<compile_context>
chip_gen: v6e
topology: v6e:2x2x1
jax: 0.10.0
libtpu: 0.0.40
codegen_flags: <defaults>
</compile_context>

<pallas_src>
import functools

import jax
import jax.numpy as jnp
from jax.experimental import pallas as pl
from jax.experimental.pallas import tpu as pltpu

# ---------------- problem sizes (small, consistent with the module) ----------
B = 2            # batch
T = 8            # sequence length
D = 16           # input_size  (X.shape[2])
H = 128          # hidden_size (512 in the original; lane-dense small stand-in)
L = 5            # num_layers
O = 1            # output_size


# ------------------------------- Pallas kernel -------------------------------
def rnn_kernel(x_ref,          # (T*B, D)  time-major flattened input (row = t*B + b)
               w_ih0_ref,      # (D, H)    layer-0 input->hidden (pre-transposed)
               w_hh0_ref,      # (H, H)    layer-0 hidden->hidden
               b0_ref,         # (1, H)    layer-0 combined bias (b_ih + b_hh)
               w_ih_ref,       # (L-1, H, H) layers 1..L-1 input->hidden
               w_hh_ref,       # (L-1, H, H) layers 1..L-1 hidden->hidden
               b_ref,          # (L-1, 1, H) layers 1..L-1 combined bias
               w_fc_ref,       # (1, H)    fc weight in PyTorch (O, H) layout
               b_fc_ref,       # (1, O)    fc bias
               out_ref):       # (B, O)    final output
    TB = x_ref.shape[0]
    hidden = w_hh0_ref.shape[0]
    n_rest = w_ih_ref.shape[0]
    n_layers = n_rest + 1
    batch = out_ref.shape[0]
    t_steps = TB // batch

    # ---- hoisted layer-0 input projection: one big matmul, off the critical
    #      recurrence path; bias folded in.  (T*B, D) @ (D, H) -> (T*B, H)
    x_proj = (jnp.dot(x_ref[...], w_ih0_ref[...],
                      preferred_element_type=jnp.float32)
              + b0_ref[...])

    # ---- wavefront over (layer, time): diagonal d covers cells (l, t=d-l).
    # frontier[l] holds the most recently computed h of layer l; at the start
    # of diagonal d it equals h[l][d-1-l], exactly what cells on diagonal d
    # need (h[l][t-1] for the hh term, h[l-1][t] for the ih term).  All state
    # stays in vregs -- no VMEM round-trip inside the recurrence.
    frontier = [jnp.zeros((batch, hidden), jnp.float32) for _ in range(n_layers)]

    for d in range(t_steps + n_layers - 1):       # 12 dependent steps
        lo = max(0, d - t_steps + 1)
        hi = min(n_layers, d + 1)
        new_vals = []                              # up to 5 independent cells
        for l in range(lo, hi):
            t = d - l
            if l == 0:
                pre = (x_proj[t * batch:(t + 1) * batch, :]
                       + jnp.dot(frontier[0], w_hh0_ref[...],
                                 preferred_element_type=jnp.float32))
            else:
                pre = (jnp.dot(frontier[l - 1], w_ih_ref[l - 1],
                               preferred_element_type=jnp.float32)
                       + jnp.dot(frontier[l], w_hh_ref[l - 1],
                                 preferred_element_type=jnp.float32)
                       + b_ref[l - 1])
            new_vals.append((l, jnp.tanh(pre)))
        for l, v in new_vals:                      # commit after the diagonal
            frontier[l] = v

    h_last = frontier[n_layers - 1]                # last layer, last timestep

    # ---- fc (single output column) on the VPU + lane reduction, then ReLU.
    logits = (jnp.sum(h_last * w_fc_ref[...], axis=-1, keepdims=True)
              + b_fc_ref[...])
    out_ref[...] = jnp.maximum(logits, 0.0)


# ------------------------------- wrapper --------------------------------------
@functools.partial(jax.jit, static_argnames=())
def simple_rnn_forward(x, w_ih0, w_hh0, b0, w_ih, w_hh, b, w_fc, b_fc):
    """x: (B, T, D) batch_first, same as the PyTorch module."""
    bsz, t_steps, d_in = x.shape
    # time-major + flatten (t, b) so the kernel's hoisted ih matmul has
    # M = T*B rows (better MXU row utilization than M = B per step).
    x2d = jnp.transpose(x, (1, 0, 2)).reshape(t_steps * bsz, d_in)
    vmem = pl.BlockSpec(memory_space=pltpu.MemorySpace.VMEM)
    out = pl.pallas_call(
        rnn_kernel,
        out_shape=jax.ShapeDtypeStruct((bsz, O), jnp.float32),
        in_specs=[vmem] * 9,
        out_specs=vmem,
    )(x2d, w_ih0, w_hh0, b0, w_ih, w_hh, b, w_fc, b_fc)
    return out


# --------------------------- pure-JAX reference --------------------------------
def reference_forward(x, w_ih0, w_hh0, b0, w_ih, w_hh, b, w_fc, b_fc):
    h_seq = x
    layers = [(w_ih0, w_hh0, b0)] + [(w_ih[l], w_hh[l], b[l]) for l in range(L - 1)]
    for (wi, wh, bb) in layers:
        h = jnp.zeros((x.shape[0], H), jnp.float32)
        outs = []
        for t in range(T):
            h = jnp.tanh(h_seq[:, t, :] @ wi + h @ wh + bb)
            outs.append(h)
        h_seq = jnp.stack(outs, axis=1)
    return jax.nn.relu(h_seq[:, -1, :] @ w_fc.T + b_fc)


# ------------------------------- main -----------------------------------------
if __name__ == "__main__":
    key = jax.random.PRNGKey(0)
    keys = jax.random.split(key, 16)
    k = 1.0 / jnp.sqrt(jnp.float32(H))  # PyTorch-style uniform(-1/sqrt(H), 1/sqrt(H))

    def u(kk, shape):
        return jax.random.uniform(kk, shape, jnp.float32, -k, k)

    # Layer 0 parameters (stored pre-transposed: (in, out))
    w_ih0 = u(keys[0], (D, H))
    w_hh0 = u(keys[1], (H, H))
    b0 = (u(keys[2], (1, H)) + u(keys[3], (1, H)))            # b_ih + b_hh

    # Layers 1..L-1 stacked (pre-transposed: (in, out))
    w_ih = u(keys[4], (L - 1, H, H))
    w_hh = u(keys[5], (L - 1, H, H))
    b = (u(keys[6], (L - 1, 1, H)) + u(keys[7], (L - 1, 1, H)))

    # Final linear layer, kept in PyTorch (O, H) layout (used on the VPU)
    w_fc = u(keys[8], (O, H))
    b_fc = u(keys[9], (1, O))

    # Input, batch_first like the PyTorch module
    x = jax.random.normal(keys[10], (B, T, D), jnp.float32)

    out = simple_rnn_forward(x, w_ih0, w_hh0, b0, w_ih, w_hh, b, w_fc, b_fc)
    out = jax.block_until_ready(out)

    ref = reference_forward(x, w_ih0, w_hh0, b0, w_ih, w_hh, b, w_fc, b_fc)
    assert out.shape == (B, O)
    assert jnp.allclose(out, ref, atol=1e-4, rtol=1e-4), (out, ref)

    print("KERNEL_OK")
</pallas_src>

<mosaic_0001>
module attributes {stable_mosaic.version = 11 : i64} {
  func.func @rnn_kernel(%arg0: memref<16x16xf32, #tpu.memory_space<vmem>>, %arg1: memref<16x128xf32, #tpu.memory_space<vmem>>, %arg2: memref<128x128xf32, #tpu.memory_space<vmem>>, %arg3: memref<1x128xf32, #tpu.memory_space<vmem>>, %arg4: memref<4x128x128xf32, #tpu.memory_space<vmem>>, %arg5: memref<4x128x128xf32, #tpu.memory_space<vmem>>, %arg6: memref<4x1x128xf32, #tpu.memory_space<vmem>>, %arg7: memref<1x128xf32, #tpu.memory_space<vmem>>, %arg8: memref<1x1xf32, #tpu.memory_space<vmem>>, %arg9: memref<2x1xf32, #tpu.memory_space<vmem>>) attributes {dimension_semantics = [], scalar_prefetch = 0 : i64, scratch_operands = 0 : i64, tpu.core_type = #tpu.core_type<tc>} {
    %c0 = arith.constant 0 : index
    %c0_0 = arith.constant 0 : index
    %0 = vector.load %arg0[%c0, %c0_0] : memref<16x16xf32, #tpu.memory_space<vmem>>, vector<16x16xf32>
    %c0_1 = arith.constant 0 : index
    %c0_2 = arith.constant 0 : index
    %1 = vector.load %arg1[%c0_1, %c0_2] : memref<16x128xf32, #tpu.memory_space<vmem>>, vector<16x128xf32>
    %cst = arith.constant dense<0.000000e+00> : vector<16x128xf32>
    %2 = tpu.matmul %0, %1, %cst {dimension_numbers = #tpu.dot_dimension_numbers<[1], [0], [0], [1], [0, 0, 1, 1], [], []>} : vector<16x16xf32>, vector<16x128xf32>, vector<16x128xf32> -> vector<16x128xf32>
    %c0_3 = arith.constant 0 : index
    %c0_4 = arith.constant 0 : index
    %3 = vector.load %arg3[%c0_3, %c0_4] : memref<1x128xf32, #tpu.memory_space<vmem>>, vector<1x128xf32>
    %4 = vector.broadcast %3 : vector<1x128xf32> to vector<16x128xf32>
    %5 = arith.addf %2, %4 : vector<16x128xf32>
    %cst_5 = arith.constant 0.000000e+00 : f32
    %6 = vector.broadcast %cst_5 : f32 to vector<2x128xf32>
    %cst_6 = arith.constant 0.000000e+00 : f32
    %7 = vector.broadcast %cst_6 : f32 to vector<2x128xf32>
    %cst_7 = arith.constant 0.000000e+00 : f32
    %8 = vector.broadcast %cst_7 : f32 to vector<2x128xf32>
    %cst_8 = arith.constant 0.000000e+00 : f32
    %9 = vector.broadcast %cst_8 : f32 to vector<2x128xf32>
    %cst_9 = arith.constant 0.000000e+00 : f32
    %10 = vector.broadcast %cst_9 : f32 to vector<2x128xf32>
    %11 = vector.extract_strided_slice %5 {offsets = [0, 0], sizes = [2, 128], strides = [1, 1]} : vector<16x128xf32> to vector<2x128xf32>
    %c0_10 = arith.constant 0 : index
    %c0_11 = arith.constant 0 : index
    %12 = vector.load %arg2[%c0_10, %c0_11] : memref<128x128xf32, #tpu.memory_space<vmem>>, vector<128x128xf32>
    %cst_12 = arith.constant dense<0.000000e+00> : vector<2x128xf32>
    %13 = tpu.matmul %6, %12, %cst_12 {dimension_numbers = #tpu.dot_dimension_numbers<[1], [0], [0], [1], [0, 0, 1, 1], [], []>} : vector<2x128xf32>, vector<128x128xf32>, vector<2x128xf32> -> vector<2x128xf32>
    %14 = arith.addf %11, %13 : vector<2x128xf32>
    %15 = math.tanh %14 : vector<2x128xf32>
    %16 = vector.extract_strided_slice %5 {offsets = [2, 0], sizes = [2, 128], strides = [1, 1]} : vector<16x128xf32> to vector<2x128xf32>
    %c0_13 = arith.constant 0 : index
    %c0_14 = arith.constant 0 : index
    %17 = vector.load %arg2[%c0_13, %c0_14] : memref<128x128xf32, #tpu.memory_space<vmem>>, vector<128x128xf32>
    %cst_15 = arith.constant dense<0.000000e+00> : vector<2x128xf32>
    %18 = tpu.matmul %15, %17, %cst_15 {dimension_numbers = #tpu.dot_dimension_numbers<[1], [0], [0], [1], [0, 0, 1, 1], [], []>} : vector<2x128xf32>, vector<128x128xf32>, vector<2x128xf32> -> vector<2x128xf32>
    %19 = arith.addf %16, %18 : vector<2x128xf32>
    %20 = math.tanh %19 : vector<2x128xf32>
    %c0_16 = arith.constant 0 : index
    %c0_17 = arith.constant 0 : index
    %c0_18 = arith.constant 0 : index
    %21 = vector.load %arg4[%c0_16, %c0_17, %c0_18] : memref<4x128x128xf32, #tpu.memory_space<vmem>>, vector<1x128x128xf32>
    %22 = vector.shape_cast %21 : vector<1x128x128xf32> to vector<128x128xf32>
    %cst_19 = arith.constant dense<0.000000e+00> : vector<2x128xf32>
    %23 = tpu.matmul %15, %22, %cst_19 {dimension_numbers = #tpu.dot_dimension_numbers<[1], [0], [0], [1], [0, 0, 1, 1], [], []>} : vector<2x128xf32>, vector<128x128xf32>, vector<2x128xf32> -> vector<2x128xf32>
    %c0_20 = arith.constant 0 : index
    %c0_21 = arith.constant 0 : index
    %c0_22 = arith.constant 0 : index
    %24 = vector.load %arg5[%c0_20, %c0_21, %c0_22] : memref<4x128x128xf32, #tpu.memory_space<vmem>>, vector<1x128x128xf32>
    %25 = vector.shape_cast %24 : vector<1x128x128xf32> to vector<128x128xf32>
    %cst_23 = arith.constant dense<0.000000e+00> : vector<2x128xf32>
    %26 = tpu.matmul %7, %25, %cst_23 {dimension_numbers = #tpu.dot_dimension_numbers<[1], [0], [0], [1], [0, 0, 1, 1], [], []>} : vector<2x128xf32>, vector<128x128xf32>, vector<2x128xf32> -> vector<2x128xf32>
    %27 = arith.addf %23, %26 : vector<2x128xf32>
    %c0_24 = arith.constant 0 : index
    %c0_25 = arith.constant 0 : index
    %c0_26 = arith.constant 0 : index
    %28 = vector.load %arg6[%c0_24, %c0_25, %c0_26] : memref<4x1x128xf32, #tpu.memory_space<vmem>>, vector<1x1x128xf32>
    %29 = vector.shape_cast %28 : vector<1x1x128xf32> to vector<1x128xf32>
    %30 = vector.broadcast %29 : vector<1x128xf32> to vector<2x128xf32>
    %31 = arith.addf %27, %30 : vector<2x128xf32>
    %32 = math.tanh %31 : vector<2x128xf32>
    %33 = vector.extract_strided_slice %5 {offsets = [4, 0], sizes = [2, 128], strides = [1, 1]} : vector<16x128xf32> to vector<2x128xf32>
    %c0_27 = arith.constant 0 : index
    %c0_28 = arith.constant 0 : index
    %34 = vector.load %arg2[%c0_27, %c0_28] : memref<128x128xf32, #tpu.memory_space<vmem>>, vector<128x128xf32>
    %cst_29 = arith.constant dense<0.000000e+00> : vector<2x128xf32>
    %35 = tpu.matmul %20, %34, %cst_29 {dimension_numbers = #tpu.dot_dimension_numbers<[1], [0], [0], [1], [0, 0, 1, 1], [], []>} : vector<2x128xf32>, vector<128x128xf32>, vector<2x128xf32> -> vector<2x128xf32>
    %36 = arith.addf %33, %35 : vector<2x128xf32>
    %37 = math.tanh %36 : vector<2x128xf32>
    %c0_30 = arith.constant 0 : index
    %c0_31 = arith.constant 0 : index
    %c0_32 = arith.constant 0 : index
    %38 = vector.load %arg4[%c0_30, %c0_31, %c0_32] : memref<4x128x128xf32, #tpu.memory_space<vmem>>, vector<1x128x128xf32>
    %39 = vector.shape_cast %38 : vector<1x128x128xf32> to vector<128x128xf32>
    %cst_33 = arith.constant dense<0.000000e+00> : vector<2x128xf32>
    %40 = tpu.matmul %20, %39, %cst_33 {dimension_numbers = #tpu.dot_dimension_numbers<[1], [0], [0], [1], [0, 0, 1, 1], [], []>} : vector<2x128xf32>, vector<128x128xf32>, vector<2x128xf32> -> vector<2x128xf32>
    %c0_34 = arith.constant 0 : index
    %c0_35 = arith.constant 0 : index
    %c0_36 = arith.constant 0 : index
    %41 = vector.load %arg5[%c0_34, %c0_35, %c0_36] : memref<4x128x128xf32, #tpu.memory_space<vmem>>, vector<1x128x128xf32>
    %42 = vector.shape_cast %41 : vector<1x128x128xf32> to vector<128x128xf32>
    %cst_37 = arith.constant dense<0.000000e+00> : vector<2x128xf32>
    %43 = tpu.matmul %32, %42, %cst_37 {dimension_numbers = #tpu.dot_dimension_numbers<[1], [0], [0], [1], [0, 0, 1, 1], [], []>} : vector<2x128xf32>, vector<128x128xf32>, vector<2x128xf32> -> vector<2x128xf32>
    %44 = arith.addf %40, %43 : vector<2x128xf32>
    %c0_38 = arith.constant 0 : index
    %c0_39 = arith.constant 0 : index
    %c0_40 = arith.constant 0 : index
    %45 = vector.load %arg6[%c0_38, %c0_39, %c0_40] : memref<4x1x128xf32, #tpu.memory_space<vmem>>, vector<1x1x128xf32>
    %46 = vector.shape_cast %45 : vector<1x1x128xf32> to vector<1x128xf32>
    %47 = vector.broadcast %46 : vector<1x128xf32> to vector<2x128xf32>
    %48 = arith.addf %44, %47 : vector<2x128xf32>
    %49 = math.tanh %48 : vector<2x128xf32>
    %c1 = arith.constant 1 : index
    %c0_41 = arith.constant 0 : index
    %c0_42 = arith.constant 0 : index
    %50 = vector.load %arg4[%c1, %c0_41, %c0_42] : memref<4x128x128xf32, #tpu.memory_space<vmem>>, vector<1x128x128xf32>
    %51 = vector.shape_cast %50 : vector<1x128x128xf32> to vector<128x128xf32>
    %cst_43 = arith.constant dense<0.000000e+00> : vector<2x128xf32>
    %52 = tpu.matmul %32, %51, %cst_43 {dimension_numbers = #tpu.dot_dimension_numbers<[1], [0], [0], [1], [0, 0, 1, 1], [], []>} : vector<2x128xf32>, vector<128x128xf32>, vector<2x128xf32> -> vector<2x128xf32>
    %c1_44 = arith.constant 1 : index
    %c0_45 = arith.constant 0 : index
    %c0_46 = arith.constant 0 : index
    %53 = vector.load %arg5[%c1_44, %c0_45, %c0_46] : memref<4x128x128xf32, #tpu.memory_space<vmem>>, vector<1x128x128xf32>
    %54 = vector.shape_cast %53 : vector<1x128x128xf32> to vector<128x128xf32>
    %cst_47 = arith.constant dense<0.000000e+00> : vector<2x128xf32>
    %55 = tpu.matmul %8, %54, %cst_47 {dimension_numbers = #tpu.dot_dimension_numbers<[1], [0], [0], [1], [0, 0, 1, 1], [], []>} : vector<2x128xf32>, vector<128x128xf32>, vector<2x128xf32> -> vector<2x128xf32>
    %56 = arith.addf %52, %55 : vector<2x128xf32>
    %c1_48 = arith.constant 1 : index
    %c0_49 = arith.constant 0 : index
    %c0_50 = arith.constant 0 : index
    %57 = vector.load %arg6[%c1_48, %c0_49, %c0_50] : memref<4x1x128xf32, #tpu.memory_space<vmem>>, vector<1x1x128xf32>
    %58 = vector.shape_cast %57 : vector<1x1x128xf32> to vector<1x128xf32>
    %59 = vector.broadcast %58 : vector<1x128xf32> to vector<2x128xf32>
    %60 = arith.addf %56, %59 : vector<2x128xf32>
    %61 = math.tanh %60 : vector<2x128xf32>
    %62 = vector.extract_strided_slice %5 {offsets = [6, 0], sizes = [2, 128], strides = [1, 1]} : vector<16x128xf32> to vector<2x128xf32>
    %c0_51 = arith.constant 0 : index
    %c0_52 = arith.constant 0 : index
    %63 = vector.load %arg2[%c0_51, %c0_52] : memref<128x128xf32, #tpu.memory_space<vmem>>, vector<128x128xf32>
    %cst_53 = arith.constant dense<0.000000e+00> : vector<2x128xf32>
    %64 = tpu.matmul %37, %63, %cst_53 {dimension_numbers = #tpu.dot_dimension_numbers<[1], [0], [0], [1], [0, 0, 1, 1], [], []>} : vector<2x128xf32>, vector<128x128xf32>, vector<2x128xf32> -> vector<2x128xf32>
    %65 = arith.addf %62, %64 : vector<2x128xf32>
    %66 = math.tanh %65 : vector<2x128xf32>
    %c0_54 = arith.constant 0 : index
    %c0_55 = arith.constant 0 : index
    %c0_56 = arith.constant 0 : index
    %67 = vector.load %arg4[%c0_54, %c0_55, %c0_56] : memref<4x128x128xf32, #tpu.memory_space<vmem>>, vector<1x128x128xf32>
    %68 = vector.shape_cast %67 : vector<1x128x128xf32> to vector<128x128xf32>
    %cst_57 = arith.constant dense<0.000000e+00> : vector<2x128xf32>
    %69 = tpu.matmul %37, %68, %cst_57 {dimension_numbers = #tpu.dot_dimension_numbers<[1], [0], [0], [1], [0, 0, 1, 1], [], []>} : vector<2x128xf32>, vector<128x128xf32>, vector<2x128xf32> -> vector<2x128xf32>
    %c0_58 = arith.constant 0 : index
    %c0_59 = arith.constant 0 : index
    %c0_60 = arith.constant 0 : index
    %70 = vector.load %arg5[%c0_58, %c0_59, %c0_60] : memref<4x128x128xf32, #tpu.memory_space<vmem>>, vector<1x128x128xf32>
    %71 = vector.shape_cast %70 : vector<1x128x128xf32> to vector<128x128xf32>
    %cst_61 = arith.constant dense<0.000000e+00> : vector<2x128xf32>
    %72 = tpu.matmul %49, %71, %cst_61 {dimension_numbers = #tpu.dot_dimension_numbers<[1], [0], [0], [1], [0, 0, 1, 1], [], []>} : vector<2x128xf32>, vector<128x128xf32>, vector<2x128xf32> -> vector<2x128xf32>
    %73 = arith.addf %69, %72 : vector<2x128xf32>
    %c0_62 = arith.constant 0 : index
    %c0_63 = arith.constant 0 : index
    %c0_64 = arith.constant 0 : index
    %74 = vector.load %arg6[%c0_62, %c0_63, %c0_64] : memref<4x1x128xf32, #tpu.memory_space<vmem>>, vector<1x1x128xf32>
    %75 = vector.shape_cast %74 : vector<1x1x128xf32> to vector<1x128xf32>
    %76 = vector.broadcast %75 : vector<1x128xf32> to vector<2x128xf32>
    %77 = arith.addf %73, %76 : vector<2x128xf32>
    %78 = math.tanh %77 : vector<2x128xf32>
    %c1_65 = arith.constant 1 : index
    %c0_66 = arith.constant 0 : index
    %c0_67 = arith.constant 0 : index
    %79 = vector.load %arg4[%c1_65, %c0_66, %c0_67] : memref<4x128x128xf32, #tpu.memory_space<vmem>>, vector<1x128x128xf32>
    %80 = vector.shape_cast %79 : vector<1x128x128xf32> to vector<128x128xf32>
    %cst_68 = arith.constant dense<0.000000e+00> : vector<2x128xf32>
    %81 = tpu.matmul %49, %80, %cst_68 {dimension_numbers = #tpu.dot_dimension_numbers<[1], [0], [0], [1], [0, 0, 1, 1], [], []>} : vector<2x128xf32>, vector<128x128xf32>, vector<2x128xf32> -> vector<2x128xf32>
    %c1_69 = arith.constant 1 : index
    %c0_70 = arith.constant 0 : index
    %c0_71 = arith.constant 0 : index
    %82 = vector.load %arg5[%c1_69, %c0_70, %c0_71] : memref<4x128x128xf32, #tpu.memory_space<vmem>>, vector<1x128x128xf32>
    %83 = vector.shape_cast %82 : vector<1x128x128xf32> to vector<128x128xf32>
    %cst_72 = arith.constant dense<0.000000e+00> : vector<2x128xf32>
    %84 = tpu.matmul %61, %83, %cst_72 {dimension_numbers = #tpu.dot_dimension_numbers<[1], [0], [0], [1], [0, 0, 1, 1], [], []>} : vector<2x128xf32>, vector<128x128xf32>, vector<2x128xf32> -> vector<2x128xf32>
    %85 = arith.addf %81, %84 : vector<2x128xf32>
    %c1_73 = arith.constant 1 : index
    %c0_74 = arith.constant 0 : index
    %c0_75 = arith.constant 0 : index
    %86 = vector.load %arg6[%c1_73, %c0_74, %c0_75] : memref<4x1x128xf32, #tpu.memory_space<vmem>>, vector<1x1x128xf32>
    %87 = vector.shape_cast %86 : vector<1x1x128xf32> to vector<1x128xf32>
    %88 = vector.broadcast %87 : vector<1x128xf32> to vector<2x128xf32>
    %89 = arith.addf %85, %88 : vector<2x128xf32>
    %90 = math.tanh %89 : vector<2x128xf32>
    %c2 = arith.constant 2 : index
    %c0_76 = arith.constant 0 : index
    %c0_77 = arith.constant 0 : index
    %91 = vector.load %arg4[%c2, %c0_76, %c0_77] : memref<4x128x128xf32, #tpu.memory_space<vmem>>, vector<1x128x128xf32>
    %92 = vector.shape_cast %91 : vector<1x128x128xf32> to vector<128x128xf32>
    %cst_78 = arith.constant dense<0.000000e+00> : vector<2x128xf32>
    %93 = tpu.matmul %61, %92, %cst_78 {dimension_numbers = #tpu.dot_dimension_numbers<[1], [0], [0], [1], [0, 0, 1, 1], [], []>} : vector<2x128xf32>, vector<128x128xf32>, vector<2x128xf32> -> vector<2x128xf32>
    %c2_79 = arith.constant 2 : index
    %c0_80 = arith.constant 0 : index
    %c0_81 = arith.constant 0 : index
    %94 = vector.load %arg5[%c2_79, %c0_80, %c0_81] : memref<4x128x128xf32, #tpu.memory_space<vmem>>, vector<1x128x128xf32>
    %95 = vector.shape_cast %94 : vector<1x128x128xf32> to vector<128x128xf32>
    %cst_82 = arith.constant dense<0.000000e+00> : vector<2x128xf32>
    %96 = tpu.matmul %9, %95, %cst_82 {dimension_numbers = #tpu.dot_dimension_numbers<[1], [0], [0], [1], [0, 0, 1, 1], [], []>} : vector<2x128xf32>, vector<128x128xf32>, vector<2x128xf32> -> vector<2x128xf32>
    %97 = arith.addf %93, %96 : vector<2x128xf32>
    %c2_83 = arith.constant 2 : index
    %c0_84 = arith.constant 0 : index
    %c0_85 = arith.constant 0 : index
    %98 = vector.load %arg6[%c2_83, %c0_84, %c0_85] : memref<4x1x128xf32, #tpu.memory_space<vmem>>, vector<1x1x128xf32>
    %99 = vector.shape_cast %98 : vector<1x1x128xf32> to vector<1x128xf32>
    %100 = vector.broadcast %99 : vector<1x128xf32> to vector<2x128xf32>
    %101 = arith.addf %97, %100 : vector<2x128xf32>
    %102 = math.tanh %101 : vector<2x128xf32>
    %103 = vector.extract_strided_slice %5 {offsets = [8, 0], sizes = [2, 128], strides = [1, 1]} : vector<16x128xf32> to vector<2x128xf32>
    %c0_86 = arith.constant 0 : index
    %c0_87 = arith.constant 0 : index
    %104 = vector.load %arg2[%c0_86, %c0_87] : memref<128x128xf32, #tpu.memory_space<vmem>>, vector<128x128xf32>
    %cst_88 = arith.constant dense<0.000000e+00> : vector<2x128xf32>
    %105 = tpu.matmul %66, %104, %cst_88 {dimension_numbers = #tpu.dot_dimension_numbers<[1], [0], [0], [1], [0, 0, 1, 1], [], []>} : vector<2x128xf32>, vector<128x128xf32>, vector<2x128xf32> -> vector<2x128xf32>
    %106 = arith.addf %103, %105 : vector<2x128xf32>
    %107 = math.tanh %106 : vector<2x128xf32>
    %c0_89 = arith.constant 0 : index
    %c0_90 = arith.constant 0 : index
    %c0_91 = arith.constant 0 : index
    %108 = vector.load %arg4[%c0_89, %c0_90, %c0_91] : memref<4x128x128xf32, #tpu.memory_space<vmem>>, vector<1x128x128xf32>
    %109 = vector.shape_cast %108 : vector<1x128x128xf32> to vector<128x128xf32>
    %cst_92 = arith.constant dense<0.000000e+00> : vector<2x128xf32>
    %110 = tpu.matmul %66, %109, %cst_92 {dimension_numbers = #tpu.dot_dimension_numbers<[1], [0], [0], [1], [0, 0, 1, 1], [], []>} : vector<2x128xf32>, vector<128x128xf32>, vector<2x128xf32> -> vector<2x128xf32>
    %c0_93 = arith.constant 0 : index
    %c0_94 = arith.constant 0 : index
    %c0_95 = arith.constant 0 : index
    %111 = vector.load %arg5[%c0_93, %c0_94, %c0_95] : memref<4x128x128xf32, #tpu.memory_space<vmem>>, vector<1x128x128xf32>
    %112 = vector.shape_cast %111 : vector<1x128x128xf32> to vector<128x128xf32>
    %cst_96 = arith.constant dense<0.000000e+00> : vector<2x128xf32>
    %113 = tpu.matmul %78, %112, %cst_96 {dimension_numbers = #tpu.dot_dimension_numbers<[1], [0], [0], [1], [0, 0, 1, 1], [], []>} : vector<2x128xf32>, vector<128x128xf32>, vector<2x128xf32> -> vector<2x128xf32>
    %114 = arith.addf %110, %113 : vector<2x128xf32>
    %c0_97 = arith.constant 0 : index
    %c0_98 = arith.constant 0 : index
    %c0_99 = arith.constant 0 : index
    %115 = vector.load %arg6[%c0_97, %c0_98, %c0_99] : memref<4x1x128xf32, #tpu.memory_space<vmem>>, vector<1x1x128xf32>
    %116 = vector.shape_cast %115 : vector<1x1x128xf32> to vector<1x128xf32>
    %117 = vector.broadcast %116 : vector<1x128xf32> to vector<2x128xf32>
    %118 = arith.addf %114, %117 : vector<2x128xf32>
    %119 = math.tanh %118 : vector<2x128xf32>
    %c1_100 = arith.constant 1 : index
    %c0_101 = arith.constant 0 : index
    %c0_102 = arith.constant 0 : index
    %120 = vector.load %arg4[%c1_100, %c0_101, %c0_102] : memref<4x128x128xf32, #tpu.memory_space<vmem>>, vector<1x128x128xf32>
    %121 = vector.shape_cast %120 : vector<1x128x128xf32> to vector<128x128xf32>
    %cst_103 = arith.constant dense<0.000000e+00> : vector<2x128xf32>
    %122 = tpu.matmul %78, %121, %cst_103 {dimension_numbers = #tpu.dot_dimension_numbers<[1], [0], [0], [1], [0, 0, 1, 1], [], []>} : vector<2x128xf32>, vector<128x128xf32>, vector<2x128xf32> -> vector<2x128xf32>
    %c1_104 = arith.constant 1 : index
    %c0_105 = arith.constant 0 : index
    %c0_106 = arith.constant 0 : index
    %123 = vector.load %arg5[%c1_104, %c0_105, %c0_106] : memref<4x128x128xf32, #tpu.memory_space<vmem>>, vector<1x128x128xf32>
    %124 = vector.shape_cast %123 : vector<1x128x128xf32> to vector<128x128xf32>
    %cst_107 = arith.constant dense<0.000000e+00> : vector<2x128xf32>
    %125 = tpu.matmul %90, %124, %cst_107 {dimension_numbers = #tpu.dot_dimension_numbers<[1], [0], [0], [1], [0, 0, 1, 1], [], []>} : vector<2x128xf32>, vector<128x128xf32>, vector<2x128xf32> -> vector<2x128xf32>
    %126 = arith.addf %122, %125 : vector<2x128xf32>
    %c1_108 = arith.constant 1 : index
    %c0_109 = arith.constant 0 : index
    %c0_110 = arith.constant 0 : index
    %127 = vector.load %arg6[%c1_108, %c0_109, %c0_110] : memref<4x1x128xf32, #tpu.memory_space<vmem>>, vector<1x1x128xf32>
    %128 = vector.shape_cast %127 : vector<1x1x128xf32> to vector<1x128xf32>
    %129 = vector.broadcast %128 : vector<1x128xf32> to vector<2x128xf32>
    %130 = arith.addf %126, %129 : vector<2x128xf32>
    %131 = math.tanh %130 : vector<2x128xf32>
    %c2_111 = arith.constant 2 : index
    %c0_112 = arith.constant 0 : index
    %c0_113 = arith.constant 0 : index
    %132 = vector.load %arg4[%c2_111, %c0_112, %c0_113] : memref<4x128x128xf32, #tpu.memory_space<vmem>>, vector<1x128x128xf32>
    %133 = vector.shape_cast %132 : vector<1x128x128xf32> to vector<128x128xf32>
    %cst_114 = arith.constant dense<0.000000e+00> : vector<2x128xf32>
    %134 = tpu.matmul %90, %133, %cst_114 {dimension_numbers = #tpu.dot_dimension_numbers<[1], [0], [0], [1], [0, 0, 1, 1], [], []>} : vector<2x128xf32>, vector<128x128xf32>, vector<2x128xf32> -> vector<2x128xf32>
    %c2_115 = arith.constant 2 : index
    %c0_116 = arith.constant 0 : index
    %c0_117 = arith.constant 0 : index
    %135 = vector.load %arg5[%c2_115, %c0_116, %c0_117] : memref<4x128x128xf32, #tpu.memory_space<vmem>>, vector<1x128x128xf32>
    %136 = vector.shape_cast %135 : vector<1x128x128xf32> to vector<128x128xf32>
    %cst_118 = arith.constant dense<0.000000e+00> : vector<2x128xf32>
    %137 = tpu.matmul %102, %136, %cst_118 {dimension_numbers = #tpu.dot_dimension_numbers<[1], [0], [0], [1], [0, 0, 1, 1], [], []>} : vector<2x128xf32>, vector<128x128xf32>, vector<2x128xf32> -> vector<2x128xf32>
    %138 = arith.addf %134, %137 : vector<2x128xf32>
    %c2_119 = arith.constant 2 : index
    %c0_120 = arith.constant 0 : index
    %c0_121 = arith.constant 0 : index
    %139 = vector.load %arg6[%c2_119, %c0_120, %c0_121] : memref<4x1x128xf32, #tpu.memory_space<vmem>>, vector<1x1x128xf32>
    %140 = vector.shape_cast %139 : vector<1x1x128xf32> to vector<1x128xf32>
    %141 = vector.broadcast %140 : vector<1x128xf32> to vector<2x128xf32>
    %142 = arith.addf %138, %141 : vector<2x128xf32>
    %143 = math.tanh %142 : vector<2x128xf32>
    %c3 = arith.constant 3 : index
    %c0_122 = arith.constant 0 : index
    %c0_123 = arith.constant 0 : index
    %144 = vector.load %arg4[%c3, %c0_122, %c0_123] : memref<4x128x128xf32, #tpu.memory_space<vmem>>, vector<1x128x128xf32>
    %145 = vector.shape_cast %144 : vector<1x128x128xf32> to vector<128x128xf32>
    %cst_124 = arith.constant dense<0.000000e+00> : vector<2x128xf32>
    %146 = tpu.matmul %102, %145, %cst_124 {dimension_numbers = #tpu.dot_dimension_numbers<[1], [0], [0], [1], [0, 0, 1, 1], [], []>} : vector<2x128xf32>, vector<128x128xf32>, vector<2x128xf32> -> vector<2x128xf32>
    %c3_125 = arith.constant 3 : index
    %c0_126 = arith.constant 0 : index
    %c0_127 = arith.constant 0 : index
    %147 = vector.load %arg5[%c3_125, %c0_126, %c0_127] : memref<4x128x128xf32, #tpu.memory_space<vmem>>, vector<1x128x128xf32>
    %148 = vector.shape_cast %147 : vector<1x128x128xf32> to vector<128x128xf32>
    %cst_128 = arith.constant dense<0.000000e+00> : vector<2x128xf32>
    %149 = tpu.matmul %10, %148, %cst_128 {dimension_numbers = #tpu.dot_dimension_numbers<[1], [0], [0], [1], [0, 0, 1, 1], [], []>} : vector<2x128xf32>, vector<128x128xf32>, vector<2x128xf32> -> vector<2x128xf32>
    %150 = arith.addf %146, %149 : vector<2x128xf32>
    %c3_129 = arith.constant 3 : index
    %c0_130 = arith.constant 0 : index
    %c0_131 = arith.constant 0 : index
    %151 = vector.load %arg6[%c3_129, %c0_130, %c0_131] : memref<4x1x128xf32, #tpu.memory_space<vmem>>, vector<1x1x128xf32>
    %152 = vector.shape_cast %151 : vector<1x1x128xf32> to vector<1x128xf32>
    %153 = vector.broadcast %152 : vector<1x128xf32> to vector<2x128xf32>
    %154 = arith.addf %150, %153 : vector<2x128xf32>
    %155 = math.tanh %154 : vector<2x128xf32>
    %156 = vector.extract_strided_slice %5 {offsets = [10, 0], sizes = [2, 128], strides = [1, 1]} : vector<16x128xf32> to vector<2x128xf32>
    %c0_132 = arith.constant 0 : index
    %c0_133 = arith.constant 0 : index
    %157 = vector.load %arg2[%c0_132, %c0_133] : memref<128x128xf32, #tpu.memory_space<vmem>>, vector<128x128xf32>
    %cst_134 = arith.constant dense<0.000000e+00> : vector<2x128xf32>
    %158 = tpu.matmul %107, %157, %cst_134 {dimension_numbers = #tpu.dot_dimension_numbers<[1], [0], [0], [1], [0, 0, 1, 1], [], []>} : vector<2x128xf32>, vector<128x128xf32>, vector<2x128xf32> -> vector<2x128xf32>
    %159 = arith.addf %156, %158 : vector<2x128xf32>
    %160 = math.tanh %159 : vector<2x128xf32>
    %c0_135 = arith.constant 0 : index
    %c0_136 = arith.constant 0 : index
    %c0_137 = arith.constant 0 : index
    %161 = vector.load %arg4[%c0_135, %c0_136, %c0_137] : memref<4x128x128xf32, #tpu.memory_space<vmem>>, vector<1x128x128xf32>
    %162 = vector.shape_cast %161 : vector<1x128x128xf32> to vector<128x128xf32>
    %cst_138 = arith.constant dense<0.000000e+00> : vector<2x128xf32>
    %163 = tpu.matmul %107, %162, %cst_138 {dimension_numbers = #tpu.dot_dimension_numbers<[1], [0], [0], [1], [0, 0, 1, 1], [], []>} : vector<2x128xf32>, vector<128x128xf32>, vector<2x128xf32> -> vector<2x128xf32>
    %c0_139 = arith.constant 0 : index
    %c0_140 = arith.constant 0 : index
    %c0_141 = arith.constant 0 : index
    %164 = vector.load %arg5[%c0_139, %c0_140, %c0_141] : memref<4x128x128xf32, #tpu.memory_space<vmem>>, vector<1x128x128xf32>
    %165 = vector.shape_cast %164 : vector<1x128x128xf32> to vector<128x128xf32>
    %cst_142 = arith.constant dense<0.000000e+00> : vector<2x128xf32>
    %166 = tpu.matmul %119, %165, %cst_142 {dimension_numbers = #tpu.dot_dimension_numbers<[1], [0], [0], [1], [0, 0, 1, 1], [], []>} : vector<2x128xf32>, vector<128x128xf32>, vector<2x128xf32> -> vector<2x128xf32>
    %167 = arith.addf %163, %166 : vector<2x128xf32>
    %c0_143 = arith.constant 0 : index
    %c0_144 = arith.constant 0 : index
    %c0_145 = arith.constant 0 : index
    %168 = vector.load %arg6[%c0_143, %c0_144, %c0_145] : memref<4x1x128xf32, #tpu.memory_space<vmem>>, vector<1x1x128xf32>
    %169 = vector.shape_cast %168 : vector<1x1x128xf32> to vector<1x128xf32>
    %170 = vector.broadcast %169 : vector<1x128xf32> to vector<2x128xf32>
    %171 = arith.addf %167, %170 : vector<2x128xf32>
    %172 = math.tanh %171 : vector<2x128xf32>
    %c1_146 = arith.constant 1 : index
    %c0_147 = arith.constant 0 : index
    %c0_148 = arith.constant 0 : index
    %173 = vector.load %arg4[%c1_146, %c0_147, %c0_148] : memref<4x128x128xf32, #tpu.memory_space<vmem>>, vector<1x128x128xf32>
    %174 = vector.shape_cast %173 : vector<1x128x128xf32> to vector<128x128xf32>
    %cst_149 = arith.constant dense<0.000000e+00> : vector<2x128xf32>
    %175 = tpu.matmul %119, %174, %cst_149 {dimension_numbers = #tpu.dot_dimension_numbers<[1], [0], [0], [1], [0, 0, 1, 1], [], []>} : vector<2x128xf32>, vector<128x128xf32>, vector<2x128xf32> -> vector<2x128xf32>
    %c1_150 = arith.constant 1 : index
    %c0_151 = arith.constant 0 : index
    %c0_152 = arith.constant 0 : index
    %176 = vector.load %arg5[%c1_150, %c0_151, %c0_152] : memref<4x128x128xf32, #tpu.memory_space<vmem>>, vector<1x128x128xf32>
    %177 = vector.shape_cast %176 : vector<1x128x128xf32> to vector<128x128xf32>
    %cst_153 = arith.constant dense<0.000000e+00> : vector<2x128xf32>
    %178 = tpu.matmul %131, %177, %cst_153 {dimension_numbers = #tpu.dot_dimension_numbers<[1], [0], [0], [1], [0, 0, 1, 1], [], []>} : vector<2x128xf32>, vector<128x128xf32>, vector<2x128xf32> -> vector<2x128xf32>
    %179 = arith.addf %175, %178 : vector<2x128xf32>
    %c1_154 = arith.constant 1 : index
    %c0_155 = arith.constant 0 : index
    %c0_156 = arith.constant 0 : index
    %180 = vector.load %arg6[%c1_154, %c0_155, %c0_156] : memref<4x1x128xf32, #tpu.memory_space<vmem>>, vector<1x1x128xf32>
    %181 = vector.shape_cast %180 : vector<1x1x128xf32> to vector<1x128xf32>
    %182 = vector.broadcast %181 : vector<1x128xf32> to vector<2x128xf32>
    %183 = arith.addf %179, %182 : vector<2x128xf32>
    %184 = math.tanh %183 : vector<2x128xf32>
    %c2_157 = arith.constant 2 : index
    %c0_158 = arith.constant 0 : index
    %c0_159 = arith.constant 0 : index
    %185 = vector.load %arg4[%c2_157, %c0_158, %c0_159] : memref<4x128x128xf32, #tpu.memory_space<vmem>>, vector<1x128x128xf32>
    %186 = vector.shape_cast %185 : vector<1x128x128xf32> to vector<128x128xf32>
    %cst_160 = arith.constant dense<0.000000e+00> : vector<2x128xf32>
    %187 = tpu.matmul %131, %186, %cst_160 {dimension_numbers = #tpu.dot_dimension_numbers<[1], [0], [0], [1], [0, 0, 1, 1], [], []>} : vector<2x128xf32>, vector<128x128xf32>, vector<2x128xf32> -> vector<2x128xf32>
    %c2_161 = arith.constant 2 : index
    %c0_162 = arith.constant 0 : index
    %c0_163 = arith.constant 0 : index
    %188 = vector.load %arg5[%c2_161, %c0_162, %c0_163] : memref<4x128x128xf32, #tpu.memory_space<vmem>>, vector<1x128x128xf32>
    %189 = vector.shape_cast %188 : vector<1x128x128xf32> to vector<128x128xf32>
    %cst_164 = arith.constant dense<0.000000e+00> : vector<2x128xf32>
    %190 = tpu.matmul %143, %189, %cst_164 {dimension_numbers = #tpu.dot_dimension_numbers<[1], [0], [0], [1], [0, 0, 1, 1], [], []>} : vector<2x128xf32>, vector<128x128xf32>, vector<2x128xf32> -> vector<2x128xf32>
    %191 = arith.addf %187, %190 : vector<2x128xf32>
    %c2_165 = arith.constant 2 : index
    %c0_166 = arith.constant 0 : index
    %c0_167 = arith.constant 0 : index
    %192 = vector.load %arg6[%c2_165, %c0_166, %c0_167] : memref<4x1x128xf32, #tpu.memory_space<vmem>>, vector<1x1x128xf32>
    %193 = vector.shape_cast %192 : vector<1x1x128xf32> to vector<1x128xf32>
    %194 = vector.broadcast %193 : vector<1x128xf32> to vector<2x128xf32>
    %195 = arith.addf %191, %194 : vector<2x128xf32>
    %196 = math.tanh %195 : vector<2x128xf32>
    %c3_168 = arith.constant 3 : index
    %c0_169 = arith.constant 0 : index
    %c0_170 = arith.constant 0 : index
    %197 = vector.load %arg4[%c3_168, %c0_169, %c0_170] : memref<4x128x128xf32, #tpu.memory_space<vmem>>, vector<1x128x128xf32>
    %198 = vector.shape_cast %197 : vector<1x128x128xf32> to vector<128x128xf32>
    %cst_171 = arith.constant dense<0.000000e+00> : vector<2x128xf32>
    %199 = tpu.matmul %143, %198, %cst_171 {dimension_numbers = #tpu.dot_dimension_numbers<[1], [0], [0], [1], [0, 0, 1, 1], [], []>} : vector<2x128xf32>, vector<128x128xf32>, vector<2x128xf32> -> vector<2x128xf32>
    %c3_172 = arith.constant 3 : index
    %c0_173 = arith.constant 0 : index
    %c0_174 = arith.constant 0 : index
    %200 = vector.load %arg5[%c3_172, %c0_173, %c0_174] : memref<4x128x128xf32, #tpu.memory_space<vmem>>, vector<1x128x128xf32>
    %201 = vector.shape_cast %200 : vector<1x128x128xf32> to vector<128x128xf32>
    %cst_175 = arith.constant dense<0.000000e+00> : vector<2x128xf32>
    %202 = tpu.matmul %155, %201, %cst_175 {dimension_numbers = #tpu.dot_dimension_numbers<[1], [0], [0], [1], [0, 0, 1, 1], [], []>} : vector<2x128xf32>, vector<128x128xf32>, vector<2x128xf32> -> vector<2x128xf32>
    %203 = arith.addf %199, %202 : vector<2x128xf32>
    %c3_176 = arith.constant 3 : index
    %c0_177 = arith.constant 0 : index
    %c0_178 = arith.constant 0 : index
    %204 = vector.load %arg6[%c3_176, %c0_177, %c0_178] : memref<4x1x128xf32, #tpu.memory_space<vmem>>, vector<1x1x128xf32>
    %205 = vector.shape_cast %204 : vector<1x1x128xf32> to vector<1x128xf32>
    %206 = vector.broadcast %205 : vector<1x128xf32> to vector<2x128xf32>
    %207 = arith.addf %203, %206 : vector<2x128xf32>
    %208 = math.tanh %207 : vector<2x128xf32>
    %209 = vector.extract_strided_slice %5 {offsets = [12, 0], sizes = [2, 128], strides = [1, 1]} : vector<16x128xf32> to vector<2x128xf32>
    %c0_179 = arith.constant 0 : index
    %c0_180 = arith.constant 0 : index
    %210 = vector.load %arg2[%c0_179, %c0_180] : memref<128x128xf32, #tpu.memory_space<vmem>>, vector<128x128xf32>
    %cst_181 = arith.constant dense<0.000000e+00> : vector<2x128xf32>
    %211 = tpu.matmul %160, %210, %cst_181 {dimension_numbers = #tpu.dot_dimension_numbers<[1], [0], [0], [1], [0, 0, 1, 1], [], []>} : vector<2x128xf32>, vector<128x128xf32>, vector<2x128xf32> -> vector<2x128xf32>
    %212 = arith.addf %209, %211 : vector<2x128xf32>
    %213 = math.tanh %212 : vector<2x128xf32>
    %c0_182 = arith.constant 0 : index
    %c0_183 = arith.constant 0 : index
    %c0_184 = arith.constant 0 : index
    %214 = vector.load %arg4[%c0_182, %c0_183, %c0_184] : memref<4x128x128xf32, #tpu.memory_space<vmem>>, vector<1x128x128xf32>
    %215 = vector.shape_cast %214 : vector<1x128x128xf32> to vector<128x128xf32>
    %cst_185 = arith.constant dense<0.000000e+00> : vector<2x128xf32>
    %216 = tpu.matmul %160, %215, %cst_185 {dimension_numbers = #tpu.dot_dimension_numbers<[1], [0], [0], [1], [0, 0, 1, 1], [], []>} : vector<2x128xf32>, vector<128x128xf32>, vector<2x128xf32> -> vector<2x128xf32>
    %c0_186 = arith.constant 0 : index
    %c0_187 = arith.constant 0 : index
    %c0_188 = arith.constant 0 : index
    %217 = vector.load %arg5[%c0_186, %c0_187, %c0_188] : memref<4x128x128xf32, #tpu.memory_space<vmem>>, vector<1x128x128xf32>
    %218 = vector.shape_cast %217 : vector<1x128x128xf32> to vector<128x128xf32>
    %cst_189 = arith.constant dense<0.000000e+00> : vector<2x128xf32>
    %219 = tpu.matmul %172, %218, %cst_189 {dimension_numbers = #tpu.dot_dimension_numbers<[1], [0], [0], [1], [0, 0, 1, 1], [], []>} : vector<2x128xf32>, vector<128x128xf32>, vector<2x128xf32> -> vector<2x128xf32>
    %220 = arith.addf %216, %219 : vector<2x128xf32>
    %c0_190 = arith.constant 0 : index
    %c0_191 = arith.constant 0 : index
    %c0_192 = arith.constant 0 : index
    %221 = vector.load %arg6[%c0_190, %c0_191, %c0_192] : memref<4x1x128xf32, #tpu.memory_space<vmem>>, vector<1x1x128xf32>
    %222 = vector.shape_cast %221 : vector<1x1x128xf32> to vector<1x128xf32>
    %223 = vector.broadcast %222 : vector<1x128xf32> to vector<2x128xf32>
    %224 = arith.addf %220, %223 : vector<2x128xf32>
    %225 = math.tanh %224 : vector<2x128xf32>
    %c1_193 = arith.constant 1 : index
    %c0_194 = arith.constant 0 : index
    %c0_195 = arith.constant 0 : index
    %226 = vector.load %arg4[%c1_193, %c0_194, %c0_195] : memref<4x128x128xf32, #tpu.memory_space<vmem>>, vector<1x128x128xf32>
    %227 = vector.shape_cast %226 : vector<1x128x128xf32> to vector<128x128xf32>
    %cst_196 = arith.constant dense<0.000000e+00> : vector<2x128xf32>
    %228 = tpu.matmul %172, %227, %cst_196 {dimension_numbers = #tpu.dot_dimension_numbers<[1], [0], [0], [1], [0, 0, 1, 1], [], []>} : vector<2x128xf32>, vector<128x128xf32>, vector<2x128xf32> -> vector<2x128xf32>
    %c1_197 = arith.constant 1 : index
    %c0_198 = arith.constant 0 : index
    %c0_199 = arith.constant 0 : index
    %229 = vector.load %arg5[%c1_197, %c0_198, %c0_199] : memref<4x128x128xf32, #tpu.memory_space<vmem>>, vector<1x128x128xf32>
    %230 = vector.shape_cast %229 : vector<1x128x128xf32> to vector<128x128xf32>
    %cst_200 = arith.constant dense<0.000000e+00> : vector<2x128xf32>
    %231 = tpu.matmul %184, %230, %cst_200 {dimension_numbers = #tpu.dot_dimension_numbers<[1], [0], [0], [1], [0, 0, 1, 1], [], []>} : vector<2x128xf32>, vector<128x128xf32>, vector<2x128xf32> -> vector<2x128xf32>
    %232 = arith.addf %228, %231 : vector<2x128xf32>
    %c1_201 = arith.constant 1 : index
    %c0_202 = arith.constant 0 : index
    %c0_203 = arith.constant 0 : index
    %233 = vector.load %arg6[%c1_201, %c0_202, %c0_203] : memref<4x1x128xf32, #tpu.memory_space<vmem>>, vector<1x1x128xf32>
    %234 = vector.shape_cast %233 : vector<1x1x128xf32> to vector<1x128xf32>
    %235 = vector.broadcast %234 : vector<1x128xf32> to vector<2x128xf32>
    %236 = arith.addf %232, %235 : vector<2x128xf32>
    %237 = math.tanh %236 : vector<2x128xf32>
    %c2_204 = arith.constant 2 : index
    %c0_205 = arith.constant 0 : index
    %c0_206 = arith.constant 0 : index
    %238 = vector.load %arg4[%c2_204, %c0_205, %c0_206] : memref<4x128x128xf32, #tpu.memory_space<vmem>>, vector<1x128x128xf32>
    %239 = vector.shape_cast %238 : vector<1x128x128xf32> to vector<128x128xf32>
    %cst_207 = arith.constant dense<0.000000e+00> : vector<2x128xf32>
    %240 = tpu.matmul %184, %239, %cst_207 {dimension_numbers = #tpu.dot_dimension_numbers<[1], [0], [0], [1], [0, 0, 1, 1], [], []>} : vector<2x128xf32>, vector<128x128xf32>, vector<2x128xf32> -> vector<2x128xf32>
    %c2_208 = arith.constant 2 : index
    %c0_209 = arith.constant 0 : index
    %c0_210 = arith.constant 0 : index
    %241 = vector.load %arg5[%c2_208, %c0_209, %c0_210] : memref<4x128x128xf32, #tpu.memory_space<vmem>>, vector<1x128x128xf32>
    %242 = vector.shape_cast %241 : vector<1x128x128xf32> to vector<128x128xf32>
    %cst_211 = arith.constant dense<0.000000e+00> : vector<2x128xf32>
    %243 = tpu.matmul %196, %242, %cst_211 {dimension_numbers = #tpu.dot_dimension_numbers<[1], [0], [0], [1], [0, 0, 1, 1], [], []>} : vector<2x128xf32>, vector<128x128xf32>, vector<2x128xf32> -> vector<2x128xf32>
    %244 = arith.addf %240, %243 : vector<2x128xf32>
    %c2_212 = arith.constant 2 : index
    %c0_213 = arith.constant 0 : index
    %c0_214 = arith.constant 0 : index
    %245 = vector.load %arg6[%c2_212, %c0_213, %c0_214] : memref<4x1x128xf32, #tpu.memory_space<vmem>>, vector<1x1x128xf32>
    %246 = vector.shape_cast %245 : vector<1x1x128xf32> to vector<1x128xf32>
    %247 = vector.broadcast %246 : vector<1x128xf32> to vector<2x128xf32>
    %248 = arith.addf %244, %247 : vector<2x128xf32>
    %249 = math.tanh %248 : vector<2x128xf32>
    %c3_215 = arith.constant 3 : index
    %c0_216 = arith.constant 0 : index
    %c0_217 = arith.constant 0 : index
    %250 = vector.load %arg4[%c3_215, %c0_216, %c0_217] : memref<4x128x128xf32, #tpu.memory_space<vmem>>, vector<1x128x128xf32>
    %251 = vector.shape_cast %250 : vector<1x128x128xf32> to vector<128x128xf32>
    %cst_218 = arith.constant dense<0.000000e+00> : vector<2x128xf32>
    %252 = tpu.matmul %196, %251, %cst_218 {dimension_numbers = #tpu.dot_dimension_numbers<[1], [0], [0], [1], [0, 0, 1, 1], [], []>} : vector<2x128xf32>, vector<128x128xf32>, vector<2x128xf32> -> vector<2x128xf32>
    %c3_219 = arith.constant 3 : index
    %c0_220 = arith.constant 0 : index
    %c0_221 = arith.constant 0 : index
    %253 = vector.load %arg5[%c3_219, %c0_220, %c0_221] : memref<4x128x128xf32, #tpu.memory_space<vmem>>, vector<1x128x128xf32>
    %254 = vector.shape_cast %253 : vector<1x128x128xf32> to vector<128x128xf32>
    %cst_222 = arith.constant dense<0.000000e+00> : vector<2x128xf32>
    %255 = tpu.matmul %208, %254, %cst_222 {dimension_numbers = #tpu.dot_dimension_numbers<[1], [0], [0], [1], [0, 0, 1, 1], [], []>} : vector<2x128xf32>, vector<128x128xf32>, vector<2x128xf32> -> vector<2x128xf32>
    %256 = arith.addf %252, %255 : vector<2x128xf32>
    %c3_223 = arith.constant 3 : index
    %c0_224 = arith.constant 0 : index
    %c0_225 = arith.constant 0 : index
    %257 = vector.load %arg6[%c3_223, %c0_224, %c0_225] : memref<4x1x128xf32, #tpu.memory_space<vmem>>, vector<1x1x128xf32>
    %258 = vector.shape_cast %257 : vector<1x1x128xf32> to vector<1x128xf32>
    %259 = vector.broadcast %258 : vector<1x128xf32> to vector<2x128xf32>
    %260 = arith.addf %256, %259 : vector<2x128xf32>
    %261 = math.tanh %260 : vector<2x128xf32>
    %262 = vector.extract_strided_slice %5 {offsets = [14, 0], sizes = [2, 128], strides = [1, 1]} : vector<16x128xf32> to vector<2x128xf32>
    %c0_226 = arith.constant 0 : index
    %c0_227 = arith.constant 0 : index
    %263 = vector.load %arg2[%c0_226, %c0_227] : memref<128x128xf32, #tpu.memory_space<vmem>>, vector<128x128xf32>
    %cst_228 = arith.constant dense<0.000000e+00> : vector<2x128xf32>
    %264 = tpu.matmul %213, %263, %cst_228 {dimension_numbers = #tpu.dot_dimension_numbers<[1], [0], [0], [1], [0, 0, 1, 1], [], []>} : vector<2x128xf32>, vector<128x128xf32>, vector<2x128xf32> -> vector<2x128xf32>
    %265 = arith.addf %262, %264 : vector<2x128xf32>
    %266 = math.tanh %265 : vector<2x128xf32>
    %c0_229 = arith.constant 0 : index
    %c0_230 = arith.constant 0 : index
    %c0_231 = arith.constant 0 : index
    %267 = vector.load %arg4[%c0_229, %c0_230, %c0_231] : memref<4x128x128xf32, #tpu.memory_space<vmem>>, vector<1x128x128xf32>
    %268 = vector.shape_cast %267 : vector<1x128x128xf32> to vector<128x128xf32>
    %cst_232 = arith.constant dense<0.000000e+00> : vector<2x128xf32>
    %269 = tpu.matmul %213, %268, %cst_232 {dimension_numbers = #tpu.dot_dimension_numbers<[1], [0], [0], [1], [0, 0, 1, 1], [], []>} : vector<2x128xf32>, vector<128x128xf32>, vector<2x128xf32> -> vector<2x128xf32>
    %c0_233 = arith.constant 0 : index
    %c0_234 = arith.constant 0 : index
    %c0_235 = arith.constant 0 : index
    %270 = vector.load %arg5[%c0_233, %c0_234, %c0_235] : memref<4x128x128xf32, #tpu.memory_space<vmem>>, vector<1x128x128xf32>
    %271 = vector.shape_cast %270 : vector<1x128x128xf32> to vector<128x128xf32>
    %cst_236 = arith.constant dense<0.000000e+00> : vector<2x128xf32>
    %272 = tpu.matmul %225, %271, %cst_236 {dimension_numbers = #tpu.dot_dimension_numbers<[1], [0], [0], [1], [0, 0, 1, 1], [], []>} : vector<2x128xf32>, vector<128x128xf32>, vector<2x128xf32> -> vector<2x128xf32>
    %273 = arith.addf %269, %272 : vector<2x128xf32>
    %c0_237 = arith.constant 0 : index
    %c0_238 = arith.constant 0 : index
    %c0_239 = arith.constant 0 : index
    %274 = vector.load %arg6[%c0_237, %c0_238, %c0_239] : memref<4x1x128xf32, #tpu.memory_space<vmem>>, vector<1x1x128xf32>
    %275 = vector.shape_cast %274 : vector<1x1x128xf32> to vector<1x128xf32>
    %276 = vector.broadcast %275 : vector<1x128xf32> to vector<2x128xf32>
    %277 = arith.addf %273, %276 : vector<2x128xf32>
    %278 = math.tanh %277 : vector<2x128xf32>
    %c1_240 = arith.constant 1 : index
    %c0_241 = arith.constant 0 : index
    %c0_242 = arith.constant 0 : index
    %279 = vector.load %arg4[%c1_240, %c0_241, %c0_242] : memref<4x128x128xf32, #tpu.memory_space<vmem>>, vector<1x128x128xf32>
    %280 = vector.shape_cast %279 : vector<1x128x128xf32> to vector<128x128xf32>
    %cst_243 = arith.constant dense<0.000000e+00> : vector<2x128xf32>
    %281 = tpu.matmul %225, %280, %cst_243 {dimension_numbers = #tpu.dot_dimension_numbers<[1], [0], [0], [1], [0, 0, 1, 1], [], []>} : vector<2x128xf32>, vector<128x128xf32>, vector<2x128xf32> -> vector<2x128xf32>
    %c1_244 = arith.constant 1 : index
    %c0_245 = arith.constant 0 : index
    %c0_246 = arith.constant 0 : index
    %282 = vector.load %arg5[%c1_244, %c0_245, %c0_246] : memref<4x128x128xf32, #tpu.memory_space<vmem>>, vector<1x128x128xf32>
    %283 = vector.shape_cast %282 : vector<1x128x128xf32> to vector<128x128xf32>
    %cst_247 = arith.constant dense<0.000000e+00> : vector<2x128xf32>
    %284 = tpu.matmul %237, %283, %cst_247 {dimension_numbers = #tpu.dot_dimension_numbers<[1], [0], [0], [1], [0, 0, 1, 1], [], []>} : vector<2x128xf32>, vector<128x128xf32>, vector<2x128xf32> -> vector<2x128xf32>
    %285 = arith.addf %281, %284 : vector<2x128xf32>
    %c1_248 = arith.constant 1 : index
    %c0_249 = arith.constant 0 : index
    %c0_250 = arith.constant 0 : index
    %286 = vector.load %arg6[%c1_248, %c0_249, %c0_250] : memref<4x1x128xf32, #tpu.memory_space<vmem>>, vector<1x1x128xf32>
    %287 = vector.shape_cast %286 : vector<1x1x128xf32> to vector<1x128xf32>
    %288 = vector.broadcast %287 : vector<1x128xf32> to vector<2x128xf32>
    %289 = arith.addf %285, %288 : vector<2x128xf32>
    %290 = math.tanh %289 : vector<2x128xf32>
    %c2_251 = arith.constant 2 : index
    %c0_252 = arith.constant 0 : index
    %c0_253 = arith.constant 0 : index
    %291 = vector.load %arg4[%c2_251, %c0_252, %c0_253] : memref<4x128x128xf32, #tpu.memory_space<vmem>>, vector<1x128x128xf32>
    %292 = vector.shape_cast %291 : vector<1x128x128xf32> to vector<128x128xf32>
    %cst_254 = arith.constant dense<0.000000e+00> : vector<2x128xf32>
    %293 = tpu.matmul %237, %292, %cst_254 {dimension_numbers = #tpu.dot_dimension_numbers<[1], [0], [0], [1], [0, 0, 1, 1], [], []>} : vector<2x128xf32>, vector<128x128xf32>, vector<2x128xf32> -> vector<2x128xf32>
    %c2_255 = arith.constant 2 : index
    %c0_256 = arith.constant 0 : index
    %c0_257 = arith.constant 0 : index
    %294 = vector.load %arg5[%c2_255, %c0_256, %c0_257] : memref<4x128x128xf32, #tpu.memory_space<vmem>>, vector<1x128x128xf32>
    %295 = vector.shape_cast %294 : vector<1x128x128xf32> to vector<128x128xf32>
    %cst_258 = arith.constant dense<0.000000e+00> : vector<2x128xf32>
    %296 = tpu.matmul %249, %295, %cst_258 {dimension_numbers = #tpu.dot_dimension_numbers<[1], [0], [0], [1], [0, 0, 1, 1], [], []>} : vector<2x128xf32>, vector<128x128xf32>, vector<2x128xf32> -> vector<2x128xf32>
    %297 = arith.addf %293, %296 : vector<2x128xf32>
    %c2_259 = arith.constant 2 : index
    %c0_260 = arith.constant 0 : index
    %c0_261 = arith.constant 0 : index
    %298 = vector.load %arg6[%c2_259, %c0_260, %c0_261] : memref<4x1x128xf32, #tpu.memory_space<vmem>>, vector<1x1x128xf32>
    %299 = vector.shape_cast %298 : vector<1x1x128xf32> to vector<1x128xf32>
    %300 = vector.broadcast %299 : vector<1x128xf32> to vector<2x128xf32>
    %301 = arith.addf %297, %300 : vector<2x128xf32>
    %302 = math.tanh %301 : vector<2x128xf32>
    %c3_262 = arith.constant 3 : index
    %c0_263 = arith.constant 0 : index
    %c0_264 = arith.constant 0 : index
    %303 = vector.load %arg4[%c3_262, %c0_263, %c0_264] : memref<4x128x128xf32, #tpu.memory_space<vmem>>, vector<1x128x128xf32>
    %304 = vector.shape_cast %303 : vector<1x128x128xf32> to vector<128x128xf32>
    %cst_265 = arith.constant dense<0.000000e+00> : vector<2x128xf32>
    %305 = tpu.matmul %249, %304, %cst_265 {dimension_numbers = #tpu.dot_dimension_numbers<[1], [0], [0], [1], [0, 0, 1, 1], [], []>} : vector<2x128xf32>, vector<128x128xf32>, vector<2x128xf32> -> vector<2x128xf32>
    %c3_266 = arith.constant 3 : index
    %c0_267 = arith.constant 0 : index
    %c0_268 = arith.constant 0 : index
    %306 = vector.load %arg5[%c3_266, %c0_267, %c0_268] : memref<4x128x128xf32, #tpu.memory_space<vmem>>, vector<1x128x128xf32>
    %307 = vector.shape_cast %306 : vector<1x128x128xf32> to vector<128x128xf32>
    %cst_269 = arith.constant dense<0.000000e+00> : vector<2x128xf32>
    %308 = tpu.matmul %261, %307, %cst_269 {dimension_numbers = #tpu.dot_dimension_numbers<[1], [0], [0], [1], [0, 0, 1, 1], [], []>} : vector<2x128xf32>, vector<128x128xf32>, vector<2x128xf32> -> vector<2x128xf32>
    %309 = arith.addf %305, %308 : vector<2x128xf32>
    %c3_270 = arith.constant 3 : index
    %c0_271 = arith.constant 0 : index
    %c0_272 = arith.constant 0 : index
    %310 = vector.load %arg6[%c3_270, %c0_271, %c0_272] : memref<4x1x128xf32, #tpu.memory_space<vmem>>, vector<1x1x128xf32>
    %311 = vector.shape_cast %310 : vector<1x1x128xf32> to vector<1x128xf32>
    %312 = vector.broadcast %311 : vector<1x128xf32> to vector<2x128xf32>
    %313 = arith.addf %309, %312 : vector<2x128xf32>
    %314 = math.tanh %313 : vector<2x128xf32>
    %c0_273 = arith.constant 0 : index
    %c0_274 = arith.constant 0 : index
    %c0_275 = arith.constant 0 : index
    %315 = vector.load %arg4[%c0_273, %c0_274, %c0_275] : memref<4x128x128xf32, #tpu.memory_space<vmem>>, vector<1x128x128xf32>
    %316 = vector.shape_cast %315 : vector<1x128x128xf32> to vector<128x128xf32>
    %cst_276 = arith.constant dense<0.000000e+00> : vector<2x128xf32>
    %317 = tpu.matmul %266, %316, %cst_276 {dimension_numbers = #tpu.dot_dimension_numbers<[1], [0], [0], [1], [0, 0, 1, 1], [], []>} : vector<2x128xf32>, vector<128x128xf32>, vector<2x128xf32> -> vector<2x128xf32>
    %c0_277 = arith.constant 0 : index
    %c0_278 = arith.constant 0 : index
    %c0_279 = arith.constant 0 : index
    %318 = vector.load %arg5[%c0_277, %c0_278, %c0_279] : memref<4x128x128xf32, #tpu.memory_space<vmem>>, vector<1x128x128xf32>
    %319 = vector.shape_cast %318 : vector<1x128x128xf32> to vector<128x128xf32>
    %cst_280 = arith.constant dense<0.000000e+00> : vector<2x128xf32>
    %320 = tpu.matmul %278, %319, %cst_280 {dimension_numbers = #tpu.dot_dimension_numbers<[1], [0], [0], [1], [0, 0, 1, 1], [], []>} : vector<2x128xf32>, vector<128x128xf32>, vector<2x128xf32> -> vector<2x128xf32>
    %321 = arith.addf %317, %320 : vector<2x128xf32>
    %c0_281 = arith.constant 0 : index
    %c0_282 = arith.constant 0 : index
    %c0_283 = arith.constant 0 : index
    %322 = vector.load %arg6[%c0_281, %c0_282, %c0_283] : memref<4x1x128xf32, #tpu.memory_space<vmem>>, vector<1x1x128xf32>
    %323 = vector.shape_cast %322 : vector<1x1x128xf32> to vector<1x128xf32>
    %324 = vector.broadcast %323 : vector<1x128xf32> to vector<2x128xf32>
    %325 = arith.addf %321, %324 : vector<2x128xf32>
    %326 = math.tanh %325 : vector<2x128xf32>
    %c1_284 = arith.constant 1 : index
    %c0_285 = arith.constant 0 : index
    %c0_286 = arith.constant 0 : index
    %327 = vector.load %arg4[%c1_284, %c0_285, %c0_286] : memref<4x128x128xf32, #tpu.memory_space<vmem>>, vector<1x128x128xf32>
    %328 = vector.shape_cast %327 : vector<1x128x128xf32> to vector<128x128xf32>
    %cst_287 = arith.constant dense<0.000000e+00> : vector<2x128xf32>
    %329 = tpu.matmul %278, %328, %cst_287 {dimension_numbers = #tpu.dot_dimension_numbers<[1], [0], [0], [1], [0, 0, 1, 1], [], []>} : vector<2x128xf32>, vector<128x128xf32>, vector<2x128xf32> -> vector<2x128xf32>
    %c1_288 = arith.constant 1 : index
    %c0_289 = arith.constant 0 : index
    %c0_290 = arith.constant 0 : index
    %330 = vector.load %arg5[%c1_288, %c0_289, %c0_290] : memref<4x128x128xf32, #tpu.memory_space<vmem>>, vector<1x128x128xf32>
    %331 = vector.shape_cast %330 : vector<1x128x128xf32> to vector<128x128xf32>
    %cst_291 = arith.constant dense<0.000000e+00> : vector<2x128xf32>
    %332 = tpu.matmul %290, %331, %cst_291 {dimension_numbers = #tpu.dot_dimension_numbers<[1], [0], [0], [1], [0, 0, 1, 1], [], []>} : vector<2x128xf32>, vector<128x128xf32>, vector<2x128xf32> -> vector<2x128xf32>
    %333 = arith.addf %329, %332 : vector<2x128xf32>
    %c1_292 = arith.constant 1 : index
    %c0_293 = arith.constant 0 : index
    %c0_294 = arith.constant 0 : index
    %334 = vector.load %arg6[%c1_292, %c0_293, %c0_294] : memref<4x1x128xf32, #tpu.memory_space<vmem>>, vector<1x1x128xf32>
    %335 = vector.shape_cast %334 : vector<1x1x128xf32> to vector<1x128xf32>
    %336 = vector.broadcast %335 : vector<1x128xf32> to vector<2x128xf32>
    %337 = arith.addf %333, %336 : vector<2x128xf32>
    %338 = math.tanh %337 : vector<2x128xf32>
    %c2_295 = arith.constant 2 : index
    %c0_296 = arith.constant 0 : index
    %c0_297 = arith.constant 0 : index
    %339 = vector.load %arg4[%c2_295, %c0_296, %c0_297] : memref<4x128x128xf32, #tpu.memory_space<vmem>>, vector<1x128x128xf32>
    %340 = vector.shape_cast %339 : vector<1x128x128xf32> to vector<128x128xf32>
    %cst_298 = arith.constant dense<0.000000e+00> : vector<2x128xf32>
    %341 = tpu.matmul %290, %340, %cst_298 {dimension_numbers = #tpu.dot_dimension_numbers<[1], [0], [0], [1], [0, 0, 1, 1], [], []>} : vector<2x128xf32>, vector<128x128xf32>, vector<2x128xf32> -> vector<2x128xf32>
    %c2_299 = arith.constant 2 : index
    %c0_300 = arith.constant 0 : index
    %c0_301 = arith.constant 0 : index
    %342 = vector.load %arg5[%c2_299, %c0_300, %c0_301] : memref<4x128x128xf32, #tpu.memory_space<vmem>>, vector<1x128x128xf32>
    %343 = vector.shape_cast %342 : vector<1x128x128xf32> to vector<128x128xf32>
    %cst_302 = arith.constant dense<0.000000e+00> : vector<2x128xf32>
    %344 = tpu.matmul %302, %343, %cst_302 {dimension_numbers = #tpu.dot_dimension_numbers<[1], [0], [0], [1], [0, 0, 1, 1], [], []>} : vector<2x128xf32>, vector<128x128xf32>, vector<2x128xf32> -> vector<2x128xf32>
    %345 = arith.addf %341, %344 : vector<2x128xf32>
    %c2_303 = arith.constant 2 : index
    %c0_304 = arith.constant 0 : index
    %c0_305 = arith.constant 0 : index
    %346 = vector.load %arg6[%c2_303, %c0_304, %c0_305] : memref<4x1x128xf32, #tpu.memory_space<vmem>>, vector<1x1x128xf32>
    %347 = vector.shape_cast %346 : vector<1x1x128xf32> to vector<1x128xf32>
    %348 = vector.broadcast %347 : vector<1x128xf32> to vector<2x128xf32>
    %349 = arith.addf %345, %348 : vector<2x128xf32>
    %350 = math.tanh %349 : vector<2x128xf32>
    %c3_306 = arith.constant 3 : index
    %c0_307 = arith.constant 0 : index
    %c0_308 = arith.constant 0 : index
    %351 = vector.load %arg4[%c3_306, %c0_307, %c0_308] : memref<4x128x128xf32, #tpu.memory_space<vmem>>, vector<1x128x128xf32>
    %352 = vector.shape_cast %351 : vector<1x128x128xf32> to vector<128x128xf32>
    %cst_309 = arith.constant dense<0.000000e+00> : vector<2x128xf32>
    %353 = tpu.matmul %302, %352, %cst_309 {dimension_numbers = #tpu.dot_dimension_numbers<[1], [0], [0], [1], [0, 0, 1, 1], [], []>} : vector<2x128xf32>, vector<128x128xf32>, vector<2x128xf32> -> vector<2x128xf32>
    %c3_310 = arith.constant 3 : index
    %c0_311 = arith.constant 0 : index
    %c0_312 = arith.constant 0 : index
    %354 = vector.load %arg5[%c3_310, %c0_311, %c0_312] : memref<4x128x128xf32, #tpu.memory_space<vmem>>, vector<1x128x128xf32>
    %355 = vector.shape_cast %354 : vector<1x128x128xf32> to vector<128x128xf32>
    %cst_313 = arith.constant dense<0.000000e+00> : vector<2x128xf32>
    %356 = tpu.matmul %314, %355, %cst_313 {dimension_numbers = #tpu.dot_dimension_numbers<[1], [0], [0], [1], [0, 0, 1, 1], [], []>} : vector<2x128xf32>, vector<128x128xf32>, vector<2x128xf32> -> vector<2x128xf32>
    %357 = arith.addf %353, %356 : vector<2x128xf32>
    %c3_314 = arith.constant 3 : index
    %c0_315 = arith.constant 0 : index
    %c0_316 = arith.constant 0 : index
    %358 = vector.load %arg6[%c3_314, %c0_315, %c0_316] : memref<4x1x128xf32, #tpu.memory_space<vmem>>, vector<1x1x128xf32>
    %359 = vector.shape_cast %358 : vector<1x1x128xf32> to vector<1x128xf32>
    %360 = vector.broadcast %359 : vector<1x128xf32> to vector<2x128xf32>
    %361 = arith.addf %357, %360 : vector<2x128xf32>
    %362 = math.tanh %361 : vector<2x128xf32>
    %c1_317 = arith.constant 1 : index
    %c0_318 = arith.constant 0 : index
    %c0_319 = arith.constant 0 : index
    %363 = vector.load %arg4[%c1_317, %c0_318, %c0_319] : memref<4x128x128xf32, #tpu.memory_space<vmem>>, vector<1x128x128xf32>
    %364 = vector.shape_cast %363 : vector<1x128x128xf32> to vector<128x128xf32>
    %cst_320 = arith.constant dense<0.000000e+00> : vector<2x128xf32>
    %365 = tpu.matmul %326, %364, %cst_320 {dimension_numbers = #tpu.dot_dimension_numbers<[1], [0], [0], [1], [0, 0, 1, 1], [], []>} : vector<2x128xf32>, vector<128x128xf32>, vector<2x128xf32> -> vector<2x128xf32>
    %c1_321 = arith.constant 1 : index
    %c0_322 = arith.constant 0 : index
    %c0_323 = arith.constant 0 : index
    %366 = vector.load %arg5[%c1_321, %c0_322, %c0_323] : memref<4x128x128xf32, #tpu.memory_space<vmem>>, vector<1x128x128xf32>
    %367 = vector.shape_cast %366 : vector<1x128x128xf32> to vector<128x128xf32>
    %cst_324 = arith.constant dense<0.000000e+00> : vector<2x128xf32>
    %368 = tpu.matmul %338, %367, %cst_324 {dimension_numbers = #tpu.dot_dimension_numbers<[1], [0], [0], [1], [0, 0, 1, 1], [], []>} : vector<2x128xf32>, vector<128x128xf32>, vector<2x128xf32> -> vector<2x128xf32>
    %369 = arith.addf %365, %368 : vector<2x128xf32>
    %c1_325 = arith.constant 1 : index
    %c0_326 = arith.constant 0 : index
    %c0_327 = arith.constant 0 : index
    %370 = vector.load %arg6[%c1_325, %c0_326, %c0_327] : memref<4x1x128xf32, #tpu.memory_space<vmem>>, vector<1x1x128xf32>
    %371 = vector.shape_cast %370 : vector<1x1x128xf32> to vector<1x128xf32>
    %372 = vector.broadcast %371 : vector<1x128xf32> to vector<2x128xf32>
    %373 = arith.addf %369, %372 : vector<2x128xf32>
    %374 = math.tanh %373 : vector<2x128xf32>
    %c2_328 = arith.constant 2 : index
    %c0_329 = arith.constant 0 : index
    %c0_330 = arith.constant 0 : index
    %375 = vector.load %arg4[%c2_328, %c0_329, %c0_330] : memref<4x128x128xf32, #tpu.memory_space<vmem>>, vector<1x128x128xf32>
    %376 = vector.shape_cast %375 : vector<1x128x128xf32> to vector<128x128xf32>
    %cst_331 = arith.constant dense<0.000000e+00> : vector<2x128xf32>
    %377 = tpu.matmul %338, %376, %cst_331 {dimension_numbers = #tpu.dot_dimension_numbers<[1], [0], [0], [1], [0, 0, 1, 1], [], []>} : vector<2x128xf32>, vector<128x128xf32>, vector<2x128xf32> -> vector<2x128xf32>
    %c2_332 = arith.constant 2 : index
    %c0_333 = arith.constant 0 : index
    %c0_334 = arith.constant 0 : index
    %378 = vector.load %arg5[%c2_332, %c0_333, %c0_334] : memref<4x128x128xf32, #tpu.memory_space<vmem>>, vector<1x128x128xf32>
    %379 = vector.shape_cast %378 : vector<1x128x128xf32> to vector<128x128xf32>
    %cst_335 = arith.constant dense<0.000000e+00> : vector<2x128xf32>
    %380 = tpu.matmul %350, %379, %cst_335 {dimension_numbers = #tpu.dot_dimension_numbers<[1], [0], [0], [1], [0, 0, 1, 1], [], []>} : vector<2x128xf32>, vector<128x128xf32>, vector<2x128xf32> -> vector<2x128xf32>
    %381 = arith.addf %377, %380 : vector<2x128xf32>
    %c2_336 = arith.constant 2 : index
    %c0_337 = arith.constant 0 : index
    %c0_338 = arith.constant 0 : index
    %382 = vector.load %arg6[%c2_336, %c0_337, %c0_338] : memref<4x1x128xf32, #tpu.memory_space<vmem>>, vector<1x1x128xf32>
    %383 = vector.shape_cast %382 : vector<1x1x128xf32> to vector<1x128xf32>
    %384 = vector.broadcast %383 : vector<1x128xf32> to vector<2x128xf32>
    %385 = arith.addf %381, %384 : vector<2x128xf32>
    %386 = math.tanh %385 : vector<2x128xf32>
    %c3_339 = arith.constant 3 : index
    %c0_340 = arith.constant 0 : index
    %c0_341 = arith.constant 0 : index
    %387 = vector.load %arg4[%c3_339, %c0_340, %c0_341] : memref<4x128x128xf32, #tpu.memory_space<vmem>>, vector<1x128x128xf32>
    %388 = vector.shape_cast %387 : vector<1x128x128xf32> to vector<128x128xf32>
    %cst_342 = arith.constant dense<0.000000e+00> : vector<2x128xf32>
    %389 = tpu.matmul %350, %388, %cst_342 {dimension_numbers = #tpu.dot_dimension_numbers<[1], [0], [0], [1], [0, 0, 1, 1], [], []>} : vector<2x128xf32>, vector<128x128xf32>, vector<2x128xf32> -> vector<2x128xf32>
    %c3_343 = arith.constant 3 : index
    %c0_344 = arith.constant 0 : index
    %c0_345 = arith.constant 0 : index
    %390 = vector.load %arg5[%c3_343, %c0_344, %c0_345] : memref<4x128x128xf32, #tpu.memory_space<vmem>>, vector<1x128x128xf32>
    %391 = vector.shape_cast %390 : vector<1x128x128xf32> to vector<128x128xf32>
    %cst_346 = arith.constant dense<0.000000e+00> : vector<2x128xf32>
    %392 = tpu.matmul %362, %391, %cst_346 {dimension_numbers = #tpu.dot_dimension_numbers<[1], [0], [0], [1], [0, 0, 1, 1], [], []>} : vector<2x128xf32>, vector<128x128xf32>, vector<2x128xf32> -> vector<2x128xf32>
    %393 = arith.addf %389, %392 : vector<2x128xf32>
    %c3_347 = arith.constant 3 : index
    %c0_348 = arith.constant 0 : index
    %c0_349 = arith.constant 0 : index
    %394 = vector.load %arg6[%c3_347, %c0_348, %c0_349] : memref<4x1x128xf32, #tpu.memory_space<vmem>>, vector<1x1x128xf32>
    %395 = vector.shape_cast %394 : vector<1x1x128xf32> to vector<1x128xf32>
    %396 = vector.broadcast %395 : vector<1x128xf32> to vector<2x128xf32>
    %397 = arith.addf %393, %396 : vector<2x128xf32>
    %398 = math.tanh %397 : vector<2x128xf32>
    %c2_350 = arith.constant 2 : index
    %c0_351 = arith.constant 0 : index
    %c0_352 = arith.constant 0 : index
    %399 = vector.load %arg4[%c2_350, %c0_351, %c0_352] : memref<4x128x128xf32, #tpu.memory_space<vmem>>, vector<1x128x128xf32>
    %400 = vector.shape_cast %399 : vector<1x128x128xf32> to vector<128x128xf32>
    %cst_353 = arith.constant dense<0.000000e+00> : vector<2x128xf32>
    %401 = tpu.matmul %374, %400, %cst_353 {dimension_numbers = #tpu.dot_dimension_numbers<[1], [0], [0], [1], [0, 0, 1, 1], [], []>} : vector<2x128xf32>, vector<128x128xf32>, vector<2x128xf32> -> vector<2x128xf32>
    %c2_354 = arith.constant 2 : index
    %c0_355 = arith.constant 0 : index
    %c0_356 = arith.constant 0 : index
    %402 = vector.load %arg5[%c2_354, %c0_355, %c0_356] : memref<4x128x128xf32, #tpu.memory_space<vmem>>, vector<1x128x128xf32>
    %403 = vector.shape_cast %402 : vector<1x128x128xf32> to vector<128x128xf32>
    %cst_357 = arith.constant dense<0.000000e+00> : vector<2x128xf32>
    %404 = tpu.matmul %386, %403, %cst_357 {dimension_numbers = #tpu.dot_dimension_numbers<[1], [0], [0], [1], [0, 0, 1, 1], [], []>} : vector<2x128xf32>, vector<128x128xf32>, vector<2x128xf32> -> vector<2x128xf32>
    %405 = arith.addf %401, %404 : vector<2x128xf32>
    %c2_358 = arith.constant 2 : index
    %c0_359 = arith.constant 0 : index
    %c0_360 = arith.constant 0 : index
    %406 = vector.load %arg6[%c2_358, %c0_359, %c0_360] : memref<4x1x128xf32, #tpu.memory_space<vmem>>, vector<1x1x128xf32>
    %407 = vector.shape_cast %406 : vector<1x1x128xf32> to vector<1x128xf32>
    %408 = vector.broadcast %407 : vector<1x128xf32> to vector<2x128xf32>
    %409 = arith.addf %405, %408 : vector<2x128xf32>
    %410 = math.tanh %409 : vector<2x128xf32>
    %c3_361 = arith.constant 3 : index
    %c0_362 = arith.constant 0 : index
    %c0_363 = arith.constant 0 : index
    %411 = vector.load %arg4[%c3_361, %c0_362, %c0_363] : memref<4x128x128xf32, #tpu.memory_space<vmem>>, vector<1x128x128xf32>
    %412 = vector.shape_cast %411 : vector<1x128x128xf32> to vector<128x128xf32>
    %cst_364 = arith.constant dense<0.000000e+00> : vector<2x128xf32>
    %413 = tpu.matmul %386, %412, %cst_364 {dimension_numbers = #tpu.dot_dimension_numbers<[1], [0], [0], [1], [0, 0, 1, 1], [], []>} : vector<2x128xf32>, vector<128x128xf32>, vector<2x128xf32> -> vector<2x128xf32>
    %c3_365 = arith.constant 3 : index
    %c0_366 = arith.constant 0 : index
    %c0_367 = arith.constant 0 : index
    %414 = vector.load %arg5[%c3_365, %c0_366, %c0_367] : memref<4x128x128xf32, #tpu.memory_space<vmem>>, vector<1x128x128xf32>
    %415 = vector.shape_cast %414 : vector<1x128x128xf32> to vector<128x128xf32>
    %cst_368 = arith.constant dense<0.000000e+00> : vector<2x128xf32>
    %416 = tpu.matmul %398, %415, %cst_368 {dimension_numbers = #tpu.dot_dimension_numbers<[1], [0], [0], [1], [0, 0, 1, 1], [], []>} : vector<2x128xf32>, vector<128x128xf32>, vector<2x128xf32> -> vector<2x128xf32>
    %417 = arith.addf %413, %416 : vector<2x128xf32>
    %c3_369 = arith.constant 3 : index
    %c0_370 = arith.constant 0 : index
    %c0_371 = arith.constant 0 : index
    %418 = vector.load %arg6[%c3_369, %c0_370, %c0_371] : memref<4x1x128xf32, #tpu.memory_space<vmem>>, vector<1x1x128xf32>
    %419 = vector.shape_cast %418 : vector<1x1x128xf32> to vector<1x128xf32>
    %420 = vector.broadcast %419 : vector<1x128xf32> to vector<2x128xf32>
    %421 = arith.addf %417, %420 : vector<2x128xf32>
    %422 = math.tanh %421 : vector<2x128xf32>
    %c3_372 = arith.constant 3 : index
    %c0_373 = arith.constant 0 : index
    %c0_374 = arith.constant 0 : index
    %423 = vector.load %arg4[%c3_372, %c0_373, %c0_374] : memref<4x128x128xf32, #tpu.memory_space<vmem>>, vector<1x128x128xf32>
    %424 = vector.shape_cast %423 : vector<1x128x128xf32> to vector<128x128xf32>
    %cst_375 = arith.constant dense<0.000000e+00> : vector<2x128xf32>
    %425 = tpu.matmul %410, %424, %cst_375 {dimension_numbers = #tpu.dot_dimension_numbers<[1], [0], [0], [1], [0, 0, 1, 1], [], []>} : vector<2x128xf32>, vector<128x128xf32>, vector<2x128xf32> -> vector<2x128xf32>
    %c3_376 = arith.constant 3 : index
    %c0_377 = arith.constant 0 : index
    %c0_378 = arith.constant 0 : index
    %426 = vector.load %arg5[%c3_376, %c0_377, %c0_378] : memref<4x128x128xf32, #tpu.memory_space<vmem>>, vector<1x128x128xf32>
    %427 = vector.shape_cast %426 : vector<1x128x128xf32> to vector<128x128xf32>
    %cst_379 = arith.constant dense<0.000000e+00> : vector<2x128xf32>
    %428 = tpu.matmul %422, %427, %cst_379 {dimension_numbers = #tpu.dot_dimension_numbers<[1], [0], [0], [1], [0, 0, 1, 1], [], []>} : vector<2x128xf32>, vector<128x128xf32>, vector<2x128xf32> -> vector<2x128xf32>
    %429 = arith.addf %425, %428 : vector<2x128xf32>
    %c3_380 = arith.constant 3 : index
    %c0_381 = arith.constant 0 : index
    %c0_382 = arith.constant 0 : index
    %430 = vector.load %arg6[%c3_380, %c0_381, %c0_382] : memref<4x1x128xf32, #tpu.memory_space<vmem>>, vector<1x1x128xf32>
    %431 = vector.shape_cast %430 : vector<1x1x128xf32> to vector<1x128xf32>
    %432 = vector.broadcast %431 : vector<1x128xf32> to vector<2x128xf32>
    %433 = arith.addf %429, %432 : vector<2x128xf32>
    %434 = math.tanh %433 : vector<2x128xf32>
    %c0_383 = arith.constant 0 : index
    %c0_384 = arith.constant 0 : index
    %435 = vector.load %arg7[%c0_383, %c0_384] : memref<1x128xf32, #tpu.memory_space<vmem>>, vector<1x128xf32>
    %436 = vector.broadcast %435 : vector<1x128xf32> to vector<2x128xf32>
    %437 = arith.mulf %434, %436 : vector<2x128xf32>
    %cst_385 = arith.constant dense<0.000000e+00> : vector<2xf32>
    %438 = vector.multi_reduction <add>, %437, %cst_385 [1] : vector<2x128xf32> to vector<2xf32>
    %439 = vector.shape_cast %438 : vector<2xf32> to vector<2x1xf32>
    %c0_386 = arith.constant 0 : index
    %c0_387 = arith.constant 0 : index
    %440 = vector.load %arg8[%c0_386, %c0_387] : memref<1x1xf32, #tpu.memory_space<vmem>>, vector<1x1xf32>
    %441 = vector.broadcast %440 : vector<1x1xf32> to vector<2x1xf32>
    %442 = arith.addf %439, %441 : vector<2x1xf32>
    %cst_388 = arith.constant 0.000000e+00 : f32
    %443 = vector.broadcast %cst_388 : f32 to vector<2x1xf32>
    %444 = arith.maximumf %442, %443 : vector<2x1xf32>
    %c0_389 = arith.constant 0 : index
    %c0_390 = arith.constant 0 : index
    %445 = vector.load %arg9[%c0_389, %c0_390] : memref<2x1xf32, #tpu.memory_space<vmem>>, vector<2x1xf32>
    tpu.vector_store %arg9[%c0_389, %c0_390], %444 {strides = array<i32>} : memref<2x1xf32, #tpu.memory_space<vmem>>, vector<2x1xf32>,
    return
  }
}

</mosaic_0001>

<bundles_post_ra>
// kernel: simple_rnn_forward.1
= control target key start
LH: loop header
LB: loop body
LE: loop exit
PB: predicated region body
PF: predicated region fallthrough
CT: control target
= control target key end

     0   :  { %s13448_s0 = inlined_call_operand.vmem [shape: f32[16,16], index: 0, kind: input, shape index: {}]   ;;  %s13449_s1 = inlined_call_operand.vmem [shape: f32[16,128], index: 1, kind: input, shape index: {}]   ;;  %s13450_s2 = inlined_call_operand.hbm [shape: f32[128,128], index: 2, kind: input, shape index: {}]   ;;  %s13451_s3 = inlined_call_operand.vmem [shape: f32[1,128], index: 3, kind: input, shape index: {}]   ;;  %s13452_s4 = inlined_call_operand.hbm [shape: f32[4,128,128], index: 4, kind: input, shape index: {}]   ;;  %s13453_s5 = inlined_call_operand.hbm [shape: f32[4,128,128], index: 5, kind: input, shape index: {}]   ;;  %s13454_s6 = inlined_call_operand.vmem [shape: f32[4,1,128], index: 6, kind: input, shape index: {}]   ;;  %s13455_s7 = inlined_call_operand.vmem [shape: f32[1,128], index: 7, kind: input, shape index: {}]   ;;  %s13456_s8 = inlined_call_operand.<no memory space> [shape: f32[1,1], index: 8, kind: input, shape index: {}]   ;;  %s13457_s9 = inlined_call_operand.vmem [shape: f32[2,1], index: 9, kind: output, shape index: {}]  }
   0x1   :  { %v14_v0 = vstv %s13456_s8 }
   0x2   :  { %15 = vst [vmem:[#allocation2] sm:$0x1] %v14_v0 }
   0x3   :  { %16 = vsyncpa [#allocation4], 0 }
   0x4   :  { %17 = vsyncpa [#allocation6], 0  ;;  %s9834_s11 = smov [#allocation5]   ;;  %s9835_s13 = smov [#allocation3]  }
   0x5   :  { %s41_s12 = sshll.u32 %s9834_s11, 4  ;;  %s27_s14 = sshll.u32 %s9835_s13, 4  ;;  %s42_s12 = int_to_ptr.vmem [resolvable:$true] %s41_s12  ;;  %s28_s14 = int_to_ptr.vmem [resolvable:$true] %s27_s14 }
   0x6   :  { %s9778_s15 = scalar_lea.vmem %s42_s12, 8192  ;;  %p9783_p1 = scmp.lt.s32.totalorder %s42_s12, %s42_s12 }
   0x7   :  { %p9779_p0 = scmp.ne.s32.totalorder %s42_s12, %s9778_s15  ;;  %p9784_p2 = scmp.lt.s32.totalorder %s9778_s15, %s9778_s15 }
   0x9   :  { %p9785_p3 = por %p9784_p2, %p9783_p1 }
   0xb   :  { %p9786_p4 = pnand %p9785_p3, %p9779_p0 }
   0xd   :  { %9789 = shalt.err (!%p9786_p4)
}
   0xe   :  { %s9836_s16 = smov 128   ;;  %s9837_s17 = smov 8  }
   0xf   :  { %47 = dma.hbm_to_vmem [thread:$0]  %s13452_s4, 8192, %s42_s12, [#allocation6], %s9836_s16, %s9836_s16, %s9837_s17  }
  0x10   :  { %s9798_s19 = scalar_lea.vmem %s28_s14, 2048  ;;  %p9803_p6 = scmp.lt.s32.totalorder %s28_s14, %s28_s14 }
  0x11   :  { %p9799_p5 = scmp.ne.s32.totalorder %s28_s14, %s9798_s19  ;;  %p9804_p7 = scmp.lt.s32.totalorder %s9798_s19, %s9798_s19 }
  0x13   :  { %p9805_p8 = por %p9804_p7, %p9803_p6 }
  0x15   :  { %p9806_p9 = pnand %p9805_p8, %p9799_p5 }
  0x17   :  { %9809 = shalt.err (!%p9806_p9)
}
  0x18   :  { %33 = dma.hbm_to_vmem [thread:$0]  %s13450_s2, 2048, %s28_s14, [#allocation4], %s9836_s16, %s9836_s16, %s9837_s17  }
  0x19   :  { %s9838_s22 = smov [#allocation7]  }
  0x1a   :  { %s53_s23 = sshll.u32 %s9838_s22, 4  ;;  %s54_s23 = int_to_ptr.vmem [resolvable:$true] %s53_s23 }
  0x1b   :  { %s9818_s24 = scalar_lea.vmem %s54_s23, 8192  ;;  %p9823_p11 = scmp.lt.s32.totalorder %s54_s23, %s54_s23 }
  0x1c   :  { %p9819_p10 = scmp.ne.s32.totalorder %s54_s23, %s9818_s24  ;;  %p9824_p12 = scmp.lt.s32.totalorder %s9818_s24, %s9818_s24 }
  0x1e   :  { %p9825_p13 = por %p9824_p12, %p9823_p11 }
  0x20   :  { %p9826_p0 = pnand %p9825_p13, %p9819_p10 }
  0x22   :  { %9829 = shalt.err (!%p9826_p0)
}
  0x23   :  { %59 = dma.hbm_to_vmem [thread:$0]  %s13453_s5, 8192, %s54_s23, [#allocation6], %s9836_s16, %s9836_s16, %s9837_s17  }
  0x24   :  { %9830 = dma.done.wait [#allocation4], 2048  }
  0x25   :  { %9831 = vsyncadd [#allocation4], 4294965248 }
  0x26   :  { %9832 = dma.done.wait [#allocation6], 16384  }
  0x27   :  { %9833 = vsyncadd [#allocation6], 4294950912  ;;  %v9839_v1 = vmov 0.0   ;;  %vm9840_vm0 = vmmov 0   ;;  %v9906_v2 = vld [vmem:[#allocation3 + $0x78] sm:$0xff]  ;;  %v9908_v3 = vld [vmem:[#allocation3 + $0x70] sm:$0xff] }
  0x28   :  { %6781 = vmatprep.subr.mxu1 %v9839_v1  ;;  %6813 = vmatprep.mubr.msk.f32.mxu1 %vm9840_vm0, %v9839_v1  ;;  %v9912_v4 = vld [vmem:[#allocation3 + $0x68] sm:$0xff]  ;;  %v9919_v6 = vld [vmem:[#allocation3 + $0x60] sm:$0xff]  ;;  %vm86_vm1 = vcmask 130048   ;;  %v9929_v9 = vld [vmem:[#allocation3 + $0x58] sm:$0xff]  ;;  %vm5513_vm2 = vcmask 1041408   ;;  %vm5526_vm3 = vcmask 1024  }
  0x29   :  { %6782 = vmatpush3.msra.mxu1 %v9906_v2  ;;  %v78_v5 = vld [vmem:[%s13449_s1 + $0x8] sm:$0xff]  ;;  %v77_v7 = vld [vmem:[%s13449_s1] sm:$0xff]  ;;  %v9936_v11 = vld [vmem:[#allocation3 + $0x50] sm:$0xff] }
  0x2a   :  { %6783 = vmatprep.subr.mxu1 %v9839_v1  ;;  %6774 = vmatprep.subr.mxu0 %v78_v5  ;;  %v75_v8 = vld [vmem:[%s13448_s0] sm:$0xff]  ;;  %v76_v10 = vld [vmem:[%s13448_s0 + $0x8] sm:$0xff]  ;;  %v9958_v15 = vld [vmem:[#allocation3 + $0x30] sm:$0xff] }
  0x2b   :  { %6784 = vmatpush3.msra.mxu1 %v9908_v3  ;;  %6775 = vmatpush3.msra.mxu0 %v78_v5  ;;  %v9940_v12 = vld [vmem:[#allocation3 + $0x48] sm:$0xff]  ;;  %v9946_v13 = vld [vmem:[#allocation3 + $0x40] sm:$0xff]  ;;  %v9952_v14 = vld [vmem:[#allocation3 + $0x38] sm:$0xff] }
  0x2c   :  { %6785 = vmatprep.subr.mxu1 %v9839_v1  ;;  %6776 = vmatprep.subr.mxu0 %v77_v7  ;;  %v9964_v16 = vld [vmem:[#allocation3 + $0x28] sm:$0xff]  ;;  %v9970_v17 = vld [vmem:[#allocation3 + $0x20] sm:$0xff]  ;;  %v9976_v18 = vld [vmem:[#allocation3 + $0x18] sm:$0xff] }
  0x2d   :  { %6786 = vmatpush3.msra.mxu1 %v9912_v4  ;;  %6777 = vmatpush3.msra.mxu0 %v77_v7  ;;  %v9982_v19 = vld [vmem:[#allocation3 + $0x10] sm:$0xff]  ;;  %v9988_v20 = vld [vmem:[#allocation3 + $0x8] sm:$0xff]  ;;  %v9994_v21 = vld [vmem:[#allocation3] sm:$0xff] }
  0x2e   :  { %6787 = vmatprep.subr.mxu1 %v9839_v1  ;;  %6778 = vmatprep.mubr.msk.f32.mxu0 %vm86_vm1, %v75_v8  ;;  %v10020_v22 = vld [vmem:[#allocation7 + $0x78] sm:$0xff]  ;;  %v10024_v23 = vld [vmem:[#allocation7 + $0x70] sm:$0xff]  ;;  %v10028_v24 = vld [vmem:[#allocation7 + $0x68] sm:$0xff] }
  0x2f   :  { %6788 = vmatpush3.msra.mxu1 %v9919_v6  ;;  %6779 = vmatmul.mubr.msk.f32.vlgmr.msra.gmra.mxu0 %vm86_vm1, %v76_v10  ;;  %v10032_v25 = vld [vmem:[#allocation7 + $0x60] sm:$0xff]  ;;  %v10036_v26 = vld [vmem:[#allocation7 + $0x58] sm:$0xff]  ;;  %v10040_v27 = vld [vmem:[#allocation7 + $0x50] sm:$0xff] }
  0x30   :  { %6789 = vmatprep.subr.mxu1 %v9839_v1  ;;  %6816 = vmatprep.subr.mxu0 %v9839_v1  ;;  %v10044_v28 = vld [vmem:[#allocation7 + $0x48] sm:$0xff]  ;;  %v10048_v29 = vld [vmem:[#allocation7 + $0x40] sm:$0xff]  ;;  %v10052_v30 = vld [vmem:[#allocation7 + $0x38] sm:$0xff] }
  0x31   :  { %6790 = vmatpush3.msra.mxu1 %v9929_v9  ;;  %6817 = vmatpush3.msra.mxu0 %v9906_v2  ;;  %v10056_v31 = vld [vmem:[#allocation7 + $0x30] sm:$0xff]  ;;  %v10060_v32 = vld [vmem:[#allocation7 + $0x28] sm:$0xff]  ;;  %v10064_v33 = vld [vmem:[#allocation7 + $0x20] sm:$0xff] }
  0x32   :  { %6791 = vmatprep.subr.mxu1 %v9839_v1  ;;  %6818 = vmatprep.subr.mxu0 %v9839_v1  ;;  %v10068_v34 = vld [vmem:[#allocation7 + $0x18] sm:$0xff]  ;;  %v10072_v35 = vld [vmem:[#allocation7 + $0x10] sm:$0xff]  ;;  %v10076_v36 = vld [vmem:[#allocation7 + $0x8] sm:$0xff] }
  0x33   :  { %6792 = vmatpush3.msra.mxu1 %v9936_v11  ;;  %6819 = vmatpush3.msra.mxu0 %v9908_v3  ;;  %v10080_v37 = vld [vmem:[#allocation7] sm:$0xff]  ;;  %v5534_v38 = vld [vmem:[%s13451_s3] ss:$0 sm:$0xff]  ;;  %v10129_v48 = vld [vmem:[#allocation5 + $0x70] sm:$0xff] }
  0x34   :  { %6793 = vmatprep.subr.mxu1 %v9839_v1  ;;  %6820 = vmatprep.subr.mxu0 %v9839_v1  ;;  %v10127_v46 = vld [vmem:[#allocation5 + $0x78] sm:$0xff]  ;;  %v10135_v49 = vld [vmem:[#allocation5 + $0x68] sm:$0xff]  ;;  %v10139_v50 = vld [vmem:[#allocation5 + $0x60] sm:$0xff] }
  0x35   :  { %6794 = vmatpush3.msra.mxu1 %v9940_v12  ;;  %6821 = vmatpush3.msra.mxu0 %v9912_v4  ;;  %v10143_v51 = vld [vmem:[#allocation5 + $0x58] sm:$0xff]  ;;  %v10147_v52 = vld [vmem:[#allocation5 + $0x50] sm:$0xff]  ;;  %v10151_v53 = vld [vmem:[#allocation5 + $0x48] sm:$0xff] }
  0x36   :  { %6795 = vmatprep.subr.mxu1 %v9839_v1  ;;  %6822 = vmatprep.subr.mxu0 %v9839_v1  ;;  %v10155_v54 = vld [vmem:[#allocation5 + $0x40] sm:$0xff]  ;;  %v10159_v55 = vld [vmem:[#allocation5 + $0x38] sm:$0xff]  ;;  %v10163_v56 = vld [vmem:[#allocation5 + $0x30] sm:$0xff] }
  0x37   :  { %6796 = vmatpush3.msra.mxu1 %v9946_v13  ;;  %6823 = vmatpush3.msra.mxu0 %v9919_v6  ;;  %v10167_v57 = vld [vmem:[#allocation5 + $0x28] sm:$0xff]  ;;  %v10171_v58 = vld [vmem:[#allocation5 + $0x20] sm:$0xff]  ;;  %v10175_v59 = vld [vmem:[#allocation5 + $0x18] sm:$0xff] }
  0x38   :  { %6797 = vmatprep.subr.mxu1 %v9839_v1  ;;  %6824 = vmatprep.subr.mxu0 %v9839_v1  ;;  %v10179_v60 = vld [vmem:[#allocation5 + $0x10] sm:$0xff]  ;;  %v10183_v61 = vld [vmem:[#allocation5 + $0x8] sm:$0xff]  ;;  %v10187_v62 = vld [vmem:[#allocation5] sm:$0xff] }
  0x39   :  { %6798 = vmatpush3.msra.mxu1 %v9952_v14  ;;  %6825 = vmatpush3.msra.mxu0 %v9929_v9 }
  0x3a   :  { %6799 = vmatprep.subr.mxu1 %v9839_v1  ;;  %6826 = vmatprep.subr.mxu0 %v9839_v1 }
  0x3b   :  { %6800 = vmatpush3.msra.mxu1 %v9958_v15  ;;  %6827 = vmatpush3.msra.mxu0 %v9936_v11 }
  0x3c   :  { %6801 = vmatprep.subr.mxu1 %v9839_v1  ;;  %6828 = vmatprep.subr.mxu0 %v9839_v1 }
  0x3d   :  { %6802 = vmatpush3.msra.mxu1 %v9964_v16  ;;  %6829 = vmatpush3.msra.mxu0 %v9940_v12 }
  0x3e   :  { %6803 = vmatprep.subr.mxu1 %v9839_v1  ;;  %6830 = vmatprep.subr.mxu0 %v9839_v1 }
  0x3f   :  { %6804 = vmatpush3.msra.mxu1 %v9970_v17  ;;  %6831 = vmatpush3.msra.mxu0 %v9946_v13 }
  0x40   :  { %6805 = vmatprep.subr.mxu1 %v9839_v1  ;;  %6832 = vmatprep.subr.mxu0 %v9839_v1 }
  0x41   :  { %6806 = vmatpush3.msra.mxu1 %v9976_v18  ;;  %6833 = vmatpush3.msra.mxu0 %v9952_v14 }
  0x42   :  { %6807 = vmatprep.subr.mxu1 %v9839_v1  ;;  %6834 = vmatprep.subr.mxu0 %v9839_v1 }
  0x43   :  { %6808 = vmatpush3.msra.mxu1 %v9982_v19  ;;  %6835 = vmatpush3.msra.mxu0 %v9958_v15 }
  0x44   :  { %6809 = vmatprep.subr.mxu1 %v9839_v1  ;;  %6836 = vmatprep.subr.mxu0 %v9839_v1 }
  0x45   :  { %6810 = vmatpush3.msra.mxu1 %v9988_v20  ;;  %6837 = vmatpush3.msra.mxu0 %v9964_v16 }
  0x46   :  { %6811 = vmatprep.subr.mxu1 %v9839_v1  ;;  %6838 = vmatprep.subr.mxu0 %v9839_v1 }
  0x47   :  { %6812 = vmatpush3.msra.mxu1 %v9994_v21  ;;  %6839 = vmatpush3.msra.mxu0 %v9970_v17 }
  0x48   :  { %6814 = vmatmul.mubr.f32.vlgmr.msra.gmra.mxu1 %v9839_v1  ;;  %6848 = vmatprep.mubr.msk.f32.mxu0 %vm9840_vm0, %v9839_v1 }
  0x49   :  { %6840 = vmatprep.subr.mxu0 %v9839_v1  ;;  %6851 = vmatprep.subr.mxu1 %v9839_v1 }
  0x4a   :  { %6841 = vmatpush3.msra.mxu0 %v9976_v18  ;;  %6883 = vmatprep.mubr.msk.f32.mxu1 %vm9840_vm0, %v9839_v1 }
  0x4b   :  { %6842 = vmatprep.subr.mxu0 %v9839_v1  ;;  %6852 = vmatpush3.msra.mxu1 %v10020_v22 }
  0x4c   :  { %6843 = vmatpush3.msra.mxu0 %v9982_v19  ;;  %6853 = vmatprep.subr.mxu1 %v9839_v1 }
  0x4d   :  { %6844 = vmatprep.subr.mxu0 %v9839_v1  ;;  %6854 = vmatpush3.msra.mxu1 %v10024_v23 }
  0x4e   :  { %6845 = vmatpush3.msra.mxu0 %v9988_v20  ;;  %6855 = vmatprep.subr.mxu1 %v9839_v1 }
  0x4f   :  { %6846 = vmatprep.subr.mxu0 %v9839_v1  ;;  %6856 = vmatpush3.msra.mxu1 %v10028_v24 }
  0x50   :  { %6847 = vmatpush3.msra.mxu0 %v9994_v21  ;;  %6857 = vmatprep.subr.mxu1 %v9839_v1 }
  0x51   :  { %6886 = vmatprep.subr.mxu0 %v9839_v1  ;;  %6858 = vmatpush3.msra.mxu1 %v10032_v25 }
  0x52   :  { %6859 = vmatprep.subr.mxu1 %v9839_v1 }
  0x53   :  { %6860 = vmatpush3.msra.mxu1 %v10036_v26 }
  0x54   :  { %6861 = vmatprep.subr.mxu1 %v9839_v1 }
  0x55   :  { %6862 = vmatpush3.msra.mxu1 %v10040_v27 }
  0x56   :  { %6863 = vmatprep.subr.mxu1 %v9839_v1 }
  0x57   :  { %6864 = vmatpush3.msra.mxu1 %v10044_v28 }
  0x58   :  { %6865 = vmatprep.subr.mxu1 %v9839_v1 }
  0x59   :  { %6866 = vmatpush3.msra.mxu1 %v10048_v29 }
  0x5a   :  { %6867 = vmatprep.subr.mxu1 %v9839_v1 }
  0x5b   :  { %6868 = vmatpush3.msra.mxu1 %v10052_v30 }
  0x5c   :  { %6869 = vmatprep.subr.mxu1 %v9839_v1 }
  0x5d   :  { %6870 = vmatpush3.msra.mxu1 %v10056_v31 }
  0x5e   :  { %6871 = vmatprep.subr.mxu1 %v9839_v1 }
  0x5f   :  { %6872 = vmatpush3.msra.mxu1 %v10060_v32 }
  0x60   :  { %6873 = vmatprep.subr.mxu1 %v9839_v1 }
  0x61   :  { %6874 = vmatpush3.msra.mxu1 %v10064_v33 }
  0x62   :  { %6875 = vmatprep.subr.mxu1 %v9839_v1 }
  0x63   :  { %6876 = vmatpush3.msra.mxu1 %v10068_v34 }
  0x64   :  { %6877 = vmatprep.subr.mxu1 %v9839_v1 }
  0x65   :  { %6878 = vmatpush3.msra.mxu1 %v10072_v35 }
  0x66   :  { %6879 = vmatprep.subr.mxu1 %v9839_v1 }
  0x67   :  { %6880 = vmatpush3.msra.mxu1 %v10076_v36 }
  0x68   :  { %6881 = vmatprep.subr.mxu1 %v9839_v1 }
  0x69   :  { %6882 = vmatpush3.msra.mxu1 %v10080_v37 }
  0x6a   :  { %6884 = vmatmul.mubr.f32.vlgmr.msra.gmra.mxu1 %v9839_v1  ;;  %6921 = vmatprep.subr.mxu1 %v9839_v1 }
  0x6b   :  { %6922 = vmatpush3.msra.mxu1 %v9906_v2  ;;  %6953 = vmatprep.mubr.msk.f32.mxu1 %vm9840_vm0, %v9839_v1 }
  0x6c   :  { %6923 = vmatprep.subr.mxu1 %v9839_v1 }
  0x6d   :  { %6924 = vmatpush3.msra.mxu1 %v9908_v3 }
  0x6e   :  { %6925 = vmatprep.subr.mxu1 %v9839_v1 }
  0x6f   :  { %6926 = vmatpush3.msra.mxu1 %v9912_v4 }
  0x70   :  { %6927 = vmatprep.subr.mxu1 %v9839_v1 }
  0x71   :  { %6928 = vmatpush3.msra.mxu1 %v9919_v6 }
  0x72   :  { %6929 = vmatprep.subr.mxu1 %v9839_v1 }
  0x73   :  { %6930 = vmatpush3.msra.mxu1 %v9929_v9 }
  0x74   :  { %6931 = vmatprep.subr.mxu1 %v9839_v1 }
  0x75   :  { %6932 = vmatpush3.msra.mxu1 %v9936_v11 }
  0x76   :  { %6933 = vmatprep.subr.mxu1 %v9839_v1 }
  0x77   :  { %6934 = vmatpush3.msra.mxu1 %v9940_v12 }
  0x78   :  { %6935 = vmatprep.subr.mxu1 %v9839_v1 }
  0x79   :  { %6936 = vmatpush3.msra.mxu1 %v9946_v13 }
  0x7a   :  { %6937 = vmatprep.subr.mxu1 %v9839_v1 }
  0x7b   :  { %6938 = vmatpush3.msra.mxu1 %v9952_v14 }
  0x7c   :  { %6939 = vmatprep.subr.mxu1 %v9839_v1 }
  0x7d   :  { %6940 = vmatpush3.msra.mxu1 %v9958_v15 }
  0x7e   :  { %6941 = vmatprep.subr.mxu1 %v9839_v1 }
  0x7f   :  { %6942 = vmatpush3.msra.mxu1 %v9964_v16 }
  0x80   :  { %6943 = vmatprep.subr.mxu1 %v9839_v1 }
  0x81   :  { %6944 = vmatpush3.msra.mxu1 %v9970_v17 }
  0x82   :  { %6945 = vmatprep.subr.mxu1 %v9839_v1 }
  0x83   :  { %6946 = vmatpush3.msra.mxu1 %v9976_v18 }
  0x84   :  { %6947 = vmatprep.subr.mxu1 %v9839_v1 }
  0x85   :  { %6948 = vmatpush3.msra.mxu1 %v9982_v19 }
  0x86   :  { %6949 = vmatprep.subr.mxu1 %v9839_v1 }
  0x87   :  { %6950 = vmatpush3.msra.mxu1 %v9988_v20 }
  0x88   :  { %6951 = vmatprep.subr.mxu1 %v9839_v1 }
  0x89   :  { %6952 = vmatpush3.msra.mxu1 %v9994_v21 }
  0x8a   :  { %6991 = vmatprep.subr.mxu1 %v9839_v1 }
  0xef   :  { %v6780_v39 = vpop.f32.mrf.mxu0 }
  0xf0   :  { %v10122_v40 = vadd.f32 %v6780_v39, %v5534_v38 }
  0xf1   :  { %v159_v41 = vpop.f32.mrf.mxu0 }
  0xf2   :  { %13643 = vst [vmem:[#allocation10_spill] sm:$0xff] %v10122_v40  ;;  %v10124_v42 = vadd.f32 %v5534_v38, %v159_v41  ;;  %v10310_v40 = vld [vmem:[#allocation5 + $0xd0] sm:$0xff] }
  0xf3   :  { %13650 = vst [vmem:[#allocation17_spill] sm:$0xff] %v10310_v40 }
 0x108   :  { %v250_v43 = vpop.f32.mrf.mxu1 }
 0x109   :  { %v254_v44 = vadd.f32 %v250_v43, %v10124_v42  ;;  %v10243_v43 = vld [vmem:[%s13454_s6] ss:$0 sm:$0xff] }
 0x10a   :  { %v6815_v45 = vpop.f32.mrf.mxu1 }
 0x10b   :  { %9308 = vtanh.f32 %v254_v44 }
 0x118   :  { %v9309_v47 = vpop.eup %9308 }
 0x119   :  { %6849 = vmatmul.mubr.f32.vlgmr.msra.gmra.mxu0 %v9309_v47 }
 0x11a   :  { %6887 = vmatpush3.msra.mxu0 %v10127_v46  ;;  %6918 = vmatprep.mubr.msk.f32.mxu0 %vm9840_vm0, %v9839_v1 }
 0x11b   :  { %6888 = vmatprep.subr.mxu0 %v9839_v1 }
 0x11c   :  { %6889 = vmatpush3.msra.mxu0 %v10129_v48 }
 0x11d   :  { %6890 = vmatprep.subr.mxu0 %v9839_v1 }
 0x11e   :  { %6891 = vmatpush3.msra.mxu0 %v10135_v49 }
 0x11f   :  { %6892 = vmatprep.subr.mxu0 %v9839_v1 }
 0x120   :  { %6893 = vmatpush3.msra.mxu0 %v10139_v50 }
 0x121   :  { %6894 = vmatprep.subr.mxu0 %v9839_v1 }
 0x122   :  { %6895 = vmatpush3.msra.mxu0 %v10143_v51 }
 0x123   :  { %6896 = vmatprep.subr.mxu0 %v9839_v1 }
 0x124   :  { %6897 = vmatpush3.msra.mxu0 %v10147_v52 }
 0x125   :  { %6898 = vmatprep.subr.mxu0 %v9839_v1 }
 0x126   :  { %6899 = vmatpush3.msra.mxu0 %v10151_v53 }
 0x127   :  { %6900 = vmatprep.subr.mxu0 %v9839_v1 }
 0x128   :  { %6901 = vmatpush3.msra.mxu0 %v10155_v54 }
 0x129   :  { %6902 = vmatprep.subr.mxu0 %v9839_v1 }
 0x12a   :  { %6903 = vmatpush3.msra.mxu0 %v10159_v55  ;;  %v429_v63 = vpop.f32.mrf.mxu1 }
 0x12b   :  { %6904 = vmatprep.subr.mxu0 %v9839_v1 }
 0x12c   :  { %6905 = vmatpush3.msra.mxu0 %v10163_v56  ;;  %v6885_v0 = vpop.f32.mrf.mxu1 }
 0x12d   :  { %6906 = vmatprep.subr.mxu0 %v9839_v1 }
 0x12e   :  { %6907 = vmatpush3.msra.mxu0 %v10167_v57 }
 0x12f   :  { %6908 = vmatprep.subr.mxu0 %v9839_v1 }
 0x130   :  { %6909 = vmatpush3.msra.mxu0 %v10171_v58 }
 0x131   :  { %6910 = vmatprep.subr.mxu0 %v9839_v1 }
 0x132   :  { %6911 = vmatpush3.msra.mxu0 %v10175_v59 }
 0x133   :  { %6912 = vmatprep.subr.mxu0 %v9839_v1 }
 0x134   :  { %6913 = vmatpush3.msra.mxu0 %v10179_v60 }
 0x135   :  { %6914 = vmatprep.subr.mxu0 %v9839_v1 }
 0x136   :  { %6915 = vmatpush3.msra.mxu0 %v10183_v61 }
 0x137   :  { %6916 = vmatprep.subr.mxu0 %v9839_v1 }
 0x138   :  { %6917 = vmatpush3.msra.mxu0 %v10187_v62 }
 0x139   :  { %6919 = vmatmul.mubr.f32.vlgmr.msra.gmra.mxu0 %v9309_v47  ;;  %6956 = vmatprep.subr.mxu0 %v9839_v1 }
 0x13a   :  { %6957 = vmatpush3.msra.mxu0 %v10020_v22  ;;  %6988 = vmatprep.mubr.msk.f32.mxu0 %vm9840_vm0, %v9839_v1 }
 0x13b   :  { %6958 = vmatprep.subr.mxu0 %v9839_v1 }
 0x13c   :  { %6959 = vmatpush3.msra.mxu0 %v10024_v23 }
 0x13d   :  { %6960 = vmatprep.subr.mxu0 %v9839_v1 }
 0x13e   :  { %6961 = vmatpush3.msra.mxu0 %v10028_v24 }
 0x13f   :  { %6962 = vmatprep.subr.mxu0 %v9839_v1 }
 0x140   :  { %6963 = vmatpush3.msra.mxu0 %v10032_v25 }
 0x141   :  { %6964 = vmatprep.subr.mxu0 %v9839_v1 }
 0x142   :  { %6965 = vmatpush3.msra.mxu0 %v10036_v26 }
 0x143   :  { %6966 = vmatprep.subr.mxu0 %v9839_v1 }
 0x144   :  { %6967 = vmatpush3.msra.mxu0 %v10040_v27 }
 0x145   :  { %6968 = vmatprep.subr.mxu0 %v9839_v1 }
 0x146   :  { %6969 = vmatpush3.msra.mxu0 %v10044_v28 }
 0x147   :  { %6970 = vmatprep.subr.mxu0 %v9839_v1 }
 0x148   :  { %6971 = vmatpush3.msra.mxu0 %v10048_v29 }
 0x149   :  { %6972 = vmatprep.subr.mxu0 %v9839_v1 }
 0x14a   :  { %6973 = vmatpush3.msra.mxu0 %v10052_v30 }
 0x14b   :  { %6974 = vmatprep.subr.mxu0 %v9839_v1 }
 0x14c   :  { %6975 = vmatpush3.msra.mxu0 %v10056_v31 }
 0x14d   :  { %6976 = vmatprep.subr.mxu0 %v9839_v1 }
 0x14e   :  { %6977 = vmatpush3.msra.mxu0 %v10060_v32 }
 0x14f   :  { %6978 = vmatprep.subr.mxu0 %v9839_v1 }
 0x150   :  { %6979 = vmatpush3.msra.mxu0 %v10064_v33 }
 0x151   :  { %6980 = vmatprep.subr.mxu0 %v9839_v1 }
 0x152   :  { %6981 = vmatpush3.msra.mxu0 %v10068_v34 }
 0x153   :  { %6982 = vmatprep.subr.mxu0 %v9839_v1 }
 0x154   :  { %6983 = vmatpush3.msra.mxu0 %v10072_v35 }
 0x155   :  { %6984 = vmatprep.subr.mxu0 %v9839_v1 }
 0x156   :  { %6985 = vmatpush3.msra.mxu0 %v10076_v36 }
 0x157   :  { %6986 = vmatprep.subr.mxu0 %v9839_v1 }
 0x158   :  { %6987 = vmatpush3.msra.mxu0 %v10080_v37 }
 0x159   :  { %7026 = vmatprep.subr.mxu0 %v9839_v1 }
 0x1d9   :  { %v322_v5 = vpop.f32.mrf.mxu0 }
 0x1da   :  { %v327_v7 = vrot.slane %v322_v5, 6  ;;  %v10271_v5 = vld [vmem:[#allocation5 + $0xf8] sm:$0xff] }
 0x1db   :  { %v6850_v8 = vpop.f32.mrf.mxu0 }
 0x1dc   :  { %v329_v10 = vadd.f32 %v327_v7, %v10124_v42  ;;  %v10275_v7 = vld [vmem:[#allocation7 + $0xf0] sm:$0xff] }
 0x1dd   :  { %v10278_v8 = vld [vmem:[#allocation5 + $0xf0] sm:$0xff] }
 0x1de   :  { %9310 = vtanh.f32 %v329_v10  ;;  %v10282_v10 = vld [vmem:[#allocation7 + $0xe8] sm:$0xff] }
 0x1eb   :  { %v9311_v38 = vpop.eup %9310 }
 0x1ec   :  { %v513_v39 = vrot.slane %v9311_v38, 2  ;;  %v10286_v38 = vld [vmem:[#allocation5 + $0xe8] sm:$0xff] }
 0x1ed   :  { %13644 = vst [vmem:[#allocation11_spill] sm:$0xff] %v10286_v38 }
 0x1ee   :  { %6954 = vmatmul.mubr.f32.vlgmr.msra.gmra.mxu1 %v513_v39 }
 0x1ef   :  { %6992 = vmatpush3.msra.mxu1 %v10127_v46  ;;  %7023 = vmatprep.mubr.msk.f32.mxu1 %vm9840_vm0, %v9839_v1 }
 0x1f0   :  { %6993 = vmatprep.subr.mxu1 %v9839_v1 }
 0x1f1   :  { %6994 = vmatpush3.msra.mxu1 %v10129_v48 }
 0x1f2   :  { %6995 = vmatprep.subr.mxu1 %v9839_v1 }
 0x1f3   :  { %6996 = vmatpush3.msra.mxu1 %v10135_v49 }
 0x1f4   :  { %6997 = vmatprep.subr.mxu1 %v9839_v1 }
 0x1f5   :  { %6998 = vmatpush3.msra.mxu1 %v10139_v50 }
 0x1f6   :  { %6999 = vmatprep.subr.mxu1 %v9839_v1 }
 0x1f7   :  { %7000 = vmatpush3.msra.mxu1 %v10143_v51 }
 0x1f8   :  { %7001 = vmatprep.subr.mxu1 %v9839_v1 }
 0x1f9   :  { %v499_v41 = vpop.f32.mrf.mxu0  ;;  %7002 = vmatpush3.msra.mxu1 %v10147_v52 }
 0x1fa   :  { %v500_v44 = vadd.f32 %v499_v41, %v429_v63  ;;  %7003 = vmatprep.subr.mxu1 %v9839_v1  ;;  %v10264_v63 = vld [vmem:[#allocation7 + $0xf8] sm:$0xff]  ;;  %v10294_v41 = vld [vmem:[#allocation5 + $0xe0] sm:$0xff] }
 0x1fb   :  { %v6920_v45 = vpop.f32.mrf.mxu0  ;;  %7004 = vmatpush3.msra.mxu1 %v10151_v53  ;;  %13646 = vst [vmem:[#allocation13_spill] sm:$0xff] %v10294_v41 }
 0x1fc   :  { %v510_v47 = vadd.f32 %v10243_v43, %v500_v44  ;;  %7005 = vmatprep.subr.mxu1 %v9839_v1  ;;  %v10298_v44 = vld [vmem:[#allocation7 + $0xd8] sm:$0xff] }
 0x1fd   :  { %7006 = vmatpush3.msra.mxu1 %v10155_v54  ;;  %13647 = vst [vmem:[#allocation14_spill] sm:$0xff] %v10298_v44  ;;  %v10302_v45 = vld [vmem:[#allocation5 + $0xd8] sm:$0xff] }
 0x1fe   :  { %9312 = vtanh.f32 %v510_v47  ;;  %7007 = vmatprep.subr.mxu1 %v9839_v1  ;;  %13648 = vst [vmem:[#allocation15_spill] sm:$0xff] %v10302_v45  ;;  %v10306_v47 = vld [vmem:[#allocation7 + $0xd0] sm:$0xff] }
 0x1ff   :  { %7008 = vmatpush3.msra.mxu1 %v10159_v55  ;;  %13649 = vst [vmem:[#allocation16_spill] sm:$0xff] %v10306_v47 }
 0x200   :  { %7009 = vmatprep.subr.mxu1 %v9839_v1 }
 0x201   :  { %7010 = vmatpush3.msra.mxu1 %v10163_v56 }
 0x202   :  { %7011 = vmatprep.subr.mxu1 %v9839_v1 }
 0x203   :  { %7012 = vmatpush3.msra.mxu1 %v10167_v57 }
 0x204   :  { %7013 = vmatprep.subr.mxu1 %v9839_v1 }
 0x205   :  { %7014 = vmatpush3.msra.mxu1 %v10171_v58 }
 0x206   :  { %7015 = vmatprep.subr.mxu1 %v9839_v1 }
 0x207   :  { %7016 = vmatpush3.msra.mxu1 %v10175_v59 }
 0x208   :  { %7017 = vmatprep.subr.mxu1 %v9839_v1 }
 0x209   :  { %7018 = vmatpush3.msra.mxu1 %v10179_v60 }
 0x20a   :  { %7019 = vmatprep.subr.mxu1 %v9839_v1 }
 0x20b   :  { %v10266_v0 = vpop.eup %9312  ;;  %7020 = vmatpush3.msra.mxu1 %v10183_v61 }
 0x20c   :  { %6989 = vmatmul.mubr.f32.vlgmr.msra.gmra.mxu0 %v10266_v0  ;;  %7021 = vmatprep.subr.mxu1 %v9839_v1 }
 0x20d   :  { %7022 = vmatpush3.msra.mxu1 %v10187_v62  ;;  %7027 = vmatpush3.msra.mxu0 %v10264_v63 }
 0x20e   :  { %7024 = vmatmul.mubr.f32.vlgmr.msra.gmra.mxu1 %v513_v39  ;;  %7061 = vmatprep.subr.mxu1 %v9839_v1  ;;  %v10290_v39 = vld [vmem:[#allocation7 + $0xe0] sm:$0xff] }
 0x20f   :  { %7062 = vmatpush3.msra.mxu1 %v10271_v5  ;;  %7028 = vmatprep.subr.mxu0 %v9839_v1  ;;  %13645 = vst [vmem:[#allocation12_spill] sm:$0xff] %v10290_v39 }
 0x210   :  { %7063 = vmatprep.subr.mxu1 %v9839_v1  ;;  %7029 = vmatpush3.msra.mxu0 %v10275_v7 }
 0x211   :  { %7064 = vmatpush3.msra.mxu1 %v10278_v8  ;;  %7030 = vmatprep.subr.mxu0 %v9839_v1 }
 0x212   :  { %7065 = vmatprep.subr.mxu1 %v9839_v1  ;;  %7031 = vmatpush3.msra.mxu0 %v10282_v10 }
 0x213   :  { %7066 = vmatpush3.msra.mxu1 %v10286_v38  ;;  %7032 = vmatprep.subr.mxu0 %v9839_v1  ;;  %v10314_v38 = vld [vmem:[#allocation7 + $0xc8] sm:$0xff] }
 0x214   :  { %7067 = vmatprep.subr.mxu1 %v9839_v1  ;;  %7033 = vmatpush3.msra.mxu0 %v10290_v39  ;;  %13651 = vst [vmem:[#allocation18_spill] sm:$0xff] %v10314_v38  ;;  %v10322_v39 = vld [vmem:[#allocation7 + $0xc0] sm:$0xff] }
 0x215   :  { %7068 = vmatpush3.msra.mxu1 %v10294_v41  ;;  %7034 = vmatprep.subr.mxu0 %v9839_v1  ;;  %v10318_v41 = vld [vmem:[#allocation5 + $0xc8] sm:$0xff]  ;;  %13653 = vst [vmem:[#allocation20_spill] sm:$0xff] %v10322_v39 }
 0x216   :  { %7069 = vmatprep.subr.mxu1 %v9839_v1  ;;  %7035 = vmatpush3.msra.mxu0 %v10298_v44  ;;  %13652 = vst [vmem:[#allocation19_spill] sm:$0xff] %v10318_v41  ;;  %v10330_v44 = vld [vmem:[#allocation7 + $0xb8] sm:$0xff] }
 0x217   :  { %7070 = vmatpush3.msra.mxu1 %v10302_v45  ;;  %7036 = vmatprep.subr.mxu0 %v9839_v1  ;;  %v10326_v45 = vld [vmem:[#allocation5 + $0xc0] sm:$0xff]  ;;  %13655 = vst [vmem:[#allocation22_spill] sm:$0xff] %v10330_v44 }
 0x218   :  { %7071 = vmatprep.subr.mxu1 %v9839_v1  ;;  %7037 = vmatpush3.msra.mxu0 %v10306_v47  ;;  %13654 = vst [vmem:[#allocation21_spill] sm:$0xff] %v10326_v45  ;;  %v10338_v47 = vld [vmem:[#allocation7 + $0xb0] sm:$0xff] }
 0x219   :  { %7072 = vmatpush3.msra.mxu1 %v10310_v40  ;;  %7038 = vmatprep.subr.mxu0 %v9839_v1  ;;  %v10334_v40 = vld [vmem:[#allocation5 + $0xb8] sm:$0xff]  ;;  %13657 = vst [vmem:[#allocation24_spill] sm:$0xff] %v10338_v47 }
 0x21a   :  { %7073 = vmatprep.subr.mxu1 %v9839_v1  ;;  %7039 = vmatpush3.msra.mxu0 %v10314_v38  ;;  %13656 = vst [vmem:[#allocation23_spill] sm:$0xff] %v10334_v40  ;;  %v10346_v38 = vld [vmem:[#allocation7 + $0xa8] sm:$0xff] }
 0x21b   :  { %7074 = vmatpush3.msra.mxu1 %v10318_v41  ;;  %7040 = vmatprep.subr.mxu0 %v9839_v1  ;;  %v10342_v41 = vld [vmem:[#allocation5 + $0xb0] sm:$0xff]  ;;  %13659 = vst [vmem:[#allocation26_spill] sm:$0xff] %v10346_v38 }
 0x21c   :  { %7075 = vmatprep.subr.mxu1 %v9839_v1  ;;  %7041 = vmatpush3.msra.mxu0 %v10322_v39  ;;  %13658 = vst [vmem:[#allocation25_spill] sm:$0xff] %v10342_v41  ;;  %v10354_v39 = vld [vmem:[#allocation7 + $0xa0] sm:$0xff] }
 0x21d   :  { %7076 = vmatpush3.msra.mxu1 %v10326_v45  ;;  %7042 = vmatprep.subr.mxu0 %v9839_v1  ;;  %v10350_v45 = vld [vmem:[#allocation5 + $0xa8] sm:$0xff]  ;;  %13661 = vst [vmem:[#allocation28_spill] sm:$0xff] %v10354_v39 }
 0x21e   :  { %7077 = vmatprep.subr.mxu1 %v9839_v1  ;;  %7043 = vmatpush3.msra.mxu0 %v10330_v44  ;;  %13660 = vst [vmem:[#allocation27_spill] sm:$0xff] %v10350_v45  ;;  %v10362_v44 = vld [vmem:[#allocation7 + $0x98] sm:$0xff] }
 0x21f   :  { %7078 = vmatpush3.msra.mxu1 %v10334_v40  ;;  %7044 = vmatprep.subr.mxu0 %v9839_v1  ;;  %v10358_v40 = vld [vmem:[#allocation5 + $0xa0] sm:$0xff] }
 0x220   :  { %7079 = vmatprep.subr.mxu1 %v9839_v1  ;;  %7045 = vmatpush3.msra.mxu0 %v10338_v47  ;;  %13662 = vst [vmem:[#allocation29_spill] sm:$0xff] %v10358_v40  ;;  %v10370_v47 = vld [vmem:[#allocation7 + $0x90] sm:$0xff] }
 0x221   :  { %7080 = vmatpush3.msra.mxu1 %v10342_v41  ;;  %7046 = vmatprep.subr.mxu0 %v9839_v1  ;;  %v10366_v41 = vld [vmem:[#allocation5 + $0x98] sm:$0xff] }
 0x222   :  { %7081 = vmatprep.subr.mxu1 %v9839_v1  ;;  %7047 = vmatpush3.msra.mxu0 %v10346_v38  ;;  %13663 = vst [vmem:[#allocation30_spill] sm:$0xff] %v10366_v41  ;;  %v10378_v38 = vld [vmem:[#allocation7 + $0x88] sm:$0xff] }
 0x223   :  { %7082 = vmatpush3.msra.mxu1 %v10350_v45  ;;  %7048 = vmatprep.subr.mxu0 %v9839_v1  ;;  %v10374_v45 = vld [vmem:[#allocation5 + $0x90] sm:$0xff] }
 0x224   :  { %7083 = vmatprep.subr.mxu1 %v9839_v1  ;;  %7049 = vmatpush3.msra.mxu0 %v10354_v39  ;;  %v10386_v39 = vld [vmem:[#allocation7 + $0x80] sm:$0xff] }
 0x225   :  { %7084 = vmatpush3.msra.mxu1 %v10358_v40  ;;  %7050 = vmatprep.subr.mxu0 %v9839_v1  ;;  %v10382_v40 = vld [vmem:[#allocation5 + $0x88] sm:$0xff] }
 0x226   :  { %7085 = vmatprep.subr.mxu1 %v9839_v1  ;;  %7051 = vmatpush3.msra.mxu0 %v10362_v44 }
 0x227   :  { %7086 = vmatpush3.msra.mxu1 %v10366_v41  ;;  %7052 = vmatprep.subr.mxu0 %v9839_v1  ;;  %v10390_v41 = vld [vmem:[#allocation5 + $0x80] sm:$0xff] }
 0x228   :  { %7087 = vmatprep.subr.mxu1 %v9839_v1  ;;  %7053 = vmatpush3.msra.mxu0 %v10370_v47 }
 0x229   :  { %7088 = vmatpush3.msra.mxu1 %v10374_v45  ;;  %7054 = vmatprep.subr.mxu0 %v9839_v1 }
 0x22a   :  { %7089 = vmatprep.subr.mxu1 %v9839_v1  ;;  %7055 = vmatpush3.msra.mxu0 %v10378_v38 }
 0x22b   :  { %7090 = vmatpush3.msra.mxu1 %v10382_v40  ;;  %7056 = vmatprep.subr.mxu0 %v9839_v1 }
 0x22c   :  { %7091 = vmatprep.subr.mxu1 %v9839_v1  ;;  %7057 = vmatpush3.msra.mxu0 %v10386_v39 }
 0x22d   :  { %7058 = vmatprep.mubr.msk.f32.mxu0 %vm9840_vm0, %v9839_v1  ;;  %7092 = vmatpush3.msra.mxu1 %v10390_v41 }
 0x22e   :  { %7093 = vmatprep.mubr.msk.f32.mxu1 %vm9840_vm0, %v9839_v1  ;;  %7059 = vmatmul.mubr.f32.vlgmr.msra.gmra.mxu0 %v9839_v1 }
 0x22f   :  { %7094 = vmatmul.mubr.f32.vlgmr.msra.gmra.mxu1 %v10266_v0  ;;  %7096 = vmatprep.subr.mxu0 %v9839_v1  ;;  %v10621_v0 = vld [vmem:[#allocation5 + $0x158] sm:$0xff] }
 0x230   :  { %7097 = vmatpush3.msra.mxu0 %v9906_v2  ;;  %7131 = vmatprep.subr.mxu1 %v9839_v1 }
 0x231   :  { %7098 = vmatprep.subr.mxu0 %v9839_v1  ;;  %7132 = vmatpush3.msra.mxu1 %v10020_v22  ;;  %v13667_v22 = vld [vmem:[#allocation13_spill] sm:$0xff] }
 0x232   :  { %7099 = vmatpush3.msra.mxu0 %v9908_v3  ;;  %7128 = vmatprep.mubr.msk.f32.mxu0 %vm9840_vm0, %v9839_v1 }
 0x233   :  { %7100 = vmatprep.subr.mxu0 %v9839_v1  ;;  %7133 = vmatprep.subr.mxu1 %v9839_v1 }
 0x234   :  { %7101 = vmatpush3.msra.mxu0 %v9912_v4  ;;  %7134 = vmatpush3.msra.mxu1 %v10024_v23  ;;  %v13668_v23 = vld [vmem:[#allocation16_spill] sm:$0xff] }
 0x235   :  { %7102 = vmatprep.subr.mxu0 %v9839_v1  ;;  %7135 = vmatprep.subr.mxu1 %v9839_v1 }
 0x236   :  { %7103 = vmatpush3.msra.mxu0 %v9919_v6  ;;  %7136 = vmatpush3.msra.mxu1 %v10028_v24  ;;  %v13669_v24 = vld [vmem:[#allocation15_spill] sm:$0xff] }
 0x237   :  { %7104 = vmatprep.subr.mxu0 %v9839_v1  ;;  %7137 = vmatprep.subr.mxu1 %v9839_v1 }
 0x238   :  { %7105 = vmatpush3.msra.mxu0 %v9929_v9  ;;  %7138 = vmatpush3.msra.mxu1 %v10032_v25 }
 0x239   :  { %7106 = vmatprep.subr.mxu0 %v9839_v1  ;;  %7139 = vmatprep.subr.mxu1 %v9839_v1 }
 0x23a   :  { %7107 = vmatpush3.msra.mxu0 %v9936_v11  ;;  %7140 = vmatpush3.msra.mxu1 %v10036_v26  ;;  %v13670_v26 = vld [vmem:[#allocation18_spill] sm:$0xff] }
 0x23b   :  { %7108 = vmatprep.subr.mxu0 %v9839_v1  ;;  %7141 = vmatprep.subr.mxu1 %v9839_v1 }
 0x23c   :  { %7109 = vmatpush3.msra.mxu0 %v9940_v12  ;;  %7142 = vmatpush3.msra.mxu1 %v10040_v27 }
 0x23d   :  { %7110 = vmatprep.subr.mxu0 %v9839_v1  ;;  %7143 = vmatprep.subr.mxu1 %v9839_v1 }
 0x23e   :  { %7111 = vmatpush3.msra.mxu0 %v9946_v13  ;;  %7144 = vmatpush3.msra.mxu1 %v10044_v28  ;;  %v10538_v28 = vld [vmem:[%s13454_s6 + $0x1] ss:$0 sm:$0xff] }
 0x23f   :  { %7112 = vmatprep.subr.mxu0 %v9839_v1  ;;  %7145 = vmatprep.subr.mxu1 %v9839_v1 }
 0x240   :  { %7113 = vmatpush3.msra.mxu0 %v9952_v14  ;;  %7146 = vmatpush3.msra.mxu1 %v10048_v29  ;;  %v13671_v29 = vld [vmem:[#allocation17_spill] sm:$0xff] }
 0x241   :  { %7114 = vmatprep.subr.mxu0 %v9839_v1  ;;  %7147 = vmatprep.subr.mxu1 %v9839_v1 }
 0x242   :  { %7115 = vmatpush3.msra.mxu0 %v9958_v15  ;;  %7148 = vmatpush3.msra.mxu1 %v10052_v30 }
 0x243   :  { %7116 = vmatprep.subr.mxu0 %v9839_v1  ;;  %7149 = vmatprep.subr.mxu1 %v9839_v1 }
 0x244   :  { %7117 = vmatpush3.msra.mxu0 %v9964_v16  ;;  %7150 = vmatpush3.msra.mxu1 %v10056_v31  ;;  %v13672_v31 = vld [vmem:[#allocation20_spill] sm:$0xff] }
 0x245   :  { %7118 = vmatprep.subr.mxu0 %v9839_v1  ;;  %7151 = vmatprep.subr.mxu1 %v9839_v1 }
 0x246   :  { %7119 = vmatpush3.msra.mxu0 %v9970_v17  ;;  %7152 = vmatpush3.msra.mxu1 %v10060_v32 }
 0x247   :  { %7120 = vmatprep.subr.mxu0 %v9839_v1  ;;  %7153 = vmatprep.subr.mxu1 %v9839_v1 }
 0x248   :  { %7121 = vmatpush3.msra.mxu0 %v9976_v18  ;;  %7154 = vmatpush3.msra.mxu1 %v10064_v33 }
 0x249   :  { %7122 = vmatprep.subr.mxu0 %v9839_v1  ;;  %7155 = vmatprep.subr.mxu1 %v9839_v1 }
 0x24a   :  { %7123 = vmatpush3.msra.mxu0 %v9982_v19  ;;  %7156 = vmatpush3.msra.mxu1 %v10068_v34  ;;  %v13664_v19 = vld [vmem:[#allocation12_spill] sm:$0xff]  ;;  %v13673_v34 = vld [vmem:[#allocation19_spill] sm:$0xff] }
 0x24b   :  { %7124 = vmatprep.subr.mxu0 %v9839_v1  ;;  %7157 = vmatprep.subr.mxu1 %v9839_v1 }
 0x24c   :  { %7125 = vmatpush3.msra.mxu0 %v9988_v20  ;;  %7158 = vmatpush3.msra.mxu1 %v10072_v35  ;;  %v13665_v20 = vld [vmem:[#allocation11_spill] sm:$0xff] }
 0x24d   :  { %7126 = vmatprep.subr.mxu0 %v9839_v1  ;;  %7159 = vmatprep.subr.mxu1 %v9839_v1 }
 0x24e   :  { %7127 = vmatpush3.msra.mxu0 %v9994_v21  ;;  %7160 = vmatpush3.msra.mxu1 %v10076_v36  ;;  %v13666_v21 = vld [vmem:[#allocation14_spill] sm:$0xff] }
 0x24f   :  { %7166 = vmatprep.subr.mxu0 %v9839_v1  ;;  %7161 = vmatprep.subr.mxu1 %v9839_v1  ;;  %v13674_v36 = vld [vmem:[#allocation22_spill] sm:$0xff] }
 0x250   :  { %7162 = vmatpush3.msra.mxu1 %v10080_v37  ;;  %7163 = vmatprep.mubr.msk.f32.mxu1 %vm9840_vm0, %v9839_v1  ;;  %v13675_v37 = vld [vmem:[#allocation21_spill] sm:$0xff] }
 0x251   :  { %7201 = vmatprep.subr.mxu1 %v9839_v1 }
 0x2ae   :  { %v581_v2 = vpop.f32.mrf.mxu1 }
 0x2af   :  { %v586_v3 = vrot.slane %v581_v2, 4  ;;  %v10637_v2 = vld [vmem:[#allocation5 + $0x148] sm:$0xff] }
 0x2b0   :  { %v6955_v4 = vpop.f32.mrf.mxu1 }
 0x2b1   :  { %v588_v6 = vadd.f32 %v586_v3, %v10124_v42  ;;  %v10641_v3 = vld [vmem:[#allocation7 + $0x140] sm:$0xff] }
 0x2b2   :  { %v10645_v4 = vld [vmem:[#allocation5 + $0x140] sm:$0xff] }
 0x2b3   :  { %9314 = vtanh.f32 %v588_v6  ;;  %v10649_v6 = vld [vmem:[#allocation7 + $0x138] sm:$0xff] }
 0x2c0   :  { %v9315_v9 = vpop.eup %9314 }
 0x2c1   :  { %v917_v11 = vrot.slane %v9315_v9, 4  ;;  %v10653_v9 = vld [vmem:[#allocation5 + $0x138] sm:$0xff] }
 0x2c3   :  { %7129 = vmatmul.mubr.f32.vlgmr.msra.gmra.mxu0 %v917_v11 }
 0x2c4   :  { %7167 = vmatpush3.msra.mxu0 %v10127_v46  ;;  %7198 = vmatprep.mubr.msk.f32.mxu0 %vm9840_vm0, %v9839_v1  ;;  %v13676_v46 = vld [vmem:[#allocation24_spill] sm:$0xff] }
 0x2c5   :  { %7168 = vmatprep.subr.mxu0 %v9839_v1 }
 0x2c6   :  { %7169 = vmatpush3.msra.mxu0 %v10129_v48  ;;  %v13677_v48 = vld [vmem:[#allocation23_spill] sm:$0xff] }
 0x2c7   :  { %7170 = vmatprep.subr.mxu0 %v9839_v1 }
 0x2c8   :  { %7171 = vmatpush3.msra.mxu0 %v10135_v49  ;;  %v13678_v49 = vld [vmem:[#allocation26_spill] sm:$0xff] }
 0x2c9   :  { %7172 = vmatprep.subr.mxu0 %v9839_v1 }
 0x2ca   :  { %7173 = vmatpush3.msra.mxu0 %v10139_v50  ;;  %v13679_v50 = vld [vmem:[#allocation25_spill] sm:$0xff] }
 0x2cb   :  { %7174 = vmatprep.subr.mxu0 %v9839_v1 }
 0x2cc   :  { %v656_v12 = vpop.f32.mrf.mxu0  ;;  %7175 = vmatpush3.msra.mxu0 %v10143_v51  ;;  %v13680_v51 = vld [vmem:[#allocation28_spill] sm:$0xff] }
 0x2cd   :  { %7176 = vmatprep.subr.mxu0 %v9839_v1 }
 0x2ce   :  { %v6990_v13 = vpop.f32.mrf.mxu0  ;;  %v726_v14 = vpop.f32.mrf.mxu1  ;;  %7177 = vmatpush3.msra.mxu0 %v10147_v52  ;;  %v13681_v52 = vld [vmem:[#allocation27_spill] sm:$0xff] }
 0x2cf   :  { %v727_v15 = vadd.f32 %v726_v14, %v656_v12  ;;  %7178 = vmatprep.subr.mxu0 %v9839_v1  ;;  %v10661_v12 = vld [vmem:[#allocation5 + $0x130] sm:$0xff]  ;;  %v10665_v13 = vld [vmem:[#allocation7 + $0x128] sm:$0xff] }
 0x2d0   :  { %v7025_v16 = vpop.f32.mrf.mxu1  ;;  %7179 = vmatpush3.msra.mxu0 %v10151_v53  ;;  %v13682_v53 = vld [vmem:[#allocation29_spill] sm:$0xff]  ;;  %v10669_v14 = vld [vmem:[#allocation5 + $0x128] sm:$0xff] }
 0x2d1   :  { %v730_v17 = vadd.f32 %v10243_v43, %v727_v15  ;;  %7180 = vmatprep.subr.mxu0 %v9839_v1  ;;  %v10613_v43 = vld [vmem:[#allocation5 + $0x160] sm:$0xff] }
 0x2d2   :  { %7181 = vmatpush3.msra.mxu0 %v10155_v54  ;;  %v13683_v54 = vld [vmem:[#allocation30_spill] sm:$0xff] }
 0x2d3   :  { %9316 = vtanh.f32 %v730_v17  ;;  %7182 = vmatprep.subr.mxu0 %v9839_v1  ;;  %v10673_v15 = vld [vmem:[#allocation7 + $0x120] sm:$0xff]  ;;  %v10681_v17 = vld [vmem:[#allocation7 + $0x118] sm:$0xff] }
 0x2d4   :  { %7183 = vmatpush3.msra.mxu0 %v10159_v55  ;;  %v10677_v16 = vld [vmem:[#allocation5 + $0x120] sm:$0xff] }
 0x2d5   :  { %7184 = vmatprep.subr.mxu0 %v9839_v1 }
 0x2d6   :  { %7185 = vmatpush3.msra.mxu0 %v10163_v56  ;;  %v10584_v56 = vld [vmem:[#allocation7 + $0x178] sm:$0xff] }
 0x2d7   :  { %7186 = vmatprep.subr.mxu0 %v9839_v1 }
 0x2d8   :  { %7187 = vmatpush3.msra.mxu0 %v10167_v57  ;;  %v10589_v57 = vld [vmem:[#allocation5 + $0x178] sm:$0xff] }
 0x2d9   :  { %7188 = vmatprep.subr.mxu0 %v9839_v1 }
 0x2da   :  { %7189 = vmatpush3.msra.mxu0 %v10171_v58  ;;  %v10593_v58 = vld [vmem:[#allocation7 + $0x170] sm:$0xff] }
 0x2db   :  { %7190 = vmatprep.subr.mxu0 %v9839_v1 }
 0x2dc   :  { %7191 = vmatpush3.msra.mxu0 %v10175_v59  ;;  %v10597_v59 = vld [vmem:[#allocation5 + $0x170] sm:$0xff] }
 0x2dd   :  { %7192 = vmatprep.subr.mxu0 %v9839_v1 }
 0x2de   :  { %7193 = vmatpush3.msra.mxu0 %v10179_v60  ;;  %v10601_v60 = vld [vmem:[#allocation7 + $0x168] sm:$0xff] }
 0x2df   :  { %7194 = vmatprep.subr.mxu0 %v9839_v1 }
 0x2e0   :  { %v10505_v18 = vpop.eup %9316  ;;  %7195 = vmatpush3.msra.mxu0 %v10183_v61  ;;  %v10605_v61 = vld [vmem:[#allocation5 + $0x168] sm:$0xff] }
 0x2e1   :  { %7164 = vmatmul.mubr.f32.vlgmr.msra.gmra.mxu1 %v10505_v18  ;;  %7196 = vmatprep.subr.mxu0 %v9839_v1 }
 0x2e2   :  { %7197 = vmatpush3.msra.mxu0 %v10187_v62  ;;  %7202 = vmatpush3.msra.mxu1 %v10264_v63  ;;  %v10609_v62 = vld [vmem:[#allocation7 + $0x160] sm:$0xff]  ;;  %v10617_v63 = vld [vmem:[#allocation7 + $0x158] sm:$0xff] }
 0x2e3   :  { %7199 = vmatmul.mubr.f32.vlgmr.msra.gmra.mxu0 %v917_v11  ;;  %7203 = vmatprep.subr.mxu1 %v9839_v1  ;;  %v10657_v11 = vld [vmem:[#allocation7 + $0x130] sm:$0xff] }
 0x2e4   :  { %7236 = vmatprep.subr.mxu0 %v9839_v1  ;;  %7204 = vmatpush3.msra.mxu1 %v10275_v7  ;;  %v10629_v7 = vld [vmem:[#allocation5 + $0x150] sm:$0xff] }
 0x2e5   :  { %7237 = vmatpush3.msra.mxu0 %v10271_v5  ;;  %7205 = vmatprep.subr.mxu1 %v9839_v1  ;;  %v10625_v5 = vld [vmem:[#allocation7 + $0x150] sm:$0xff] }
 0x2e6   :  { %7238 = vmatprep.subr.mxu0 %v9839_v1  ;;  %7206 = vmatpush3.msra.mxu1 %v10282_v10 }
 0x2e7   :  { %7239 = vmatpush3.msra.mxu0 %v10278_v8  ;;  %7207 = vmatprep.subr.mxu1 %v9839_v1  ;;  %v10633_v8 = vld [vmem:[#allocation7 + $0x148] sm:$0xff] }
 0x2e8   :  { %7240 = vmatprep.subr.mxu0 %v9839_v1  ;;  %7208 = vmatpush3.msra.mxu1 %v13664_v19 }
 0x2e9   :  { %7241 = vmatpush3.msra.mxu0 %v13665_v20  ;;  %7209 = vmatprep.subr.mxu1 %v9839_v1  ;;  %v10689_v20 = vld [vmem:[#allocation7 + $0x110] sm:$0xff] }
 0x2ea   :  { %7242 = vmatprep.subr.mxu0 %v9839_v1  ;;  %7210 = vmatpush3.msra.mxu1 %v13666_v21  ;;  %13685 = vst [vmem:[#allocation11_spill] sm:$0xff] %v10689_v20 }
 0x2eb   :  { %7243 = vmatpush3.msra.mxu0 %v13667_v22  ;;  %7211 = vmatprep.subr.mxu1 %v9839_v1 }
 0x2ec   :  { %7244 = vmatprep.subr.mxu0 %v9839_v1  ;;  %7212 = vmatpush3.msra.mxu1 %v13668_v23 }
 0x2ed   :  { %7245 = vmatpush3.msra.mxu0 %v13669_v24  ;;  %7213 = vmatprep.subr.mxu1 %v9839_v1 }
 0x2ee   :  { %7246 = vmatprep.subr.mxu0 %v9839_v1  ;;  %v832_v25 = vpop.f32.mrf.mxu0  ;;  %7214 = vmatpush3.msra.mxu1 %v13670_v26 }
 0x2ef   :  { %v902_v27 = vpop.f32.mrf.mxu1  ;;  %7247 = vmatpush3.msra.mxu0 %v13671_v29  ;;  %7215 = vmatprep.subr.mxu1 %v9839_v1 }
 0x2f0   :  { %v903_v30 = vadd.f32 %v902_v27, %v832_v25  ;;  %7248 = vmatprep.subr.mxu0 %v9839_v1  ;;  %7216 = vmatpush3.msra.mxu1 %v13672_v31  ;;  %v7060_v32 = vpop.f32.mrf.mxu0  ;;  %v10693_v25 = vld [vmem:[#allocation5 + $0x110] sm:$0xff]  ;;  %v10697_v27 = vld [vmem:[#allocation7 + $0x108] sm:$0xff] }
 0x2f1   :  { %v7095_v33 = vpop.f32.mrf.mxu1  ;;  %7249 = vmatpush3.msra.mxu0 %v13673_v34  ;;  %7217 = vmatprep.subr.mxu1 %v9839_v1  ;;  %13686 = vst [vmem:[#allocation14_spill] sm:$0xff] %v10693_v25  ;;  %13687 = vst [vmem:[#allocation13_spill] sm:$0xff] %v10697_v27  ;;  %v10705_v32 = vld [vmem:[#allocation7 + $0x100] sm:$0xff] }
 0x2f2   :  { %v914_v35 = vadd.f32 %v10538_v28, %v903_v30  ;;  %7250 = vmatprep.subr.mxu0 %v9839_v1  ;;  %7218 = vmatpush3.msra.mxu1 %v13674_v36  ;;  %v10701_v30 = vld [vmem:[#allocation5 + $0x108] sm:$0xff]  ;;  %13689 = vst [vmem:[#allocation15_spill] sm:$0xff] %v10705_v32  ;;  %v10709_v33 = vld [vmem:[#allocation5 + $0x100] sm:$0xff] }
 0x2f3   :  { %7251 = vmatpush3.msra.mxu0 %v13675_v37  ;;  %7219 = vmatprep.subr.mxu1 %v9839_v1  ;;  %13688 = vst [vmem:[#allocation16_spill] sm:$0xff] %v10701_v30  ;;  %13690 = vst [vmem:[#allocation18_spill] sm:$0xff] %v10709_v33 }
 0x2f4   :  { %9318 = vtanh.f32 %v914_v35  ;;  %7252 = vmatprep.subr.mxu0 %v9839_v1  ;;  %7220 = vmatpush3.msra.mxu1 %v13676_v46  ;;  %v10723_v35 = vld [vmem:[#allocation3 + $0x78] sm:$0xff] }
 0x2f5   :  { %7253 = vmatpush3.msra.mxu0 %v13677_v48  ;;  %7221 = vmatprep.subr.mxu1 %v9839_v1  ;;  %13691 = vst [vmem:[#allocation17_spill] sm:$0xff] %v10723_v35 }
 0x2f6   :  { %7254 = vmatprep.subr.mxu0 %v9839_v1  ;;  %7222 = vmatpush3.msra.mxu1 %v13678_v49 }
 0x2f7   :  { %7255 = vmatpush3.msra.mxu0 %v13679_v50  ;;  %7223 = vmatprep.subr.mxu1 %v9839_v1 }
 0x2f8   :  { %7256 = vmatprep.subr.mxu0 %v9839_v1  ;;  %7224 = vmatpush3.msra.mxu1 %v13680_v51 }
 0x2f9   :  { %7257 = vmatpush3.msra.mxu0 %v13681_v52  ;;  %7225 = vmatprep.subr.mxu1 %v9839_v1 }
 0x2fa   :  { %7258 = vmatprep.subr.mxu0 %v9839_v1  ;;  %7226 = vmatpush3.msra.mxu1 %v10362_v44 }
 0x2fb   :  { %7259 = vmatpush3.msra.mxu0 %v13682_v53  ;;  %7227 = vmatprep.subr.mxu1 %v9839_v1 }
 0x2fc   :  { %7260 = vmatprep.subr.mxu0 %v9839_v1  ;;  %7228 = vmatpush3.msra.mxu1 %v10370_v47 }
 0x2fd   :  { %7261 = vmatpush3.msra.mxu0 %v13683_v54  ;;  %7229 = vmatprep.subr.mxu1 %v9839_v1 }
 0x2fe   :  { %7262 = vmatprep.subr.mxu0 %v9839_v1  ;;  %7230 = vmatpush3.msra.mxu1 %v10378_v38 }
 0x2ff   :  { %7263 = vmatpush3.msra.mxu0 %v10374_v45  ;;  %7231 = vmatprep.subr.mxu1 %v9839_v1 }
 0x300   :  { %7264 = vmatprep.subr.mxu0 %v9839_v1  ;;  %7232 = vmatpush3.msra.mxu1 %v10386_v39 }
 0x301   :  { %v10577_v55 = vpop.eup %9318  ;;  %7233 = vmatprep.mubr.msk.f32.mxu1 %vm9840_vm0, %v9839_v1  ;;  %7265 = vmatpush3.msra.mxu0 %v10382_v40 }
 0x302   :  { %7234 = vmatmul.mubr.f32.vlgmr.msra.gmra.mxu1 %v10577_v55  ;;  %7266 = vmatprep.subr.mxu0 %v9839_v1 }
 0x303   :  { %7267 = vmatpush3.msra.mxu0 %v10390_v41  ;;  %7268 = vmatprep.mubr.msk.f32.mxu0 %vm9840_vm0, %v9839_v1 }
 0x304   :  { %7269 = vmatmul.mubr.f32.vlgmr.msra.gmra.mxu0 %v10505_v18  ;;  %7271 = vmatprep.subr.mxu1 %v9839_v1  ;;  %v10685_v18 = vld [vmem:[#allocation5 + $0x118] sm:$0xff] }
 0x305   :  { %7306 = vmatprep.subr.mxu0 %v9839_v1  ;;  %7272 = vmatpush3.msra.mxu1 %v10584_v56  ;;  %13684 = vst [vmem:[#allocation12_spill] sm:$0xff] %v10685_v18 }
 0x306   :  { %7307 = vmatpush3.msra.mxu0 %v10589_v57  ;;  %7273 = vmatprep.subr.mxu1 %v9839_v1 }
 0x307   :  { %7308 = vmatprep.subr.mxu0 %v9839_v1  ;;  %7274 = vmatpush3.msra.mxu1 %v10593_v58 }
 0x308   :  { %7309 = vmatpush3.msra.mxu0 %v10597_v59  ;;  %7275 = vmatprep.subr.mxu1 %v9839_v1 }
 0x309   :  { %7310 = vmatprep.subr.mxu0 %v9839_v1  ;;  %7276 = vmatpush3.msra.mxu1 %v10601_v60 }
 0x30a   :  { %7311 = vmatpush3.msra.mxu0 %v10605_v61  ;;  %7277 = vmatprep.subr.mxu1 %v9839_v1 }
 0x30b   :  { %7312 = vmatprep.subr.mxu0 %v9839_v1  ;;  %7278 = vmatpush3.msra.mxu1 %v10609_v62 }
 0x30c   :  { %7313 = vmatpush3.msra.mxu0 %v10613_v43  ;;  %7279 = vmatprep.subr.mxu1 %v9839_v1 }
 0x30d   :  { %7314 = vmatprep.subr.mxu0 %v9839_v1  ;;  %7280 = vmatpush3.msra.mxu1 %v10617_v63 }
 0x30e   :  { %7315 = vmatpush3.msra.mxu0 %v10621_v0  ;;  %7281 = vmatprep.subr.mxu1 %v9839_v1 }
 0x30f   :  { %7316 = vmatprep.subr.mxu0 %v9839_v1  ;;  %7282 = vmatpush3.msra.mxu1 %v10625_v5 }
 0x310   :  { %7317 = vmatpush3.msra.mxu0 %v10629_v7  ;;  %7283 = vmatprep.subr.mxu1 %v9839_v1 }
 0x311   :  { %7318 = vmatprep.subr.mxu0 %v9839_v1  ;;  %7284 = vmatpush3.msra.mxu1 %v10633_v8 }
 0x312   :  { %7319 = vmatpush3.msra.mxu0 %v10637_v2  ;;  %7285 = vmatprep.subr.mxu1 %v9839_v1 }
 0x313   :  { %7320 = vmatprep.subr.mxu0 %v9839_v1  ;;  %7286 = vmatpush3.msra.mxu1 %v10641_v3 }
 0x314   :  { %7321 = vmatpush3.msra.mxu0 %v10645_v4  ;;  %7287 = vmatprep.subr.mxu1 %v9839_v1 }
 0x315   :  { %7322 = vmatprep.subr.mxu0 %v9839_v1  ;;  %7288 = vmatpush3.msra.mxu1 %v10649_v6 }
 0x316   :  { %7323 = vmatpush3.msra.mxu0 %v10653_v9  ;;  %7289 = vmatprep.subr.mxu1 %v9839_v1 }
 0x317   :  { %7324 = vmatprep.subr.mxu0 %v9839_v1  ;;  %7290 = vmatpush3.msra.mxu1 %v10657_v11 }
 0x318   :  { %7325 = vmatpush3.msra.mxu0 %v10661_v12  ;;  %7291 = vmatprep.subr.mxu1 %v9839_v1 }
 0x319   :  { %7326 = vmatprep.subr.mxu0 %v9839_v1  ;;  %7292 = vmatpush3.msra.mxu1 %v10665_v13 }
 0x31a   :  { %7327 = vmatpush3.msra.mxu0 %v10669_v14  ;;  %7293 = vmatprep.subr.mxu1 %v9839_v1 }
 0x31b   :  { %7328 = vmatprep.subr.mxu0 %v9839_v1  ;;  %7294 = vmatpush3.msra.mxu1 %v10673_v15 }
 0x31c   :  { %7329 = vmatpush3.msra.mxu0 %v10677_v16  ;;  %7295 = vmatprep.subr.mxu1 %v9839_v1 }
 0x31d   :  { %7330 = vmatprep.subr.mxu0 %v9839_v1  ;;  %7296 = vmatpush3.msra.mxu1 %v10681_v17 }
 0x31e   :  { %7331 = vmatpush3.msra.mxu0 %v10685_v18  ;;  %7297 = vmatprep.subr.mxu1 %v9839_v1  ;;  %v10860_v18 = vld [vmem:[#allocation5 + $0x78] sm:$0xff] }
 0x31f   :  { %7332 = vmatprep.subr.mxu0 %v9839_v1  ;;  %7298 = vmatpush3.msra.mxu1 %v10689_v20  ;;  %13723 = vst [vmem:[#allocation50_spill] sm:$0xff] %v10860_v18  ;;  %v10896_v20 = vld [vmem:[#allocation5 + $0x40] sm:$0xff] }
 0x320   :  { %7333 = vmatpush3.msra.mxu0 %v10693_v25  ;;  %7299 = vmatprep.subr.mxu1 %v9839_v1 }
 0x321   :  { %7334 = vmatprep.subr.mxu0 %v9839_v1  ;;  %7300 = vmatpush3.msra.mxu1 %v10697_v27 }
 0x322   :  { %7335 = vmatpush3.msra.mxu0 %v10701_v30  ;;  %7301 = vmatprep.subr.mxu1 %v9839_v1  ;;  %v10728_v30 = vld [vmem:[#allocation7 + $0x78] sm:$0xff] }
 0x323   :  { %7336 = vmatprep.subr.mxu0 %v9839_v1  ;;  %7302 = vmatpush3.msra.mxu1 %v10705_v32  ;;  %13692 = vst [vmem:[#allocation20_spill] sm:$0xff] %v10728_v30 }
 0x324   :  { %7303 = vmatprep.mubr.msk.f32.mxu1 %vm9840_vm0, %v9839_v1  ;;  %7337 = vmatpush3.msra.mxu0 %v10709_v33  ;;  %v10731_v33 = vld [vmem:[#allocation3 + $0x70] sm:$0xff] }
 0x325   :  { %7338 = vmatprep.mubr.msk.f32.mxu0 %vm9840_vm0, %v9839_v1  ;;  %7304 = vmatmul.mubr.f32.vlgmr.msra.gmra.mxu1 %v9839_v1  ;;  %13693 = vst [vmem:[#allocation19_spill] sm:$0xff] %v10731_v33 }
 0x326   :  { %7339 = vmatmul.mubr.f32.vlgmr.msra.gmra.mxu0 %v10577_v55  ;;  %7341 = vmatprep.subr.mxu1 %v9839_v1  ;;  %v10738_v55 = vld [vmem:[#allocation3 + $0x68] sm:$0xff] }
 0x327   :  { %7342 = vmatpush3.msra.mxu1 %v10723_v35  ;;  %7376 = vmatprep.subr.mxu0 %v9839_v1  ;;  %13694 = vst [vmem:[#allocation22_spill] sm:$0xff] %v10738_v55  ;;  %v10741_v35 = vld [vmem:[#allocation7 + $0x70] sm:$0xff] }
 0x328   :  { %7343 = vmatprep.subr.mxu1 %v9839_v1  ;;  %7377 = vmatpush3.msra.mxu0 %v10728_v30  ;;  %13695 = vst [vmem:[#allocation21_spill] sm:$0xff] %v10741_v35  ;;  %v10746_v30 = vld [vmem:[#allocation3 + $0x60] sm:$0xff] }
 0x329   :  { %7344 = vmatpush3.msra.mxu1 %v10731_v33  ;;  %7373 = vmatprep.mubr.msk.f32.mxu1 %vm9840_vm0, %v9839_v1  ;;  %13696 = vst [vmem:[#allocation24_spill] sm:$0xff] %v10746_v30  ;;  %v10749_v33 = vld [vmem:[#allocation7 + $0x68] sm:$0xff] }
 0x32a   :  { %7345 = vmatprep.subr.mxu1 %v9839_v1  ;;  %7378 = vmatprep.subr.mxu0 %v9839_v1  ;;  %13697 = vst [vmem:[#allocation23_spill] sm:$0xff] %v10749_v33 }
 0x32b   :  { %7346 = vmatpush3.msra.mxu1 %v10738_v55  ;;  %7379 = vmatpush3.msra.mxu0 %v10741_v35  ;;  %v10754_v55 = vld [vmem:[#allocation3 + $0x58] sm:$0xff]  ;;  %v10757_v35 = vld [vmem:[#allocation7 + $0x60] sm:$0xff] }
 0x32c   :  { %7347 = vmatprep.subr.mxu1 %v9839_v1  ;;  %7380 = vmatprep.subr.mxu0 %v9839_v1  ;;  %13698 = vst [vmem:[#allocation26_spill] sm:$0xff] %v10754_v55  ;;  %13699 = vst [vmem:[#allocation25_spill] sm:$0xff] %v10757_v35 }
 0x32d   :  { %7348 = vmatpush3.msra.mxu1 %v10746_v30  ;;  %7381 = vmatpush3.msra.mxu0 %v10749_v33  ;;  %v10762_v30 = vld [vmem:[#allocation3 + $0x50] sm:$0xff]  ;;  %v10765_v33 = vld [vmem:[#allocation7 + $0x58] sm:$0xff] }
 0x32e   :  { %7349 = vmatprep.subr.mxu1 %v9839_v1  ;;  %7382 = vmatprep.subr.mxu0 %v9839_v1  ;;  %13700 = vst [vmem:[#allocation28_spill] sm:$0xff] %v10762_v30  ;;  %13701 = vst [vmem:[#allocation27_spill] sm:$0xff] %v10765_v33 }
 0x32f   :  { %7350 = vmatpush3.msra.mxu1 %v10754_v55  ;;  %7383 = vmatpush3.msra.mxu0 %v10757_v35  ;;  %v10770_v55 = vld [vmem:[#allocation3 + $0x48] sm:$0xff]  ;;  %v10773_v35 = vld [vmem:[#allocation7 + $0x50] sm:$0xff] }
 0x330   :  { %7351 = vmatprep.subr.mxu1 %v9839_v1  ;;  %7384 = vmatprep.subr.mxu0 %v9839_v1  ;;  %13702 = vst [vmem:[#allocation29_spill] sm:$0xff] %v10770_v55  ;;  %13703 = vst [vmem:[#allocation30_spill] sm:$0xff] %v10773_v35 }
 0x331   :  { %7352 = vmatpush3.msra.mxu1 %v10762_v30  ;;  %7385 = vmatpush3.msra.mxu0 %v10765_v33  ;;  %v10778_v30 = vld [vmem:[#allocation3 + $0x40] sm:$0xff]  ;;  %v10781_v33 = vld [vmem:[#allocation7 + $0x48] sm:$0xff] }
 0x332   :  { %7353 = vmatprep.subr.mxu1 %v9839_v1  ;;  %7386 = vmatprep.subr.mxu0 %v9839_v1  ;;  %13704 = vst [vmem:[#allocation31_spill] sm:$0xff] %v10778_v30  ;;  %13705 = vst [vmem:[#allocation32_spill] sm:$0xff] %v10781_v33 }
 0x333   :  { %7354 = vmatpush3.msra.mxu1 %v10770_v55  ;;  %7387 = vmatpush3.msra.mxu0 %v10773_v35  ;;  %v10786_v55 = vld [vmem:[#allocation3 + $0x38] sm:$0xff]  ;;  %v10789_v35 = vld [vmem:[#allocation7 + $0x40] sm:$0xff] }
 0x334   :  { %7355 = vmatprep.subr.mxu1 %v9839_v1  ;;  %7388 = vmatprep.subr.mxu0 %v9839_v1  ;;  %13706 = vst [vmem:[#allocation33_spill] sm:$0xff] %v10786_v55  ;;  %13707 = vst [vmem:[#allocation34_spill] sm:$0xff] %v10789_v35 }
 0x335   :  { %7356 = vmatpush3.msra.mxu1 %v10778_v30  ;;  %7389 = vmatpush3.msra.mxu0 %v10781_v33  ;;  %v10794_v30 = vld [vmem:[#allocation3 + $0x30] sm:$0xff]  ;;  %v10797_v33 = vld [vmem:[#allocation7 + $0x38] sm:$0xff] }
 0x336   :  { %7357 = vmatprep.subr.mxu1 %v9839_v1  ;;  %7390 = vmatprep.subr.mxu0 %v9839_v1  ;;  %13708 = vst [vmem:[#allocation35_spill] sm:$0xff] %v10794_v30  ;;  %13709 = vst [vmem:[#allocation36_spill] sm:$0xff] %v10797_v33 }
 0x337   :  { %7358 = vmatpush3.msra.mxu1 %v10786_v55  ;;  %7391 = vmatpush3.msra.mxu0 %v10789_v35  ;;  %v10802_v55 = vld [vmem:[#allocation3 + $0x28] sm:$0xff]  ;;  %v10805_v35 = vld [vmem:[#allocation7 + $0x30] sm:$0xff] }
 0x338   :  { %7359 = vmatprep.subr.mxu1 %v9839_v1  ;;  %7392 = vmatprep.subr.mxu0 %v9839_v1  ;;  %13710 = vst [vmem:[#allocation37_spill] sm:$0xff] %v10802_v55  ;;  %13711 = vst [vmem:[#allocation38_spill] sm:$0xff] %v10805_v35 }
 0x339   :  { %7360 = vmatpush3.msra.mxu1 %v10794_v30  ;;  %7393 = vmatpush3.msra.mxu0 %v10797_v33  ;;  %v10810_v30 = vld [vmem:[#allocation3 + $0x20] sm:$0xff]  ;;  %v10813_v33 = vld [vmem:[#allocation7 + $0x28] sm:$0xff] }
 0x33a   :  { %7361 = vmatprep.subr.mxu1 %v9839_v1  ;;  %7394 = vmatprep.subr.mxu0 %v9839_v1  ;;  %13712 = vst [vmem:[#allocation39_spill] sm:$0xff] %v10810_v30  ;;  %13713 = vst [vmem:[#allocation40_spill] sm:$0xff] %v10813_v33 }
 0x33b   :  { %7362 = vmatpush3.msra.mxu1 %v10802_v55  ;;  %7395 = vmatpush3.msra.mxu0 %v10805_v35  ;;  %v10818_v55 = vld [vmem:[#allocation3 + $0x18] sm:$0xff]  ;;  %v10821_v35 = vld [vmem:[#allocation7 + $0x20] sm:$0xff] }
 0x33c   :  { %7363 = vmatprep.subr.mxu1 %v9839_v1  ;;  %7396 = vmatprep.subr.mxu0 %v9839_v1  ;;  %13714 = vst [vmem:[#allocation41_spill] sm:$0xff] %v10818_v55  ;;  %13715 = vst [vmem:[#allocation42_spill] sm:$0xff] %v10821_v35 }
 0x33d   :  { %7364 = vmatpush3.msra.mxu1 %v10810_v30  ;;  %7397 = vmatpush3.msra.mxu0 %v10813_v33  ;;  %v10826_v30 = vld [vmem:[#allocation3 + $0x10] sm:$0xff]  ;;  %v10829_v33 = vld [vmem:[#allocation7 + $0x18] sm:$0xff] }
 0x33e   :  { %7365 = vmatprep.subr.mxu1 %v9839_v1  ;;  %7398 = vmatprep.subr.mxu0 %v9839_v1  ;;  %13716 = vst [vmem:[#allocation43_spill] sm:$0xff] %v10826_v30  ;;  %13717 = vst [vmem:[#allocation44_spill] sm:$0xff] %v10829_v33 }
 0x33f   :  { %7366 = vmatpush3.msra.mxu1 %v10818_v55  ;;  %7399 = vmatpush3.msra.mxu0 %v10821_v35  ;;  %v10834_v55 = vld [vmem:[#allocation3 + $0x8] sm:$0xff]  ;;  %v10837_v35 = vld [vmem:[#allocation7 + $0x10] sm:$0xff] }
 0x340   :  { %7367 = vmatprep.subr.mxu1 %v9839_v1  ;;  %7400 = vmatprep.subr.mxu0 %v9839_v1  ;;  %13718 = vst [vmem:[#allocation45_spill] sm:$0xff] %v10834_v55  ;;  %13719 = vst [vmem:[#allocation46_spill] sm:$0xff] %v10837_v35 }
 0x341   :  { %7368 = vmatpush3.msra.mxu1 %v10826_v30  ;;  %7401 = vmatpush3.msra.mxu0 %v10829_v33  ;;  %v10842_v30 = vld [vmem:[#allocation3] sm:$0xff]  ;;  %v10845_v33 = vld [vmem:[#allocation7 + $0x8] sm:$0xff] }
 0x342   :  { %7369 = vmatprep.subr.mxu1 %v9839_v1  ;;  %7402 = vmatprep.subr.mxu0 %v9839_v1  ;;  %13720 = vst [vmem:[#allocation47_spill] sm:$0xff] %v10842_v30  ;;  %13721 = vst [vmem:[#allocation48_spill] sm:$0xff] %v10845_v33 }
 0x343   :  { %7370 = vmatpush3.msra.mxu1 %v10834_v55  ;;  %7403 = vmatpush3.msra.mxu0 %v10837_v35  ;;  %v10850_v55 = vld [vmem:[#allocation7] sm:$0xff] }
 0x344   :  { %7371 = vmatprep.subr.mxu1 %v9839_v1  ;;  %7404 = vmatprep.subr.mxu0 %v9839_v1  ;;  %13722 = vst [vmem:[#allocation49_spill] sm:$0xff] %v10850_v55 }
 0x345   :  { %7372 = vmatpush3.msra.mxu1 %v10842_v30  ;;  %7405 = vmatpush3.msra.mxu0 %v10845_v33 }
 0x346   :  { %7411 = vmatprep.subr.mxu1 %v9839_v1  ;;  %7406 = vmatprep.subr.mxu0 %v9839_v1 }
 0x347   :  { %7407 = vmatpush3.msra.mxu0 %v10850_v55  ;;  %7408 = vmatprep.mubr.msk.f32.mxu0 %vm9840_vm0, %v9839_v1  ;;  %v10866_v55 = vld [vmem:[#allocation5 + $0x70] sm:$0xff] }
 0x348   :  { %7446 = vmatprep.subr.mxu0 %v9839_v1  ;;  %13724 = vst [vmem:[#allocation51_spill] sm:$0xff] %v10866_v55 }
 0x383   :  { %v985_v35 = vpop.f32.mrf.mxu0 }
 0x384   :  { %v990_v32 = vrot.slane %v985_v35, 2 }
 0x385   :  { %v7130_v30 = vpop.f32.mrf.mxu0 }
 0x386   :  { %v992_v25 = vadd.f32 %v990_v32, %v10124_v42  ;;  %v10870_v42 = vld [vmem:[#allocation5 + $0x68] sm:$0xff]  ;;  %v10878_v32 = vld [vmem:[#allocation5 + $0x58] sm:$0xff] }
 0x387   :  { %13725 = vst [vmem:[#allocation52_spill] sm:$0xff] %v10870_v42  ;;  %13727 = vst [vmem:[#allocation54_spill] sm:$0xff] %v10878_v32 }
 0x388   :  { %9320 = vtanh.f32 %v992_v25  ;;  %v10874_v25 = vld [vmem:[#allocation5 + $0x60] sm:$0xff] }
 0x389   :  { %13726 = vst [vmem:[#allocation53_spill] sm:$0xff] %v10874_v25 }
 0x395   :  { %v10857_v33 = vpop.eup %9320 }
 0x396   :  { %v1463_v27 = vrot.slane %v10857_v33, 6 }
 0x398   :  { %7374 = vmatmul.mubr.f32.vlgmr.msra.gmra.mxu1 %v1463_v27 }
 0x399   :  { %7412 = vmatpush3.msra.mxu1 %v10860_v18  ;;  %7443 = vmatprep.mubr.msk.f32.mxu1 %vm9840_vm0, %v9839_v1 }
 0x39a   :  { %7413 = vmatprep.subr.mxu1 %v9839_v1 }
 0x39b   :  { %7414 = vmatpush3.msra.mxu1 %v10866_v55  ;;  %v10882_v55 = vld [vmem:[#allocation5 + $0x50] sm:$0xff] }
 0x39c   :  { %7415 = vmatprep.subr.mxu1 %v9839_v1 }
 0x39d   :  { %7416 = vmatpush3.msra.mxu1 %v10870_v42 }
 0x39e   :  { %7417 = vmatprep.subr.mxu1 %v9839_v1 }
 0x39f   :  { %7418 = vmatpush3.msra.mxu1 %v10874_v25  ;;  %v10886_v25 = vld [vmem:[#allocation5 + $0x48] sm:$0xff] }
 0x3a0   :  { %7419 = vmatprep.subr.mxu1 %v9839_v1 }
 0x3a1   :  { %v1060_v30 = vpop.f32.mrf.mxu1  ;;  %7420 = vmatpush3.msra.mxu1 %v10878_v32  ;;  %v10892_v32 = vld [vmem:[%s13454_s6] ss:$0 sm:$0xff] }
 0x3a2   :  { %7421 = vmatprep.subr.mxu1 %v9839_v1  ;;  %13728 = vst [vmem:[#allocation55_spill] sm:$0xff] %v10892_v32 }
 0x3a3   :  { %v7165_v33 = vpop.f32.mrf.mxu1  ;;  %v1130_v35 = vpop.f32.mrf.mxu0  ;;  %7422 = vmatpush3.msra.mxu1 %v10882_v55 }
 0x3a4   :  { %v1131_v42 = vadd.f32 %v1130_v35, %v1060_v30  ;;  %7423 = vmatprep.subr.mxu1 %v9839_v1  ;;  %v10904_v30 = vld [vmem:[#allocation5 + $0x30] sm:$0xff]  ;;  %v10912_v35 = vld [vmem:[#allocation5 + $0x20] sm:$0xff] }
 0x3a5   :  { %v7200_v18 = vpop.f32.mrf.mxu0  ;;  %7424 = vmatpush3.msra.mxu1 %v10886_v25  ;;  %13729 = vst [vmem:[#allocation56_spill] sm:$0xff] %v10904_v30  ;;  %13731 = vst [vmem:[#allocation58_spill] sm:$0xff] %v10912_v35 }
 0x3a6   :  { %v1134_v33 = vadd.f32 %v10892_v32, %v1131_v42  ;;  %7425 = vmatprep.subr.mxu1 %v9839_v1  ;;  %v10900_v18 = vld [vmem:[#allocation5 + $0x38] sm:$0xff]  ;;  %v10908_v42 = vld [vmem:[#allocation5 + $0x28] sm:$0xff] }
 0x3a7   :  { %7426 = vmatpush3.msra.mxu1 %v10896_v20  ;;  %13730 = vst [vmem:[#allocation57_spill] sm:$0xff] %v10908_v42  ;;  %v10926_v32 = vld [vmem:[#allocation5 + $0x8] sm:$0xff] }
 0x3a8   :  { %9322 = vtanh.f32 %v1134_v33  ;;  %7427 = vmatprep.subr.mxu1 %v9839_v1  ;;  %v10916_v33 = vld [vmem:[#allocation5 + $0x18] sm:$0xff]  ;;  %13734 = vst [vmem:[#allocation61_spill] sm:$0xff] %v10926_v32 }
 0x3a9   :  { %7428 = vmatpush3.msra.mxu1 %v10900_v18  ;;  %13732 = vst [vmem:[#allocation59_spill] sm:$0xff] %v10916_v33 }
 0x3aa   :  { %7429 = vmatprep.subr.mxu1 %v9839_v1 }
 0x3ab   :  { %7430 = vmatpush3.msra.mxu1 %v10904_v30  ;;  %v10920_v30 = vld [vmem:[#allocation5 + $0x10] sm:$0xff] }
 0x3ac   :  { %7431 = vmatprep.subr.mxu1 %v9839_v1  ;;  %13733 = vst [vmem:[#allocation60_spill] sm:$0xff] %v10920_v30 }
 0x3ad   :  { %7432 = vmatpush3.msra.mxu1 %v10908_v42 }
 0x3ae   :  { %7433 = vmatprep.subr.mxu1 %v9839_v1 }
 0x3af   :  { %7434 = vmatpush3.msra.mxu1 %v10912_v35  ;;  %v10931_v35 = vld [vmem:[#allocation5] sm:$0xff] }
 0x3b0   :  { %7435 = vmatprep.subr.mxu1 %v9839_v1 }
 0x3b1   :  { %7436 = vmatpush3.msra.mxu1 %v10916_v33  ;;  %v10934_v33 = vld [vmem:[#allocation7 + $0xf8] sm:$0xff] }
 0x3b2   :  { %7437 = vmatprep.subr.mxu1 %v9839_v1  ;;  %13735 = vst [vmem:[#allocation62_spill] sm:$0xff] %v10934_v33 }
 0x3b3   :  { %7438 = vmatpush3.msra.mxu1 %v10920_v30  ;;  %v10939_v30 = vld [vmem:[#allocation7 + $0xf0] sm:$0xff] }
 0x3b4   :  { %7439 = vmatprep.subr.mxu1 %v9839_v1 }
 0x3b5   :  { %v10924_v42 = vpop.eup %9322  ;;  %7440 = vmatpush3.msra.mxu1 %v10926_v32  ;;  %v10942_v32 = vld [vmem:[#allocation5 + $0xf8] sm:$0xff] }
 0x3b6   :  { %7409 = vmatmul.mubr.f32.vlgmr.msra.gmra.mxu0 %v10924_v42  ;;  %7441 = vmatprep.subr.mxu1 %v9839_v1 }
 0x3b7   :  { %7442 = vmatpush3.msra.mxu1 %v10931_v35  ;;  %7447 = vmatpush3.msra.mxu0 %v10934_v33  ;;  %v10948_v33 = vld [vmem:[#allocation5 + $0xf0] sm:$0xff] }
 0x3b8   :  { %7444 = vmatmul.mubr.f32.vlgmr.msra.gmra.mxu1 %v1463_v27  ;;  %7448 = vmatprep.subr.mxu0 %v9839_v1  ;;  %v10954_v27 = vld [vmem:[#allocation5 + $0xe8] sm:$0xff] }
 0x3b9   :  { %7481 = vmatprep.subr.mxu1 %v9839_v1  ;;  %7449 = vmatpush3.msra.mxu0 %v10939_v30  ;;  %13736 = vst [vmem:[#allocation63_spill] sm:$0xff] %v10954_v27 }
 0x3ba   :  { %7482 = vmatpush3.msra.mxu1 %v10942_v32  ;;  %7450 = vmatprep.subr.mxu0 %v9839_v1 }
 0x3bb   :  { %7483 = vmatprep.subr.mxu1 %v9839_v1  ;;  %7451 = vmatpush3.msra.mxu0 %v10282_v10 }
 0x3bc   :  { %7484 = vmatpush3.msra.mxu1 %v10948_v33  ;;  %7452 = vmatprep.subr.mxu0 %v9839_v1 }
 0x3bd   :  { %7485 = vmatprep.subr.mxu1 %v9839_v1  ;;  %7453 = vmatpush3.msra.mxu0 %v13664_v19 }
 0x3be   :  { %7486 = vmatpush3.msra.mxu1 %v10954_v27  ;;  %7454 = vmatprep.subr.mxu0 %v9839_v1 }
 0x3bf   :  { %7487 = vmatprep.subr.mxu1 %v9839_v1  ;;  %7455 = vmatpush3.msra.mxu0 %v13666_v21 }
 0x3c0   :  { %7488 = vmatpush3.msra.mxu1 %v13667_v22  ;;  %7456 = vmatprep.subr.mxu0 %v9839_v1 }
 0x3c1   :  { %7489 = vmatprep.subr.mxu1 %v9839_v1  ;;  %7457 = vmatpush3.msra.mxu0 %v13668_v23 }
 0x3c2   :  { %v1202_v10 = vpop.f32.mrf.mxu1  ;;  %7490 = vmatpush3.msra.mxu1 %v13669_v24  ;;  %7458 = vmatprep.subr.mxu0 %v9839_v1 }
 0x3c3   :  { %7491 = vmatprep.subr.mxu1 %v9839_v1  ;;  %7459 = vmatpush3.msra.mxu0 %v13670_v26  ;;  %v13737_v26 = vld [vmem:[#allocation11_spill] sm:$0xff] }
 0x3c4   :  { %v7235_v19 = vpop.f32.mrf.mxu1  ;;  %v1272_v27 = vpop.f32.mrf.mxu0  ;;  %7492 = vmatpush3.msra.mxu1 %v13671_v29  ;;  %7460 = vmatprep.subr.mxu0 %v9839_v1  ;;  %v13739_v29 = vld [vmem:[#allocation13_spill] sm:$0xff] }
 0x3c5   :  { %v1273_v21 = vadd.f32 %v1272_v27, %v1202_v10  ;;  %7493 = vmatprep.subr.mxu1 %v9839_v1  ;;  %7461 = vmatpush3.msra.mxu0 %v13672_v31  ;;  %v13740_v31 = vld [vmem:[#allocation14_spill] sm:$0xff]  ;;  %v13745_v27 = vld [vmem:[#allocation19_spill] sm:$0xff]  ;;  %v13746_v10 = vld [vmem:[#allocation20_spill] sm:$0xff] }
 0x3c6   :  { %v7270_v22 = vpop.f32.mrf.mxu0  ;;  %7494 = vmatpush3.msra.mxu1 %v13673_v34  ;;  %7462 = vmatprep.subr.mxu0 %v9839_v1  ;;  %v13741_v34 = vld [vmem:[#allocation15_spill] sm:$0xff]  ;;  %v13747_v19 = vld [vmem:[#allocation22_spill] sm:$0xff] }
 0x3c7   :  { %v1276_v23 = vadd.f32 %v10538_v28, %v1273_v21  ;;  %7495 = vmatprep.subr.mxu1 %v9839_v1  ;;  %7463 = vmatpush3.msra.mxu0 %v13674_v36  ;;  %v13738_v28 = vld [vmem:[#allocation12_spill] sm:$0xff]  ;;  %v13748_v21 = vld [vmem:[#allocation21_spill] sm:$0xff] }
 0x3c8   :  { %7496 = vmatpush3.msra.mxu1 %v13675_v37  ;;  %7464 = vmatprep.subr.mxu0 %v9839_v1  ;;  %v13742_v37 = vld [vmem:[#allocation16_spill] sm:$0xff] }
 0x3c9   :  { %9324 = vtanh.f32 %v1276_v23  ;;  %7497 = vmatprep.subr.mxu1 %v9839_v1  ;;  %7465 = vmatpush3.msra.mxu0 %v13676_v46  ;;  %v11090_v46 = vld [vmem:[#allocation7 + $0x1f8] sm:$0xff]  ;;  %v13749_v22 = vld [vmem:[#allocation24_spill] sm:$0xff]  ;;  %v13750_v23 = vld [vmem:[#allocation23_spill] sm:$0xff] }
 0x3ca   :  { %7498 = vmatpush3.msra.mxu1 %v13677_v48  ;;  %7466 = vmatprep.subr.mxu0 %v9839_v1  ;;  %v13743_v48 = vld [vmem:[#allocation18_spill] sm:$0xff] }
 0x3cb   :  { %7499 = vmatprep.subr.mxu1 %v9839_v1  ;;  %7467 = vmatpush3.msra.mxu0 %v13678_v49  ;;  %v11095_v49 = vld [vmem:[#allocation5 + $0x1f8] sm:$0xff] }
 0x3cc   :  { %7500 = vmatpush3.msra.mxu1 %v13679_v50  ;;  %7468 = vmatprep.subr.mxu0 %v9839_v1  ;;  %v11099_v50 = vld [vmem:[#allocation7 + $0x1f0] sm:$0xff] }
 0x3cd   :  { %7501 = vmatprep.subr.mxu1 %v9839_v1  ;;  %7469 = vmatpush3.msra.mxu0 %v13680_v51  ;;  %v11103_v51 = vld [vmem:[#allocation5 + $0x1f0] sm:$0xff] }
 0x3ce   :  { %7502 = vmatpush3.msra.mxu1 %v13681_v52  ;;  %7470 = vmatprep.subr.mxu0 %v9839_v1  ;;  %v11107_v52 = vld [vmem:[#allocation7 + $0x1e8] sm:$0xff] }
 0x3cf   :  { %7503 = vmatprep.subr.mxu1 %v9839_v1  ;;  %7471 = vmatpush3.msra.mxu0 %v10362_v44 }
 0x3d0   :  { %7504 = vmatpush3.msra.mxu1 %v13682_v53  ;;  %7472 = vmatprep.subr.mxu0 %v9839_v1  ;;  %v11111_v53 = vld [vmem:[#allocation5 + $0x1e8] sm:$0xff] }
 0x3d1   :  { %7505 = vmatprep.subr.mxu1 %v9839_v1  ;;  %7473 = vmatpush3.msra.mxu0 %v10370_v47 }
 0x3d2   :  { %7506 = vmatpush3.msra.mxu1 %v13683_v54  ;;  %7474 = vmatprep.subr.mxu0 %v9839_v1  ;;  %v11115_v54 = vld [vmem:[#allocation7 + $0x1e0] sm:$0xff] }
 0x3d3   :  { %7507 = vmatprep.subr.mxu1 %v9839_v1  ;;  %7475 = vmatpush3.msra.mxu0 %v10378_v38 }
 0x3d4   :  { %7508 = vmatpush3.msra.mxu1 %v10374_v45  ;;  %7476 = vmatprep.subr.mxu0 %v9839_v1 }
 0x3d5   :  { %7509 = vmatprep.subr.mxu1 %v9839_v1  ;;  %7477 = vmatpush3.msra.mxu0 %v10386_v39  ;;  %v11044_v39 = vld [vmem:[%s13454_s6 + $0x2] ss:$0 sm:$0xff] }
 0x3d6   :  { %v11005_v44 = vpop.eup %9324  ;;  %7478 = vmatprep.mubr.msk.f32.mxu0 %vm9840_vm0, %v9839_v1  ;;  %7510 = vmatpush3.msra.mxu1 %v10382_v40 }
 0x3d7   :  { %7479 = vmatmul.mubr.f32.vlgmr.msra.gmra.mxu0 %v11005_v44  ;;  %7511 = vmatprep.subr.mxu1 %v9839_v1 }
 0x3d8   :  { %7516 = vmatprep.subr.mxu0 %v9839_v1  ;;  %7512 = vmatpush3.msra.mxu1 %v10390_v41 }
 0x3d9   :  { %7513 = vmatprep.mubr.msk.f32.mxu1 %vm9840_vm0, %v9839_v1  ;;  %7517 = vmatpush3.msra.mxu0 %v10584_v56  ;;  %v11119_v56 = vld [vmem:[#allocation5 + $0x1e0] sm:$0xff] }
 0x3da   :  { %7514 = vmatmul.mubr.f32.vlgmr.msra.gmra.mxu1 %v10924_v42  ;;  %7518 = vmatprep.subr.mxu0 %v9839_v1  ;;  %v13744_v42 = vld [vmem:[#allocation17_spill] sm:$0xff] }
 0x3db   :  { %7551 = vmatprep.subr.mxu1 %v9839_v1  ;;  %7519 = vmatpush3.msra.mxu0 %v10593_v58  ;;  %v11127_v58 = vld [vmem:[#allocation5 + $0x1d8] sm:$0xff] }
 0x3dc   :  { %7552 = vmatpush3.msra.mxu1 %v10589_v57  ;;  %7520 = vmatprep.subr.mxu0 %v9839_v1  ;;  %v11123_v57 = vld [vmem:[#allocation7 + $0x1d8] sm:$0xff] }
 0x3dd   :  { %7553 = vmatprep.subr.mxu1 %v9839_v1  ;;  %7521 = vmatpush3.msra.mxu0 %v10601_v60  ;;  %v11135_v60 = vld [vmem:[#allocation5 + $0x1d0] sm:$0xff] }
 0x3de   :  { %7554 = vmatpush3.msra.mxu1 %v10597_v59  ;;  %7522 = vmatprep.subr.mxu0 %v9839_v1  ;;  %v11131_v59 = vld [vmem:[#allocation7 + $0x1d0] sm:$0xff] }
 0x3df   :  { %7555 = vmatprep.subr.mxu1 %v9839_v1  ;;  %7523 = vmatpush3.msra.mxu0 %v10609_v62  ;;  %v11143_v62 = vld [vmem:[#allocation5 + $0x1c8] sm:$0xff] }
 0x3e0   :  { %7556 = vmatpush3.msra.mxu1 %v10605_v61  ;;  %7524 = vmatprep.subr.mxu0 %v9839_v1  ;;  %v11139_v61 = vld [vmem:[#allocation7 + $0x1c8] sm:$0xff] }
 0x3e1   :  { %7557 = vmatprep.subr.mxu1 %v9839_v1  ;;  %7525 = vmatpush3.msra.mxu0 %v10617_v63  ;;  %v11151_v63 = vld [vmem:[#allocation5 + $0x1c0] sm:$0xff] }
 0x3e2   :  { %7558 = vmatpush3.msra.mxu1 %v10613_v43  ;;  %7526 = vmatprep.subr.mxu0 %v9839_v1  ;;  %v11147_v43 = vld [vmem:[#allocation7 + $0x1c0] sm:$0xff] }
 0x3e3   :  { %7559 = vmatprep.subr.mxu1 %v9839_v1  ;;  %7527 = vmatpush3.msra.mxu0 %v10625_v5  ;;  %v11159_v5 = vld [vmem:[#allocation5 + $0x1b8] sm:$0xff] }
 0x3e4   :  { %7560 = vmatpush3.msra.mxu1 %v10621_v0  ;;  %7528 = vmatprep.subr.mxu0 %v9839_v1  ;;  %v11155_v0 = vld [vmem:[#allocation7 + $0x1b8] sm:$0xff] }
 0x3e5   :  { %7561 = vmatprep.subr.mxu1 %v9839_v1  ;;  %v1378_v40 = vpop.f32.mrf.mxu1  ;;  %7529 = vmatpush3.msra.mxu0 %v10633_v8  ;;  %v11167_v8 = vld [vmem:[#allocation5 + $0x1b0] sm:$0xff] }
 0x3e6   :  { %v1448_v38 = vpop.f32.mrf.mxu0  ;;  %7562 = vmatpush3.msra.mxu1 %v10629_v7  ;;  %7530 = vmatprep.subr.mxu0 %v9839_v1  ;;  %v11163_v7 = vld [vmem:[#allocation7 + $0x1b0] sm:$0xff] }
 0x3e7   :  { %v1449_v41 = vadd.f32 %v1448_v38, %v1378_v40  ;;  %7563 = vmatprep.subr.mxu1 %v9839_v1  ;;  %7531 = vmatpush3.msra.mxu0 %v10641_v3  ;;  %v7305_v45 = vpop.f32.mrf.mxu1  ;;  %v11175_v3 = vld [vmem:[#allocation5 + $0x1a8] sm:$0xff]  ;;  %v13752_v40 = vld [vmem:[#allocation25_spill] sm:$0xff]  ;;  %v13753_v38 = vld [vmem:[#allocation28_spill] sm:$0xff] }
 0x3e8   :  { %v7340_v47 = vpop.f32.mrf.mxu0  ;;  %7564 = vmatpush3.msra.mxu1 %v10637_v2  ;;  %7532 = vmatprep.subr.mxu0 %v9839_v1  ;;  %v11171_v2 = vld [vmem:[#allocation7 + $0x1a8] sm:$0xff]  ;;  %v13755_v45 = vld [vmem:[#allocation29_spill] sm:$0xff] }
 0x3e9   :  { %v1460_v24 = vadd.f32 %v11044_v39, %v1449_v41  ;;  %7565 = vmatprep.subr.mxu1 %v9839_v1  ;;  %7533 = vmatpush3.msra.mxu0 %v10649_v6  ;;  %v11183_v6 = vld [vmem:[#allocation5 + $0x1a0] sm:$0xff]  ;;  %v13754_v41 = vld [vmem:[#allocation27_spill] sm:$0xff] }
 0x3ea   :  { %7566 = vmatpush3.msra.mxu1 %v10645_v4  ;;  %7534 = vmatprep.subr.mxu0 %v9839_v1  ;;  %v11179_v4 = vld [vmem:[#allocation7 + $0x1a0] sm:$0xff] }
 0x3eb   :  { %9326 = vtanh.f32 %v1460_v24  ;;  %7567 = vmatprep.subr.mxu1 %v9839_v1  ;;  %7535 = vmatpush3.msra.mxu0 %v10657_v11  ;;  %v11191_v11 = vld [vmem:[#allocation5 + $0x198] sm:$0xff]  ;;  %v13756_v47 = vld [vmem:[#allocation30_spill] sm:$0xff]  ;;  %v13757_v24 = vld [vmem:[#allocation31_spill] sm:$0xff] }
 0x3ec   :  { %7568 = vmatpush3.msra.mxu1 %v10653_v9  ;;  %7536 = vmatprep.subr.mxu0 %v9839_v1  ;;  %v11187_v9 = vld [vmem:[#allocation7 + $0x198] sm:$0xff] }
 0x3ed   :  { %7569 = vmatprep.subr.mxu1 %v9839_v1  ;;  %7537 = vmatpush3.msra.mxu0 %v10665_v13  ;;  %v11199_v13 = vld [vmem:[#allocation5 + $0x190] sm:$0xff] }
 0x3ee   :  { %7570 = vmatpush3.msra.mxu1 %v10661_v12  ;;  %7538 = vmatprep.subr.mxu0 %v9839_v1  ;;  %v11195_v12 = vld [vmem:[#allocation7 + $0x190] sm:$0xff] }
 0x3ef   :  { %7571 = vmatprep.subr.mxu1 %v9839_v1  ;;  %7539 = vmatpush3.msra.mxu0 %v10673_v15  ;;  %v11207_v15 = vld [vmem:[#allocation5 + $0x188] sm:$0xff] }
 0x3f0   :  { %7572 = vmatpush3.msra.mxu1 %v10669_v14  ;;  %7540 = vmatprep.subr.mxu0 %v9839_v1  ;;  %v11203_v14 = vld [vmem:[#allocation7 + $0x188] sm:$0xff] }
 0x3f1   :  { %7573 = vmatprep.subr.mxu1 %v9839_v1  ;;  %7541 = vmatpush3.msra.mxu0 %v10681_v17  ;;  %v11215_v17 = vld [vmem:[#allocation5 + $0x180] sm:$0xff] }
 0x3f2   :  { %7574 = vmatpush3.msra.mxu1 %v10677_v16  ;;  %7542 = vmatprep.subr.mxu0 %v9839_v1  ;;  %v11211_v16 = vld [vmem:[#allocation7 + $0x180] sm:$0xff] }
 0x3f3   :  { %7575 = vmatprep.subr.mxu1 %v9839_v1  ;;  %7543 = vmatpush3.msra.mxu0 %v13737_v26  ;;  %v13758_v26 = vld [vmem:[#allocation32_spill] sm:$0xff] }
 0x3f4   :  { %7576 = vmatpush3.msra.mxu1 %v13738_v28  ;;  %7544 = vmatprep.subr.mxu0 %v9839_v1  ;;  %v13759_v28 = vld [vmem:[#allocation33_spill] sm:$0xff] }
 0x3f5   :  { %7577 = vmatprep.subr.mxu1 %v9839_v1  ;;  %7545 = vmatpush3.msra.mxu0 %v13739_v29  ;;  %v13760_v29 = vld [vmem:[#allocation34_spill] sm:$0xff] }
 0x3f6   :  { %7578 = vmatpush3.msra.mxu1 %v13740_v31  ;;  %7546 = vmatprep.subr.mxu0 %v9839_v1  ;;  %v13761_v31 = vld [vmem:[#allocation35_spill] sm:$0xff] }
 0x3f7   :  { %7579 = vmatprep.subr.mxu1 %v9839_v1  ;;  %7547 = vmatpush3.msra.mxu0 %v13741_v34  ;;  %v13762_v34 = vld [vmem:[#allocation36_spill] sm:$0xff] }
 0x3f8   :  { %v11083_v36 = vpop.eup %9326  ;;  %7548 = vmatprep.mubr.msk.f32.mxu0 %vm9840_vm0, %v9839_v1  ;;  %7580 = vmatpush3.msra.mxu1 %v13742_v37  ;;  %v13764_v37 = vld [vmem:[#allocation38_spill] sm:$0xff] }
 0x3f9   :  { %7549 = vmatmul.mubr.f32.vlgmr.msra.gmra.mxu0 %v11083_v36  ;;  %7581 = vmatprep.subr.mxu1 %v9839_v1 }
 0x3fa   :  { %7582 = vmatpush3.msra.mxu1 %v13743_v48  ;;  %7583 = vmatprep.mubr.msk.f32.mxu1 %vm9840_vm0, %v9839_v1  ;;  %v13765_v48 = vld [vmem:[#allocation39_spill] sm:$0xff] }
 0x3fb   :  { %7584 = vmatmul.mubr.f32.vlgmr.msra.gmra.mxu1 %v11005_v44  ;;  %7586 = vmatprep.subr.mxu0 %v9839_v1  ;;  %v13751_v44 = vld [vmem:[#allocation26_spill] sm:$0xff] }
 0x3fc   :  { %7621 = vmatprep.subr.mxu1 %v9839_v1  ;;  %7587 = vmatpush3.msra.mxu0 %v11090_v46 }
 0x3fd   :  { %7622 = vmatpush3.msra.mxu1 %v11095_v49  ;;  %7588 = vmatprep.subr.mxu0 %v9839_v1 }
 0x3fe   :  { %7623 = vmatprep.subr.mxu1 %v9839_v1  ;;  %7589 = vmatpush3.msra.mxu0 %v11099_v50 }
 0x3ff   :  { %7624 = vmatpush3.msra.mxu1 %v11103_v51  ;;  %7590 = vmatprep.subr.mxu0 %v9839_v1 }
 0x400   :  { %7625 = vmatprep.subr.mxu1 %v9839_v1  ;;  %7591 = vmatpush3.msra.mxu0 %v11107_v52 }
 0x401   :  { %7626 = vmatpush3.msra.mxu1 %v11111_v53  ;;  %7592 = vmatprep.subr.mxu0 %v9839_v1 }
 0x402   :  { %7627 = vmatprep.subr.mxu1 %v9839_v1  ;;  %7593 = vmatpush3.msra.mxu0 %v11115_v54 }
 0x403   :  { %7628 = vmatpush3.msra.mxu1 %v11119_v56  ;;  %7594 = vmatprep.subr.mxu0 %v9839_v1 }
 0x404   :  { %7629 = vmatprep.subr.mxu1 %v9839_v1  ;;  %7595 = vmatpush3.msra.mxu0 %v11123_v57 }
 0x405   :  { %7630 = vmatpush3.msra.mxu1 %v11127_v58  ;;  %7596 = vmatprep.subr.mxu0 %v9839_v1 }
 0x406   :  { %7631 = vmatprep.subr.mxu1 %v9839_v1  ;;  %7597 = vmatpush3.msra.mxu0 %v11131_v59 }
 0x407   :  { %7632 = vmatpush3.msra.mxu1 %v11135_v60  ;;  %7598 = vmatprep.subr.mxu0 %v9839_v1 }
 0x408   :  { %7633 = vmatprep.subr.mxu1 %v9839_v1  ;;  %7599 = vmatpush3.msra.mxu0 %v11139_v61 }
 0x409   :  { %7634 = vmatpush3.msra.mxu1 %v11143_v62  ;;  %7600 = vmatprep.subr.mxu0 %v9839_v1 }
 0x40a   :  { %7635 = vmatprep.subr.mxu1 %v9839_v1  ;;  %7601 = vmatpush3.msra.mxu0 %v11147_v43 }
 0x40b   :  { %7636 = vmatpush3.msra.mxu1 %v11151_v63  ;;  %7602 = vmatprep.subr.mxu0 %v9839_v1 }
 0x40c   :  { %7637 = vmatprep.subr.mxu1 %v9839_v1  ;;  %7603 = vmatpush3.msra.mxu0 %v11155_v0 }
 0x40d   :  { %7638 = vmatpush3.msra.mxu1 %v11159_v5  ;;  %7604 = vmatprep.subr.mxu0 %v9839_v1 }
 0x40e   :  { %7639 = vmatprep.subr.mxu1 %v9839_v1  ;;  %7605 = vmatpush3.msra.mxu0 %v11163_v7 }
 0x40f   :  { %7640 = vmatpush3.msra.mxu1 %v11167_v8  ;;  %7606 = vmatprep.subr.mxu0 %v9839_v1 }
 0x410   :  { %7641 = vmatprep.subr.mxu1 %v9839_v1  ;;  %7607 = vmatpush3.msra.mxu0 %v11171_v2 }
 0x411   :  { %7642 = vmatpush3.msra.mxu1 %v11175_v3  ;;  %7608 = vmatprep.subr.mxu0 %v9839_v1 }
 0x412   :  { %7643 = vmatprep.subr.mxu1 %v9839_v1  ;;  %7609 = vmatpush3.msra.mxu0 %v11179_v4 }
 0x413   :  { %7644 = vmatpush3.msra.mxu1 %v11183_v6  ;;  %7610 = vmatprep.subr.mxu0 %v9839_v1 }
 0x414   :  { %7645 = vmatprep.subr.mxu1 %v9839_v1  ;;  %7611 = vmatpush3.msra.mxu0 %v11187_v9 }
 0x415   :  { %7646 = vmatpush3.msra.mxu1 %v11191_v11  ;;  %7612 = vmatprep.subr.mxu0 %v9839_v1 }
 0x416   :  { %7647 = vmatprep.subr.mxu1 %v9839_v1  ;;  %7613 = vmatpush3.msra.mxu0 %v11195_v12 }
 0x417   :  { %7648 = vmatpush3.msra.mxu1 %v11199_v13  ;;  %7614 = vmatprep.subr.mxu0 %v9839_v1 }
 0x418   :  { %7649 = vmatprep.subr.mxu1 %v9839_v1  ;;  %7615 = vmatpush3.msra.mxu0 %v11203_v14 }
 0x419   :  { %7650 = vmatpush3.msra.mxu1 %v11207_v15  ;;  %7616 = vmatprep.subr.mxu0 %v9839_v1 }
 0x41a   :  { %7651 = vmatprep.subr.mxu1 %v9839_v1  ;;  %7617 = vmatpush3.msra.mxu0 %v11211_v16 }
 0x41b   :  { %7618 = vmatprep.mubr.msk.f32.mxu0 %vm9840_vm0, %v9839_v1  ;;  %7652 = vmatpush3.msra.mxu1 %v11215_v17 }
 0x41c   :  { %7653 = vmatprep.mubr.msk.f32.mxu1 %vm9840_vm0, %v9839_v1  ;;  %7619 = vmatmul.mubr.f32.vlgmr.msra.gmra.mxu0 %v9839_v1 }
 0x41d   :  { %7654 = vmatmul.mubr.f32.vlgmr.msra.gmra.mxu1 %v11083_v36  ;;  %7656 = vmatprep.subr.mxu0 %v9839_v1  ;;  %v13763_v36 = vld [vmem:[#allocation37_spill] sm:$0xff] }
 0x41e   :  { %7657 = vmatpush3.msra.mxu0 %v13744_v42  ;;  %7688 = vmatprep.mubr.msk.f32.mxu0 %vm9840_vm0, %v9839_v1  ;;  %v13766_v42 = vld [vmem:[#allocation40_spill] sm:$0xff] }
 0x41f   :  { %7658 = vmatprep.subr.mxu0 %v9839_v1  ;;  %7691 = vmatprep.subr.mxu1 %v9839_v1 }
 0x420   :  { %7659 = vmatpush3.msra.mxu0 %v13745_v27  ;;  %7692 = vmatpush3.msra.mxu1 %v13746_v10  ;;  %v13767_v27 = vld [vmem:[#allocation41_spill] sm:$0xff]  ;;  %v13768_v10 = vld [vmem:[#allocation42_spill] sm:$0xff] }
 0x421   :  { %7660 = vmatprep.subr.mxu0 %v9839_v1  ;;  %7693 = vmatprep.subr.mxu1 %v9839_v1 }
 0x422   :  { %7661 = vmatpush3.msra.mxu0 %v13747_v19  ;;  %7694 = vmatpush3.msra.mxu1 %v13748_v21  ;;  %v13769_v19 = vld [vmem:[#allocation43_spill] sm:$0xff]  ;;  %v13770_v21 = vld [vmem:[#allocation44_spill] sm:$0xff] }
 0x423   :  { %7662 = vmatprep.subr.mxu0 %v9839_v1  ;;  %7695 = vmatprep.subr.mxu1 %v9839_v1 }
 0x424   :  { %7663 = vmatpush3.msra.mxu0 %v13749_v22  ;;  %7696 = vmatpush3.msra.mxu1 %v13750_v23  ;;  %v13771_v22 = vld [vmem:[#allocation45_spill] sm:$0xff]  ;;  %v13772_v23 = vld [vmem:[#allocation46_spill] sm:$0xff] }
 0x425   :  { %7664 = vmatprep.subr.mxu0 %v9839_v1  ;;  %7697 = vmatprep.subr.mxu1 %v9839_v1 }
 0x426   :  { %7665 = vmatpush3.msra.mxu0 %v13751_v44  ;;  %7698 = vmatpush3.msra.mxu1 %v13752_v40  ;;  %v13773_v44 = vld [vmem:[#allocation47_spill] sm:$0xff]  ;;  %v13774_v40 = vld [vmem:[#allocation48_spill] sm:$0xff] }
 0x427   :  { %7666 = vmatprep.subr.mxu0 %v9839_v1  ;;  %7699 = vmatprep.subr.mxu1 %v9839_v1 }
 0x428   :  { %7667 = vmatpush3.msra.mxu0 %v13753_v38  ;;  %7700 = vmatpush3.msra.mxu1 %v13754_v41  ;;  %v13775_v38 = vld [vmem:[#allocation49_spill] sm:$0xff] }
 0x429   :  { %7668 = vmatprep.subr.mxu0 %v9839_v1  ;;  %7701 = vmatprep.subr.mxu1 %v9839_v1 }
 0x42a   :  { %7669 = vmatpush3.msra.mxu0 %v13755_v45  ;;  %7702 = vmatpush3.msra.mxu1 %v13756_v47  ;;  %v13776_v45 = vld [vmem:[#allocation10_spill] sm:$0xff] }
 0x42b   :  { %7670 = vmatprep.subr.mxu0 %v9839_v1  ;;  %7703 = vmatprep.subr.mxu1 %v9839_v1 }
 0x42c   :  { %7671 = vmatpush3.msra.mxu0 %v13757_v24  ;;  %7704 = vmatpush3.msra.mxu1 %v13758_v26 }
 0x42d   :  { %7672 = vmatprep.subr.mxu0 %v9839_v1  ;;  %7705 = vmatprep.subr.mxu1 %v9839_v1 }
 0x42e   :  { %7673 = vmatpush3.msra.mxu0 %v13759_v28  ;;  %7706 = vmatpush3.msra.mxu1 %v13760_v29  ;;  %v13777_v28 = vld [vmem:[#allocation50_spill] sm:$0xff]  ;;  %v13778_v29 = vld [vmem:[#allocation51_spill] sm:$0xff] }
 0x42f   :  { %7674 = vmatprep.subr.mxu0 %v9839_v1  ;;  %7707 = vmatprep.subr.mxu1 %v9839_v1 }
 0x430   :  { %7675 = vmatpush3.msra.mxu0 %v13761_v31  ;;  %7708 = vmatpush3.msra.mxu1 %v13762_v34  ;;  %v13779_v31 = vld [vmem:[#allocation52_spill] sm:$0xff]  ;;  %v13780_v34 = vld [vmem:[#allocation53_spill] sm:$0xff] }
 0x431   :  { %7676 = vmatprep.subr.mxu0 %v9839_v1  ;;  %7709 = vmatprep.subr.mxu1 %v9839_v1 }
 0x432   :  { %7677 = vmatpush3.msra.mxu0 %v13763_v36  ;;  %7710 = vmatpush3.msra.mxu1 %v13764_v37  ;;  %v13781_v36 = vld [vmem:[#allocation54_spill] sm:$0xff] }
 0x433   :  { %7678 = vmatprep.subr.mxu0 %v9839_v1  ;;  %7711 = vmatprep.subr.mxu1 %v9839_v1 }
 0x434   :  { %7679 = vmatpush3.msra.mxu0 %v13765_v48  ;;  %7712 = vmatpush3.msra.mxu1 %v13766_v42 }
 0x435   :  { %7680 = vmatprep.subr.mxu0 %v9839_v1  ;;  %7713 = vmatprep.subr.mxu1 %v9839_v1 }
 0x436   :  { %7681 = vmatpush3.msra.mxu0 %v13767_v27  ;;  %7714 = vmatpush3.msra.mxu1 %v13768_v10 }
 0x437   :  { %7682 = vmatprep.subr.mxu0 %v9839_v1  ;;  %7715 = vmatprep.subr.mxu1 %v9839_v1 }
 0x438   :  { %7683 = vmatpush3.msra.mxu0 %v13769_v19  ;;  %7716 = vmatpush3.msra.mxu1 %v13770_v21  ;;  %v13782_v19 = vld [vmem:[#allocation55_spill] sm:$0xff] }
 0x439   :  { %7684 = vmatprep.subr.mxu0 %v9839_v1  ;;  %7717 = vmatprep.subr.mxu1 %v9839_v1 }
 0x43a   :  { %7685 = vmatpush3.msra.mxu0 %v13771_v22  ;;  %7718 = vmatpush3.msra.mxu1 %v13772_v23  ;;  %v13786_v22 = vld [vmem:[#allocation59_spill] sm:$0xff]  ;;  %v13788_v23 = vld [vmem:[#allocation61_spill] sm:$0xff] }
 0x43b   :  { %7686 = vmatprep.subr.mxu0 %v9839_v1  ;;  %7719 = vmatprep.subr.mxu1 %v9839_v1 }
 0x43c   :  { %7687 = vmatpush3.msra.mxu0 %v13773_v44  ;;  %7720 = vmatpush3.msra.mxu1 %v13774_v40  ;;  %v13789_v40 = vld [vmem:[#allocation62_spill] sm:$0xff] }
 0x43d   :  { %7726 = vmatprep.subr.mxu0 %v9839_v1  ;;  %7721 = vmatprep.subr.mxu1 %v9839_v1 }
 0x43e   :  { %7722 = vmatpush3.msra.mxu1 %v13775_v38  ;;  %7723 = vmatprep.mubr.msk.f32.mxu1 %vm9840_vm0, %v9839_v1  ;;  %v11352_v38 = vld [vmem:[#allocation5 + $0xe0] sm:$0xff] }
 0x43f   :  { %7761 = vmatprep.subr.mxu1 %v9839_v1 }
 0x458   :  { %v1531_v41 = vpop.f32.mrf.mxu1 }
 0x459   :  { %v1535_v47 = vadd.f32 %v1531_v41, %v13776_v45  ;;  %v11365_v41 = vld [vmem:[#allocation7 + $0xd8] sm:$0xff] }
 0x45a   :  { %v7375_v24 = vpop.f32.mrf.mxu1 }
 0x45b   :  { %9328 = vtanh.f32 %v1535_v47  ;;  %v11368_v47 = vld [vmem:[#allocation5 + $0xd0] sm:$0xff] }
 0x45c   :  { %v11373_v24 = vld [vmem:[#allocation7 + $0xd0] sm:$0xff] }
 0x468   :  { %v9329_v26 = vpop.eup %9328 }
 0x469   :  { %7689 = vmatmul.mubr.f32.vlgmr.msra.gmra.mxu0 %v9329_v26 }
 0x46a   :  { %7727 = vmatpush3.msra.mxu0 %v13777_v28  ;;  %7758 = vmatprep.mubr.msk.f32.mxu0 %vm9840_vm0, %v9839_v1 }
 0x46b   :  { %7728 = vmatprep.subr.mxu0 %v9839_v1 }
 0x46c   :  { %7729 = vmatpush3.msra.mxu0 %v13778_v29  ;;  %v11381_v29 = vld [vmem:[#allocation7 + $0xc8] sm:$0xff] }
 0x46d   :  { %7730 = vmatprep.subr.mxu0 %v9839_v1 }
 0x46e   :  { %7731 = vmatpush3.msra.mxu0 %v13779_v31  ;;  %v11384_v31 = vld [vmem:[#allocation5 + $0xc0] sm:$0xff] }
 0x46f   :  { %7732 = vmatprep.subr.mxu0 %v9839_v1 }
 0x470   :  { %7733 = vmatpush3.msra.mxu0 %v13780_v34 }
 0x471   :  { %7734 = vmatprep.subr.mxu0 %v9839_v1 }
 0x472   :  { %7735 = vmatpush3.msra.mxu0 %v13781_v36 }
 0x473   :  { %7736 = vmatprep.subr.mxu0 %v9839_v1 }
 0x474   :  { %7737 = vmatpush3.msra.mxu0 %v10882_v55  ;;  %v13783_v55 = vld [vmem:[#allocation56_spill] sm:$0xff] }
 0x475   :  { %7738 = vmatprep.subr.mxu0 %v9839_v1 }
 0x476   :  { %v1603_v37 = vpop.f32.mrf.mxu0  ;;  %7739 = vmatpush3.msra.mxu0 %v10886_v25  ;;  %v13784_v25 = vld [vmem:[#allocation57_spill] sm:$0xff] }
 0x477   :  { %7740 = vmatprep.subr.mxu0 %v9839_v1 }
 0x478   :  { %v7410_v48 = vpop.f32.mrf.mxu0  ;;  %v1673_v42 = vpop.f32.mrf.mxu1  ;;  %7741 = vmatpush3.msra.mxu0 %v10896_v20  ;;  %v13785_v20 = vld [vmem:[#allocation58_spill] sm:$0xff] }
 0x479   :  { %v1674_v27 = vadd.f32 %v1673_v42, %v1603_v37  ;;  %7742 = vmatprep.subr.mxu0 %v9839_v1  ;;  %v11389_v37 = vld [vmem:[#allocation7 + $0xc0] sm:$0xff]  ;;  %v11392_v48 = vld [vmem:[#allocation5 + $0xb8] sm:$0xff] }
 0x47a   :  { %v7445_v10 = vpop.f32.mrf.mxu1  ;;  %7743 = vmatpush3.msra.mxu0 %v10900_v18  ;;  %v13787_v18 = vld [vmem:[#allocation60_spill] sm:$0xff] }
 0x47b   :  { %v1677_v21 = vadd.f32 %v13782_v19, %v1674_v27  ;;  %7744 = vmatprep.subr.mxu0 %v9839_v1  ;;  %v11397_v10 = vld [vmem:[#allocation7 + $0xb8] sm:$0xff]  ;;  %v11400_v19 = vld [vmem:[#allocation5 + $0xb0] sm:$0xff] }
 0x47c   :  { %7745 = vmatpush3.msra.mxu0 %v13783_v55 }
 0x47d   :  { %9330 = vtanh.f32 %v1677_v21  ;;  %7746 = vmatprep.subr.mxu0 %v9839_v1  ;;  %v11406_v21 = vld [vmem:[%s13454_s6 + $0x1] ss:$0 sm:$0xff] }
 0x47e   :  { %7747 = vmatpush3.msra.mxu0 %v13784_v25  ;;  %v11411_v25 = vld [vmem:[#allocation7 + $0xb0] sm:$0xff] }
 0x47f   :  { %7748 = vmatprep.subr.mxu0 %v9839_v1 }
 0x480   :  { %7749 = vmatpush3.msra.mxu0 %v13785_v20  ;;  %v11414_v20 = vld [vmem:[#allocation5 + $0xa8] sm:$0xff] }
 0x481   :  { %7750 = vmatprep.subr.mxu0 %v9839_v1 }
 0x482   :  { %7751 = vmatpush3.msra.mxu0 %v13786_v22  ;;  %v11419_v22 = vld [vmem:[#allocation7 + $0xa8] sm:$0xff] }
 0x483   :  { %7752 = vmatprep.subr.mxu0 %v9839_v1 }
 0x484   :  { %7753 = vmatpush3.msra.mxu0 %v13787_v18  ;;  %v11422_v18 = vld [vmem:[#allocation5 + $0xa0] sm:$0xff] }
 0x485   :  { %7754 = vmatprep.subr.mxu0 %v9839_v1  ;;  %13791 = vst [vmem:[#allocation11_spill] sm:$0xff] %v11422_v18 }
 0x486   :  { %7755 = vmatpush3.msra.mxu0 %v13788_v23  ;;  %v11427_v23 = vld [vmem:[#allocation7 + $0xa0] sm:$0xff] }
 0x487   :  { %7756 = vmatprep.subr.mxu0 %v9839_v1 }
 0x488   :  { %7757 = vmatpush3.msra.mxu0 %v10931_v35  ;;  %v13790_v35 = vld [vmem:[#allocation63_spill] sm:$0xff] }
 0x489   :  { %7759 = vmatmul.mubr.f32.vlgmr.msra.gmra.mxu0 %v9329_v26  ;;  %7796 = vmatprep.subr.mxu0 %v9839_v1  ;;  %v11376_v26 = vld [vmem:[#allocation5 + $0xc8] sm:$0xff] }
 0x48a   :  { %v11334_v44 = vpop.eup %9330  ;;  %7797 = vmatpush3.msra.mxu0 %v10942_v32  ;;  %7828 = vmatprep.mubr.msk.f32.mxu0 %vm9840_vm0, %v9839_v1  ;;  %v11349_v32 = vld [vmem:[#allocation7 + $0xe8] sm:$0xff] }
 0x48b   :  { %7724 = vmatmul.mubr.f32.vlgmr.msra.gmra.mxu1 %v11334_v44  ;;  %7798 = vmatprep.subr.mxu0 %v9839_v1 }
 0x48c   :  { %7762 = vmatpush3.msra.mxu1 %v13789_v40  ;;  %7799 = vmatpush3.msra.mxu0 %v10948_v33  ;;  %v11357_v33 = vld [vmem:[#allocation7 + $0xe0] sm:$0xff]  ;;  %v11430_v40 = vld [vmem:[#allocation5 + $0x98] sm:$0xff] }
 0x48d   :  { %7763 = vmatprep.subr.mxu1 %v9839_v1  ;;  %7800 = vmatprep.subr.mxu0 %v9839_v1  ;;  %13792 = vst [vmem:[#allocation12_spill] sm:$0xff] %v11430_v40 }
 0x48e   :  { %7764 = vmatpush3.msra.mxu1 %v10939_v30  ;;  %7801 = vmatpush3.msra.mxu0 %v13790_v35  ;;  %v11360_v30 = vld [vmem:[#allocation5 + $0xd8] sm:$0xff] }
 0x48f   :  { %7765 = vmatprep.subr.mxu1 %v9839_v1  ;;  %7802 = vmatprep.subr.mxu0 %v9839_v1  ;;  %v11435_v35 = vld [vmem:[#allocation7 + $0x98] sm:$0xff] }
 0x490   :  { %7766 = vmatpush3.msra.mxu1 %v11349_v32  ;;  %7803 = vmatpush3.msra.mxu0 %v11352_v38  ;;  %13793 = vst [vmem:[#allocation13_spill] sm:$0xff] %v11435_v35 }
 0x491   :  { %7767 = vmatprep.subr.mxu1 %v9839_v1  ;;  %7804 = vmatprep.subr.mxu0 %v9839_v1 }
 0x492   :  { %7768 = vmatpush3.msra.mxu1 %v11357_v33  ;;  %7805 = vmatpush3.msra.mxu0 %v11360_v30 }
 0x493   :  { %7769 = vmatprep.subr.mxu1 %v9839_v1  ;;  %7806 = vmatprep.subr.mxu0 %v9839_v1 }
 0x494   :  { %7770 = vmatpush3.msra.mxu1 %v11365_v41  ;;  %7807 = vmatpush3.msra.mxu0 %v11368_v47 }
 0x495   :  { %7771 = vmatprep.subr.mxu1 %v9839_v1  ;;  %7808 = vmatprep.subr.mxu0 %v9839_v1 }
 0x496   :  { %7772 = vmatpush3.msra.mxu1 %v11373_v24  ;;  %7809 = vmatpush3.msra.mxu0 %v11376_v26 }
 0x497   :  { %v1745_v28 = vpop.f32.mrf.mxu0  ;;  %7773 = vmatprep.subr.mxu1 %v9839_v1  ;;  %7810 = vmatprep.subr.mxu0 %v9839_v1 }
 0x498   :  { %7774 = vmatpush3.msra.mxu1 %v11381_v29  ;;  %7811 = vmatpush3.msra.mxu0 %v11384_v31 }
 0x499   :  { %v7480_v34 = vpop.f32.mrf.mxu0  ;;  %7775 = vmatprep.subr.mxu1 %v9839_v1  ;;  %7812 = vmatprep.subr.mxu0 %v9839_v1 }
 0x49a   :  { %v1815_v36 = vpop.f32.mrf.mxu1  ;;  %7776 = vmatpush3.msra.mxu1 %v11389_v37  ;;  %7813 = vmatpush3.msra.mxu0 %v11392_v48  ;;  %v11443_v34 = vld [vmem:[#allocation7 + $0x90] sm:$0xff] }
 0x49b   :  { %v1816_v42 = vadd.f32 %v1815_v36, %v1745_v28  ;;  %7777 = vmatprep.subr.mxu1 %v9839_v1  ;;  %7814 = vmatprep.subr.mxu0 %v9839_v1  ;;  %v11438_v28 = vld [vmem:[#allocation5 + $0x90] sm:$0xff]  ;;  %13795 = vst [vmem:[#allocation15_spill] sm:$0xff] %v11443_v34  ;;  %v11446_v36 = vld [vmem:[#allocation5 + $0x88] sm:$0xff] }
 0x49c   :  { %v7515_v27 = vpop.f32.mrf.mxu1  ;;  %7778 = vmatpush3.msra.mxu1 %v11397_v10  ;;  %7815 = vmatpush3.msra.mxu0 %v11400_v19  ;;  %13794 = vst [vmem:[#allocation14_spill] sm:$0xff] %v11438_v28  ;;  %13796 = vst [vmem:[#allocation16_spill] sm:$0xff] %v11446_v36 }
 0x49d   :  { %v1819_v55 = vadd.f32 %v11406_v21, %v1816_v42  ;;  %7779 = vmatprep.subr.mxu1 %v9839_v1  ;;  %7816 = vmatprep.subr.mxu0 %v9839_v1  ;;  %v11451_v42 = vld [vmem:[#allocation7 + $0x88] sm:$0xff]  ;;  %v11454_v27 = vld [vmem:[#allocation5 + $0x80] sm:$0xff] }
 0x49e   :  { %7780 = vmatpush3.msra.mxu1 %v11411_v25  ;;  %7817 = vmatpush3.msra.mxu0 %v11414_v20  ;;  %13797 = vst [vmem:[#allocation18_spill] sm:$0xff] %v11451_v42  ;;  %13798 = vst [vmem:[#allocation17_spill] sm:$0xff] %v11454_v27 }
 0x49f   :  { %9332 = vtanh.f32 %v1819_v55  ;;  %7781 = vmatprep.subr.mxu1 %v9839_v1  ;;  %7818 = vmatprep.subr.mxu0 %v9839_v1  ;;  %v11460_v55 = vld [vmem:[#allocation7 + $0x80] sm:$0xff] }
 0x4a0   :  { %7782 = vmatpush3.msra.mxu1 %v11419_v22  ;;  %7819 = vmatpush3.msra.mxu0 %v11422_v18  ;;  %13799 = vst [vmem:[#allocation19_spill] sm:$0xff] %v11460_v55  ;;  %v11541_v18 = vld [vmem:[#allocation7 + $0x138] sm:$0xff] }
 0x4a1   :  { %7783 = vmatprep.subr.mxu1 %v9839_v1  ;;  %7820 = vmatprep.subr.mxu0 %v9839_v1 }
 0x4a2   :  { %7784 = vmatpush3.msra.mxu1 %v11427_v23  ;;  %7821 = vmatpush3.msra.mxu0 %v11430_v40 }
 0x4a3   :  { %7785 = vmatprep.subr.mxu1 %v9839_v1  ;;  %7822 = vmatprep.subr.mxu0 %v9839_v1 }
 0x4a4   :  { %7786 = vmatpush3.msra.mxu1 %v11435_v35  ;;  %7823 = vmatpush3.msra.mxu0 %v11438_v28  ;;  %v11532_v35 = vld [vmem:[#allocation7 + $0x140] sm:$0xff] }
 0x4a5   :  { %7787 = vmatprep.subr.mxu1 %v9839_v1  ;;  %7824 = vmatprep.subr.mxu0 %v9839_v1 }
 0x4a6   :  { %7788 = vmatpush3.msra.mxu1 %v11443_v34  ;;  %7825 = vmatpush3.msra.mxu0 %v11446_v36  ;;  %v11465_v36 = vld [vmem:[#allocation5 + $0x178] sm:$0xff] }
 0x4a7   :  { %7789 = vmatprep.subr.mxu1 %v9839_v1  ;;  %7826 = vmatprep.subr.mxu0 %v9839_v1  ;;  %13800 = vst [vmem:[#allocation20_spill] sm:$0xff] %v11465_v36 }
 0x4a8   :  { %7790 = vmatpush3.msra.mxu1 %v11451_v42  ;;  %7827 = vmatpush3.msra.mxu0 %v11454_v27  ;;  %v11476_v27 = vld [vmem:[#allocation7 + $0x178] sm:$0xff] }
 0x4a9   :  { %7791 = vmatprep.subr.mxu1 %v9839_v1  ;;  %7829 = vmatmul.mubr.f32.vlgmr.msra.gmra.mxu0 %v11334_v44  ;;  %v11473_v44 = vld [vmem:[#allocation5 + $0x170] sm:$0xff]  ;;  %13802 = vst [vmem:[#allocation21_spill] sm:$0xff] %v11476_v27 }
 0x4aa   :  { %7866 = vmatprep.subr.mxu0 %v9839_v1  ;;  %7792 = vmatpush3.msra.mxu1 %v11460_v55  ;;  %13801 = vst [vmem:[#allocation22_spill] sm:$0xff] %v11473_v44  ;;  %v11484_v55 = vld [vmem:[#allocation7 + $0x170] sm:$0xff] }
 0x4ab   :  { %7793 = vmatprep.mubr.msk.f32.mxu1 %vm9840_vm0, %v9839_v1  ;;  %7867 = vmatpush3.msra.mxu0 %v11465_v36  ;;  %v11481_v36 = vld [vmem:[#allocation5 + $0x168] sm:$0xff]  ;;  %13804 = vst [vmem:[#allocation23_spill] sm:$0xff] %v11484_v55 }
 0x4ac   :  { %v11468_v42 = vpop.eup %9332  ;;  %7831 = vmatprep.subr.mxu1 %v9839_v1  ;;  %7868 = vmatprep.subr.mxu0 %v9839_v1  ;;  %13803 = vst [vmem:[#allocation24_spill] sm:$0xff] %v11481_v36 }
 0x4ad   :  { %7794 = vmatmul.mubr.f32.vlgmr.msra.gmra.mxu1 %v11468_v42  ;;  %7869 = vmatpush3.msra.mxu0 %v11473_v44  ;;  %v11489_v44 = vld [vmem:[#allocation5 + $0x160] sm:$0xff] }
 0x4ae   :  { %7832 = vmatpush3.msra.mxu1 %v11476_v27  ;;  %7870 = vmatprep.subr.mxu0 %v9839_v1  ;;  %13805 = vst [vmem:[#allocation26_spill] sm:$0xff] %v11489_v44  ;;  %v11492_v27 = vld [vmem:[#allocation7 + $0x168] sm:$0xff] }
 0x4af   :  { %7833 = vmatprep.subr.mxu1 %v9839_v1  ;;  %7871 = vmatpush3.msra.mxu0 %v11481_v36  ;;  %13806 = vst [vmem:[#allocation25_spill] sm:$0xff] %v11492_v27  ;;  %v11497_v36 = vld [vmem:[#allocation5 + $0x158] sm:$0xff] }
 0x4b0   :  { %7834 = vmatpush3.msra.mxu1 %v11484_v55  ;;  %7872 = vmatprep.subr.mxu0 %v9839_v1  ;;  %13807 = vst [vmem:[#allocation28_spill] sm:$0xff] %v11497_v36  ;;  %v11500_v55 = vld [vmem:[#allocation7 + $0x160] sm:$0xff] }
 0x4b1   :  { %7835 = vmatprep.subr.mxu1 %v9839_v1  ;;  %7873 = vmatpush3.msra.mxu0 %v11489_v44  ;;  %13808 = vst [vmem:[#allocation27_spill] sm:$0xff] %v11500_v55  ;;  %v11505_v44 = vld [vmem:[#allocation5 + $0x150] sm:$0xff] }
 0x4b2   :  { %7836 = vmatpush3.msra.mxu1 %v11492_v27  ;;  %7874 = vmatprep.subr.mxu0 %v9839_v1  ;;  %13809 = vst [vmem:[#allocation29_spill] sm:$0xff] %v11505_v44  ;;  %v11508_v27 = vld [vmem:[#allocation7 + $0x158] sm:$0xff] }
 0x4b3   :  { %7837 = vmatprep.subr.mxu1 %v9839_v1  ;;  %7875 = vmatpush3.msra.mxu0 %v11497_v36  ;;  %13810 = vst [vmem:[#allocation30_spill] sm:$0xff] %v11508_v27  ;;  %v11513_v36 = vld [vmem:[#allocation5 + $0x148] sm:$0xff] }
 0x4b4   :  { %7838 = vmatpush3.msra.mxu1 %v11500_v55  ;;  %7876 = vmatprep.subr.mxu0 %v9839_v1  ;;  %13811 = vst [vmem:[#allocation31_spill] sm:$0xff] %v11513_v36  ;;  %v11516_v55 = vld [vmem:[#allocation7 + $0x150] sm:$0xff] }
 0x4b5   :  { %7839 = vmatprep.subr.mxu1 %v9839_v1  ;;  %7877 = vmatpush3.msra.mxu0 %v11505_v44  ;;  %13812 = vst [vmem:[#allocation32_spill] sm:$0xff] %v11516_v55  ;;  %v11521_v44 = vld [vmem:[#allocation5 + $0x140] sm:$0xff] }
 0x4b6   :  { %7840 = vmatpush3.msra.mxu1 %v11508_v27  ;;  %7878 = vmatprep.subr.mxu0 %v9839_v1  ;;  %13813 = vst [vmem:[#allocation33_spill] sm:$0xff] %v11521_v44  ;;  %v11524_v27 = vld [vmem:[#allocation7 + $0x148] sm:$0xff] }
 0x4b7   :  { %7841 = vmatprep.subr.mxu1 %v9839_v1  ;;  %7879 = vmatpush3.msra.mxu0 %v11513_v36  ;;  %13814 = vst [vmem:[#allocation34_spill] sm:$0xff] %v11524_v27 }
 0x4b8   :  { %7842 = vmatpush3.msra.mxu1 %v11516_v55  ;;  %7880 = vmatprep.subr.mxu0 %v9839_v1  ;;  %v11529_v55 = vld [vmem:[#allocation5 + $0x138] sm:$0xff] }
 0x4b9   :  { %v1887_v28 = vpop.f32.mrf.mxu0  ;;  %7843 = vmatprep.subr.mxu1 %v9839_v1  ;;  %7881 = vmatpush3.msra.mxu0 %v11521_v44 }
 0x4ba   :  { %7844 = vmatpush3.msra.mxu1 %v11524_v27  ;;  %7882 = vmatprep.subr.mxu0 %v9839_v1  ;;  %v11537_v27 = vld [vmem:[#allocation5 + $0x130] sm:$0xff] }
 0x4bb   :  { %v7550_v36 = vpop.f32.mrf.mxu0  ;;  %v1957_v34 = vpop.f32.mrf.mxu1  ;;  %7845 = vmatprep.subr.mxu1 %v9839_v1  ;;  %7883 = vmatpush3.msra.mxu0 %v11529_v55 }
 0x4bc   :  { %v1958_v40 = vadd.f32 %v1957_v34, %v1887_v28  ;;  %7846 = vmatpush3.msra.mxu1 %v11532_v35  ;;  %7884 = vmatprep.subr.mxu0 %v9839_v1  ;;  %v11546_v28 = vld [vmem:[#allocation5 + $0x128] sm:$0xff]  ;;  %v11549_v34 = vld [vmem:[#allocation7 + $0x130] sm:$0xff] }
 0x4bd   :  { %v7585_v44 = vpop.f32.mrf.mxu1  ;;  %7847 = vmatprep.subr.mxu1 %v9839_v1  ;;  %7885 = vmatpush3.msra.mxu0 %v11537_v27  ;;  %13815 = vst [vmem:[#allocation35_spill] sm:$0xff] %v11546_v28 }
 0x4be   :  { %v1961_v36 = vadd.f32 %v11044_v39, %v1958_v40  ;;  %7848 = vmatpush3.msra.mxu1 %v11541_v18  ;;  %7886 = vmatprep.subr.mxu0 %v9839_v1  ;;  %v11554_v39 = vld [vmem:[#allocation5 + $0x120] sm:$0xff]  ;;  %v11557_v40 = vld [vmem:[#allocation7 + $0x128] sm:$0xff]  ;;  %v11562_v44 = vld [vmem:[#allocation5 + $0x118] sm:$0xff] }
 0x4bf   :  { %7849 = vmatprep.subr.mxu1 %v9839_v1  ;;  %7887 = vmatpush3.msra.mxu0 %v11546_v28  ;;  %13816 = vst [vmem:[#allocation36_spill] sm:$0xff] %v11554_v39  ;;  %13817 = vst [vmem:[#allocation37_spill] sm:$0xff] %v11562_v44  ;;  %v11573_v28 = vld [vmem:[#allocation7 + $0x118] sm:$0xff] }
 0x4c0   :  { %9334 = vtanh.f32 %v1961_v36  ;;  %7850 = vmatpush3.msra.mxu1 %v11549_v34  ;;  %7888 = vmatprep.subr.mxu0 %v9839_v1  ;;  %v11565_v36 = vld [vmem:[#allocation7 + $0x120] sm:$0xff]  ;;  %13820 = vst [vmem:[#allocation40_spill] sm:$0xff] %v11573_v28 }
 0x4c1   :  { %7851 = vmatprep.subr.mxu1 %v9839_v1  ;;  %7889 = vmatpush3.msra.mxu0 %v11554_v39  ;;  %13818 = vst [vmem:[#allocation38_spill] sm:$0xff] %v11565_v36  ;;  %v11570_v39 = vld [vmem:[#allocation5 + $0x110] sm:$0xff] }
 0x4c2   :  { %7852 = vmatpush3.msra.mxu1 %v11557_v40  ;;  %7890 = vmatprep.subr.mxu0 %v9839_v1  ;;  %13819 = vst [vmem:[#allocation39_spill] sm:$0xff] %v11570_v39 }
 0x4c3   :  { %7853 = vmatprep.subr.mxu1 %v9839_v1  ;;  %7891 = vmatpush3.msra.mxu0 %v11562_v44  ;;  %v11578_v44 = vld [vmem:[#allocation5 + $0x108] sm:$0xff] }
 0x4c4   :  { %7854 = vmatpush3.msra.mxu1 %v11565_v36  ;;  %7892 = vmatprep.subr.mxu0 %v9839_v1  ;;  %13821 = vst [vmem:[#allocation41_spill] sm:$0xff] %v11578_v44  ;;  %v11581_v36 = vld [vmem:[#allocation7 + $0x110] sm:$0xff] }
 0x4c5   :  { %7855 = vmatprep.subr.mxu1 %v9839_v1  ;;  %7893 = vmatpush3.msra.mxu0 %v11570_v39  ;;  %13822 = vst [vmem:[#allocation42_spill] sm:$0xff] %v11581_v36  ;;  %v11586_v39 = vld [vmem:[#allocation5 + $0x100] sm:$0xff] }
 0x4c6   :  { %7856 = vmatpush3.msra.mxu1 %v11573_v28  ;;  %7894 = vmatprep.subr.mxu0 %v9839_v1  ;;  %v11589_v28 = vld [vmem:[#allocation7 + $0x108] sm:$0xff] }
 0x4c7   :  { %7857 = vmatprep.subr.mxu1 %v9839_v1  ;;  %7895 = vmatpush3.msra.mxu0 %v11578_v44  ;;  %v11597_v44 = vld [vmem:[#allocation7 + $0x100] sm:$0xff] }
 0x4c8   :  { %7858 = vmatpush3.msra.mxu1 %v11581_v36  ;;  %7896 = vmatprep.subr.mxu0 %v9839_v1 }
 0x4c9   :  { %7859 = vmatprep.subr.mxu1 %v9839_v1  ;;  %7897 = vmatpush3.msra.mxu0 %v11586_v39 }
 0x4ca   :  { %7860 = vmatpush3.msra.mxu1 %v11589_v28  ;;  %7898 = vmatprep.mubr.msk.f32.mxu0 %vm9840_vm0, %v9839_v1 }
 0x4cb   :  { %7861 = vmatprep.subr.mxu1 %v9839_v1  ;;  %7899 = vmatmul.mubr.f32.vlgmr.msra.gmra.mxu0 %v11468_v42  ;;  %v11779_v42 = vld [vmem:[#allocation3 + $0x18] sm:$0xff] }
 0x4cc   :  { %7936 = vmatprep.subr.mxu0 %v9839_v1  ;;  %7862 = vmatpush3.msra.mxu1 %v11597_v44 }
 0x4cd   :  { %v11600_v36 = vpop.eup %9334  ;;  %7863 = vmatprep.mubr.msk.f32.mxu1 %vm9840_vm0, %v9839_v1  ;;  %7937 = vmatpush3.msra.mxu0 %v11095_v49 }
 0x4ce   :  { %7864 = vmatmul.mubr.f32.vlgmr.msra.gmra.mxu1 %v11600_v36  ;;  %7901 = vmatprep.subr.mxu1 %v9839_v1 }
 0x4cf   :  { %7938 = vmatprep.subr.mxu0 %v9839_v1  ;;  %7902 = vmatpush3.msra.mxu1 %v11090_v46 }
 0x4d0   :  { %7939 = vmatpush3.msra.mxu0 %v11103_v51  ;;  %7903 = vmatprep.subr.mxu1 %v9839_v1 }
 0x4d1   :  { %7940 = vmatprep.subr.mxu0 %v9839_v1  ;;  %7904 = vmatpush3.msra.mxu1 %v11099_v50  ;;  %v11638_v50 = vld [vmem:[%s13454_s6 + $0x3] ss:$0 sm:$0xff] }
 0x4d2   :  { %7941 = vmatpush3.msra.mxu0 %v11111_v53  ;;  %7905 = vmatprep.subr.mxu1 %v9839_v1 }
 0x4d3   :  { %7942 = vmatprep.subr.mxu0 %v9839_v1  ;;  %7906 = vmatpush3.msra.mxu1 %v11107_v52 }
 0x4d4   :  { %7943 = vmatpush3.msra.mxu0 %v11119_v56  ;;  %7907 = vmatprep.subr.mxu1 %v9839_v1 }
 0x4d5   :  { %7944 = vmatprep.subr.mxu0 %v9839_v1  ;;  %7908 = vmatpush3.msra.mxu1 %v11115_v54 }
 0x4d6   :  { %7945 = vmatpush3.msra.mxu0 %v11127_v58  ;;  %7909 = vmatprep.subr.mxu1 %v9839_v1  ;;  %v11684_v58 = vld [vmem:[#allocation3 + $0x78] sm:$0xff] }
 0x4d7   :  { %7946 = vmatprep.subr.mxu0 %v9839_v1  ;;  %7910 = vmatpush3.msra.mxu1 %v11123_v57  ;;  %v11681_v57 = vld [vmem:[#allocation7 + $0x78] sm:$0xff] }
 0x4d8   :  { %7947 = vmatpush3.msra.mxu0 %v11135_v60  ;;  %7911 = vmatprep.subr.mxu1 %v9839_v1  ;;  %v11694_v60 = vld [vmem:[#allocation7 + $0x70] sm:$0xff] }
 0x4d9   :  { %7948 = vmatprep.subr.mxu0 %v9839_v1  ;;  %7912 = vmatpush3.msra.mxu1 %v11131_v59  ;;  %v11691_v59 = vld [vmem:[#allocation3 + $0x70] sm:$0xff] }
 0x4da   :  { %7949 = vmatpush3.msra.mxu0 %v11143_v62  ;;  %7913 = vmatprep.subr.mxu1 %v9839_v1  ;;  %v11702_v62 = vld [vmem:[#allocation7 + $0x68] sm:$0xff] }
 0x4db   :  { %7950 = vmatprep.subr.mxu0 %v9839_v1  ;;  %7914 = vmatpush3.msra.mxu1 %v11139_v61  ;;  %v11699_v61 = vld [vmem:[#allocation3 + $0x68] sm:$0xff] }
 0x4dc   :  { %v2063_v46 = vpop.f32.mrf.mxu0  ;;  %7951 = vmatpush3.msra.mxu0 %v11151_v63  ;;  %7915 = vmatprep.subr.mxu1 %v9839_v1  ;;  %v11710_v63 = vld [vmem:[#allocation7 + $0x60] sm:$0xff] }
 0x4dd   :  { %v2133_v49 = vpop.f32.mrf.mxu1  ;;  %7952 = vmatprep.subr.mxu0 %v9839_v1  ;;  %7916 = vmatpush3.msra.mxu1 %v11147_v43  ;;  %v11707_v43 = vld [vmem:[#allocation3 + $0x60] sm:$0xff] }
 0x4de   :  { %v2134_v51 = vadd.f32 %v2133_v49, %v2063_v46  ;;  %v7620_v52 = vpop.f32.mrf.mxu0  ;;  %7953 = vmatpush3.msra.mxu0 %v11159_v5  ;;  %7917 = vmatprep.subr.mxu1 %v9839_v1  ;;  %v11718_v5 = vld [vmem:[#allocation7 + $0x58] sm:$0xff]  ;;  %v11787_v46 = vld [vmem:[#allocation3 + $0x10] sm:$0xff] }
 0x4df   :  { %v7655_v53 = vpop.f32.mrf.mxu1  ;;  %7954 = vmatprep.subr.mxu0 %v9839_v1  ;;  %7918 = vmatpush3.msra.mxu1 %v11155_v0  ;;  %v11715_v0 = vld [vmem:[#allocation3 + $0x58] sm:$0xff]  ;;  %13825 = vst [vmem:[#allocation45_spill] sm:$0xff] %v11787_v46  ;;  %v11790_v49 = vld [vmem:[#allocation7 + $0x10] sm:$0xff]  ;;  %v11798_v52 = vld [vmem:[#allocation7 + $0x8] sm:$0xff] }
 0x4e0   :  { %v2145_v54 = vadd.f32 %v11638_v50, %v2134_v51  ;;  %7955 = vmatpush3.msra.mxu0 %v11167_v8  ;;  %7919 = vmatprep.subr.mxu1 %v9839_v1  ;;  %v11726_v8 = vld [vmem:[#allocation7 + $0x50] sm:$0xff]  ;;  %13826 = vst [vmem:[#allocation46_spill] sm:$0xff] %v11790_v49  ;;  %v11795_v51 = vld [vmem:[#allocation3 + $0x8] sm:$0xff]  ;;  %13828 = vst [vmem:[#allocation48_spill] sm:$0xff] %v11798_v52 }
 0x4e1   :  { %7956 = vmatprep.subr.mxu0 %v9839_v1  ;;  %7920 = vmatpush3.msra.mxu1 %v11163_v7  ;;  %v11723_v7 = vld [vmem:[#allocation3 + $0x50] sm:$0xff]  ;;  %13827 = vst [vmem:[#allocation47_spill] sm:$0xff] %v11795_v51  ;;  %v11803_v53 = vld [vmem:[#allocation3] sm:$0xff] }
 0x4e2   :  { %9336 = vtanh.f32 %v2145_v54  ;;  %7957 = vmatpush3.msra.mxu0 %v11175_v3  ;;  %7921 = vmatprep.subr.mxu1 %v9839_v1  ;;  %v11734_v3 = vld [vmem:[#allocation7 + $0x48] sm:$0xff]  ;;  %13829 = vst [vmem:[#allocation49_spill] sm:$0xff] %v11803_v53  ;;  %v11806_v54 = vld [vmem:[#allocation7] sm:$0xff] }
 0x4e3   :  { %7958 = vmatprep.subr.mxu0 %v9839_v1  ;;  %7922 = vmatpush3.msra.mxu1 %v11171_v2  ;;  %v11731_v2 = vld [vmem:[#allocation3 + $0x48] sm:$0xff]  ;;  %13830 = vst [vmem:[#allocation50_spill] sm:$0xff] %v11806_v54 }
 0x4e4   :  { %7959 = vmatpush3.msra.mxu0 %v11183_v6  ;;  %7923 = vmatprep.subr.mxu1 %v9839_v1  ;;  %v11742_v6 = vld [vmem:[#allocation7 + $0x40] sm:$0xff] }
 0x4e5   :  { %7960 = vmatprep.subr.mxu0 %v9839_v1  ;;  %7924 = vmatpush3.msra.mxu1 %v11179_v4  ;;  %v11739_v4 = vld [vmem:[#allocation3 + $0x40] sm:$0xff] }
 0x4e6   :  { %7961 = vmatpush3.msra.mxu0 %v11191_v11  ;;  %7925 = vmatprep.subr.mxu1 %v9839_v1  ;;  %v11750_v11 = vld [vmem:[#allocation7 + $0x38] sm:$0xff] }
 0x4e7   :  { %7962 = vmatprep.subr.mxu0 %v9839_v1  ;;  %7926 = vmatpush3.msra.mxu1 %v11187_v9  ;;  %v11747_v9 = vld [vmem:[#allocation3 + $0x38] sm:$0xff] }
 0x4e8   :  { %7963 = vmatpush3.msra.mxu0 %v11199_v13  ;;  %7927 = vmatprep.subr.mxu1 %v9839_v1  ;;  %v11758_v13 = vld [vmem:[#allocation7 + $0x30] sm:$0xff] }
 0x4e9   :  { %7964 = vmatprep.subr.mxu0 %v9839_v1  ;;  %7928 = vmatpush3.msra.mxu1 %v11195_v12  ;;  %v11755_v12 = vld [vmem:[#allocation3 + $0x30] sm:$0xff] }
 0x4ea   :  { %7965 = vmatpush3.msra.mxu0 %v11207_v15  ;;  %7929 = vmatprep.subr.mxu1 %v9839_v1  ;;  %v11766_v15 = vld [vmem:[#allocation7 + $0x28] sm:$0xff] }
 0x4eb   :  { %7966 = vmatprep.subr.mxu0 %v9839_v1  ;;  %7930 = vmatpush3.msra.mxu1 %v11203_v14  ;;  %v11763_v14 = vld [vmem:[#allocation3 + $0x28] sm:$0xff] }
 0x4ec   :  { %7967 = vmatpush3.msra.mxu0 %v11215_v17  ;;  %7968 = vmatprep.mubr.msk.f32.mxu0 %vm9840_vm0, %v9839_v1  ;;  %v11774_v17 = vld [vmem:[#allocation7 + $0x20] sm:$0xff] }
 0x4ed   :  { %7931 = vmatprep.subr.mxu1 %v9839_v1  ;;  %7969 = vmatmul.mubr.f32.vlgmr.msra.gmra.mxu0 %v11600_v36  ;;  %13823 = vst [vmem:[#allocation43_spill] sm:$0xff] %v11774_v17  ;;  %v11782_v36 = vld [vmem:[#allocation7 + $0x18] sm:$0xff] }
 0x4ee   :  { %7932 = vmatpush3.msra.mxu1 %v11211_v16  ;;  %7933 = vmatprep.mubr.msk.f32.mxu1 %vm9840_vm0, %v9839_v1  ;;  %v11771_v16 = vld [vmem:[#allocation3 + $0x20] sm:$0xff]  ;;  %13824 = vst [vmem:[#allocation44_spill] sm:$0xff] %v11782_v36 }
 0x4ef   :  { %v9337_v56 = vpop.eup %9336  ;;  %7971 = vmatprep.subr.mxu1 %v9839_v1  ;;  %8006 = vmatprep.subr.mxu0 %v9839_v1 }
 0x4f0   :  { %7934 = vmatmul.mubr.f32.vlgmr.msra.gmra.mxu1 %v9337_v56  ;;  %8007 = vmatpush3.msra.mxu0 %v11681_v57 }
 0x4f1   :  { %7972 = vmatpush3.msra.mxu1 %v11684_v58  ;;  %8003 = vmatprep.mubr.msk.f32.mxu1 %vm9840_vm0, %v9839_v1 }
 0x4f2   :  { %7973 = vmatprep.subr.mxu1 %v9839_v1  ;;  %8008 = vmatprep.subr.mxu0 %v9839_v1 }
 0x4f3   :  { %7974 = vmatpush3.msra.mxu1 %v11691_v59  ;;  %8009 = vmatpush3.msra.mxu0 %v11694_v60 }
 0x4f4   :  { %7975 = vmatprep.subr.mxu1 %v9839_v1  ;;  %8010 = vmatprep.subr.mxu0 %v9839_v1 }
 0x4f5   :  { %7976 = vmatpush3.msra.mxu1 %v11699_v61  ;;  %8011 = vmatpush3.msra.mxu0 %v11702_v62 }
 0x4f6   :  { %7977 = vmatprep.subr.mxu1 %v9839_v1  ;;  %8012 = vmatprep.subr.mxu0 %v9839_v1 }
 0x4f7   :  { %7978 = vmatpush3.msra.mxu1 %v11707_v43  ;;  %8013 = vmatpush3.msra.mxu0 %v11710_v63 }
 0x4f8   :  { %7979 = vmatprep.subr.mxu1 %v9839_v1  ;;  %8014 = vmatprep.subr.mxu0 %v9839_v1 }
 0x4f9   :  { %7980 = vmatpush3.msra.mxu1 %v11715_v0  ;;  %8015 = vmatpush3.msra.mxu0 %v11718_v5 }
 0x4fa   :  { %7981 = vmatprep.subr.mxu1 %v9839_v1  ;;  %8016 = vmatprep.subr.mxu0 %v9839_v1 }
 0x4fb   :  { %7982 = vmatpush3.msra.mxu1 %v11723_v7  ;;  %8017 = vmatpush3.msra.mxu0 %v11726_v8 }
 0x4fc   :  { %7983 = vmatprep.subr.mxu1 %v9839_v1  ;;  %8018 = vmatprep.subr.mxu0 %v9839_v1 }
 0x4fd   :  { %7984 = vmatpush3.msra.mxu1 %v11731_v2  ;;  %8019 = vmatpush3.msra.mxu0 %v11734_v3 }
 0x4fe   :  { %7985 = vmatprep.subr.mxu1 %v9839_v1  ;;  %8020 = vmatprep.subr.mxu0 %v9839_v1 }
 0x4ff   :  { %7986 = vmatpush3.msra.mxu1 %v11739_v4  ;;  %8021 = vmatpush3.msra.mxu0 %v11742_v6 }
 0x500   :  { %7987 = vmatprep.subr.mxu1 %v9839_v1  ;;  %8022 = vmatprep.subr.mxu0 %v9839_v1 }
 0x501   :  { %7988 = vmatpush3.msra.mxu1 %v11747_v9  ;;  %8023 = vmatpush3.msra.mxu0 %v11750_v11 }
 0x502   :  { %7989 = vmatprep.subr.mxu1 %v9839_v1  ;;  %8024 = vmatprep.subr.mxu0 %v9839_v1 }
 0x503   :  { %7990 = vmatpush3.msra.mxu1 %v11755_v12  ;;  %8025 = vmatpush3.msra.mxu0 %v11758_v13 }
 0x504   :  { %7991 = vmatprep.subr.mxu1 %v9839_v1  ;;  %8026 = vmatprep.subr.mxu0 %v9839_v1 }
 0x505   :  { %7992 = vmatpush3.msra.mxu1 %v11763_v14  ;;  %8027 = vmatpush3.msra.mxu0 %v11766_v15 }
 0x506   :  { %7993 = vmatprep.subr.mxu1 %v9839_v1  ;;  %8028 = vmatprep.subr.mxu0 %v9839_v1 }
 0x507   :  { %7994 = vmatpush3.msra.mxu1 %v11771_v16  ;;  %8029 = vmatpush3.msra.mxu0 %v11774_v17 }
 0x508   :  { %7995 = vmatprep.subr.mxu1 %v9839_v1  ;;  %8030 = vmatprep.subr.mxu0 %v9839_v1 }
 0x509   :  { %7996 = vmatpush3.msra.mxu1 %v11779_v42  ;;  %8031 = vmatpush3.msra.mxu0 %v11782_v36 }
 0x50a   :  { %7997 = vmatprep.subr.mxu1 %v9839_v1  ;;  %8032 = vmatprep.subr.mxu0 %v9839_v1 }
 0x50b   :  { %7998 = vmatpush3.msra.mxu1 %v11787_v46  ;;  %8033 = vmatpush3.msra.mxu0 %v11790_v49 }
 0x50c   :  { %7999 = vmatprep.subr.mxu1 %v9839_v1  ;;  %8034 = vmatprep.subr.mxu0 %v9839_v1 }
 0x50d   :  { %8000 = vmatpush3.msra.mxu1 %v11795_v51  ;;  %8035 = vmatpush3.msra.mxu0 %v11798_v52 }
 0x50e   :  { %8001 = vmatprep.subr.mxu1 %v9839_v1  ;;  %8036 = vmatprep.subr.mxu0 %v9839_v1 }
 0x50f   :  { %8002 = vmatpush3.msra.mxu1 %v11803_v53  ;;  %8037 = vmatpush3.msra.mxu0 %v11806_v54  ;;  %v11814_v53 = vld [vmem:[#allocation5 + $0x78] sm:$0xff]  ;;  %v11820_v54 = vld [vmem:[#allocation5 + $0x70] sm:$0xff] }
 0x510   :  { %8041 = vmatprep.subr.mxu1 %v9839_v1  ;;  %8038 = vmatprep.mubr.msk.f32.mxu0 %vm9840_vm0, %v9839_v1  ;;  %13831 = vst [vmem:[#allocation51_spill] sm:$0xff] %v11814_v53  ;;  %13832 = vst [vmem:[#allocation52_spill] sm:$0xff] %v11820_v54 }
 0x511   :  { %8076 = vmatprep.subr.mxu0 %v9839_v1 }
 0x529   :  { %v2213_v56 = vpop.f32.mrf.mxu0 }
 0x52a   :  { %v2218_v52 = vrot.slane %v2213_v56, 6  ;;  %v11836_v56 = vld [vmem:[#allocation5 + $0x50] sm:$0xff] }
 0x52b   :  { %v7690_v49 = vpop.f32.mrf.mxu0  ;;  %13836 = vst [vmem:[#allocation56_spill] sm:$0xff] %v11836_v56 }
 0x52c   :  { %v2220_v51 = vadd.f32 %v2218_v52, %v13776_v45  ;;  %v11824_v49 = vld [vmem:[#allocation5 + $0x68] sm:$0xff] }
 0x52d   :  { %13833 = vst [vmem:[#allocation53_spill] sm:$0xff] %v11824_v49 }
 0x52e   :  { %9338 = vtanh.f32 %v2220_v51  ;;  %v11832_v51 = vld [vmem:[#allocation5 + $0x58] sm:$0xff] }
 0x52f   :  { %13835 = vst [vmem:[#allocation55_spill] sm:$0xff] %v11832_v51 }
 0x53b   :  { %v9339_v36 = vpop.eup %9338 }
 0x53c   :  { %v2791_v46 = vrot.slane %v9339_v36, 2  ;;  %v11828_v36 = vld [vmem:[#allocation5 + $0x60] sm:$0xff] }
 0x53d   :  { %13834 = vst [vmem:[#allocation54_spill] sm:$0xff] %v11828_v36 }
 0x53e   :  { %8004 = vmatmul.mubr.f32.vlgmr.msra.gmra.mxu1 %v2791_v46 }
 0x53f   :  { %8042 = vmatpush3.msra.mxu1 %v11814_v53  ;;  %8073 = vmatprep.mubr.msk.f32.mxu1 %vm9840_vm0, %v9839_v1  ;;  %v11840_v53 = vld [vmem:[#allocation5 + $0x48] sm:$0xff] }
 0x540   :  { %8043 = vmatprep.subr.mxu1 %v9839_v1 }
 0x541   :  { %8044 = vmatpush3.msra.mxu1 %v11820_v54 }
 0x542   :  { %8045 = vmatprep.subr.mxu1 %v9839_v1 }
 0x543   :  { %8046 = vmatpush3.msra.mxu1 %v11824_v49 }
 0x544   :  { %8047 = vmatprep.subr.mxu1 %v9839_v1 }
 0x545   :  { %8048 = vmatpush3.msra.mxu1 %v11828_v36 }
 0x546   :  { %8049 = vmatprep.subr.mxu1 %v9839_v1 }
 0x547   :  { %8050 = vmatpush3.msra.mxu1 %v11832_v51  ;;  %v11844_v51 = vld [vmem:[#allocation5 + $0x40] sm:$0xff] }
 0x548   :  { %8051 = vmatprep.subr.mxu1 %v9839_v1 }
 0x549   :  { %v2358_v52 = vpop.f32.mrf.mxu0  ;;  %8052 = vmatpush3.msra.mxu1 %v11836_v56  ;;  %v11850_v56 = vld [vmem:[%s13454_s6] ss:$0 sm:$0xff] }
 0x54a   :  { %8053 = vmatprep.subr.mxu1 %v9839_v1 }
 0x54b   :  { %v2288_v49 = vpop.f32.mrf.mxu1  ;;  %v7760_v54 = vpop.f32.mrf.mxu0  ;;  %8054 = vmatpush3.msra.mxu1 %v11840_v53 }
 0x54c   :  { %v2359_v36 = vadd.f32 %v2358_v52, %v2288_v49  ;;  %8055 = vmatprep.subr.mxu1 %v9839_v1  ;;  %v11854_v54 = vld [vmem:[#allocation5 + $0x38] sm:$0xff]  ;;  %v11862_v49 = vld [vmem:[#allocation5 + $0x28] sm:$0xff]  ;;  %v11874_v52 = vld [vmem:[#allocation5 + $0x10] sm:$0xff] }
 0x54d   :  { %v7725_v45 = vpop.f32.mrf.mxu1  ;;  %8056 = vmatpush3.msra.mxu1 %v11844_v51  ;;  %13838 = vst [vmem:[#allocation58_spill] sm:$0xff] %v11862_v49  ;;  %13841 = vst [vmem:[#allocation61_spill] sm:$0xff] %v11874_v52 }
 0x54e   :  { %v2362_v17 = vadd.f32 %v11850_v56, %v2359_v36  ;;  %8057 = vmatprep.subr.mxu1 %v9839_v1  ;;  %v11858_v45 = vld [vmem:[#allocation5 + $0x30] sm:$0xff]  ;;  %v11866_v36 = vld [vmem:[#allocation5 + $0x20] sm:$0xff] }
 0x54f   :  { %8058 = vmatpush3.msra.mxu1 %v11854_v54  ;;  %13837 = vst [vmem:[#allocation57_spill] sm:$0xff] %v11858_v45  ;;  %13839 = vst [vmem:[#allocation59_spill] sm:$0xff] %v11866_v36 }
 0x550   :  { %9340 = vtanh.f32 %v2362_v17  ;;  %8059 = vmatprep.subr.mxu1 %v9839_v1  ;;  %v11870_v17 = vld [vmem:[#allocation5 + $0x18] sm:$0xff] }
 0x551   :  { %8060 = vmatpush3.msra.mxu1 %v11858_v45  ;;  %13840 = vst [vmem:[#allocation60_spill] sm:$0xff] %v11870_v17  ;;  %v11884_v45 = vld [vmem:[#allocation5] sm:$0xff] }
 0x552   :  { %8061 = vmatprep.subr.mxu1 %v9839_v1  ;;  %13843 = vst [vmem:[#allocation63_spill] sm:$0xff] %v11884_v45 }
 0x553   :  { %8062 = vmatpush3.msra.mxu1 %v11862_v49  ;;  %v11878_v49 = vld [vmem:[#allocation5 + $0x8] sm:$0xff] }
 0x554   :  { %8063 = vmatprep.subr.mxu1 %v9839_v1  ;;  %13842 = vst [vmem:[#allocation62_spill] sm:$0xff] %v11878_v49 }
 0x555   :  { %8064 = vmatpush3.msra.mxu1 %v11866_v36 }
 0x556   :  { %8065 = vmatprep.subr.mxu1 %v9839_v1 }
 0x557   :  { %8066 = vmatpush3.msra.mxu1 %v11870_v17  ;;  %v11892_v17 = vld [vmem:[#allocation5 + $0xf8] sm:$0xff] }
 0x558   :  { %8067 = vmatprep.subr.mxu1 %v9839_v1 }
 0x559   :  { %8068 = vmatpush3.msra.mxu1 %v11874_v52  ;;  %v11889_v52 = vld [vmem:[#allocation7 + $0xf8] sm:$0xff] }
 0x55a   :  { %8069 = vmatprep.subr.mxu1 %v9839_v1 }
 0x55b   :  { %8070 = vmatpush3.msra.mxu1 %v11878_v49  ;;  %v11897_v49 = vld [vmem:[#allocation7 + $0xf0] sm:$0xff] }
 0x55c   :  { %8071 = vmatprep.subr.mxu1 %v9839_v1 }
 0x55d   :  { %v11882_v36 = vpop.eup %9340  ;;  %8072 = vmatpush3.msra.mxu1 %v11884_v45  ;;  %v11900_v45 = vld [vmem:[#allocation5 + $0xf0] sm:$0xff] }
 0x55e   :  { %8039 = vmatmul.mubr.f32.vlgmr.msra.gmra.mxu0 %v11882_v36  ;;  %8074 = vmatmul.mubr.f32.vlgmr.msra.gmra.mxu1 %v2791_v46  ;;  %v11906_v46 = vld [vmem:[#allocation5 + $0xe8] sm:$0xff] }
 0x55f   :  { %8111 = vmatprep.subr.mxu1 %v9839_v1  ;;  %8077 = vmatpush3.msra.mxu0 %v11889_v52 }
 0x560   :  { %8112 = vmatpush3.msra.mxu1 %v11892_v17  ;;  %8078 = vmatprep.subr.mxu0 %v9839_v1 }
 0x561   :  { %8113 = vmatprep.subr.mxu1 %v9839_v1  ;;  %8079 = vmatpush3.msra.mxu0 %v11897_v49 }
 0x562   :  { %8114 = vmatpush3.msra.mxu1 %v11900_v45  ;;  %8080 = vmatprep.subr.mxu0 %v9839_v1 }
 0x563   :  { %8115 = vmatprep.subr.mxu1 %v9839_v1  ;;  %8081 = vmatpush3.msra.mxu0 %v11349_v32 }
 0x564   :  { %8116 = vmatpush3.msra.mxu1 %v11906_v46  ;;  %8082 = vmatprep.subr.mxu0 %v9839_v1 }
 0x565   :  { %8117 = vmatprep.subr.mxu1 %v9839_v1  ;;  %8083 = vmatpush3.msra.mxu0 %v11357_v33 }
 0x566   :  { %8118 = vmatpush3.msra.mxu1 %v11352_v38  ;;  %8084 = vmatprep.subr.mxu0 %v9839_v1 }
 0x567   :  { %8119 = vmatprep.subr.mxu1 %v9839_v1  ;;  %8085 = vmatpush3.msra.mxu0 %v11365_v41 }
 0x568   :  { %8120 = vmatpush3.msra.mxu1 %v11360_v30  ;;  %8086 = vmatprep.subr.mxu0 %v9839_v1 }
 0x569   :  { %8121 = vmatprep.subr.mxu1 %v9839_v1  ;;  %v2500_v32 = vpop.f32.mrf.mxu0  ;;  %8087 = vmatpush3.msra.mxu0 %v11373_v24  ;;  %v13844_v24 = vld [vmem:[#allocation11_spill] sm:$0xff] }
 0x56a   :  { %8122 = vmatpush3.msra.mxu1 %v11368_v47  ;;  %8088 = vmatprep.subr.mxu0 %v9839_v1 }
 0x56b   :  { %8123 = vmatprep.subr.mxu1 %v9839_v1  ;;  %v7830_v38 = vpop.f32.mrf.mxu0  ;;  %8089 = vmatpush3.msra.mxu0 %v11381_v29  ;;  %v13846_v29 = vld [vmem:[#allocation12_spill] sm:$0xff] }
 0x56c   :  { %8124 = vmatpush3.msra.mxu1 %v11376_v26  ;;  %8090 = vmatprep.subr.mxu0 %v9839_v1  ;;  %v13845_v26 = vld [vmem:[#allocation13_spill] sm:$0xff] }
 0x56d   :  { %v2430_v33 = vpop.f32.mrf.mxu1  ;;  %8125 = vmatprep.subr.mxu1 %v9839_v1  ;;  %8091 = vmatpush3.msra.mxu0 %v11389_v37  ;;  %v13848_v37 = vld [vmem:[#allocation14_spill] sm:$0xff]  ;;  %v13857_v38 = vld [vmem:[#allocation25_spill] sm:$0xff] }
 0x56e   :  { %v2501_v30 = vadd.f32 %v2500_v32, %v2430_v33  ;;  %8126 = vmatpush3.msra.mxu1 %v11384_v31  ;;  %8092 = vmatprep.subr.mxu0 %v9839_v1  ;;  %v13847_v31 = vld [vmem:[#allocation15_spill] sm:$0xff]  ;;  %v13856_v32 = vld [vmem:[#allocation22_spill] sm:$0xff] }
 0x56f   :  { %v7795_v41 = vpop.f32.mrf.mxu1  ;;  %8127 = vmatprep.subr.mxu1 %v9839_v1  ;;  %8093 = vmatpush3.msra.mxu0 %v11397_v10  ;;  %v13850_v10 = vld [vmem:[#allocation16_spill] sm:$0xff]  ;;  %v13859_v33 = vld [vmem:[#allocation27_spill] sm:$0xff] }
 0x570   :  { %v2504_v47 = vadd.f32 %v11406_v21, %v2501_v30  ;;  %8128 = vmatpush3.msra.mxu1 %v11392_v48  ;;  %8094 = vmatprep.subr.mxu0 %v9839_v1  ;;  %v13849_v48 = vld [vmem:[#allocation18_spill] sm:$0xff]  ;;  %v13852_v21 = vld [vmem:[#allocation17_spill] sm:$0xff] }
 0x571   :  { %8129 = vmatprep.subr.mxu1 %v9839_v1  ;;  %8095 = vmatpush3.msra.mxu0 %v11411_v25  ;;  %v13860_v30 = vld [vmem:[#allocation26_spill] sm:$0xff] }
 0x572   :  { %9342 = vtanh.f32 %v2504_v47  ;;  %8130 = vmatpush3.msra.mxu1 %v11400_v19  ;;  %8096 = vmatprep.subr.mxu0 %v9839_v1  ;;  %v13851_v19 = vld [vmem:[#allocation19_spill] sm:$0xff]  ;;  %v13861_v41 = vld [vmem:[#allocation30_spill] sm:$0xff]  ;;  %v13862_v47 = vld [vmem:[#allocation28_spill] sm:$0xff] }
 0x573   :  { %8131 = vmatprep.subr.mxu1 %v9839_v1  ;;  %8097 = vmatpush3.msra.mxu0 %v11419_v22  ;;  %v13854_v22 = vld [vmem:[#allocation20_spill] sm:$0xff] }
 0x574   :  { %8132 = vmatpush3.msra.mxu1 %v11414_v20  ;;  %8098 = vmatprep.subr.mxu0 %v9839_v1  ;;  %v13853_v20 = vld [vmem:[#allocation21_spill] sm:$0xff] }
 0x575   :  { %8133 = vmatprep.subr.mxu1 %v9839_v1  ;;  %8099 = vmatpush3.msra.mxu0 %v11427_v23  ;;  %v13855_v23 = vld [vmem:[#allocation23_spill] sm:$0xff] }
 0x576   :  { %8134 = vmatpush3.msra.mxu1 %v13844_v24  ;;  %8100 = vmatprep.subr.mxu0 %v9839_v1 }
 0x577   :  { %8135 = vmatprep.subr.mxu1 %v9839_v1  ;;  %8101 = vmatpush3.msra.mxu0 %v13845_v26  ;;  %v13863_v26 = vld [vmem:[#allocation32_spill] sm:$0xff] }
 0x578   :  { %8136 = vmatpush3.msra.mxu1 %v13846_v29  ;;  %8102 = vmatprep.subr.mxu0 %v9839_v1  ;;  %v13864_v29 = vld [vmem:[#allocation29_spill] sm:$0xff] }
 0x579   :  { %8137 = vmatprep.subr.mxu1 %v9839_v1  ;;  %8103 = vmatpush3.msra.mxu0 %v13847_v31 }
 0x57a   :  { %8138 = vmatpush3.msra.mxu1 %v13848_v37  ;;  %8104 = vmatprep.subr.mxu0 %v9839_v1  ;;  %v13865_v37 = vld [vmem:[#allocation34_spill] sm:$0xff] }
 0x57b   :  { %8139 = vmatprep.subr.mxu1 %v9839_v1  ;;  %8105 = vmatpush3.msra.mxu0 %v13849_v48 }
 0x57c   :  { %8140 = vmatpush3.msra.mxu1 %v13850_v10  ;;  %8106 = vmatprep.subr.mxu0 %v9839_v1  ;;  %v13866_v10 = vld [vmem:[#allocation31_spill] sm:$0xff] }
 0x57d   :  { %8141 = vmatprep.subr.mxu1 %v9839_v1  ;;  %8107 = vmatpush3.msra.mxu0 %v13851_v19 }
 0x57e   :  { %8108 = vmatprep.mubr.msk.f32.mxu0 %vm9840_vm0, %v9839_v1  ;;  %8142 = vmatpush3.msra.mxu1 %v13852_v21 }
 0x57f   :  { %v11964_v25 = vpop.eup %9342  ;;  %8143 = vmatprep.mubr.msk.f32.mxu1 %vm9840_vm0, %v9839_v1  ;;  %8146 = vmatprep.subr.mxu0 %v9839_v1 }
 0x580   :  { %8109 = vmatmul.mubr.f32.vlgmr.msra.gmra.mxu0 %v11964_v25  ;;  %8144 = vmatmul.mubr.f32.vlgmr.msra.gmra.mxu1 %v11882_v36  ;;  %v13858_v36 = vld [vmem:[#allocation24_spill] sm:$0xff] }
 0x581   :  { %8181 = vmatprep.subr.mxu1 %v9839_v1  ;;  %8147 = vmatpush3.msra.mxu0 %v13853_v20  ;;  %v13867_v20 = vld [vmem:[#allocation33_spill] sm:$0xff] }
 0x582   :  { %8182 = vmatpush3.msra.mxu1 %v13854_v22  ;;  %8148 = vmatprep.subr.mxu0 %v9839_v1  ;;  %v12006_v22 = vld [vmem:[%s13454_s6 + $0x2] ss:$0 sm:$0xff] }
 0x583   :  { %8183 = vmatprep.subr.mxu1 %v9839_v1  ;;  %8149 = vmatpush3.msra.mxu0 %v13855_v23 }
 0x584   :  { %8184 = vmatpush3.msra.mxu1 %v13856_v32  ;;  %8150 = vmatprep.subr.mxu0 %v9839_v1  ;;  %v13874_v32 = vld [vmem:[#allocation39_spill] sm:$0xff] }
 0x585   :  { %8185 = vmatprep.subr.mxu1 %v9839_v1  ;;  %8151 = vmatpush3.msra.mxu0 %v13857_v38  ;;  %v13875_v38 = vld [vmem:[#allocation41_spill] sm:$0xff] }
 0x586   :  { %8186 = vmatpush3.msra.mxu1 %v13858_v36  ;;  %8152 = vmatprep.subr.mxu0 %v9839_v1 }
 0x587   :  { %8187 = vmatprep.subr.mxu1 %v9839_v1  ;;  %8153 = vmatpush3.msra.mxu0 %v13859_v33  ;;  %v12066_v33 = vld [vmem:[#allocation7 + $0x1e8] sm:$0xff] }
 0x588   :  { %8188 = vmatpush3.msra.mxu1 %v13860_v30  ;;  %8154 = vmatprep.subr.mxu0 %v9839_v1  ;;  %v12069_v30 = vld [vmem:[#allocation5 + $0x1e8] sm:$0xff] }
 0x589   :  { %8189 = vmatprep.subr.mxu1 %v9839_v1  ;;  %8155 = vmatpush3.msra.mxu0 %v13861_v41  ;;  %v12074_v41 = vld [vmem:[#allocation7 + $0x1e0] sm:$0xff] }
 0x58a   :  { %8190 = vmatpush3.msra.mxu1 %v13862_v47  ;;  %8156 = vmatprep.subr.mxu0 %v9839_v1  ;;  %v12077_v47 = vld [vmem:[#allocation5 + $0x1e0] sm:$0xff] }
 0x58b   :  { %8191 = vmatprep.subr.mxu1 %v9839_v1  ;;  %v2642_v24 = vpop.f32.mrf.mxu0  ;;  %8157 = vmatpush3.msra.mxu0 %v13863_v26  ;;  %v12085_v26 = vld [vmem:[#allocation5 + $0x1d8] sm:$0xff] }
 0x58c   :  { %8192 = vmatpush3.msra.mxu1 %v13864_v29  ;;  %8158 = vmatprep.subr.mxu0 %v9839_v1 }
 0x58d   :  { %8193 = vmatprep.subr.mxu1 %v9839_v1  ;;  %v7900_v31 = vpop.f32.mrf.mxu0  ;;  %8159 = vmatpush3.msra.mxu0 %v13865_v37  ;;  %v12093_v37 = vld [vmem:[#allocation5 + $0x1d0] sm:$0xff] }
 0x58e   :  { %v2572_v48 = vpop.f32.mrf.mxu1  ;;  %8194 = vmatpush3.msra.mxu1 %v13866_v10  ;;  %8160 = vmatprep.subr.mxu0 %v9839_v1  ;;  %v12090_v31 = vld [vmem:[#allocation7 + $0x1d0] sm:$0xff]  ;;  %v12098_v10 = vld [vmem:[#allocation7 + $0x1c8] sm:$0xff] }
 0x58f   :  { %v2643_v19 = vadd.f32 %v2642_v24, %v2572_v48  ;;  %8195 = vmatprep.subr.mxu1 %v9839_v1  ;;  %8161 = vmatpush3.msra.mxu0 %v11532_v35  ;;  %v13868_v35 = vld [vmem:[#allocation35_spill] sm:$0xff]  ;;  %v12082_v24 = vld [vmem:[#allocation7 + $0x1d8] sm:$0xff] }
 0x590   :  { %v7865_v21 = vpop.f32.mrf.mxu1  ;;  %8196 = vmatpush3.msra.mxu1 %v13867_v20  ;;  %8162 = vmatprep.subr.mxu0 %v9839_v1 }
 0x591   :  { %v2646_v23 = vadd.f32 %v12006_v22, %v2643_v19  ;;  %8197 = vmatprep.subr.mxu1 %v9839_v1  ;;  %8163 = vmatpush3.msra.mxu0 %v11541_v18  ;;  %v13869_v18 = vld [vmem:[#allocation38_spill] sm:$0xff]  ;;  %v12101_v21 = vld [vmem:[#allocation5 + $0x1c8] sm:$0xff] }
 0x592   :  { %8198 = vmatpush3.msra.mxu1 %v11529_v55  ;;  %8164 = vmatprep.subr.mxu0 %v9839_v1  ;;  %v13870_v55 = vld [vmem:[#allocation36_spill] sm:$0xff] }
 0x593   :  { %9344 = vtanh.f32 %v2646_v23  ;;  %8199 = vmatprep.subr.mxu1 %v9839_v1  ;;  %8165 = vmatpush3.msra.mxu0 %v11549_v34  ;;  %v13872_v34 = vld [vmem:[#allocation37_spill] sm:$0xff]  ;;  %v12106_v23 = vld [vmem:[#allocation7 + $0x1c0] sm:$0xff] }
 0x594   :  { %8200 = vmatpush3.msra.mxu1 %v11537_v27  ;;  %8166 = vmatprep.subr.mxu0 %v9839_v1  ;;  %v13871_v27 = vld [vmem:[#allocation40_spill] sm:$0xff] }
 0x595   :  { %8201 = vmatprep.subr.mxu1 %v9839_v1  ;;  %8167 = vmatpush3.msra.mxu0 %v11557_v40  ;;  %v13873_v40 = vld [vmem:[#allocation42_spill] sm:$0xff] }
 0x596   :  { %8202 = vmatpush3.msra.mxu1 %v13868_v35  ;;  %8168 = vmatprep.subr.mxu0 %v9839_v1 }
 0x597   :  { %8203 = vmatprep.subr.mxu1 %v9839_v1  ;;  %8169 = vmatpush3.msra.mxu0 %v13869_v18  ;;  %v12109_v18 = vld [vmem:[#allocation5 + $0x1c0] sm:$0xff] }
 0x598   :  { %8204 = vmatpush3.msra.mxu1 %v13870_v55  ;;  %8170 = vmatprep.subr.mxu0 %v9839_v1 }
 0x599   :  { %8205 = vmatprep.subr.mxu1 %v9839_v1  ;;  %8171 = vmatpush3.msra.mxu0 %v13871_v27  ;;  %v12115_v27 = vld [vmem:[#allocation7 + $0x1b8] sm:$0xff] }
 0x59a   :  { %8206 = vmatpush3.msra.mxu1 %v13872_v34  ;;  %8172 = vmatprep.subr.mxu0 %v9839_v1  ;;  %v12118_v34 = vld [vmem:[#allocation5 + $0x1b8] sm:$0xff] }
 0x59b   :  { %8207 = vmatprep.subr.mxu1 %v9839_v1  ;;  %8173 = vmatpush3.msra.mxu0 %v13873_v40  ;;  %v12123_v40 = vld [vmem:[#allocation7 + $0x1b0] sm:$0xff] }
 0x59c   :  { %8208 = vmatpush3.msra.mxu1 %v13874_v32  ;;  %8174 = vmatprep.subr.mxu0 %v9839_v1  ;;  %v12131_v32 = vld [vmem:[#allocation7 + $0x1a8] sm:$0xff] }
 0x59d   :  { %8209 = vmatprep.subr.mxu1 %v9839_v1  ;;  %8175 = vmatpush3.msra.mxu0 %v11589_v28  ;;  %v12050_v28 = vld [vmem:[#allocation7 + $0x1f8] sm:$0xff] }
 0x59e   :  { %8210 = vmatpush3.msra.mxu1 %v13875_v38  ;;  %8176 = vmatprep.subr.mxu0 %v9839_v1  ;;  %v12134_v38 = vld [vmem:[#allocation5 + $0x1a8] sm:$0xff] }
 0x59f   :  { %8211 = vmatprep.subr.mxu1 %v9839_v1  ;;  %8177 = vmatpush3.msra.mxu0 %v11597_v44  ;;  %v12053_v44 = vld [vmem:[#allocation5 + $0x1f8] sm:$0xff] }
 0x5a0   :  { %v12039_v36 = vpop.eup %9344  ;;  %8178 = vmatprep.mubr.msk.f32.mxu0 %vm9840_vm0, %v9839_v1  ;;  %8212 = vmatpush3.msra.mxu1 %v11586_v39  ;;  %v12058_v39 = vld [vmem:[#allocation7 + $0x1f0] sm:$0xff] }
 0x5a1   :  { %8213 = vmatprep.mubr.msk.f32.mxu1 %vm9840_vm0, %v9839_v1  ;;  %8179 = vmatmul.mubr.f32.vlgmr.msra.gmra.mxu0 %v12039_v36 }
 0x5a2   :  { %8214 = vmatmul.mubr.f32.vlgmr.msra.gmra.mxu1 %v11964_v25  ;;  %8216 = vmatprep.subr.mxu0 %v9839_v1  ;;  %v12061_v25 = vld [vmem:[#allocation5 + $0x1f0] sm:$0xff] }
 0x5a3   :  { %8251 = vmatprep.subr.mxu1 %v9839_v1  ;;  %8217 = vmatpush3.msra.mxu0 %v12050_v28 }
 0x5a4   :  { %8252 = vmatpush3.msra.mxu1 %v12053_v44  ;;  %8218 = vmatprep.subr.mxu0 %v9839_v1 }
 0x5a5   :  { %8253 = vmatprep.subr.mxu1 %v9839_v1  ;;  %8219 = vmatpush3.msra.mxu0 %v12058_v39 }
 0x5a6   :  { %8254 = vmatpush3.msra.mxu1 %v12061_v25  ;;  %8220 = vmatprep.subr.mxu0 %v9839_v1 }
 0x5a7   :  { %8255 = vmatprep.subr.mxu1 %v9839_v1  ;;  %8221 = vmatpush3.msra.mxu0 %v12066_v33 }
 0x5a8   :  { %8256 = vmatpush3.msra.mxu1 %v12069_v30  ;;  %8222 = vmatprep.subr.mxu0 %v9839_v1 }
 0x5a9   :  { %8257 = vmatprep.subr.mxu1 %v9839_v1  ;;  %8223 = vmatpush3.msra.mxu0 %v12074_v41 }
 0x5aa   :  { %8258 = vmatpush3.msra.mxu1 %v12077_v47  ;;  %8224 = vmatprep.subr.mxu0 %v9839_v1 }
 0x5ab   :  { %8259 = vmatprep.subr.mxu1 %v9839_v1  ;;  %8225 = vmatpush3.msra.mxu0 %v12082_v24 }
 0x5ac   :  { %8260 = vmatpush3.msra.mxu1 %v12085_v26  ;;  %8226 = vmatprep.subr.mxu0 %v9839_v1 }
 0x5ad   :  { %8261 = vmatprep.subr.mxu1 %v9839_v1  ;;  %v2784_v29 = vpop.f32.mrf.mxu0  ;;  %8227 = vmatpush3.msra.mxu0 %v12090_v31 }
 0x5ae   :  { %8262 = vmatpush3.msra.mxu1 %v12093_v37  ;;  %8228 = vmatprep.subr.mxu0 %v9839_v1 }
 0x5af   :  { %8263 = vmatprep.subr.mxu1 %v9839_v1  ;;  %v7970_v48 = vpop.f32.mrf.mxu0  ;;  %8229 = vmatpush3.msra.mxu0 %v12098_v10 }
 0x5b0   :  { %v2714_v19 = vpop.f32.mrf.mxu1  ;;  %8264 = vmatpush3.msra.mxu1 %v12101_v21  ;;  %8230 = vmatprep.subr.mxu0 %v9839_v1  ;;  %v12142_v48 = vld [vmem:[#allocation5 + $0x1a0] sm:$0xff] }
 0x5b1   :  { %v2785_v20 = vadd.f32 %v2784_v29, %v2714_v19  ;;  %8265 = vmatprep.subr.mxu1 %v9839_v1  ;;  %8231 = vmatpush3.msra.mxu0 %v12106_v23  ;;  %v12139_v29 = vld [vmem:[#allocation7 + $0x1a0] sm:$0xff]  ;;  %13876 = vst [vmem:[#allocation11_spill] sm:$0xff] %v12142_v48  ;;  %v12147_v19 = vld [vmem:[#allocation7 + $0x198] sm:$0xff] }
 0x5b2   :  { %v7935_v35 = vpop.f32.mrf.mxu1  ;;  %8266 = vmatpush3.msra.mxu1 %v12109_v18  ;;  %8232 = vmatprep.subr.mxu0 %v9839_v1  ;;  %13877 = vst [vmem:[#allocation13_spill] sm:$0xff] %v12147_v19 }
 0x5b3   :  { %v2788_v55 = vadd.f32 %v11638_v50, %v2785_v20  ;;  %8267 = vmatprep.subr.mxu1 %v9839_v1  ;;  %8233 = vmatpush3.msra.mxu0 %v12115_v27  ;;  %v12126_v50 = vld [vmem:[#allocation5 + $0x1b0] sm:$0xff]  ;;  %v12150_v20 = vld [vmem:[#allocation5 + $0x198] sm:$0xff] }
 0x5b4   :  { %8268 = vmatpush3.msra.mxu1 %v12118_v34  ;;  %8234 = vmatprep.subr.mxu0 %v9839_v1  ;;  %13878 = vst [vmem:[#allocation12_spill] sm:$0xff] %v12150_v20  ;;  %v12155_v35 = vld [vmem:[#allocation7 + $0x190] sm:$0xff] }
 0x5b5   :  { %9346 = vtanh.f32 %v2788_v55  ;;  %8269 = vmatprep.subr.mxu1 %v9839_v1  ;;  %8235 = vmatpush3.msra.mxu0 %v12123_v40  ;;  %13879 = vst [vmem:[#allocation15_spill] sm:$0xff] %v12155_v35  ;;  %v12158_v55 = vld [vmem:[#allocation5 + $0x190] sm:$0xff] }
 0x5b6   :  { %8270 = vmatpush3.msra.mxu1 %v12126_v50  ;;  %8236 = vmatprep.subr.mxu0 %v9839_v1  ;;  %13880 = vst [vmem:[#allocation14_spill] sm:$0xff] %v12158_v55 }
 0x5b7   :  { %8271 = vmatprep.subr.mxu1 %v9839_v1  ;;  %8237 = vmatpush3.msra.mxu0 %v12131_v32 }
 0x5b8   :  { %8272 = vmatpush3.msra.mxu1 %v12134_v38  ;;  %8238 = vmatprep.subr.mxu0 %v9839_v1 }
 0x5b9   :  { %8273 = vmatprep.subr.mxu1 %v9839_v1  ;;  %8239 = vmatpush3.msra.mxu0 %v12139_v29 }
 0x5ba   :  { %8274 = vmatpush3.msra.mxu1 %v12142_v48  ;;  %8240 = vmatprep.subr.mxu0 %v9839_v1  ;;  %v12163_v48 = vld [vmem:[#allocation7 + $0x188] sm:$0xff] }
 0x5bb   :  { %8275 = vmatprep.subr.mxu1 %v9839_v1  ;;  %8241 = vmatpush3.msra.mxu0 %v12147_v19  ;;  %v12176_v19 = vld [vmem:[#allocation5 + $0x180] sm:$0xff] }
 0x5bc   :  { %8276 = vmatpush3.msra.mxu1 %v12150_v20  ;;  %8242 = vmatprep.subr.mxu0 %v9839_v1  ;;  %v12166_v20 = vld [vmem:[#allocation5 + $0x188] sm:$0xff] }
 0x5bd   :  { %8277 = vmatprep.subr.mxu1 %v9839_v1  ;;  %8243 = vmatpush3.msra.mxu0 %v12155_v35  ;;  %v12171_v35 = vld [vmem:[#allocation7 + $0x180] sm:$0xff] }
 0x5be   :  { %8278 = vmatpush3.msra.mxu1 %v12158_v55  ;;  %8244 = vmatprep.subr.mxu0 %v9839_v1 }
 0x5bf   :  { %8279 = vmatprep.subr.mxu1 %v9839_v1  ;;  %8245 = vmatpush3.msra.mxu0 %v12163_v48 }
 0x5c0   :  { %8280 = vmatpush3.msra.mxu1 %v12166_v20  ;;  %8246 = vmatprep.subr.mxu0 %v9839_v1 }
 0x5c1   :  { %8281 = vmatprep.subr.mxu1 %v9839_v1  ;;  %8247 = vmatpush3.msra.mxu0 %v12171_v35 }
 0x5c2   :  { %v9347_v55 = vpop.eup %9346  ;;  %8248 = vmatprep.mubr.msk.f32.mxu0 %vm9840_vm0, %v9839_v1  ;;  %8282 = vmatpush3.msra.mxu1 %v12176_v19 }
 0x5c3   :  { %8283 = vmatprep.mubr.msk.f32.mxu1 %vm9840_vm0, %v9839_v1  ;;  %8249 = vmatmul.mubr.f32.vlgmr.msra.gmra.mxu0 %v9347_v55 }
 0x5c4   :  { %8284 = vmatmul.mubr.f32.vlgmr.msra.gmra.mxu1 %v12039_v36  ;;  %8286 = vmatprep.subr.mxu0 %v9839_v1 }
 0x5c5   :  { %8287 = vmatpush3.msra.mxu0 %v11684_v58  ;;  %8321 = vmatprep.subr.mxu1 %v9839_v1  ;;  %v13882_v58 = vld [vmem:[#allocation45_spill] sm:$0xff] }
 0x5c6   :  { %8288 = vmatprep.subr.mxu0 %v9839_v1  ;;  %8322 = vmatpush3.msra.mxu1 %v11681_v57  ;;  %v13881_v57 = vld [vmem:[#allocation43_spill] sm:$0xff] }
 0x5c7   :  { %8289 = vmatpush3.msra.mxu0 %v11691_v59  ;;  %8318 = vmatprep.mubr.msk.f32.mxu0 %vm9840_vm0, %v9839_v1  ;;  %v13883_v59 = vld [vmem:[#allocation44_spill] sm:$0xff] }
 0x5c8   :  { %8290 = vmatprep.subr.mxu0 %v9839_v1  ;;  %8323 = vmatprep.subr.mxu1 %v9839_v1 }
 0x5c9   :  { %8291 = vmatpush3.msra.mxu0 %v11699_v61  ;;  %8324 = vmatpush3.msra.mxu1 %v11694_v60  ;;  %v13884_v60 = vld [vmem:[#allocation47_spill] sm:$0xff]  ;;  %v13885_v61 = vld [vmem:[#allocation46_spill] sm:$0xff] }
 0x5ca   :  { %8292 = vmatprep.subr.mxu0 %v9839_v1  ;;  %8325 = vmatprep.subr.mxu1 %v9839_v1 }
 0x5cb   :  { %8293 = vmatpush3.msra.mxu0 %v11707_v43  ;;  %8326 = vmatpush3.msra.mxu1 %v11702_v62  ;;  %v13886_v62 = vld [vmem:[#allocation49_spill] sm:$0xff]  ;;  %v13887_v43 = vld [vmem:[#allocation48_spill] sm:$0xff] }
 0x5cc   :  { %8294 = vmatprep.subr.mxu0 %v9839_v1  ;;  %8327 = vmatprep.subr.mxu1 %v9839_v1 }
 0x5cd   :  { %8295 = vmatpush3.msra.mxu0 %v11715_v0  ;;  %8328 = vmatpush3.msra.mxu1 %v11710_v63  ;;  %v13888_v63 = vld [vmem:[#allocation50_spill] sm:$0xff] }
 0x5ce   :  { %8296 = vmatprep.subr.mxu0 %v9839_v1  ;;  %8329 = vmatprep.subr.mxu1 %v9839_v1 }
 0x5cf   :  { %8297 = vmatpush3.msra.mxu0 %v11723_v7  ;;  %8330 = vmatpush3.msra.mxu1 %v11718_v5 }
 0x5d0   :  { %8298 = vmatprep.subr.mxu0 %v9839_v1  ;;  %8331 = vmatprep.subr.mxu1 %v9839_v1 }
 0x5d1   :  { %8299 = vmatpush3.msra.mxu0 %v11731_v2  ;;  %8332 = vmatpush3.msra.mxu1 %v11726_v8  ;;  %v13889_v8 = vld [vmem:[#allocation10_spill] sm:$0xff] }
 0x5d2   :  { %8300 = vmatprep.subr.mxu0 %v9839_v1  ;;  %8333 = vmatprep.subr.mxu1 %v9839_v1 }
 0x5d3   :  { %8301 = vmatpush3.msra.mxu0 %v11739_v4  ;;  %8334 = vmatpush3.msra.mxu1 %v11734_v3 }
 0x5d4   :  { %8302 = vmatprep.subr.mxu0 %v9839_v1  ;;  %8335 = vmatprep.subr.mxu1 %v9839_v1 }
 0x5d5   :  { %8303 = vmatpush3.msra.mxu0 %v11747_v9  ;;  %8336 = vmatpush3.msra.mxu1 %v11742_v6  ;;  %v13890_v6 = vld [vmem:[#allocation51_spill] sm:$0xff]  ;;  %v13891_v9 = vld [vmem:[#allocation52_spill] sm:$0xff] }
 0x5d6   :  { %8304 = vmatprep.subr.mxu0 %v9839_v1  ;;  %8337 = vmatprep.subr.mxu1 %v9839_v1 }
 0x5d7   :  { %8305 = vmatpush3.msra.mxu0 %v11755_v12  ;;  %8338 = vmatpush3.msra.mxu1 %v11750_v11  ;;  %v13892_v11 = vld [vmem:[#allocation53_spill] sm:$0xff]  ;;  %v13893_v12 = vld [vmem:[#allocation54_spill] sm:$0xff] }
 0x5d8   :  { %8306 = vmatprep.subr.mxu0 %v9839_v1  ;;  %8339 = vmatprep.subr.mxu1 %v9839_v1 }
 0x5d9   :  { %8307 = vmatpush3.msra.mxu0 %v11763_v14  ;;  %8340 = vmatpush3.msra.mxu1 %v11758_v13  ;;  %v13894_v13 = vld [vmem:[#allocation55_spill] sm:$0xff] }
 0x5da   :  { %8308 = vmatprep.subr.mxu0 %v9839_v1  ;;  %8341 = vmatprep.subr.mxu1 %v9839_v1 }
 0x5db   :  { %8309 = vmatpush3.msra.mxu0 %v11771_v16  ;;  %8342 = vmatpush3.msra.mxu1 %v11766_v15  ;;  %v13895_v16 = vld [vmem:[#allocation56_spill] sm:$0xff] }
 0x5dc   :  { %8310 = vmatprep.subr.mxu0 %v9839_v1  ;;  %8343 = vmatprep.subr.mxu1 %v9839_v1 }
 0x5dd   :  { %8311 = vmatpush3.msra.mxu0 %v11779_v42  ;;  %8344 = vmatpush3.msra.mxu1 %v13881_v57 }
 0x5de   :  { %8312 = vmatprep.subr.mxu0 %v9839_v1  ;;  %8345 = vmatprep.subr.mxu1 %v9839_v1 }
 0x5df   :  { %8313 = vmatpush3.msra.mxu0 %v13882_v58  ;;  %8346 = vmatpush3.msra.mxu1 %v13883_v59  ;;  %v13896_v58 = vld [vmem:[#allocation57_spill] sm:$0xff]  ;;  %v13897_v59 = vld [vmem:[#allocation58_spill] sm:$0xff] }
 0x5e0   :  { %8314 = vmatprep.subr.mxu0 %v9839_v1  ;;  %8347 = vmatprep.subr.mxu1 %v9839_v1 }
 0x5e1   :  { %8315 = vmatpush3.msra.mxu0 %v13884_v60  ;;  %8348 = vmatpush3.msra.mxu1 %v13885_v61  ;;  %v13901_v60 = vld [vmem:[#allocation62_spill] sm:$0xff]  ;;  %v13902_v61 = vld [vmem:[#allocation63_spill] sm:$0xff] }
 0x5e2   :  { %8316 = vmatprep.subr.mxu0 %v9839_v1  ;;  %8349 = vmatprep.subr.mxu1 %v9839_v1 }
 0x5e3   :  { %8317 = vmatpush3.msra.mxu0 %v13886_v62  ;;  %8350 = vmatpush3.msra.mxu1 %v13887_v43  ;;  %v12297_v62 = vld [vmem:[#allocation7 + $0xe8] sm:$0xff] }
 0x5e4   :  { %8356 = vmatprep.subr.mxu0 %v9839_v1  ;;  %8351 = vmatprep.subr.mxu1 %v9839_v1  ;;  %v12325_v43 = vld [vmem:[#allocation7 + $0xc8] sm:$0xff] }
 0x5e5   :  { %8352 = vmatpush3.msra.mxu1 %v13888_v63  ;;  %8353 = vmatprep.mubr.msk.f32.mxu1 %vm9840_vm0, %v9839_v1  ;;  %v12328_v63 = vld [vmem:[#allocation5 + $0xd0] sm:$0xff] }
 0x5e6   :  { %8391 = vmatprep.subr.mxu1 %v9839_v1 }
 0x5fe   :  { %v2859_v0 = vpop.f32.mrf.mxu1 }
 0x5ff   :  { %v2864_v5 = vrot.slane %v2859_v0, 4 }
 0x600   :  { %v8005_v7 = vpop.f32.mrf.mxu1 }
 0x601   :  { %v2866_v2 = vadd.f32 %v2864_v5, %v13889_v8  ;;  %v12333_v7 = vld [vmem:[#allocation7 + $0xc0] sm:$0xff] }
 0x602   :  { %13903 = vst [vmem:[#allocation18_spill] sm:$0xff] %v12333_v7 }
 0x603   :  { %9348 = vtanh.f32 %v2866_v2 }
 0x610   :  { %v9349_v3 = vpop.eup %9348 }
 0x611   :  { %v3437_v4 = vrot.slane %v9349_v3, 4  ;;  %v12336_v3 = vld [vmem:[#allocation5 + $0xc8] sm:$0xff] }
 0x613   :  { %8319 = vmatmul.mubr.f32.vlgmr.msra.gmra.mxu0 %v3437_v4 }
 0x614   :  { %8357 = vmatpush3.msra.mxu0 %v13890_v6  ;;  %8388 = vmatprep.mubr.msk.f32.mxu0 %vm9840_vm0, %v9839_v1 }
 0x615   :  { %8358 = vmatprep.subr.mxu0 %v9839_v1 }
 0x616   :  { %8359 = vmatpush3.msra.mxu0 %v13891_v9  ;;  %v12341_v9 = vld [vmem:[#allocation7 + $0xb8] sm:$0xff] }
 0x617   :  { %8360 = vmatprep.subr.mxu0 %v9839_v1  ;;  %13904 = vst [vmem:[#allocation16_spill] sm:$0xff] %v12341_v9 }
 0x618   :  { %8361 = vmatpush3.msra.mxu0 %v13892_v11  ;;  %v12347_v11 = vld [vmem:[%s13454_s6 + $0x1] ss:$0 sm:$0xff] }
 0x619   :  { %8362 = vmatprep.subr.mxu0 %v9839_v1  ;;  %13905 = vst [vmem:[#allocation19_spill] sm:$0xff] %v12347_v11 }
 0x61a   :  { %8363 = vmatpush3.msra.mxu0 %v13893_v12 }
 0x61b   :  { %8364 = vmatprep.subr.mxu0 %v9839_v1 }
 0x61c   :  { %8365 = vmatpush3.msra.mxu0 %v13894_v13  ;;  %v12350_v13 = vld [vmem:[#allocation5 + $0xc0] sm:$0xff] }
 0x61d   :  { %8366 = vmatprep.subr.mxu0 %v9839_v1 }
 0x61e   :  { %v2934_v14 = vpop.f32.mrf.mxu0  ;;  %v3004_v15 = vpop.f32.mrf.mxu1  ;;  %8367 = vmatpush3.msra.mxu0 %v13895_v16  ;;  %v12363_v16 = vld [vmem:[#allocation7 + $0xa8] sm:$0xff] }
 0x61f   :  { %v3005_v42 = vadd.f32 %v3004_v15, %v2934_v14  ;;  %8368 = vmatprep.subr.mxu0 %v9839_v1  ;;  %v12355_v14 = vld [vmem:[#allocation7 + $0xb0] sm:$0xff]  ;;  %v12358_v15 = vld [vmem:[#allocation5 + $0xb8] sm:$0xff]  ;;  %13907 = vst [vmem:[#allocation21_spill] sm:$0xff] %v12363_v16 }
 0x620   :  { %v8040_v36 = vpop.f32.mrf.mxu0  ;;  %v8075_v55 = vpop.f32.mrf.mxu1  ;;  %8369 = vmatpush3.msra.mxu0 %v11840_v53  ;;  %v13898_v53 = vld [vmem:[#allocation59_spill] sm:$0xff]  ;;  %13906 = vst [vmem:[#allocation17_spill] sm:$0xff] %v12355_v14 }
 0x621   :  { %v3008_v57 = vadd.f32 %v11850_v56, %v3005_v42  ;;  %8370 = vmatprep.subr.mxu0 %v9839_v1  ;;  %v13900_v56 = vld [vmem:[#allocation61_spill] sm:$0xff]  ;;  %v12366_v42 = vld [vmem:[#allocation5 + $0xb0] sm:$0xff]  ;;  %v12371_v36 = vld [vmem:[#allocation7 + $0xa0] sm:$0xff] }
 0x622   :  { %8371 = vmatpush3.msra.mxu0 %v11844_v51  ;;  %v13899_v51 = vld [vmem:[#allocation60_spill] sm:$0xff]  ;;  %13908 = vst [vmem:[#allocation20_spill] sm:$0xff] %v12371_v36  ;;  %v12374_v55 = vld [vmem:[#allocation5 + $0xa8] sm:$0xff] }
 0x623   :  { %9350 = vtanh.f32 %v3008_v57  ;;  %8372 = vmatprep.subr.mxu0 %v9839_v1  ;;  %v12379_v57 = vld [vmem:[#allocation7 + $0x98] sm:$0xff] }
 0x624   :  { %8373 = vmatpush3.msra.mxu0 %v11854_v54  ;;  %13909 = vst [vmem:[#allocation23_spill] sm:$0xff] %v12379_v57 }
 0x625   :  { %8374 = vmatprep.subr.mxu0 %v9839_v1 }
 0x626   :  { %8375 = vmatpush3.msra.mxu0 %v13896_v58  ;;  %v12382_v58 = vld [vmem:[#allocation5 + $0xa0] sm:$0xff] }
 0x627   :  { %8376 = vmatprep.subr.mxu0 %v9839_v1 }
 0x628   :  { %8377 = vmatpush3.msra.mxu0 %v13897_v59  ;;  %v12387_v59 = vld [vmem:[#allocation7 + $0x90] sm:$0xff] }
 0x629   :  { %8378 = vmatprep.subr.mxu0 %v9839_v1  ;;  %13910 = vst [vmem:[#allocation22_spill] sm:$0xff] %v12387_v59 }
 0x62a   :  { %8379 = vmatpush3.msra.mxu0 %v13898_v53  ;;  %v12390_v53 = vld [vmem:[#allocation5 + $0x98] sm:$0xff] }
 0x62b   :  { %8380 = vmatprep.subr.mxu0 %v9839_v1 }
 0x62c   :  { %8381 = vmatpush3.msra.mxu0 %v13899_v51  ;;  %v12395_v51 = vld [vmem:[#allocation7 + $0x88] sm:$0xff] }
 0x62d   :  { %8382 = vmatprep.subr.mxu0 %v9839_v1  ;;  %13911 = vst [vmem:[#allocation25_spill] sm:$0xff] %v12395_v51 }
 0x62e   :  { %8383 = vmatpush3.msra.mxu0 %v13900_v56  ;;  %v12398_v56 = vld [vmem:[#allocation5 + $0x90] sm:$0xff] }
 0x62f   :  { %8384 = vmatprep.subr.mxu0 %v9839_v1 }
 0x630   :  { %v12284_v54 = vpop.eup %9350  ;;  %8385 = vmatpush3.msra.mxu0 %v13901_v60  ;;  %v12403_v60 = vld [vmem:[#allocation7 + $0x80] sm:$0xff] }
 0x631   :  { %8354 = vmatmul.mubr.f32.vlgmr.msra.gmra.mxu1 %v12284_v54  ;;  %8386 = vmatprep.subr.mxu0 %v9839_v1  ;;  %13912 = vst [vmem:[#allocation24_spill] sm:$0xff] %v12403_v60 }
 0x632   :  { %8387 = vmatpush3.msra.mxu0 %v13902_v61  ;;  %8392 = vmatpush3.msra.mxu1 %v11889_v52  ;;  %v12303_v52 = vld [vmem:[#allocation7 + $0xe0] sm:$0xff]  ;;  %v12408_v61 = vld [vmem:[#allocation5 + $0x88] sm:$0xff] }
 0x633   :  { %8389 = vmatmul.mubr.f32.vlgmr.msra.gmra.mxu0 %v3437_v4  ;;  %8393 = vmatprep.subr.mxu1 %v9839_v1 }
 0x634   :  { %8426 = vmatprep.subr.mxu0 %v9839_v1  ;;  %8394 = vmatpush3.msra.mxu1 %v11897_v49  ;;  %v12309_v49 = vld [vmem:[#allocation7 + $0xd8] sm:$0xff] }
 0x635   :  { %8427 = vmatpush3.msra.mxu0 %v11892_v17  ;;  %8395 = vmatprep.subr.mxu1 %v9839_v1  ;;  %v12312_v17 = vld [vmem:[#allocation5 + $0xe0] sm:$0xff] }
 0x636   :  { %8428 = vmatprep.subr.mxu0 %v9839_v1  ;;  %8396 = vmatpush3.msra.mxu1 %v12297_v62 }
 0x637   :  { %8429 = vmatpush3.msra.mxu0 %v11900_v45  ;;  %8397 = vmatprep.subr.mxu1 %v9839_v1  ;;  %v12317_v45 = vld [vmem:[#allocation7 + $0xd0] sm:$0xff] }
 0x638   :  { %8430 = vmatprep.subr.mxu0 %v9839_v1  ;;  %8398 = vmatpush3.msra.mxu1 %v12303_v52 }
 0x639   :  { %8431 = vmatpush3.msra.mxu0 %v11906_v46  ;;  %8399 = vmatprep.subr.mxu1 %v9839_v1  ;;  %v12320_v46 = vld [vmem:[#allocation5 + $0xd8] sm:$0xff] }
 0x63a   :  { %8432 = vmatprep.subr.mxu0 %v9839_v1  ;;  %8400 = vmatpush3.msra.mxu1 %v12309_v49 }
 0x63b   :  { %8433 = vmatpush3.msra.mxu0 %v12312_v17  ;;  %8401 = vmatprep.subr.mxu1 %v9839_v1 }
 0x63c   :  { %8434 = vmatprep.subr.mxu0 %v9839_v1  ;;  %8402 = vmatpush3.msra.mxu1 %v12317_v45 }
 0x63d   :  { %8435 = vmatpush3.msra.mxu0 %v12320_v46  ;;  %8403 = vmatprep.subr.mxu1 %v9839_v1 }
 0x63e   :  { %8436 = vmatprep.subr.mxu0 %v9839_v1  ;;  %8404 = vmatpush3.msra.mxu1 %v12325_v43 }
 0x63f   :  { %8437 = vmatpush3.msra.mxu0 %v12328_v63  ;;  %8405 = vmatprep.subr.mxu1 %v9839_v1 }
 0x640   :  { %v3076_v0 = vpop.f32.mrf.mxu0  ;;  %v3146_v5 = vpop.f32.mrf.mxu1  ;;  %8438 = vmatprep.subr.mxu0 %v9839_v1  ;;  %8406 = vmatpush3.msra.mxu1 %v12333_v7 }
 0x641   :  { %v3147_v2 = vadd.f32 %v3146_v5, %v3076_v0  ;;  %8439 = vmatpush3.msra.mxu0 %v12336_v3  ;;  %8407 = vmatprep.subr.mxu1 %v9839_v1  ;;  %v12416_v5 = vld [vmem:[#allocation5 + $0x80] sm:$0xff] }
 0x642   :  { %v8110_v4 = vpop.f32.mrf.mxu0  ;;  %v8145_v6 = vpop.f32.mrf.mxu1  ;;  %8440 = vmatprep.subr.mxu0 %v9839_v1  ;;  %8408 = vmatpush3.msra.mxu1 %v12341_v9  ;;  %v12483_v9 = vld [vmem:[#allocation7 + $0x138] sm:$0xff] }
 0x643   :  { %v3150_v12 = vadd.f32 %v12347_v11, %v3147_v2  ;;  %8441 = vmatpush3.msra.mxu0 %v12350_v13  ;;  %8409 = vmatprep.subr.mxu1 %v9839_v1  ;;  %v12421_v2 = vld [vmem:[#allocation7 + $0x178] sm:$0xff]  ;;  %v12427_v4 = vld [vmem:[#allocation7 + $0x170] sm:$0xff]  ;;  %v12478_v11 = vld [vmem:[#allocation5 + $0x148] sm:$0xff]  ;;  %13922 = vst [vmem:[#allocation35_spill] sm:$0xff] %v12483_v9 }
 0x644   :  { %8442 = vmatprep.subr.mxu0 %v9839_v1  ;;  %8410 = vmatpush3.msra.mxu1 %v12355_v14  ;;  %13913 = vst [vmem:[#allocation27_spill] sm:$0xff] %v12421_v2  ;;  %13914 = vst [vmem:[#allocation26_spill] sm:$0xff] %v12427_v4  ;;  %v12430_v6 = vld [vmem:[#allocation5 + $0x178] sm:$0xff] }
 0x645   :  { %9352 = vtanh.f32 %v3150_v12  ;;  %8443 = vmatpush3.msra.mxu0 %v12358_v15  ;;  %8411 = vmatprep.subr.mxu1 %v9839_v1  ;;  %v12435_v12 = vld [vmem:[#allocation7 + $0x168] sm:$0xff] }
 0x646   :  { %8444 = vmatprep.subr.mxu0 %v9839_v1  ;;  %8412 = vmatpush3.msra.mxu1 %v12363_v16  ;;  %13915 = vst [vmem:[#allocation30_spill] sm:$0xff] %v12435_v12 }
 0x647   :  { %8445 = vmatpush3.msra.mxu0 %v12366_v42  ;;  %8413 = vmatprep.subr.mxu1 %v9839_v1 }
 0x648   :  { %8446 = vmatprep.subr.mxu0 %v9839_v1  ;;  %8414 = vmatpush3.msra.mxu1 %v12371_v36  ;;  %v12475_v36 = vld [vmem:[#allocation7 + $0x140] sm:$0xff] }
 0x649   :  { %8447 = vmatpush3.msra.mxu0 %v12374_v55  ;;  %8415 = vmatprep.subr.mxu1 %v9839_v1  ;;  %13921 = vst [vmem:[#allocation33_spill] sm:$0xff] %v12475_v36 }
 0x64a   :  { %8448 = vmatprep.subr.mxu0 %v9839_v1  ;;  %8416 = vmatpush3.msra.mxu1 %v12379_v57  ;;  %v12470_v57 = vld [vmem:[#allocation5 + $0x150] sm:$0xff] }
 0x64b   :  { %8449 = vmatpush3.msra.mxu0 %v12382_v58  ;;  %8417 = vmatprep.subr.mxu1 %v9839_v1  ;;  %13920 = vst [vmem:[#allocation31_spill] sm:$0xff] %v12470_v57 }
 0x64c   :  { %8450 = vmatprep.subr.mxu0 %v9839_v1  ;;  %8418 = vmatpush3.msra.mxu1 %v12387_v59 }
 0x64d   :  { %8451 = vmatpush3.msra.mxu0 %v12390_v53  ;;  %8419 = vmatprep.subr.mxu1 %v9839_v1 }
 0x64e   :  { %8452 = vmatprep.subr.mxu0 %v9839_v1  ;;  %8420 = vmatpush3.msra.mxu1 %v12395_v51  ;;  %v12462_v51 = vld [vmem:[#allocation5 + $0x158] sm:$0xff] }
 0x64f   :  { %8453 = vmatpush3.msra.mxu0 %v12398_v56  ;;  %8421 = vmatprep.subr.mxu1 %v9839_v1 }
 0x650   :  { %8454 = vmatprep.subr.mxu0 %v9839_v1  ;;  %8422 = vmatpush3.msra.mxu1 %v12403_v60  ;;  %v12454_v60 = vld [vmem:[#allocation5 + $0x160] sm:$0xff] }
 0x651   :  { %8423 = vmatprep.mubr.msk.f32.mxu1 %vm9840_vm0, %v9839_v1  ;;  %8455 = vmatpush3.msra.mxu0 %v12408_v61 }
 0x652   :  { %v12411_v0 = vpop.eup %9352  ;;  %8456 = vmatprep.subr.mxu0 %v9839_v1  ;;  %8461 = vmatprep.subr.mxu1 %v9839_v1 }
 0x653   :  { %8424 = vmatmul.mubr.f32.vlgmr.msra.gmra.mxu1 %v12411_v0  ;;  %8457 = vmatpush3.msra.mxu0 %v12416_v5 }
 0x654   :  { %8458 = vmatprep.mubr.msk.f32.mxu0 %vm9840_vm0, %v9839_v1  ;;  %8462 = vmatpush3.msra.mxu1 %v12421_v2  ;;  %v12446_v2 = vld [vmem:[#allocation5 + $0x168] sm:$0xff] }
 0x655   :  { %8459 = vmatmul.mubr.f32.vlgmr.msra.gmra.mxu0 %v12284_v54  ;;  %8463 = vmatprep.subr.mxu1 %v9839_v1  ;;  %v12438_v54 = vld [vmem:[#allocation5 + $0x170] sm:$0xff] }
 0x656   :  { %8496 = vmatprep.subr.mxu0 %v9839_v1  ;;  %8464 = vmatpush3.msra.mxu1 %v12427_v4  ;;  %v12443_v4 = vld [vmem:[#allocation7 + $0x160] sm:$0xff] }
 0x657   :  { %8497 = vmatpush3.msra.mxu0 %v12430_v6  ;;  %8465 = vmatprep.subr.mxu1 %v9839_v1  ;;  %13916 = vst [vmem:[#allocation28_spill] sm:$0xff] %v12443_v4 }
 0x658   :  { %8498 = vmatprep.subr.mxu0 %v9839_v1  ;;  %8466 = vmatpush3.msra.mxu1 %v12435_v12  ;;  %v12451_v12 = vld [vmem:[#allocation7 + $0x158] sm:$0xff] }
 0x659   :  { %8499 = vmatpush3.msra.mxu0 %v12438_v54  ;;  %8467 = vmatprep.subr.mxu1 %v9839_v1  ;;  %13917 = vst [vmem:[#allocation32_spill] sm:$0xff] %v12451_v12 }
 0x65a   :  { %8500 = vmatprep.subr.mxu0 %v9839_v1  ;;  %8468 = vmatpush3.msra.mxu1 %v12443_v4  ;;  %v12459_v4 = vld [vmem:[#allocation7 + $0x150] sm:$0xff] }
 0x65b   :  { %8501 = vmatpush3.msra.mxu0 %v12446_v2  ;;  %8469 = vmatprep.subr.mxu1 %v9839_v1  ;;  %13918 = vst [vmem:[#allocation29_spill] sm:$0xff] %v12459_v4 }
 0x65c   :  { %8502 = vmatprep.subr.mxu0 %v9839_v1  ;;  %8470 = vmatpush3.msra.mxu1 %v12451_v12  ;;  %v12467_v12 = vld [vmem:[#allocation7 + $0x148] sm:$0xff] }
 0x65d   :  { %8503 = vmatpush3.msra.mxu0 %v12454_v60  ;;  %8471 = vmatprep.subr.mxu1 %v9839_v1  ;;  %13919 = vst [vmem:[#allocation34_spill] sm:$0xff] %v12467_v12 }
 0x65e   :  { %8504 = vmatprep.subr.mxu0 %v9839_v1  ;;  %8472 = vmatpush3.msra.mxu1 %v12459_v4 }
 0x65f   :  { %8505 = vmatpush3.msra.mxu0 %v12462_v51  ;;  %8473 = vmatprep.subr.mxu1 %v9839_v1 }
 0x660   :  { %8506 = vmatprep.subr.mxu0 %v9839_v1  ;;  %8474 = vmatpush3.msra.mxu1 %v12467_v12 }
 0x661   :  { %v3218_v59 = vpop.f32.mrf.mxu0  ;;  %8507 = vmatpush3.msra.mxu0 %v12470_v57  ;;  %8475 = vmatprep.subr.mxu1 %v9839_v1  ;;  %v12487_v57 = vld [vmem:[#allocation5 + $0x140] sm:$0xff] }
 0x662   :  { %v3288_v4 = vpop.f32.mrf.mxu1  ;;  %8508 = vmatprep.subr.mxu0 %v9839_v1  ;;  %8476 = vmatpush3.msra.mxu1 %v12475_v36  ;;  %v12545_v36 = vld [vmem:[#allocation5 + $0x108] sm:$0xff] }
 0x663   :  { %v3289_v16 = vadd.f32 %v3288_v4, %v3218_v59  ;;  %v8180_v14 = vpop.f32.mrf.mxu0  ;;  %8509 = vmatpush3.msra.mxu0 %v12478_v11  ;;  %8477 = vmatprep.subr.mxu1 %v9839_v1  ;;  %v12495_v59 = vld [vmem:[#allocation5 + $0x138] sm:$0xff]  ;;  %v12511_v4 = vld [vmem:[#allocation5 + $0x128] sm:$0xff] }
 0x664   :  { %v8215_v12 = vpop.f32.mrf.mxu1  ;;  %8510 = vmatprep.subr.mxu0 %v9839_v1  ;;  %8478 = vmatpush3.msra.mxu1 %v12483_v9  ;;  %v12492_v14 = vld [vmem:[#allocation7 + $0x130] sm:$0xff] }
 0x665   :  { %v3292_v7 = vadd.f32 %v12006_v22, %v3289_v16  ;;  %8511 = vmatpush3.msra.mxu0 %v12487_v57  ;;  %8479 = vmatprep.subr.mxu1 %v9839_v1  ;;  %13923 = vst [vmem:[#allocation38_spill] sm:$0xff] %v12492_v14  ;;  %v12500_v22 = vld [vmem:[#allocation7 + $0x128] sm:$0xff]  ;;  %v12503_v16 = vld [vmem:[#allocation5 + $0x130] sm:$0xff]  ;;  %v12516_v12 = vld [vmem:[#allocation7 + $0x118] sm:$0xff] }
 0x666   :  { %8512 = vmatprep.subr.mxu0 %v9839_v1  ;;  %8480 = vmatpush3.msra.mxu1 %v12492_v14  ;;  %13924 = vst [vmem:[#allocation36_spill] sm:$0xff] %v12500_v22  ;;  %13926 = vst [vmem:[#allocation37_spill] sm:$0xff] %v12516_v12  ;;  %v12527_v14 = vld [vmem:[#allocation5 + $0x118] sm:$0xff]  ;;  %v12535_v9 = vld [vmem:[#allocation5 + $0x110] sm:$0xff] }
 0x667   :  { %9354 = vtanh.f32 %v3292_v7  ;;  %8513 = vmatpush3.msra.mxu0 %v12495_v59  ;;  %8481 = vmatprep.subr.mxu1 %v9839_v1  ;;  %v12508_v7 = vld [vmem:[#allocation7 + $0x120] sm:$0xff]  ;;  %13929 = vst [vmem:[#allocation41_spill] sm:$0xff] %v12535_v9 }
 0x668   :  { %8514 = vmatprep.subr.mxu0 %v9839_v1  ;;  %8482 = vmatpush3.msra.mxu1 %v12500_v22  ;;  %13925 = vst [vmem:[#allocation40_spill] sm:$0xff] %v12508_v7  ;;  %v12519_v22 = vld [vmem:[#allocation5 + $0x120] sm:$0xff] }
 0x669   :  { %8515 = vmatpush3.msra.mxu0 %v12503_v16  ;;  %8483 = vmatprep.subr.mxu1 %v9839_v1 }
 0x66a   :  { %8516 = vmatprep.subr.mxu0 %v9839_v1  ;;  %8484 = vmatpush3.msra.mxu1 %v12508_v7  ;;  %v12524_v7 = vld [vmem:[#allocation7 + $0x110] sm:$0xff] }
 0x66b   :  { %8517 = vmatpush3.msra.mxu0 %v12511_v4  ;;  %8485 = vmatprep.subr.mxu1 %v9839_v1  ;;  %13927 = vst [vmem:[#allocation42_spill] sm:$0xff] %v12524_v7 }
 0x66c   :  { %8518 = vmatprep.subr.mxu0 %v9839_v1  ;;  %8486 = vmatpush3.msra.mxu1 %v12516_v12  ;;  %v12532_v12 = vld [vmem:[#allocation7 + $0x108] sm:$0xff] }
 0x66d   :  { %8519 = vmatpush3.msra.mxu0 %v12519_v22  ;;  %8487 = vmatprep.subr.mxu1 %v9839_v1  ;;  %13928 = vst [vmem:[#allocation39_spill] sm:$0xff] %v12532_v12 }
 0x66e   :  { %8520 = vmatprep.subr.mxu0 %v9839_v1  ;;  %8488 = vmatpush3.msra.mxu1 %v12524_v7  ;;  %v12540_v7 = vld [vmem:[#allocation7 + $0x100] sm:$0xff] }
 0x66f   :  { %8521 = vmatpush3.msra.mxu0 %v12527_v14  ;;  %8489 = vmatprep.subr.mxu1 %v9839_v1 }
 0x670   :  { %8522 = vmatprep.subr.mxu0 %v9839_v1  ;;  %8490 = vmatpush3.msra.mxu1 %v12532_v12 }
 0x671   :  { %8523 = vmatpush3.msra.mxu0 %v12535_v9  ;;  %8491 = vmatprep.subr.mxu1 %v9839_v1  ;;  %v12553_v9 = vld [vmem:[#allocation5 + $0x100] sm:$0xff] }
 0x672   :  { %8524 = vmatprep.subr.mxu0 %v9839_v1  ;;  %8492 = vmatpush3.msra.mxu1 %v12540_v7 }
 0x673   :  { %8493 = vmatprep.mubr.msk.f32.mxu1 %vm9840_vm0, %v9839_v1  ;;  %8525 = vmatpush3.msra.mxu0 %v12545_v36 }
 0x674   :  { %v12548_v12 = vpop.eup %9354  ;;  %8526 = vmatprep.subr.mxu0 %v9839_v1  ;;  %8531 = vmatprep.subr.mxu1 %v9839_v1 }
 0x675   :  { %8494 = vmatmul.mubr.f32.vlgmr.msra.gmra.mxu1 %v12548_v12  ;;  %8527 = vmatpush3.msra.mxu0 %v12553_v9 }
 0x676   :  { %8528 = vmatprep.mubr.msk.f32.mxu0 %vm9840_vm0, %v9839_v1  ;;  %8532 = vmatpush3.msra.mxu1 %v12050_v28 }
 0x677   :  { %8529 = vmatmul.mubr.f32.vlgmr.msra.gmra.mxu0 %v12411_v0  ;;  %8533 = vmatprep.subr.mxu1 %v9839_v1  ;;  %v9664_v0 = vld [vmem:[#allocation7 + $0x48] sm:$0xff] }
 0x678   :  { %8566 = vmatprep.subr.mxu0 %v9839_v1  ;;  %8534 = vmatpush3.msra.mxu1 %v12058_v39 }
 0x679   :  { %8567 = vmatpush3.msra.mxu0 %v12053_v44  ;;  %8535 = vmatprep.subr.mxu1 %v9839_v1 }
 0x67a   :  { %8568 = vmatprep.subr.mxu0 %v9839_v1  ;;  %8536 = vmatpush3.msra.mxu1 %v12066_v33 }
 0x67b   :  { %8569 = vmatpush3.msra.mxu0 %v12061_v25  ;;  %8537 = vmatprep.subr.mxu1 %v9839_v1 }
 0x67c   :  { %8570 = vmatprep.subr.mxu0 %v9839_v1  ;;  %8538 = vmatpush3.msra.mxu1 %v12074_v41 }
 0x67d   :  { %8571 = vmatpush3.msra.mxu0 %v12069_v30  ;;  %8539 = vmatprep.subr.mxu1 %v9839_v1  ;;  %v12594_v30 = vld [vmem:[%s13454_s6 + $0x3] ss:$0 sm:$0xff] }
 0x67e   :  { %8572 = vmatprep.subr.mxu0 %v9839_v1  ;;  %8540 = vmatpush3.msra.mxu1 %v12082_v24  ;;  %v13931_v24 = vld [vmem:[#allocation11_spill] sm:$0xff] }
 0x67f   :  { %8573 = vmatpush3.msra.mxu0 %v12077_v47  ;;  %8541 = vmatprep.subr.mxu1 %v9839_v1  ;;  %v13930_v47 = vld [vmem:[#allocation13_spill] sm:$0xff] }
 0x680   :  { %8574 = vmatprep.subr.mxu0 %v9839_v1  ;;  %8542 = vmatpush3.msra.mxu1 %v12090_v31  ;;  %v13933_v31 = vld [vmem:[#allocation12_spill] sm:$0xff] }
 0x681   :  { %8575 = vmatpush3.msra.mxu0 %v12085_v26  ;;  %8543 = vmatprep.subr.mxu1 %v9839_v1  ;;  %v13932_v26 = vld [vmem:[#allocation15_spill] sm:$0xff] }
 0x682   :  { %8576 = vmatprep.subr.mxu0 %v9839_v1  ;;  %8544 = vmatpush3.msra.mxu1 %v12098_v10 }
 0x683   :  { %v3360_v28 = vpop.f32.mrf.mxu0  ;;  %8577 = vmatpush3.msra.mxu0 %v12093_v37  ;;  %8545 = vmatprep.subr.mxu1 %v9839_v1  ;;  %v13934_v37 = vld [vmem:[#allocation14_spill] sm:$0xff] }
 0x684   :  { %v3430_v44 = vpop.f32.mrf.mxu1  ;;  %8578 = vmatprep.subr.mxu0 %v9839_v1  ;;  %8546 = vmatpush3.msra.mxu1 %v12106_v23  ;;  %v9651_v23 = vld [vmem:[#allocation7 + $0x78] sm:$0xff] }
 0x685   :  { %v3431_v39 = vadd.f32 %v3430_v44, %v3360_v28  ;;  %v8250_v25 = vpop.f32.mrf.mxu0  ;;  %8579 = vmatpush3.msra.mxu0 %v12101_v21  ;;  %8547 = vmatprep.subr.mxu1 %v9839_v1  ;;  %v9650_v21 = vld [vmem:[#allocation5 + $0x78] sm:$0xff]  ;;  %v9666_v28 = vld [vmem:[#allocation7 + $0x40] sm:$0xff]  ;;  %v9667_v44 = vld [vmem:[#allocation5 + $0x30] sm:$0xff] }
 0x686   :  { %v8285_v33 = vpop.f32.mrf.mxu1  ;;  %8580 = vmatprep.subr.mxu0 %v9839_v1  ;;  %8548 = vmatpush3.msra.mxu1 %v12115_v27  ;;  %v9653_v27 = vld [vmem:[#allocation5 + $0x68] sm:$0xff] }
 0x687   :  { %v3434_v41 = vadd.f32 %v12594_v30, %v3431_v39  ;;  %8581 = vmatpush3.msra.mxu0 %v12109_v18  ;;  %8549 = vmatprep.subr.mxu1 %v9839_v1  ;;  %v9652_v18 = vld [vmem:[#allocation5 + $0x70] sm:$0xff]  ;;  %v9668_v39 = vld [vmem:[#allocation7 + $0x38] sm:$0xff]  ;;  %v9669_v25 = vld [vmem:[#allocation5 + $0x28] sm:$0xff] }
 0x688   :  { %8582 = vmatprep.subr.mxu0 %v9839_v1  ;;  %8550 = vmatpush3.msra.mxu1 %v12123_v40  ;;  %v9655_v40 = vld [vmem:[#allocation5 + $0x60] sm:$0xff]  ;;  %v9670_v33 = vld [vmem:[#allocation7 + $0x30] sm:$0xff] }
 0x689   :  { %9356 = vtanh.f32 %v3434_v41  ;;  %8583 = vmatpush3.msra.mxu0 %v12118_v34  ;;  %8551 = vmatprep.subr.mxu1 %v9839_v1  ;;  %v9654_v34 = vld [vmem:[#allocation7 + $0x70] sm:$0xff]  ;;  %v9671_v41 = vld [vmem:[#allocation5 + $0x20] sm:$0xff] }
 0x68a   :  { %8584 = vmatprep.subr.mxu0 %v9839_v1  ;;  %8552 = vmatpush3.msra.mxu1 %v12131_v32  ;;  %v9657_v32 = vld [vmem:[#allocation5 + $0x58] sm:$0xff] }
 0x68b   :  { %8585 = vmatpush3.msra.mxu0 %v12126_v50  ;;  %8553 = vmatprep.subr.mxu1 %v9839_v1  ;;  %v9656_v50 = vld [vmem:[#allocation7 + $0x68] sm:$0xff] }
 0x68c   :  { %8586 = vmatprep.subr.mxu0 %v9839_v1  ;;  %8554 = vmatpush3.msra.mxu1 %v12139_v29  ;;  %v9659_v29 = vld [vmem:[#allocation5 + $0x50] sm:$0xff] }
 0x68d   :  { %8587 = vmatpush3.msra.mxu0 %v12134_v38  ;;  %8555 = vmatprep.subr.mxu1 %v9839_v1  ;;  %v9658_v38 = vld [vmem:[#allocation7 + $0x60] sm:$0xff] }
 0x68e   :  { %8588 = vmatprep.subr.mxu0 %v9839_v1  ;;  %8556 = vmatpush3.msra.mxu1 %v13930_v47  ;;  %v9672_v47 = vld [vmem:[#allocation7 + $0x28] sm:$0xff] }
 0x68f   :  { %8589 = vmatpush3.msra.mxu0 %v13931_v24  ;;  %8557 = vmatprep.subr.mxu1 %v9839_v1  ;;  %v9673_v24 = vld [vmem:[#allocation5 + $0x18] sm:$0xff] }
 0x690   :  { %8590 = vmatprep.subr.mxu0 %v9839_v1  ;;  %8558 = vmatpush3.msra.mxu1 %v13932_v26  ;;  %v9674_v26 = vld [vmem:[#allocation7 + $0x20] sm:$0xff] }
 0x691   :  { %8591 = vmatpush3.msra.mxu0 %v13933_v31  ;;  %8559 = vmatprep.subr.mxu1 %v9839_v1  ;;  %v9675_v31 = vld [vmem:[#allocation5 + $0x10] sm:$0xff] }
 0x692   :  { %8592 = vmatprep.subr.mxu0 %v9839_v1  ;;  %8560 = vmatpush3.msra.mxu1 %v12163_v48  ;;  %v9660_v48 = vld [vmem:[#allocation7 + $0x58] sm:$0xff] }
 0x693   :  { %8593 = vmatpush3.msra.mxu0 %v13934_v37  ;;  %8561 = vmatprep.subr.mxu1 %v9839_v1  ;;  %v9676_v37 = vld [vmem:[#allocation7 + $0x18] sm:$0xff] }
 0x694   :  { %8594 = vmatprep.subr.mxu0 %v9839_v1  ;;  %8562 = vmatpush3.msra.mxu1 %v12171_v35  ;;  %v9663_v35 = vld [vmem:[#allocation5 + $0x40] sm:$0xff] }
 0x695   :  { %8563 = vmatprep.mubr.msk.f32.mxu1 %vm9840_vm0, %v9839_v1  ;;  %8595 = vmatpush3.msra.mxu0 %v12166_v20  ;;  %v9662_v20 = vld [vmem:[#allocation7 + $0x50] sm:$0xff] }
 0x696   :  { %v9357_v10 = vpop.eup %9356  ;;  %8596 = vmatprep.subr.mxu0 %v9839_v1  ;;  %8598 = vmatprep.mubr.msk.f32.mxu0 %vm9840_vm0, %v9839_v1 }
 0x697   :  { %8564 = vmatmul.mubr.f32.vlgmr.msra.gmra.mxu1 %v9357_v10  ;;  %8597 = vmatpush3.msra.mxu0 %v12176_v19  ;;  %v9661_v19 = vld [vmem:[#allocation5 + $0x48] sm:$0xff] }
 0x698   :  { %8599 = vmatmul.mubr.f32.vlgmr.msra.gmra.mxu0 %v12548_v12  ;;  %8636 = vmatprep.subr.mxu0 %v9839_v1  ;;  %v9665_v12 = vld [vmem:[#allocation5 + $0x38] sm:$0xff]  ;;  %v9677_v10 = vld [vmem:[#allocation5 + $0x8] sm:$0xff] }
 0x699   :  { %8637 = vmatpush3.msra.mxu0 %v9650_v21  ;;  %8601 = vmatprep.subr.mxu1 %v9839_v1  ;;  %v9678_v21 = vld [vmem:[#allocation7 + $0x10] sm:$0xff] }
 0x69a   :  { %8638 = vmatprep.subr.mxu0 %v9839_v1  ;;  %8602 = vmatpush3.msra.mxu1 %v9651_v23  ;;  %v9679_v23 = vld [vmem:[#allocation5] sm:$0xff] }
 0x69b   :  { %8639 = vmatpush3.msra.mxu0 %v9652_v18  ;;  %8603 = vmatprep.subr.mxu1 %v9839_v1  ;;  %v9680_v18 = vld [vmem:[#allocation7 + $0x8] sm:$0xff] }
 0x69c   :  { %8640 = vmatprep.subr.mxu0 %v9839_v1  ;;  %8668 = vmatprep.mubr.msk.f32.mxu0 %vm9840_vm0, %v9839_v1 }
 0x69d   :  { %8641 = vmatpush3.msra.mxu0 %v9653_v27  ;;  %8604 = vmatpush3.msra.mxu1 %v9654_v34  ;;  %v9681_v27 = vld [vmem:[#allocation7] sm:$0xff] }
 0x69e   :  { %8642 = vmatprep.subr.mxu0 %v9839_v1  ;;  %8605 = vmatprep.subr.mxu1 %v9839_v1 }
 0x69f   :  { %8643 = vmatpush3.msra.mxu0 %v9655_v40  ;;  %8606 = vmatpush3.msra.mxu1 %v9656_v50 }
 0x6a0   :  { %8644 = vmatprep.subr.mxu0 %v9839_v1  ;;  %8607 = vmatprep.subr.mxu1 %v9839_v1 }
 0x6a1   :  { %8645 = vmatpush3.msra.mxu0 %v9657_v32  ;;  %8608 = vmatpush3.msra.mxu1 %v9658_v38 }
 0x6a2   :  { %8646 = vmatprep.subr.mxu0 %v9839_v1  ;;  %8609 = vmatprep.subr.mxu1 %v9839_v1 }
 0x6a3   :  { %8647 = vmatpush3.msra.mxu0 %v9659_v29  ;;  %8610 = vmatpush3.msra.mxu1 %v9660_v48  ;;  %v12672_v48 = vld [vmem:[#allocation5 + $0xf8] sm:$0xff] }
 0x6a4   :  { %8648 = vmatprep.subr.mxu0 %v9839_v1  ;;  %8611 = vmatprep.subr.mxu1 %v9839_v1 }
 0x6a5   :  { %8649 = vmatpush3.msra.mxu0 %v9661_v19  ;;  %8612 = vmatpush3.msra.mxu1 %v9662_v20  ;;  %v12678_v19 = vld [vmem:[#allocation5 + $0xf0] sm:$0xff] }
 0x6a6   :  { %8650 = vmatprep.subr.mxu0 %v9839_v1  ;;  %8613 = vmatprep.subr.mxu1 %v9839_v1 }
 0x6a7   :  { %8651 = vmatpush3.msra.mxu0 %v9663_v35  ;;  %8614 = vmatpush3.msra.mxu1 %v9664_v0 }
 0x6a8   :  { %8652 = vmatprep.subr.mxu0 %v9839_v1  ;;  %8615 = vmatprep.subr.mxu1 %v9839_v1 }
 0x6a9   :  { %8653 = vmatpush3.msra.mxu0 %v9665_v12  ;;  %8616 = vmatpush3.msra.mxu1 %v9666_v28 }
 0x6aa   :  { %8654 = vmatprep.subr.mxu0 %v9839_v1  ;;  %8617 = vmatprep.subr.mxu1 %v9839_v1 }
 0x6ab   :  { %8655 = vmatpush3.msra.mxu0 %v9667_v44  ;;  %8618 = vmatpush3.msra.mxu1 %v9668_v39  ;;  %v12696_v44 = vld [vmem:[%s13454_s6] ss:$0 sm:$0xff] }
 0x6ac   :  { %8656 = vmatprep.subr.mxu0 %v9839_v1  ;;  %8619 = vmatprep.subr.mxu1 %v9839_v1 }
 0x6ad   :  { %8657 = vmatpush3.msra.mxu0 %v9669_v25  ;;  %8620 = vmatpush3.msra.mxu1 %v9670_v33  ;;  %v12716_v33 = vld [vmem:[#allocation7 + $0xf8] sm:$0xff] }
 0x6ae   :  { %8658 = vmatprep.subr.mxu0 %v9839_v1  ;;  %8621 = vmatprep.subr.mxu1 %v9839_v1 }
 0x6af   :  { %8659 = vmatpush3.msra.mxu0 %v9671_v41  ;;  %8622 = vmatpush3.msra.mxu1 %v9672_v47  ;;  %v12722_v41 = vld [vmem:[#allocation7 + $0xf0] sm:$0xff]  ;;  %v13939_v47 = vld [vmem:[#allocation17_spill] sm:$0xff] }
 0x6b0   :  { %8660 = vmatprep.subr.mxu0 %v9839_v1  ;;  %8623 = vmatprep.subr.mxu1 %v9839_v1 }
 0x6b1   :  { %8661 = vmatpush3.msra.mxu0 %v9673_v24  ;;  %8624 = vmatpush3.msra.mxu1 %v9674_v26  ;;  %v13945_v24 = vld [vmem:[#allocation41_spill] sm:$0xff]  ;;  %v13947_v26 = vld [vmem:[#allocation27_spill] sm:$0xff] }
 0x6b2   :  { %8662 = vmatprep.subr.mxu0 %v9839_v1  ;;  %8625 = vmatprep.subr.mxu1 %v9839_v1 }
 0x6b3   :  { %8663 = vmatpush3.msra.mxu0 %v9675_v31  ;;  %8626 = vmatpush3.msra.mxu1 %v9676_v37  ;;  %v13948_v31 = vld [vmem:[#allocation26_spill] sm:$0xff]  ;;  %v12794_v37 = vld [vmem:[#allocation5 + $0x1f8] sm:$0xff] }
 0x6b4   :  { %8664 = vmatprep.subr.mxu0 %v9839_v1  ;;  %8627 = vmatprep.subr.mxu1 %v9839_v1 }
 0x6b5   :  { %8665 = vmatpush3.msra.mxu0 %v9677_v10  ;;  %8628 = vmatpush3.msra.mxu1 %v9678_v21  ;;  %v13949_v10 = vld [vmem:[#allocation30_spill] sm:$0xff]  ;;  %v12800_v21 = vld [vmem:[#allocation5 + $0x1f0] sm:$0xff] }
 0x6b6   :  { %8666 = vmatprep.subr.mxu0 %v9839_v1  ;;  %8629 = vmatprep.subr.mxu1 %v9839_v1 }
 0x6b7   :  { %8667 = vmatpush3.msra.mxu0 %v9679_v23  ;;  %8630 = vmatpush3.msra.mxu1 %v9680_v18  ;;  %v13950_v23 = vld [vmem:[#allocation28_spill] sm:$0xff]  ;;  %v12806_v18 = vld [vmem:[#allocation5 + $0x1e8] sm:$0xff] }
 0x6b8   :  { %8706 = vmatprep.subr.mxu0 %v9839_v1  ;;  %8631 = vmatprep.subr.mxu1 %v9839_v1 }
 0x6b9   :  { %8632 = vmatpush3.msra.mxu1 %v9681_v27  ;;  %8633 = vmatprep.mubr.msk.f32.mxu1 %vm9840_vm0, %v9839_v1  ;;  %v13951_v27 = vld [vmem:[#allocation32_spill] sm:$0xff] }
 0x6ba   :  { %8671 = vmatprep.subr.mxu1 %v9839_v1 }
 0x6d3   :  { %v3505_v34 = vpop.f32.mrf.mxu0 }
 0x6d4   :  { %v3510_v40 = vrot.slane %v3505_v34, 2  ;;  %v12812_v34 = vld [vmem:[#allocation5 + $0x1e0] sm:$0xff] }
 0x6d5   :  { %v8320_v50 = vpop.f32.mrf.mxu0 }
 0x6d6   :  { %v3512_v32 = vadd.f32 %v3510_v40, %v13889_v8  ;;  %v12682_v8 = vld [vmem:[#allocation5 + $0xe8] sm:$0xff]  ;;  %v13952_v40 = vld [vmem:[#allocation29_spill] sm:$0xff] }
 0x6d7   :  { %v12818_v50 = vld [vmem:[#allocation5 + $0x1d8] sm:$0xff] }
 0x6d8   :  { %9358 = vtanh.f32 %v3512_v32 }
 0x6e5   :  { %v9359_v38 = vpop.eup %9358 }
 0x6e6   :  { %v4153_v29 = vrot.slane %v9359_v38, 6  ;;  %v13953_v38 = vld [vmem:[#allocation34_spill] sm:$0xff] }
 0x6e8   :  { %8669 = vmatmul.mubr.f32.vlgmr.msra.gmra.mxu0 %v4153_v29  ;;  %v12824_v29 = vld [vmem:[#allocation5 + $0x1d0] sm:$0xff] }
 0x6e9   :  { %8707 = vmatpush3.msra.mxu0 %v12672_v48  ;;  %8738 = vmatprep.mubr.msk.f32.mxu0 %vm9840_vm0, %v9839_v1 }
 0x6ea   :  { %8708 = vmatprep.subr.mxu0 %v9839_v1 }
 0x6eb   :  { %8709 = vmatpush3.msra.mxu0 %v12678_v19 }
 0x6ec   :  { %8710 = vmatprep.subr.mxu0 %v9839_v1 }
 0x6ed   :  { %8711 = vmatpush3.msra.mxu0 %v12682_v8 }
 0x6ee   :  { %8712 = vmatprep.subr.mxu0 %v9839_v1 }
 0x6ef   :  { %8713 = vmatpush3.msra.mxu0 %v12312_v17 }
 0x6f0   :  { %8714 = vmatprep.subr.mxu0 %v9839_v1 }
 0x6f1   :  { %v3580_v20 = vpop.f32.mrf.mxu1  ;;  %8715 = vmatpush3.msra.mxu0 %v12320_v46 }
 0x6f2   :  { %8716 = vmatprep.subr.mxu0 %v9839_v1 }
 0x6f3   :  { %v8355_v35 = vpop.f32.mrf.mxu1  ;;  %v3650_v0 = vpop.f32.mrf.mxu0  ;;  %8717 = vmatpush3.msra.mxu0 %v12328_v63 }
 0x6f4   :  { %v3651_v12 = vadd.f32 %v3650_v0, %v3580_v20  ;;  %8718 = vmatprep.subr.mxu0 %v9839_v1  ;;  %v13954_v0 = vld [vmem:[#allocation33_spill] sm:$0xff] }
 0x6f5   :  { %v8390_v28 = vpop.f32.mrf.mxu0  ;;  %8719 = vmatpush3.msra.mxu0 %v12336_v3 }
 0x6f6   :  { %v3654_v39 = vadd.f32 %v12696_v44, %v3651_v12  ;;  %8720 = vmatprep.subr.mxu0 %v9839_v1  ;;  %v12830_v28 = vld [vmem:[#allocation5 + $0x1c8] sm:$0xff] }
 0x6f7   :  { %8721 = vmatpush3.msra.mxu0 %v12350_v13 }
 0x6f8   :  { %9360 = vtanh.f32 %v3654_v39  ;;  %8722 = vmatprep.subr.mxu0 %v9839_v1 }
 0x6f9   :  { %8723 = vmatpush3.msra.mxu0 %v12358_v15 }
 0x6fa   :  { %8724 = vmatprep.subr.mxu0 %v9839_v1 }
 0x6fb   :  { %8725 = vmatpush3.msra.mxu0 %v12366_v42 }
 0x6fc   :  { %8726 = vmatprep.subr.mxu0 %v9839_v1 }
 0x6fd   :  { %8727 = vmatpush3.msra.mxu0 %v12374_v55 }
 0x6fe   :  { %8728 = vmatprep.subr.mxu0 %v9839_v1 }
 0x6ff   :  { %8729 = vmatpush3.msra.mxu0 %v12382_v58 }
 0x700   :  { %8730 = vmatprep.subr.mxu0 %v9839_v1 }
 0x701   :  { %8731 = vmatpush3.msra.mxu0 %v12390_v53 }
 0x702   :  { %8732 = vmatprep.subr.mxu0 %v9839_v1 }
 0x703   :  { %8733 = vmatpush3.msra.mxu0 %v12398_v56 }
 0x704   :  { %8734 = vmatprep.subr.mxu0 %v9839_v1 }
 0x705   :  { %v9361_v25 = vpop.eup %9360  ;;  %8735 = vmatpush3.msra.mxu0 %v12408_v61 }
 0x706   :  { %8634 = vmatmul.mubr.f32.vlgmr.msra.gmra.mxu1 %v9361_v25  ;;  %8736 = vmatprep.subr.mxu0 %v9839_v1 }
 0x707   :  { %8672 = vmatpush3.msra.mxu1 %v12716_v33  ;;  %8737 = vmatpush3.msra.mxu0 %v12416_v5 }
 0x708   :  { %8673 = vmatprep.subr.mxu1 %v9839_v1  ;;  %8739 = vmatmul.mubr.f32.vlgmr.msra.gmra.mxu0 %v9361_v25  ;;  %v13955_v25 = vld [vmem:[#allocation35_spill] sm:$0xff] }
 0x709   :  { %8776 = vmatprep.subr.mxu0 %v9839_v1  ;;  %8674 = vmatpush3.msra.mxu1 %v12722_v41 }
 0x70a   :  { %8777 = vmatpush3.msra.mxu0 %v12430_v6  ;;  %8675 = vmatprep.subr.mxu1 %v9839_v1  ;;  %v13937_v6 = vld [vmem:[#allocation16_spill] sm:$0xff] }
 0x70b   :  { %8778 = vmatprep.subr.mxu0 %v9839_v1  ;;  %8676 = vmatpush3.msra.mxu1 %v12297_v62 }
 0x70c   :  { %8779 = vmatpush3.msra.mxu0 %v12438_v54  ;;  %8677 = vmatprep.subr.mxu1 %v9839_v1 }
 0x70d   :  { %8780 = vmatprep.subr.mxu0 %v9839_v1  ;;  %8678 = vmatpush3.msra.mxu1 %v12303_v52  ;;  %v13935_v52 = vld [vmem:[#allocation31_spill] sm:$0xff] }
 0x70e   :  { %8781 = vmatpush3.msra.mxu0 %v12446_v2  ;;  %8679 = vmatprep.subr.mxu1 %v9839_v1  ;;  %v13936_v2 = vld [vmem:[#allocation18_spill] sm:$0xff] }
 0x70f   :  { %8782 = vmatprep.subr.mxu0 %v9839_v1  ;;  %8680 = vmatpush3.msra.mxu1 %v12309_v49 }
 0x710   :  { %8783 = vmatpush3.msra.mxu0 %v12454_v60  ;;  %8681 = vmatprep.subr.mxu1 %v9839_v1 }
 0x711   :  { %8784 = vmatprep.subr.mxu0 %v9839_v1  ;;  %8682 = vmatpush3.msra.mxu1 %v12317_v45 }
 0x712   :  { %8785 = vmatpush3.msra.mxu0 %v12462_v51  ;;  %8683 = vmatprep.subr.mxu1 %v9839_v1 }
 0x713   :  { %v3722_v62 = vpop.f32.mrf.mxu1  ;;  %8786 = vmatprep.subr.mxu0 %v9839_v1  ;;  %8684 = vmatpush3.msra.mxu1 %v12325_v43  ;;  %v13938_v43 = vld [vmem:[#allocation19_spill] sm:$0xff] }
 0x714   :  { %8787 = vmatpush3.msra.mxu0 %v13935_v52  ;;  %8685 = vmatprep.subr.mxu1 %v9839_v1 }
 0x715   :  { %v8425_v49 = vpop.f32.mrf.mxu1  ;;  %v3792_v60 = vpop.f32.mrf.mxu0  ;;  %8788 = vmatprep.subr.mxu0 %v9839_v1  ;;  %8686 = vmatpush3.msra.mxu1 %v13936_v2  ;;  %v12848_v2 = vld [vmem:[#allocation5 + $0x1b8] sm:$0xff] }
 0x716   :  { %v3793_v45 = vadd.f32 %v3792_v60, %v3722_v62  ;;  %8789 = vmatpush3.msra.mxu0 %v12478_v11  ;;  %8687 = vmatprep.subr.mxu1 %v9839_v1  ;;  %v13940_v11 = vld [vmem:[#allocation21_spill] sm:$0xff]  ;;  %v12839_v62 = vld [vmem:[%s13454_s6 + $0x2] ss:$0 sm:$0xff] }
 0x717   :  { %v8460_v51 = vpop.f32.mrf.mxu0  ;;  %8790 = vmatprep.subr.mxu0 %v9839_v1  ;;  %8688 = vmatpush3.msra.mxu1 %v13937_v6  ;;  %v12842_v49 = vld [vmem:[#allocation5 + $0x1c0] sm:$0xff]  ;;  %v13958_v6 = vld [vmem:[#allocation40_spill] sm:$0xff] }
 0x718   :  { %v3796_v54 = vadd.f32 %v13938_v43, %v3793_v45  ;;  %8791 = vmatpush3.msra.mxu0 %v12487_v57  ;;  %8689 = vmatprep.subr.mxu1 %v9839_v1  ;;  %v13941_v57 = vld [vmem:[#allocation20_spill] sm:$0xff]  ;;  %v13956_v60 = vld [vmem:[#allocation38_spill] sm:$0xff]  ;;  %v12860_v43 = vld [vmem:[#allocation5 + $0x1a8] sm:$0xff] }
 0x719   :  { %8792 = vmatprep.subr.mxu0 %v9839_v1  ;;  %8690 = vmatpush3.msra.mxu1 %v13939_v47  ;;  %v13957_v45 = vld [vmem:[#allocation36_spill] sm:$0xff]  ;;  %v12866_v47 = vld [vmem:[#allocation5 + $0x1a0] sm:$0xff] }
 0x71a   :  { %9362 = vtanh.f32 %v3796_v54  ;;  %8793 = vmatpush3.msra.mxu0 %v12495_v59  ;;  %8691 = vmatprep.subr.mxu1 %v9839_v1  ;;  %v13942_v59 = vld [vmem:[#allocation23_spill] sm:$0xff]  ;;  %v12854_v51 = vld [vmem:[#allocation5 + $0x1b0] sm:$0xff]  ;;  %v13959_v54 = vld [vmem:[#allocation37_spill] sm:$0xff]  ;;  %13960 = vst [vmem:[#allocation43_spill] sm:$0xff] %v12866_v47 }
 0x71b   :  { %8794 = vmatprep.subr.mxu0 %v9839_v1  ;;  %8692 = vmatpush3.msra.mxu1 %v13940_v11  ;;  %v13961_v11 = vld [vmem:[#allocation42_spill] sm:$0xff] }
 0x71c   :  { %8795 = vmatpush3.msra.mxu0 %v12503_v16  ;;  %8693 = vmatprep.subr.mxu1 %v9839_v1  ;;  %v13943_v16 = vld [vmem:[#allocation22_spill] sm:$0xff] }
 0x71d   :  { %8796 = vmatprep.subr.mxu0 %v9839_v1  ;;  %8694 = vmatpush3.msra.mxu1 %v13941_v57  ;;  %v12872_v57 = vld [vmem:[#allocation5 + $0x198] sm:$0xff] }
 0x71e   :  { %8797 = vmatpush3.msra.mxu0 %v12511_v4  ;;  %8695 = vmatprep.subr.mxu1 %v9839_v1  ;;  %v13944_v4 = vld [vmem:[#allocation25_spill] sm:$0xff]  ;;  %13962 = vst [vmem:[#allocation45_spill] sm:$0xff] %v12872_v57 }
 0x71f   :  { %8798 = vmatprep.subr.mxu0 %v9839_v1  ;;  %8696 = vmatpush3.msra.mxu1 %v13942_v59  ;;  %v13963_v59 = vld [vmem:[#allocation39_spill] sm:$0xff] }
 0x720   :  { %8799 = vmatpush3.msra.mxu0 %v12519_v22  ;;  %8697 = vmatprep.subr.mxu1 %v9839_v1  ;;  %v13946_v22 = vld [vmem:[#allocation24_spill] sm:$0xff] }
 0x721   :  { %8800 = vmatprep.subr.mxu0 %v9839_v1  ;;  %8698 = vmatpush3.msra.mxu1 %v13943_v16  ;;  %v12878_v16 = vld [vmem:[#allocation5 + $0x190] sm:$0xff] }
 0x722   :  { %8801 = vmatpush3.msra.mxu0 %v12527_v14  ;;  %8699 = vmatprep.subr.mxu1 %v9839_v1  ;;  %13964 = vst [vmem:[#allocation44_spill] sm:$0xff] %v12878_v16 }
 0x723   :  { %8802 = vmatprep.subr.mxu0 %v9839_v1  ;;  %8700 = vmatpush3.msra.mxu1 %v13944_v4  ;;  %v12886_v4 = vld [vmem:[#allocation5 + $0x188] sm:$0xff] }
 0x724   :  { %8803 = vmatpush3.msra.mxu0 %v13945_v24  ;;  %8701 = vmatprep.subr.mxu1 %v9839_v1 }
 0x725   :  { %8804 = vmatprep.subr.mxu0 %v9839_v1  ;;  %8702 = vmatpush3.msra.mxu1 %v13946_v22  ;;  %v12891_v22 = vld [vmem:[#allocation5 + $0x180] sm:$0xff] }
 0x726   :  { %8703 = vmatprep.mubr.msk.f32.mxu1 %vm9840_vm0, %v9839_v1  ;;  %8805 = vmatpush3.msra.mxu0 %v12545_v36 }
 0x727   :  { %v9363_v14 = vpop.eup %9362  ;;  %8741 = vmatprep.subr.mxu1 %v9839_v1  ;;  %8806 = vmatprep.subr.mxu0 %v9839_v1 }
 0x728   :  { %8704 = vmatmul.mubr.f32.vlgmr.msra.gmra.mxu1 %v9363_v14  ;;  %8807 = vmatpush3.msra.mxu0 %v12553_v9 }
 0x729   :  { %8742 = vmatpush3.msra.mxu1 %v13947_v26  ;;  %8808 = vmatprep.mubr.msk.f32.mxu0 %vm9840_vm0, %v9839_v1  ;;  %v12907_v26 = vld [vmem:[#allocation7 + $0x1e8] sm:$0xff] }
 0x72a   :  { %8743 = vmatprep.subr.mxu1 %v9839_v1  ;;  %8809 = vmatmul.mubr.f32.vlgmr.msra.gmra.mxu0 %v9363_v14  ;;  %v12894_v14 = vld [vmem:[#allocation7 + $0x1f8] sm:$0xff] }
 0x72b   :  { %8846 = vmatprep.subr.mxu0 %v9839_v1  ;;  %8744 = vmatpush3.msra.mxu1 %v13948_v31  ;;  %v12913_v31 = vld [vmem:[#allocation7 + $0x1e0] sm:$0xff] }
 0x72c   :  { %8847 = vmatpush3.msra.mxu0 %v12794_v37  ;;  %8745 = vmatprep.subr.mxu1 %v9839_v1 }
 0x72d   :  { %8848 = vmatprep.subr.mxu0 %v9839_v1  ;;  %8746 = vmatpush3.msra.mxu1 %v13949_v10  ;;  %v12919_v10 = vld [vmem:[#allocation7 + $0x1d8] sm:$0xff] }
 0x72e   :  { %8849 = vmatpush3.msra.mxu0 %v12800_v21  ;;  %8747 = vmatprep.subr.mxu1 %v9839_v1 }
 0x72f   :  { %8850 = vmatprep.subr.mxu0 %v9839_v1  ;;  %8748 = vmatpush3.msra.mxu1 %v13950_v23  ;;  %v12931_v23 = vld [vmem:[#allocation7 + $0x1c8] sm:$0xff] }
 0x730   :  { %8851 = vmatpush3.msra.mxu0 %v12806_v18  ;;  %8749 = vmatprep.subr.mxu1 %v9839_v1 }
 0x731   :  { %8852 = vmatprep.subr.mxu0 %v9839_v1  ;;  %8750 = vmatpush3.msra.mxu1 %v13951_v27 }
 0x732   :  { %8853 = vmatpush3.msra.mxu0 %v12812_v34  ;;  %8751 = vmatprep.subr.mxu1 %v9839_v1 }
 0x733   :  { %8854 = vmatprep.subr.mxu0 %v9839_v1  ;;  %8752 = vmatpush3.msra.mxu1 %v13952_v40 }
 0x734   :  { %8855 = vmatpush3.msra.mxu0 %v12818_v50  ;;  %8753 = vmatprep.subr.mxu1 %v9839_v1 }
 0x735   :  { %v3864_v32 = vpop.f32.mrf.mxu1  ;;  %8856 = vmatprep.subr.mxu0 %v9839_v1  ;;  %8754 = vmatpush3.msra.mxu1 %v13953_v38  ;;  %v12944_v38 = vld [vmem:[#allocation7 + $0x1b8] sm:$0xff] }
 0x736   :  { %8857 = vmatpush3.msra.mxu0 %v12824_v29  ;;  %8755 = vmatprep.subr.mxu1 %v9839_v1 }
 0x737   :  { %v8495_v20 = vpop.f32.mrf.mxu1  ;;  %v3934_v35 = vpop.f32.mrf.mxu0  ;;  %8858 = vmatprep.subr.mxu0 %v9839_v1  ;;  %8756 = vmatpush3.msra.mxu1 %v13954_v0  ;;  %v9729_v0 = vld [vmem:[#allocation7 + $0xa8] sm:$0xff] }
 0x738   :  { %v3935_v12 = vadd.f32 %v3934_v35, %v3864_v32  ;;  %8859 = vmatpush3.msra.mxu0 %v12830_v28  ;;  %8757 = vmatprep.subr.mxu1 %v9839_v1  ;;  %v12937_v32 = vld [vmem:[#allocation7 + $0x1c0] sm:$0xff]  ;;  %v12950_v20 = vld [vmem:[#allocation7 + $0x1b0] sm:$0xff] }
 0x739   :  { %v8530_v39 = vpop.f32.mrf.mxu0  ;;  %8860 = vmatprep.subr.mxu0 %v9839_v1  ;;  %8758 = vmatpush3.msra.mxu1 %v13955_v25  ;;  %v9728_v35 = vld [vmem:[#allocation7 + $0xb0] sm:$0xff] }
 0x73a   :  { %v3938_v52 = vadd.f32 %v12839_v62, %v3935_v12  ;;  %8861 = vmatpush3.msra.mxu0 %v12842_v49  ;;  %8759 = vmatprep.subr.mxu1 %v9839_v1  ;;  %v9730_v12 = vld [vmem:[#allocation7 + $0xa0] sm:$0xff]  ;;  %v9731_v39 = vld [vmem:[#allocation7 + $0x98] sm:$0xff]  ;;  %v9732_v25 = vld [vmem:[#allocation7 + $0x90] sm:$0xff] }
 0x73b   :  { %8862 = vmatprep.subr.mxu0 %v9839_v1  ;;  %8760 = vmatpush3.msra.mxu1 %v13956_v60  ;;  %v9734_v60 = vld [vmem:[#allocation7 + $0x80] sm:$0xff] }
 0x73c   :  { %9364 = vtanh.f32 %v3938_v52  ;;  %8863 = vmatpush3.msra.mxu0 %v12848_v2  ;;  %8761 = vmatprep.subr.mxu1 %v9839_v1  ;;  %v9733_v52 = vld [vmem:[#allocation7 + $0x88] sm:$0xff] }
 0x73d   :  { %8864 = vmatprep.subr.mxu0 %v9839_v1  ;;  %8762 = vmatpush3.msra.mxu1 %v13957_v45 }
 0x73e   :  { %8865 = vmatpush3.msra.mxu0 %v12854_v51  ;;  %8763 = vmatprep.subr.mxu1 %v9839_v1 }
 0x73f   :  { %8866 = vmatprep.subr.mxu0 %v9839_v1  ;;  %8764 = vmatpush3.msra.mxu1 %v13958_v6 }
 0x740   :  { %8867 = vmatpush3.msra.mxu0 %v12860_v43  ;;  %8765 = vmatprep.subr.mxu1 %v9839_v1 }
 0x741   :  { %8868 = vmatprep.subr.mxu0 %v9839_v1  ;;  %8766 = vmatpush3.msra.mxu1 %v13959_v54 }
 0x742   :  { %8869 = vmatpush3.msra.mxu0 %v12866_v47  ;;  %8767 = vmatprep.subr.mxu1 %v9839_v1 }
 0x743   :  { %8870 = vmatprep.subr.mxu0 %v9839_v1  ;;  %8768 = vmatpush3.msra.mxu1 %v13961_v11 }
 0x744   :  { %8871 = vmatpush3.msra.mxu0 %v12872_v57  ;;  %8769 = vmatprep.subr.mxu1 %v9839_v1 }
 0x745   :  { %8872 = vmatprep.subr.mxu0 %v9839_v1  ;;  %8770 = vmatpush3.msra.mxu1 %v13963_v59 }
 0x746   :  { %8873 = vmatpush3.msra.mxu0 %v12878_v16  ;;  %8771 = vmatprep.subr.mxu1 %v9839_v1 }
 0x747   :  { %8874 = vmatprep.subr.mxu0 %v9839_v1  ;;  %8772 = vmatpush3.msra.mxu1 %v12540_v7  ;;  %v12900_v7 = vld [vmem:[#allocation7 + $0x1f0] sm:$0xff] }
 0x748   :  { %8773 = vmatprep.mubr.msk.f32.mxu1 %vm9840_vm0, %v9839_v1  ;;  %8875 = vmatpush3.msra.mxu0 %v12886_v4 }
 0x749   :  { %v9365_v24 = vpop.eup %9364  ;;  %8811 = vmatprep.subr.mxu1 %v9839_v1  ;;  %8876 = vmatprep.subr.mxu0 %v9839_v1 }
 0x74a   :  { %8774 = vmatmul.mubr.f32.vlgmr.msra.gmra.mxu1 %v9365_v24  ;;  %8877 = vmatpush3.msra.mxu0 %v12891_v22 }
 0x74b   :  { %8812 = vmatpush3.msra.mxu1 %v12894_v14  ;;  %8878 = vmatprep.mubr.msk.f32.mxu0 %vm9840_vm0, %v9839_v1 }
 0x74c   :  { %8813 = vmatprep.subr.mxu1 %v9839_v1  ;;  %8879 = vmatmul.mubr.f32.vlgmr.msra.gmra.mxu0 %v9365_v24 }
 0x74d   :  { %8814 = vmatpush3.msra.mxu1 %v12900_v7  ;;  %8843 = vmatprep.mubr.msk.f32.mxu1 %vm9840_vm0, %v9839_v1 }
 0x74e   :  { %8815 = vmatprep.subr.mxu1 %v9839_v1  ;;  %8916 = vmatprep.subr.mxu0 %v9839_v1 }
 0x74f   :  { %8816 = vmatpush3.msra.mxu1 %v12907_v26  ;;  %8917 = vmatpush3.msra.mxu0 %v12672_v48  ;;  %v12925_v48 = vld [vmem:[#allocation7 + $0x1d0] sm:$0xff] }
 0x750   :  { %8817 = vmatprep.subr.mxu1 %v9839_v1  ;;  %8918 = vmatprep.subr.mxu0 %v9839_v1 }
 0x751   :  { %8818 = vmatpush3.msra.mxu1 %v12913_v31  ;;  %8919 = vmatpush3.msra.mxu0 %v12678_v19 }
 0x752   :  { %8819 = vmatprep.subr.mxu1 %v9839_v1  ;;  %8920 = vmatprep.subr.mxu0 %v9839_v1 }
 0x753   :  { %8820 = vmatpush3.msra.mxu1 %v12919_v10  ;;  %8921 = vmatpush3.msra.mxu0 %v12682_v8 }
 0x754   :  { %8821 = vmatprep.subr.mxu1 %v9839_v1  ;;  %8922 = vmatprep.subr.mxu0 %v9839_v1 }
 0x755   :  { %8822 = vmatpush3.msra.mxu1 %v12925_v48  ;;  %8923 = vmatpush3.msra.mxu0 %v12312_v17 }
 0x756   :  { %8823 = vmatprep.subr.mxu1 %v9839_v1  ;;  %8924 = vmatprep.subr.mxu0 %v9839_v1 }
 0x757   :  { %v4006_v19 = vpop.f32.mrf.mxu1  ;;  %8824 = vmatpush3.msra.mxu1 %v12931_v23  ;;  %8925 = vmatpush3.msra.mxu0 %v12320_v46 }
 0x758   :  { %v4076_v8 = vpop.f32.mrf.mxu0  ;;  %8825 = vmatprep.subr.mxu1 %v9839_v1  ;;  %8926 = vmatprep.subr.mxu0 %v9839_v1 }
 0x759   :  { %v8565_v27 = vpop.f32.mrf.mxu1  ;;  %v4077_v40 = vadd.f32 %v4076_v8, %v4006_v19  ;;  %8826 = vmatpush3.msra.mxu1 %v12937_v32  ;;  %8927 = vmatpush3.msra.mxu0 %v12328_v63  ;;  %v12956_v63 = vld [vmem:[#allocation7 + $0x1a8] sm:$0xff] }
 0x75a   :  { %v8600_v17 = vpop.f32.mrf.mxu0  ;;  %8827 = vmatprep.subr.mxu1 %v9839_v1  ;;  %8928 = vmatprep.subr.mxu0 %v9839_v1 }
 0x75b   :  { %v4080_v46 = vadd.f32 %v12594_v30, %v4077_v40  ;;  %8828 = vmatpush3.msra.mxu1 %v12944_v38  ;;  %8929 = vmatpush3.msra.mxu0 %v12336_v3  ;;  %v12962_v3 = vld [vmem:[#allocation7 + $0x1a0] sm:$0xff]  ;;  %v9725_v30 = vld [vmem:[#allocation7 + $0xc8] sm:$0xff]  ;;  %v13019_v40 = vld [vmem:[#allocation5 + $0x178] sm:$0xff] }
 0x75c   :  { %8829 = vmatprep.subr.mxu1 %v9839_v1  ;;  %8930 = vmatprep.subr.mxu0 %v9839_v1  ;;  %v13025_v17 = vld [vmem:[#allocation5 + $0x170] sm:$0xff] }
 0x75d   :  { %9366 = vtanh.f32 %v4080_v46  ;;  %8830 = vmatpush3.msra.mxu1 %v12950_v20  ;;  %8931 = vmatpush3.msra.mxu0 %v12350_v13  ;;  %v12968_v13 = vld [vmem:[#allocation7 + $0x198] sm:$0xff]  ;;  %v13033_v46 = vld [vmem:[#allocation5 + $0x160] sm:$0xff] }
 0x75e   :  { %8831 = vmatprep.subr.mxu1 %v9839_v1  ;;  %8932 = vmatprep.subr.mxu0 %v9839_v1 }
 0x75f   :  { %8832 = vmatpush3.msra.mxu1 %v12956_v63  ;;  %8933 = vmatpush3.msra.mxu0 %v12358_v15  ;;  %v12974_v15 = vld [vmem:[#allocation7 + $0x190] sm:$0xff] }
 0x760   :  { %8833 = vmatprep.subr.mxu1 %v9839_v1  ;;  %8934 = vmatprep.subr.mxu0 %v9839_v1 }
 0x761   :  { %8834 = vmatpush3.msra.mxu1 %v12962_v3  ;;  %8935 = vmatpush3.msra.mxu0 %v12366_v42  ;;  %v12980_v42 = vld [vmem:[#allocation7 + $0x188] sm:$0xff] }
 0x762   :  { %8835 = vmatprep.subr.mxu1 %v9839_v1  ;;  %8936 = vmatprep.subr.mxu0 %v9839_v1 }
 0x763   :  { %8836 = vmatpush3.msra.mxu1 %v12968_v13  ;;  %8937 = vmatpush3.msra.mxu0 %v12374_v55  ;;  %v12986_v55 = vld [vmem:[#allocation7 + $0x180] sm:$0xff] }
 0x764   :  { %8837 = vmatprep.subr.mxu1 %v9839_v1  ;;  %8938 = vmatprep.subr.mxu0 %v9839_v1 }
 0x765   :  { %8838 = vmatpush3.msra.mxu1 %v12974_v15  ;;  %8939 = vmatpush3.msra.mxu0 %v12382_v58 }
 0x766   :  { %8839 = vmatprep.subr.mxu1 %v9839_v1  ;;  %8940 = vmatprep.subr.mxu0 %v9839_v1 }
 0x767   :  { %8840 = vmatpush3.msra.mxu1 %v12980_v42  ;;  %8941 = vmatpush3.msra.mxu0 %v12390_v53  ;;  %v9721_v53 = vld [vmem:[#allocation7 + $0xe8] sm:$0xff] }
 0x768   :  { %8841 = vmatprep.subr.mxu1 %v9839_v1  ;;  %8942 = vmatprep.subr.mxu0 %v9839_v1 }
 0x769   :  { %8842 = vmatpush3.msra.mxu1 %v12986_v55  ;;  %8943 = vmatpush3.msra.mxu0 %v12398_v56  ;;  %v9722_v56 = vld [vmem:[#allocation7 + $0xe0] sm:$0xff] }
 0x76a   :  { %v9367_v58 = vpop.eup %9366  ;;  %8944 = vmatprep.subr.mxu0 %v9839_v1  ;;  %8948 = vmatprep.mubr.msk.f32.mxu0 %vm9840_vm0, %v9839_v1 }
 0x76b   :  { %8844 = vmatmul.mubr.f32.vlgmr.msra.gmra.mxu1 %v9367_v58  ;;  %8945 = vmatpush3.msra.mxu0 %v12408_v61  ;;  %v9723_v61 = vld [vmem:[#allocation7 + $0xd8] sm:$0xff] }
 0x76c   :  { %8946 = vmatprep.subr.mxu0 %v9839_v1  ;;  %8881 = vmatprep.subr.mxu1 %v9839_v1  ;;  %v13037_v58 = vld [vmem:[#allocation5 + $0x158] sm:$0xff] }
 0x76d   :  { %8947 = vmatpush3.msra.mxu0 %v12416_v5  ;;  %8882 = vmatpush3.msra.mxu1 %v12716_v33  ;;  %v9724_v5 = vld [vmem:[#allocation7 + $0xd0] sm:$0xff]  ;;  %v9726_v33 = vld [vmem:[#allocation7 + $0xc0] sm:$0xff] }
 0x76e   :  { %8986 = vmatprep.subr.mxu0 %v9839_v1  ;;  %8883 = vmatprep.subr.mxu1 %v9839_v1 }
 0x76f   :  { %8884 = vmatpush3.msra.mxu1 %v12722_v41  ;;  %8913 = vmatprep.mubr.msk.f32.mxu1 %vm9840_vm0, %v9839_v1  ;;  %v9727_v41 = vld [vmem:[#allocation7 + $0xb8] sm:$0xff] }
 0x770   :  { %8885 = vmatprep.subr.mxu1 %v9839_v1 }
 0x771   :  { %8886 = vmatpush3.msra.mxu1 %v9721_v53  ;;  %v13041_v53 = vld [vmem:[#allocation5 + $0x150] sm:$0xff] }
 0x772   :  { %8887 = vmatprep.subr.mxu1 %v9839_v1 }
 0x773   :  { %8888 = vmatpush3.msra.mxu1 %v9722_v56  ;;  %v13045_v56 = vld [vmem:[#allocation5 + $0x148] sm:$0xff] }
 0x774   :  { %8889 = vmatprep.subr.mxu1 %v9839_v1 }
 0x775   :  { %8890 = vmatpush3.msra.mxu1 %v9723_v61 }
 0x776   :  { %8891 = vmatprep.subr.mxu1 %v9839_v1 }
 0x777   :  { %8892 = vmatpush3.msra.mxu1 %v9724_v5  ;;  %v13049_v5 = vld [vmem:[#allocation5 + $0x140] sm:$0xff] }
 0x778   :  { %8893 = vmatprep.subr.mxu1 %v9839_v1 }
 0x779   :  { %8894 = vmatpush3.msra.mxu1 %v9725_v30 }
 0x77a   :  { %8895 = vmatprep.subr.mxu1 %v9839_v1 }
 0x77b   :  { %8896 = vmatpush3.msra.mxu1 %v9726_v33 }
 0x77c   :  { %8897 = vmatprep.subr.mxu1 %v9839_v1 }
 0x77d   :  { %8898 = vmatpush3.msra.mxu1 %v9727_v41 }
 0x77e   :  { %8899 = vmatprep.subr.mxu1 %v9839_v1 }
 0x77f   :  { %8900 = vmatpush3.msra.mxu1 %v9728_v35  ;;  %v13055_v35 = vld [vmem:[#allocation5 + $0x138] sm:$0xff] }
 0x780   :  { %8901 = vmatprep.subr.mxu1 %v9839_v1 }
 0x781   :  { %8902 = vmatpush3.msra.mxu1 %v9729_v0  ;;  %v13061_v0 = vld [vmem:[%s13454_s6 + $0x1] ss:$0 sm:$0xff] }
 0x782   :  { %8903 = vmatprep.subr.mxu1 %v9839_v1 }
 0x783   :  { %8904 = vmatpush3.msra.mxu1 %v9730_v12 }
 0x784   :  { %8905 = vmatprep.subr.mxu1 %v9839_v1 }
 0x785   :  { %8906 = vmatpush3.msra.mxu1 %v9731_v39 }
 0x786   :  { %8907 = vmatprep.subr.mxu1 %v9839_v1 }
 0x787   :  { %8908 = vmatpush3.msra.mxu1 %v9732_v25  ;;  %v13065_v25 = vld [vmem:[#allocation5 + $0x130] sm:$0xff] }
 0x788   :  { %8909 = vmatprep.subr.mxu1 %v9839_v1 }
 0x789   :  { %8910 = vmatpush3.msra.mxu1 %v9733_v52  ;;  %v13069_v52 = vld [vmem:[#allocation5 + $0x128] sm:$0xff] }
 0x78a   :  { %8911 = vmatprep.subr.mxu1 %v9839_v1 }
 0x78b   :  { %8912 = vmatpush3.msra.mxu1 %v9734_v60  ;;  %v13073_v60 = vld [vmem:[#allocation5 + $0x120] sm:$0xff] }
 0x78c   :  { %8951 = vmatprep.subr.mxu1 %v9839_v1 }
 0x7a8   :  { %v4221_v45 = vpop.f32.mrf.mxu0 }
 0x7aa   :  { %v8670_v6 = vpop.f32.mrf.mxu0 }
 0x7ab   :  { %v13081_v6 = vld [vmem:[#allocation5 + $0x110] sm:$0xff] }
 0x7c6   :  { %v4148_v54 = vpop.f32.mrf.mxu1 }
 0x7c7   :  { %v4222_v11 = vadd.f32 %v4221_v45, %v4148_v54  ;;  %v13077_v45 = vld [vmem:[#allocation5 + $0x118] sm:$0xff] }
 0x7c8   :  { %v8635_v59 = vpop.f32.mrf.mxu1  ;;  %v4363_v24 = vpop.f32.mrf.mxu0 }
 0x7c9   :  { %v4225_v19 = vadd.f32 %v12696_v44, %v4222_v11  ;;  %v13029_v44 = vld [vmem:[#allocation5 + $0x168] sm:$0xff]  ;;  %v13089_v11 = vld [vmem:[#allocation7 + $0x178] sm:$0xff]  ;;  %v13107_v59 = vld [vmem:[#allocation7 + $0x160] sm:$0xff] }
 0x7ca   :  { %v8740_v8 = vpop.f32.mrf.mxu0 }
 0x7cb   :  { %9368 = vtanh.f32 %v4225_v19  ;;  %v13119_v19 = vld [vmem:[#allocation7 + $0x150] sm:$0xff]  ;;  %v13125_v8 = vld [vmem:[#allocation7 + $0x148] sm:$0xff] }
 0x7d8   :  { %v9369_v27 = vpop.eup %9368 }
 0x7d9   :  { %8949 = vmatmul.mubr.f32.vlgmr.msra.gmra.mxu0 %v9369_v27 }
 0x7da   :  { %8987 = vmatpush3.msra.mxu0 %v13019_v40  ;;  %9018 = vmatprep.mubr.msk.f32.mxu0 %vm9840_vm0, %v9839_v1 }
 0x7db   :  { %8988 = vmatprep.subr.mxu0 %v9839_v1 }
 0x7dc   :  { %8989 = vmatpush3.msra.mxu0 %v13025_v17 }
 0x7dd   :  { %8990 = vmatprep.subr.mxu0 %v9839_v1 }
 0x7de   :  { %8991 = vmatpush3.msra.mxu0 %v13029_v44 }
 0x7df   :  { %8992 = vmatprep.subr.mxu0 %v9839_v1 }
 0x7e0   :  { %8993 = vmatpush3.msra.mxu0 %v13033_v46 }
 0x7e1   :  { %8994 = vmatprep.subr.mxu0 %v9839_v1 }
 0x7e2   :  { %8995 = vmatpush3.msra.mxu0 %v13037_v58 }
 0x7e3   :  { %8996 = vmatprep.subr.mxu0 %v9839_v1 }
 0x7e4   :  { %8997 = vmatpush3.msra.mxu0 %v13041_v53 }
 0x7e5   :  { %8998 = vmatprep.subr.mxu0 %v9839_v1 }
 0x7e6   :  { %8999 = vmatpush3.msra.mxu0 %v13045_v56 }
 0x7e7   :  { %9000 = vmatprep.subr.mxu0 %v9839_v1 }
 0x7e8   :  { %v4293_v61 = vpop.f32.mrf.mxu1  ;;  %9001 = vmatpush3.msra.mxu0 %v13049_v5 }
 0x7e9   :  { %v4364_v30 = vadd.f32 %v4363_v24, %v4293_v61  ;;  %9002 = vmatprep.subr.mxu0 %v9839_v1  ;;  %v13113_v24 = vld [vmem:[#allocation7 + $0x158] sm:$0xff]  ;;  %v13131_v61 = vld [vmem:[#allocation7 + $0x140] sm:$0xff] }
 0x7ea   :  { %v8705_v33 = vpop.f32.mrf.mxu1  ;;  %v13053_v41 = vpop.f32.mrf.mxu0  ;;  %9003 = vmatpush3.msra.mxu0 %v13055_v35 }
 0x7eb   :  { %v4367_v12 = vadd.f32 %v13061_v0, %v4364_v30  ;;  %9004 = vmatprep.subr.mxu0 %v9839_v1 }
 0x7ec   :  { %v8810_v39 = vpop.f32.mrf.mxu0  ;;  %9005 = vmatpush3.msra.mxu0 %v13065_v25 }
 0x7ed   :  { %9370 = vtanh.f32 %v4367_v12  ;;  %9006 = vmatprep.subr.mxu0 %v9839_v1  ;;  %v13140_v39 = vld [vmem:[#allocation7 + $0x138] sm:$0xff] }
 0x7ee   :  { %9007 = vmatpush3.msra.mxu0 %v13069_v52 }
 0x7ef   :  { %9008 = vmatprep.subr.mxu0 %v9839_v1 }
 0x7f0   :  { %9009 = vmatpush3.msra.mxu0 %v13073_v60 }
 0x7f1   :  { %9010 = vmatprep.subr.mxu0 %v9839_v1 }
 0x7f2   :  { %9011 = vmatpush3.msra.mxu0 %v13077_v45 }
 0x7f3   :  { %9012 = vmatprep.subr.mxu0 %v9839_v1 }
 0x7f4   :  { %9013 = vmatpush3.msra.mxu0 %v13081_v6 }
 0x7f5   :  { %9014 = vmatprep.subr.mxu0 %v9839_v1 }
 0x7f6   :  { %9015 = vmatpush3.msra.mxu0 %v12545_v36  ;;  %v13095_v36 = vld [vmem:[#allocation7 + $0x170] sm:$0xff] }
 0x7f7   :  { %9016 = vmatprep.subr.mxu0 %v9839_v1 }
 0x7f8   :  { %9017 = vmatpush3.msra.mxu0 %v12553_v9  ;;  %v13101_v9 = vld [vmem:[#allocation7 + $0x168] sm:$0xff] }
 0x7f9   :  { %9056 = vmatprep.subr.mxu0 %v9839_v1 }
 0x7fa   :  { %v9371_v54 = vpop.eup %9370 }
 0x7fb   :  { %8914 = vmatmul.mubr.f32.vlgmr.msra.gmra.mxu1 %v9371_v54  ;;  %9019 = vmatmul.mubr.f32.vlgmr.msra.gmra.mxu0 %v9371_v54 }
 0x7fc   :  { %8952 = vmatpush3.msra.mxu1 %v13089_v11  ;;  %9057 = vmatpush3.msra.mxu0 %v12794_v37 }
 0x7fd   :  { %8953 = vmatprep.subr.mxu1 %v9839_v1  ;;  %9058 = vmatprep.subr.mxu0 %v9839_v1 }
 0x7fe   :  { %8954 = vmatpush3.msra.mxu1 %v13095_v36  ;;  %9059 = vmatpush3.msra.mxu0 %v12800_v21 }
 0x7ff   :  { %8955 = vmatprep.subr.mxu1 %v9839_v1  ;;  %9060 = vmatprep.subr.mxu0 %v9839_v1 }
 0x800   :  { %8956 = vmatpush3.msra.mxu1 %v13101_v9  ;;  %9061 = vmatpush3.msra.mxu0 %v12806_v18 }
 0x801   :  { %8957 = vmatprep.subr.mxu1 %v9839_v1  ;;  %9062 = vmatprep.subr.mxu0 %v9839_v1 }
 0x802   :  { %8958 = vmatpush3.msra.mxu1 %v13107_v59  ;;  %9063 = vmatpush3.msra.mxu0 %v12812_v34 }
 0x803   :  { %8959 = vmatprep.subr.mxu1 %v9839_v1  ;;  %9064 = vmatprep.subr.mxu0 %v9839_v1 }
 0x804   :  { %8960 = vmatpush3.msra.mxu1 %v13113_v24  ;;  %9065 = vmatpush3.msra.mxu0 %v12818_v50 }
 0x805   :  { %8961 = vmatprep.subr.mxu1 %v9839_v1  ;;  %9066 = vmatprep.subr.mxu0 %v9839_v1 }
 0x806   :  { %8962 = vmatpush3.msra.mxu1 %v13119_v19  ;;  %9067 = vmatpush3.msra.mxu0 %v12824_v29 }
 0x807   :  { %8963 = vmatprep.subr.mxu1 %v9839_v1  ;;  %9068 = vmatprep.subr.mxu0 %v9839_v1 }
 0x808   :  { %8964 = vmatpush3.msra.mxu1 %v13125_v8  ;;  %9069 = vmatpush3.msra.mxu0 %v12830_v28 }
 0x809   :  { %8965 = vmatprep.subr.mxu1 %v9839_v1  ;;  %9070 = vmatprep.subr.mxu0 %v9839_v1 }
 0x80a   :  { %v4435_v27 = vpop.f32.mrf.mxu1  ;;  %8966 = vmatpush3.msra.mxu1 %v13131_v61  ;;  %9071 = vmatpush3.msra.mxu0 %v12842_v49 }
 0x80b   :  { %v4506_v30 = vadd.f32 %v13053_v41, %v4435_v27  ;;  %8967 = vmatprep.subr.mxu1 %v9839_v1  ;;  %9072 = vmatprep.subr.mxu0 %v9839_v1  ;;  %v13147_v27 = vld [vmem:[#allocation7 + $0x130] sm:$0xff] }
 0x80c   :  { %v8775_v33 = vpop.f32.mrf.mxu1  ;;  %v13138_v12 = vpop.f32.mrf.mxu0  ;;  %8968 = vmatpush3.msra.mxu1 %v13140_v39  ;;  %9073 = vmatpush3.msra.mxu0 %v12848_v2 }
 0x80d   :  { %v4509_v54 = vadd.f32 %v12839_v62, %v4506_v30  ;;  %8969 = vmatprep.subr.mxu1 %v9839_v1  ;;  %9074 = vmatprep.subr.mxu0 %v9839_v1  ;;  %v13153_v33 = vld [vmem:[#allocation7 + $0x128] sm:$0xff]  ;;  %v13159_v30 = vld [vmem:[#allocation7 + $0x120] sm:$0xff] }
 0x80e   :  { %v8880_v41 = vpop.f32.mrf.mxu0  ;;  %8970 = vmatpush3.msra.mxu1 %v13147_v27  ;;  %9075 = vmatpush3.msra.mxu0 %v12854_v51 }
 0x80f   :  { %9372 = vtanh.f32 %v4509_v54  ;;  %8971 = vmatprep.subr.mxu1 %v9839_v1  ;;  %9076 = vmatprep.subr.mxu0 %v9839_v1  ;;  %v13165_v54 = vld [vmem:[#allocation7 + $0x118] sm:$0xff]  ;;  %v13171_v41 = vld [vmem:[#allocation7 + $0x110] sm:$0xff] }
 0x810   :  { %8972 = vmatpush3.msra.mxu1 %v13153_v33  ;;  %9077 = vmatpush3.msra.mxu0 %v12860_v43 }
 0x811   :  { %8973 = vmatprep.subr.mxu1 %v9839_v1  ;;  %9078 = vmatprep.subr.mxu0 %v9839_v1 }
 0x812   :  { %8974 = vmatpush3.msra.mxu1 %v13159_v30  ;;  %9079 = vmatpush3.msra.mxu0 %v12866_v47  ;;  %v13177_v47 = vld [vmem:[#allocation7 + $0x108] sm:$0xff] }
 0x813   :  { %8975 = vmatprep.subr.mxu1 %v9839_v1  ;;  %9080 = vmatprep.subr.mxu0 %v9839_v1 }
 0x814   :  { %8976 = vmatpush3.msra.mxu1 %v13165_v54  ;;  %9081 = vmatpush3.msra.mxu0 %v12872_v57  ;;  %v13183_v57 = vld [vmem:[#allocation7 + $0x100] sm:$0xff] }
 0x815   :  { %8977 = vmatprep.subr.mxu1 %v9839_v1  ;;  %9082 = vmatprep.subr.mxu0 %v9839_v1 }
 0x816   :  { %8978 = vmatpush3.msra.mxu1 %v13171_v41  ;;  %9083 = vmatpush3.msra.mxu0 %v12878_v16 }
 0x817   :  { %8979 = vmatprep.subr.mxu1 %v9839_v1  ;;  %9084 = vmatprep.subr.mxu0 %v9839_v1 }
 0x818   :  { %8980 = vmatpush3.msra.mxu1 %v13177_v47  ;;  %9085 = vmatpush3.msra.mxu0 %v12886_v4 }
 0x819   :  { %8981 = vmatprep.subr.mxu1 %v9839_v1  ;;  %9086 = vmatprep.subr.mxu0 %v9839_v1 }
 0x81a   :  { %8982 = vmatpush3.msra.mxu1 %v13183_v57  ;;  %8983 = vmatprep.mubr.msk.f32.mxu1 %vm9840_vm0, %v9839_v1 }
 0x81b   :  { %9087 = vmatpush3.msra.mxu0 %v12891_v22  ;;  %9088 = vmatprep.mubr.msk.f32.mxu0 %vm9840_vm0, %v9839_v1 }
 0x81c   :  { %v9373_v16 = vpop.eup %9372  ;;  %9021 = vmatprep.subr.mxu1 %v9839_v1  ;;  %9126 = vmatprep.subr.mxu0 %v9839_v1 }
 0x81d   :  { %8984 = vmatmul.mubr.f32.vlgmr.msra.gmra.mxu1 %v9373_v16  ;;  %9089 = vmatmul.mubr.f32.vlgmr.msra.gmra.mxu0 %v9373_v16 }
 0x81e   :  { %9022 = vmatpush3.msra.mxu1 %v12894_v14  ;;  %9053 = vmatprep.mubr.msk.f32.mxu1 %vm9840_vm0, %v9839_v1 }
 0x81f   :  { %9023 = vmatprep.subr.mxu1 %v9839_v1  ;;  %9127 = vmatpush3.msra.mxu0 %v13019_v40 }
 0x820   :  { %9024 = vmatpush3.msra.mxu1 %v12900_v7  ;;  %9128 = vmatprep.subr.mxu0 %v9839_v1 }
 0x821   :  { %9025 = vmatprep.subr.mxu1 %v9839_v1  ;;  %9129 = vmatpush3.msra.mxu0 %v13025_v17 }
 0x822   :  { %9026 = vmatpush3.msra.mxu1 %v12907_v26  ;;  %9130 = vmatprep.subr.mxu0 %v9839_v1 }
 0x823   :  { %9027 = vmatprep.subr.mxu1 %v9839_v1  ;;  %9131 = vmatpush3.msra.mxu0 %v13029_v44  ;;  %v13230_v44 = vld [vmem:[%s13454_s6 + $0x3] ss:$0 sm:$0xff] }
 0x824   :  { %9028 = vmatpush3.msra.mxu1 %v12913_v31  ;;  %9132 = vmatprep.subr.mxu0 %v9839_v1 }
 0x825   :  { %9029 = vmatprep.subr.mxu1 %v9839_v1  ;;  %9133 = vmatpush3.msra.mxu0 %v13033_v46 }
 0x826   :  { %9030 = vmatpush3.msra.mxu1 %v12919_v10  ;;  %9134 = vmatprep.subr.mxu0 %v9839_v1 }
 0x827   :  { %9031 = vmatprep.subr.mxu1 %v9839_v1  ;;  %9135 = vmatpush3.msra.mxu0 %v13037_v58  ;;  %v9767_v58 = vld [vmem:[#allocation5 + $0x108] sm:$0xff] }
 0x828   :  { %9032 = vmatpush3.msra.mxu1 %v12925_v48  ;;  %9136 = vmatprep.subr.mxu0 %v9839_v1 }
 0x829   :  { %9033 = vmatprep.subr.mxu1 %v9839_v1  ;;  %9137 = vmatpush3.msra.mxu0 %v13041_v53 }
 0x82a   :  { %9034 = vmatpush3.msra.mxu1 %v12931_v23  ;;  %9138 = vmatprep.subr.mxu0 %v9839_v1 }
 0x82b   :  { %v4577_v16 = vpop.f32.mrf.mxu1  ;;  %9035 = vmatprep.subr.mxu1 %v9839_v1  ;;  %9139 = vmatpush3.msra.mxu0 %v13045_v56  ;;  %v9768_v56 = vld [vmem:[#allocation5 + $0x100] sm:$0xff] }
 0x82c   :  { %v4648_v40 = vadd.f32 %v13138_v12, %v4577_v16  ;;  %9036 = vmatpush3.msra.mxu1 %v12937_v32  ;;  %9140 = vmatprep.subr.mxu0 %v9839_v1  ;;  %v5545_v12 = vld [vmem:[#allocation2] ss:$0 sm:$0xff] }
 0x82d   :  { %v8845_v17 = vpop.f32.mrf.mxu1  ;;  %9037 = vmatprep.subr.mxu1 %v9839_v1  ;;  %9141 = vmatpush3.msra.mxu0 %v13049_v5 }
 0x82e   :  { %v4651_v46 = vadd.f32 %v13230_v44, %v4648_v40  ;;  %9038 = vmatpush3.msra.mxu1 %v12944_v38  ;;  %9142 = vmatprep.subr.mxu0 %v9839_v1 }
 0x82f   :  { %9039 = vmatprep.subr.mxu1 %v9839_v1  ;;  %9143 = vmatpush3.msra.mxu0 %v13055_v35 }
 0x830   :  { %9374 = vtanh.f32 %v4651_v46  ;;  %9040 = vmatpush3.msra.mxu1 %v12950_v20  ;;  %9144 = vmatprep.subr.mxu0 %v9839_v1 }
 0x831   :  { %9041 = vmatprep.subr.mxu1 %v9839_v1  ;;  %9145 = vmatpush3.msra.mxu0 %v13065_v25 }
 0x832   :  { %9042 = vmatpush3.msra.mxu1 %v12956_v63  ;;  %9146 = vmatprep.subr.mxu0 %v9839_v1 }
 0x833   :  { %9043 = vmatprep.subr.mxu1 %v9839_v1  ;;  %9147 = vmatpush3.msra.mxu0 %v13069_v52 }
 0x834   :  { %9044 = vmatpush3.msra.mxu1 %v12962_v3  ;;  %9148 = vmatprep.subr.mxu0 %v9839_v1 }
 0x835   :  { %9045 = vmatprep.subr.mxu1 %v9839_v1  ;;  %9149 = vmatpush3.msra.mxu0 %v13073_v60 }
 0x836   :  { %9046 = vmatpush3.msra.mxu1 %v12968_v13  ;;  %9150 = vmatprep.subr.mxu0 %v9839_v1 }
 0x837   :  { %9047 = vmatprep.subr.mxu1 %v9839_v1  ;;  %9151 = vmatpush3.msra.mxu0 %v13077_v45 }
 0x838   :  { %9048 = vmatpush3.msra.mxu1 %v12974_v15  ;;  %9152 = vmatprep.subr.mxu0 %v9839_v1 }
 0x839   :  { %9049 = vmatprep.subr.mxu1 %v9839_v1  ;;  %9153 = vmatpush3.msra.mxu0 %v13081_v6 }
 0x83a   :  { %9050 = vmatpush3.msra.mxu1 %v12980_v42  ;;  %9154 = vmatprep.subr.mxu0 %v9839_v1 }
 0x83b   :  { %9051 = vmatprep.subr.mxu1 %v9839_v1  ;;  %9155 = vmatpush3.msra.mxu0 %v9767_v58 }
 0x83c   :  { %9052 = vmatpush3.msra.mxu1 %v12986_v55  ;;  %9156 = vmatprep.subr.mxu0 %v9839_v1 }
 0x83d   :  { %v9375_v53 = vpop.eup %9374  ;;  %9157 = vmatpush3.msra.mxu0 %v9768_v56  ;;  %9158 = vmatprep.mubr.msk.f32.mxu0 %vm9840_vm0, %v9839_v1 }
 0x83e   :  { %9054 = vmatmul.mubr.f32.vlgmr.msra.gmra.mxu1 %v9375_v53  ;;  %9091 = vmatprep.subr.mxu1 %v9839_v1 }
 0x83f   :  { %9196 = vmatprep.subr.mxu0 %v9839_v1  ;;  %9092 = vmatpush3.msra.mxu1 %v13089_v11 }
 0x840   :  { %9093 = vmatprep.subr.mxu1 %v9839_v1  ;;  %9123 = vmatprep.mubr.msk.f32.mxu1 %vm9840_vm0, %v9839_v1 }
 0x841   :  { %9094 = vmatpush3.msra.mxu1 %v13095_v36 }
 0x842   :  { %9095 = vmatprep.subr.mxu1 %v9839_v1 }
 0x843   :  { %9096 = vmatpush3.msra.mxu1 %v13101_v9 }
 0x844   :  { %9097 = vmatprep.subr.mxu1 %v9839_v1 }
 0x845   :  { %9098 = vmatpush3.msra.mxu1 %v13107_v59 }
 0x846   :  { %9099 = vmatprep.subr.mxu1 %v9839_v1 }
 0x847   :  { %9100 = vmatpush3.msra.mxu1 %v13113_v24 }
 0x848   :  { %9101 = vmatprep.subr.mxu1 %v9839_v1 }
 0x849   :  { %9102 = vmatpush3.msra.mxu1 %v13119_v19  ;;  %v13965_v19 = vld [vmem:[#allocation43_spill] sm:$0xff] }
 0x84a   :  { %9103 = vmatprep.subr.mxu1 %v9839_v1 }
 0x84b   :  { %9104 = vmatpush3.msra.mxu1 %v13125_v8  ;;  %v13966_v8 = vld [vmem:[#allocation45_spill] sm:$0xff] }
 0x84c   :  { %9105 = vmatprep.subr.mxu1 %v9839_v1 }
 0x84d   :  { %9106 = vmatpush3.msra.mxu1 %v13131_v61 }
 0x84e   :  { %9107 = vmatprep.subr.mxu1 %v9839_v1 }
 0x84f   :  { %9108 = vmatpush3.msra.mxu1 %v13140_v39 }
 0x850   :  { %9109 = vmatprep.subr.mxu1 %v9839_v1 }
 0x851   :  { %9110 = vmatpush3.msra.mxu1 %v13147_v27 }
 0x852   :  { %9111 = vmatprep.subr.mxu1 %v9839_v1 }
 0x853   :  { %9112 = vmatpush3.msra.mxu1 %v13153_v33 }
 0x854   :  { %9113 = vmatprep.subr.mxu1 %v9839_v1 }
 0x855   :  { %9114 = vmatpush3.msra.mxu1 %v13159_v30 }
 0x856   :  { %9115 = vmatprep.subr.mxu1 %v9839_v1 }
 0x857   :  { %9116 = vmatpush3.msra.mxu1 %v13165_v54 }
 0x858   :  { %9117 = vmatprep.subr.mxu1 %v9839_v1 }
 0x859   :  { %9118 = vmatpush3.msra.mxu1 %v13171_v41 }
 0x85a   :  { %9119 = vmatprep.subr.mxu1 %v9839_v1 }
 0x85b   :  { %9120 = vmatpush3.msra.mxu1 %v13177_v47 }
 0x85c   :  { %9121 = vmatprep.subr.mxu1 %v9839_v1 }
 0x85d   :  { %9122 = vmatpush3.msra.mxu1 %v13183_v57 }
 0x85e   :  { %9161 = vmatprep.subr.mxu1 %v9839_v1 }
 0x899   :  { %v4789_v5 = vpop.f32.mrf.mxu0 }
 0x89b   :  { %v8950_v35 = vpop.f32.mrf.mxu0 }
 0x8bb   :  { %v4719_v25 = vpop.f32.mrf.mxu1  ;;  %v4931_v52 = vpop.f32.mrf.mxu0 }
 0x8bc   :  { %v4790_v60 = vadd.f32 %v4789_v5, %v4719_v25 }
 0x8bd   :  { %v8915_v45 = vpop.f32.mrf.mxu1  ;;  %v9020_v6 = vpop.f32.mrf.mxu0 }
 0x8be   :  { %v4793_v11 = vadd.f32 %v13061_v0, %v4790_v60 }
 0x8c0   :  { %9376 = vtanh.f32 %v4793_v11 }
 0x8cd   :  { %v9377_v36 = vpop.eup %9376 }
 0x8ce   :  { %9159 = vmatmul.mubr.f32.vlgmr.msra.gmra.mxu0 %v9377_v36 }
 0x8cf   :  { %9197 = vmatpush3.msra.mxu0 %v12794_v37  ;;  %9228 = vmatprep.mubr.msk.f32.mxu0 %vm9840_vm0, %v9839_v1 }
 0x8d0   :  { %9198 = vmatprep.subr.mxu0 %v9839_v1 }
 0x8d1   :  { %9199 = vmatpush3.msra.mxu0 %v12800_v21 }
 0x8d2   :  { %9200 = vmatprep.subr.mxu0 %v9839_v1 }
 0x8d3   :  { %9201 = vmatpush3.msra.mxu0 %v12806_v18 }
 0x8d4   :  { %9202 = vmatprep.subr.mxu0 %v9839_v1 }
 0x8d5   :  { %9203 = vmatpush3.msra.mxu0 %v12812_v34 }
 0x8d6   :  { %9204 = vmatprep.subr.mxu0 %v9839_v1 }
 0x8d7   :  { %9205 = vmatpush3.msra.mxu0 %v12818_v50 }
 0x8d8   :  { %9206 = vmatprep.subr.mxu0 %v9839_v1 }
 0x8d9   :  { %9207 = vmatpush3.msra.mxu0 %v12824_v29 }
 0x8da   :  { %9208 = vmatprep.subr.mxu0 %v9839_v1 }
 0x8db   :  { %9209 = vmatpush3.msra.mxu0 %v12830_v28 }
 0x8dc   :  { %9210 = vmatprep.subr.mxu0 %v9839_v1 }
 0x8dd   :  { %v4861_v47 = vpop.f32.mrf.mxu1  ;;  %v5073_v57 = vpop.f32.mrf.mxu0  ;;  %9211 = vmatpush3.msra.mxu0 %v12842_v49 }
 0x8de   :  { %v4932_v0 = vadd.f32 %v4931_v52, %v4861_v47  ;;  %9212 = vmatprep.subr.mxu0 %v9839_v1 }
 0x8df   :  { %v8985_v9 = vpop.f32.mrf.mxu1  ;;  %v9090_v59 = vpop.f32.mrf.mxu0  ;;  %9213 = vmatpush3.msra.mxu0 %v12848_v2 }
 0x8e0   :  { %v4935_v24 = vadd.f32 %v12839_v62, %v4932_v0  ;;  %9214 = vmatprep.subr.mxu0 %v9839_v1  ;;  %v13967_v62 = vld [vmem:[#allocation44_spill] sm:$0xff] }
 0x8e1   :  { %9215 = vmatpush3.msra.mxu0 %v12854_v51 }
 0x8e2   :  { %9378 = vtanh.f32 %v4935_v24  ;;  %9216 = vmatprep.subr.mxu0 %v9839_v1 }
 0x8e3   :  { %9217 = vmatpush3.msra.mxu0 %v12860_v43 }
 0x8e4   :  { %9218 = vmatprep.subr.mxu0 %v9839_v1 }
 0x8e5   :  { %9219 = vmatpush3.msra.mxu0 %v13965_v19 }
 0x8e6   :  { %9220 = vmatprep.subr.mxu0 %v9839_v1 }
 0x8e7   :  { %9221 = vmatpush3.msra.mxu0 %v13966_v8 }
 0x8e8   :  { %9222 = vmatprep.subr.mxu0 %v9839_v1 }
 0x8e9   :  { %9223 = vmatpush3.msra.mxu0 %v13967_v62 }
 0x8ea   :  { %9224 = vmatprep.subr.mxu0 %v9839_v1 }
 0x8eb   :  { %9225 = vmatpush3.msra.mxu0 %v12886_v4 }
 0x8ec   :  { %9226 = vmatprep.subr.mxu0 %v9839_v1 }
 0x8ed   :  { %9227 = vmatpush3.msra.mxu0 %v12891_v22 }
 0x8ee   :  { %9266 = vmatprep.subr.mxu0 %v9839_v1 }
 0x8ef   :  { %v9379_v61 = vpop.eup %9378 }
 0x8f0   :  { %9124 = vmatmul.mubr.f32.vlgmr.msra.gmra.mxu1 %v9379_v61  ;;  %9229 = vmatmul.mubr.f32.vlgmr.msra.gmra.mxu0 %v9379_v61 }
 0x8f1   :  { %9162 = vmatpush3.msra.mxu1 %v12894_v14  ;;  %9193 = vmatprep.mubr.msk.f32.mxu1 %vm9840_vm0, %v9839_v1 }
 0x8f2   :  { %9163 = vmatprep.subr.mxu1 %v9839_v1  ;;  %9267 = vmatpush3.msra.mxu0 %v12794_v37 }
 0x8f3   :  { %9164 = vmatpush3.msra.mxu1 %v12900_v7  ;;  %9268 = vmatprep.subr.mxu0 %v9839_v1 }
 0x8f4   :  { %9165 = vmatprep.subr.mxu1 %v9839_v1  ;;  %9269 = vmatpush3.msra.mxu0 %v12800_v21 }
 0x8f5   :  { %9166 = vmatpush3.msra.mxu1 %v12907_v26  ;;  %9270 = vmatprep.subr.mxu0 %v9839_v1 }
 0x8f6   :  { %9167 = vmatprep.subr.mxu1 %v9839_v1  ;;  %9271 = vmatpush3.msra.mxu0 %v12806_v18 }
 0x8f7   :  { %9168 = vmatpush3.msra.mxu1 %v12913_v31  ;;  %9272 = vmatprep.subr.mxu0 %v9839_v1 }
 0x8f8   :  { %9169 = vmatprep.subr.mxu1 %v9839_v1  ;;  %9273 = vmatpush3.msra.mxu0 %v12812_v34 }
 0x8f9   :  { %9170 = vmatpush3.msra.mxu1 %v12919_v10  ;;  %9274 = vmatprep.subr.mxu0 %v9839_v1 }
 0x8fa   :  { %9171 = vmatprep.subr.mxu1 %v9839_v1  ;;  %9275 = vmatpush3.msra.mxu0 %v12818_v50 }
 0x8fb   :  { %9172 = vmatpush3.msra.mxu1 %v12925_v48  ;;  %9276 = vmatprep.subr.mxu0 %v9839_v1 }
 0x8fc   :  { %9173 = vmatprep.subr.mxu1 %v9839_v1  ;;  %9277 = vmatpush3.msra.mxu0 %v12824_v29 }
 0x8fd   :  { %9174 = vmatpush3.msra.mxu1 %v12931_v23  ;;  %9278 = vmatprep.subr.mxu0 %v9839_v1 }
 0x8fe   :  { %v5003_v37 = vpop.f32.mrf.mxu1  ;;  %9175 = vmatprep.subr.mxu1 %v9839_v1  ;;  %9279 = vmatpush3.msra.mxu0 %v12830_v28 }
 0x8ff   :  { %v5074_v21 = vadd.f32 %v5073_v57, %v5003_v37  ;;  %9176 = vmatpush3.msra.mxu1 %v12937_v32  ;;  %9280 = vmatprep.subr.mxu0 %v9839_v1 }
 0x900   :  { %v9055_v18 = vpop.f32.mrf.mxu1  ;;  %9177 = vmatprep.subr.mxu1 %v9839_v1  ;;  %9281 = vmatpush3.msra.mxu0 %v12842_v49 }
 0x901   :  { %v5077_v34 = vadd.f32 %v13230_v44, %v5074_v21  ;;  %9178 = vmatpush3.msra.mxu1 %v12944_v38  ;;  %9282 = vmatprep.subr.mxu0 %v9839_v1 }
 0x902   :  { %9179 = vmatprep.subr.mxu1 %v9839_v1  ;;  %9283 = vmatpush3.msra.mxu0 %v12848_v2 }
 0x903   :  { %9380 = vtanh.f32 %v5077_v34  ;;  %9180 = vmatpush3.msra.mxu1 %v12950_v20  ;;  %9284 = vmatprep.subr.mxu0 %v9839_v1 }
 0x904   :  { %9181 = vmatprep.subr.mxu1 %v9839_v1  ;;  %9285 = vmatpush3.msra.mxu0 %v12854_v51 }
 0x905   :  { %9182 = vmatpush3.msra.mxu1 %v12956_v63  ;;  %9286 = vmatprep.subr.mxu0 %v9839_v1 }
 0x906   :  { %9183 = vmatprep.subr.mxu1 %v9839_v1  ;;  %9287 = vmatpush3.msra.mxu0 %v12860_v43 }
 0x907   :  { %9184 = vmatpush3.msra.mxu1 %v12962_v3  ;;  %9288 = vmatprep.subr.mxu0 %v9839_v1 }
 0x908   :  { %9185 = vmatprep.subr.mxu1 %v9839_v1  ;;  %9289 = vmatpush3.msra.mxu0 %v13965_v19 }
 0x909   :  { %9186 = vmatpush3.msra.mxu1 %v12968_v13  ;;  %9290 = vmatprep.subr.mxu0 %v9839_v1 }
 0x90a   :  { %9187 = vmatprep.subr.mxu1 %v9839_v1  ;;  %9291 = vmatpush3.msra.mxu0 %v13966_v8 }
 0x90b   :  { %9188 = vmatpush3.msra.mxu1 %v12974_v15  ;;  %9292 = vmatprep.subr.mxu0 %v9839_v1 }
 0x90c   :  { %9189 = vmatprep.subr.mxu1 %v9839_v1  ;;  %9293 = vmatpush3.msra.mxu0 %v13967_v62 }
 0x90d   :  { %9190 = vmatpush3.msra.mxu1 %v12980_v42  ;;  %9294 = vmatprep.subr.mxu0 %v9839_v1 }
 0x90e   :  { %9191 = vmatprep.subr.mxu1 %v9839_v1  ;;  %9295 = vmatpush3.msra.mxu0 %v12886_v4 }
 0x90f   :  { %9192 = vmatpush3.msra.mxu1 %v12986_v55  ;;  %9296 = vmatprep.subr.mxu0 %v9839_v1 }
 0x910   :  { %v9381_v50 = vpop.eup %9380  ;;  %9297 = vmatpush3.msra.mxu0 %v12891_v22  ;;  %9298 = vmatprep.mubr.msk.f32.mxu0 %vm9840_vm0, %v9839_v1  ;;  %v9769_v22 = vld [vmem:[%s13454_s6 + $0x2] ss:$0 sm:$0xff] }
 0x911   :  { %9194 = vmatmul.mubr.f32.vlgmr.msra.gmra.mxu1 %v9381_v50  ;;  %9231 = vmatprep.subr.mxu1 %v9839_v1 }
 0x912   :  { %9232 = vmatpush3.msra.mxu1 %v12894_v14  ;;  %9263 = vmatprep.mubr.msk.f32.mxu1 %vm9840_vm0, %v9839_v1 }
 0x913   :  { %9233 = vmatprep.subr.mxu1 %v9839_v1 }
 0x914   :  { %9234 = vmatpush3.msra.mxu1 %v12900_v7 }
 0x915   :  { %9235 = vmatprep.subr.mxu1 %v9839_v1 }
 0x916   :  { %9236 = vmatpush3.msra.mxu1 %v12907_v26 }
 0x917   :  { %9237 = vmatprep.subr.mxu1 %v9839_v1 }
 0x918   :  { %9238 = vmatpush3.msra.mxu1 %v12913_v31 }
 0x919   :  { %9239 = vmatprep.subr.mxu1 %v9839_v1 }
 0x91a   :  { %9240 = vmatpush3.msra.mxu1 %v12919_v10 }
 0x91b   :  { %9241 = vmatprep.subr.mxu1 %v9839_v1 }
 0x91c   :  { %9242 = vmatpush3.msra.mxu1 %v12925_v48 }
 0x91d   :  { %9243 = vmatprep.subr.mxu1 %v9839_v1 }
 0x91e   :  { %9244 = vmatpush3.msra.mxu1 %v12931_v23 }
 0x91f   :  { %9245 = vmatprep.subr.mxu1 %v9839_v1 }
 0x920   :  { %9246 = vmatpush3.msra.mxu1 %v12937_v32 }
 0x921   :  { %9247 = vmatprep.subr.mxu1 %v9839_v1 }
 0x922   :  { %9248 = vmatpush3.msra.mxu1 %v12944_v38 }
 0x923   :  { %9249 = vmatprep.subr.mxu1 %v9839_v1 }
 0x924   :  { %9250 = vmatpush3.msra.mxu1 %v12950_v20 }
 0x925   :  { %9251 = vmatprep.subr.mxu1 %v9839_v1 }
 0x926   :  { %9252 = vmatpush3.msra.mxu1 %v12956_v63 }
 0x927   :  { %9253 = vmatprep.subr.mxu1 %v9839_v1 }
 0x928   :  { %9254 = vmatpush3.msra.mxu1 %v12962_v3 }
 0x929   :  { %9255 = vmatprep.subr.mxu1 %v9839_v1 }
 0x92a   :  { %9256 = vmatpush3.msra.mxu1 %v12968_v13  ;;  %v5544_v13 = vld [vmem:[%s13455_s7] ss:$0 sm:$0xff] }
 0x92b   :  { %9257 = vmatprep.subr.mxu1 %v9839_v1 }
 0x92c   :  { %9258 = vmatpush3.msra.mxu1 %v12974_v15 }
 0x92d   :  { %9259 = vmatprep.subr.mxu1 %v9839_v1 }
 0x92e   :  { %9260 = vmatpush3.msra.mxu1 %v12980_v42 }
 0x92f   :  { %9261 = vmatprep.subr.mxu1 %v9839_v1 }
 0x930   :  { %9262 = vmatpush3.msra.mxu1 %v12986_v55 }
 0x98e   :  { %v5215_v29 = vpop.f32.mrf.mxu0 }
 0x990   :  { %v9160_v28 = vpop.f32.mrf.mxu0 }
 0x9b0   :  { %v5145_v49 = vpop.f32.mrf.mxu1  ;;  %v5357_v2 = vpop.f32.mrf.mxu0 }
 0x9b1   :  { %v5216_v51 = vadd.f32 %v5215_v29, %v5145_v49 }
 0x9b2   :  { %v9125_v43 = vpop.f32.mrf.mxu1  ;;  %v9230_v4 = vpop.f32.mrf.mxu0 }
 0x9b3   :  { %v5219_v14 = vadd.f32 %v9769_v22, %v5216_v51 }
 0x9b5   :  { %9382 = vtanh.f32 %v5219_v14 }
 0x9c2   :  { %v9383_v7 = vpop.eup %9382 }
 0x9c3   :  { %9299 = vmatmul.mubr.f32.vlgmr.msra.gmra.mxu0 %v9383_v7 }
 0x9d1   :  { %v5287_v26 = vpop.f32.mrf.mxu1 }
 0x9d2   :  { %v5358_v31 = vadd.f32 %v5357_v2, %v5287_v26 }
 0x9d3   :  { %v9195_v1 = vpop.f32.mrf.mxu1 }
 0x9d4   :  { %v5361_v10 = vadd.f32 %v13230_v44, %v5358_v31 }
 0x9d6   :  { %9384 = vtanh.f32 %v5361_v10 }
 0x9e3   :  { %v9385_v48 = vpop.eup %9384 }
 0x9e4   :  { %9264 = vmatmul.mubr.f32.vlgmr.msra.gmra.mxu1 %v9385_v48 }
 0xa83   :  { %v5499_v23 = vpop.f32.mrf.mxu0 }
 0xa85   :  { %v9300_v32 = vpop.f32.mrf.mxu0 }
 0xaa4   :  { %v5429_v38 = vpop.f32.mrf.mxu1 }
 0xaa5   :  { %v5500_v20 = vadd.f32 %v5499_v23, %v5429_v38 }
 0xaa6   :  { %v9265_v63 = vpop.f32.mrf.mxu1 }
 0xaa7   :  { %v5503_v3 = vadd.f32 %v13230_v44, %v5500_v20 }
 0xaa9   :  { %9386 = vtanh.f32 %v5503_v3 }
 0xab6   :  { %v9387_v15 = vpop.eup %9386 }
 0xab7   :  { %v5512_v42 = vmul.f32 %v9387_v15, %v5544_v13 }
 0xab9   :  { %v5514_v55 = vsel %vm5513_vm2, %v5512_v42, 0.0 }
 0xaba   :  { %5515 = vadd.xlane.f32.xlu0 %v5514_v55 }
 0xb43   :  { %v5516_v39 = vpop.xlane.xlu0 %5515 }
 0xb44   :  { %v5524_v27 = vadd.f32 %v5545_v12, %v5516_v39 }
 0xb46   :  { %v5525_v33 = vmax.f32 %v5524_v27, 0.0 }
 0xb48   :  { %5527 = vst.msk [vmem:[%s13457_s9] sm:$0x3] %vm5526_vm3, %v5525_v33 }
 0xb49   :  { %5532 = vsyncpa [#allocation4], 1 }
 0xb4a   :  { %5533 = vsyncpa [#allocation6], 1 }

</bundles_post_ra>
